<compile_context>
chip_gen: v5e
topology: v5e:2x2
jax: 0.10.0
libtpu: 0.0.40
codegen_flags: <defaults>
</compile_context>

<pallas_src>
import numpy as np
import jax
import jax.numpy as jnp
from jax import lax
from jax.experimental import pallas as pl
from jax.experimental.pallas import tpu as pltpu

_LANE = 128      # f32 lane width
_SUBLANE = 8     # f32 sublane width
_NEG = -1e9      # mask / padded-vocab bias (exp underflows to exactly 0)


def _round_up(x, m):
    return ((x + m - 1) // m) * m


def _vmem_specs(n):
    return [pl.BlockSpec(memory_space=pltpu.MemorySpace.VMEM) for _ in range(n)]


def _compiler_params(*arrays, extra_bytes=0):
    """Size the scoped VMEM limit from the actual resident footprint."""
    resident = sum(int(np.prod(a.shape)) * np.dtype(a.dtype).itemsize
                   for a in arrays) + int(extra_bytes)
    # Cap at 48 MiB: v7x only has 64 MiB VMEM per TensorCore, leave headroom.
    # TODO(synk): on v5e/v6e (128 MiB physical) raise toward ~100 MiB when a
    # realistic-size resident set warrants it.
    limit = int(min(max(2 * resident + (8 << 20), 32 << 20), 48 << 20))
    return pltpu.CompilerParams(vmem_limit_bytes=limit)


# ----------------------------------------------------------------------------
# GRU cell gate math (PyTorch gate order: r, z, n)
# ----------------------------------------------------------------------------
def _gru_from_gates(gi, gh, h, H):
    r = jax.nn.sigmoid(gi[:, :H] + gh[:, :H])
    z = jax.nn.sigmoid(gi[:, H:2 * H] + gh[:, H:2 * H])
    n = jnp.tanh(gi[:, 2 * H:3 * H] + r * gh[:, 2 * H:3 * H])
    return (1.0 - z) * n + z * h


# ----------------------------------------------------------------------------
# Fused encoder + decoder kernel.
#   tf_ref    : (T,) int32 SMEM   (1 -> feed ground-truth target next step)
#   x_ref     : (S*Bp, Hp)        embedded source, time-major (row = t*Bp+b)
#   tgtx_ref  : (T, Bp, Hp)       embedded targets (teacher-forced feedback)
#   x0_ref    : (Bp, Hp)          SOS-token embedding
#   mask_ref  : (Bp, SBpad)       0 on column t*Bp+b for row b, else -1e9
#   enc weights: ew_ih/ew_hh (Hp,3Hp), eb_ih/eb_hh (1,3Hp)
#   emb_ref   : (Vp, Hp)          target embedding table (greedy branch only)
#   dec weights: wxc (2Hp,3Hp) merged [x_emb;ctx], whh (Hp,3Hp),
#                bih/bhh (1,3Hp), wout (Hp,Vp), bout (1,Vp)
# outputs: logits (T,Bp,Vp), attention (T,Bp,SBpad)  (lane-dense)
# ----------------------------------------------------------------------------
def seq2seq_kernel(tf_ref, x_ref, tgtx_ref, x0_ref, mask_ref,
                   ew_ih_ref, ew_hh_ref, eb_ih_ref, eb_hh_ref,
                   emb_ref, wxc_ref, whh_ref, bih_ref, bhh_ref,
                   wout_ref, bout_ref,
                   logits_ref, attn_ref,
                   gi_scr, enc_scr, enc_t_scr, xc_scr, xemb_scr):
    T, Bp, Vp = logits_ref.shape
    SB, Hp = x_ref.shape
    S = SB // Bp

    # ------------------------------ encoder ------------------------------
    # Hoisted input-to-gates matmul for every source step: one big MXU matmul
    # instead of S tiny ones stuck behind the recurrence.
    gi_scr[...] = (jnp.dot(x_ref[...], ew_ih_ref[...],
                           preferred_element_type=jnp.float32) + eb_ih_ref[...])
    # Padded rows (>= S*Bp) must stay finite (zero) — they are masked in the
    # attention but still feed the ctx matmul with attention weight 0.
    enc_scr[...] = jnp.zeros(enc_scr.shape, jnp.float32)
    eb_hh = jnp.broadcast_to(eb_hh_ref[...], (Bp, 3 * Hp))

    def enc_step(t, h):
        row = pl.multiple_of(t * Bp, Bp)
        gi = gi_scr[pl.ds(row, Bp), :]
        gh = jnp.dot(h, ew_hh_ref[...], preferred_element_type=jnp.float32) + eb_hh
        h_new = _gru_from_gates(gi, gh, h, Hp)
        enc_scr[pl.ds(row, Bp), :] = h_new
        return h_new

    # TODO(synk): latch ew_hh in the MXU across steps (matmul_push_rhs).
    h_enc = lax.fori_loop(0, S, enc_step, jnp.zeros((Bp, Hp), jnp.float32),
                          unroll=True)

    # Transposed encoder outputs, computed ONCE, for the per-step scores matmul.
    enc_t_scr[...] = enc_scr[...].T

    # ------------------------------ decoder ------------------------------
    b_ih = jnp.broadcast_to(bih_ref[...], (Bp, 3 * Hp))
    b_hh = jnp.broadcast_to(bhh_ref[...], (Bp, 3 * Hp))
    b_out = jnp.broadcast_to(bout_ref[...], (Bp, Vp))
    attn_mask = mask_ref[...]                                   # (Bp, SBpad)
    vocab_iota = lax.broadcasted_iota(jnp.int32, (Bp, Vp), 1)

    xemb_scr[...] = x0_ref[...]                                 # SOS embedding

    def dec_step(i, h):
        x_emb = xemb_scr[...]

        # Cross-batch attention: two full-width 2-D MXU matmuls + hoisted
        # strided-diagonal additive mask (off-diagonal/padded columns -> -1e9
        # -> exp underflows to exactly 0, so ctx picks only own-batch rows).
        scores = (jnp.dot(h, enc_t_scr[...], preferred_element_type=jnp.float32)
                  + attn_mask)
        m = jnp.max(scores, axis=-1, keepdims=True)
        e = jnp.exp(scores - m)
        attn = e * pl.reciprocal(jnp.sum(e, axis=-1, keepdims=True), approx=True)
        attn_ref[i] = attn                      # lane-dense 128-wide store
        ctx = jnp.dot(attn, enc_scr[...], preferred_element_type=jnp.float32)

        # GRU cell on [x_emb ; ctx] via persistent scratch (no lane concat),
        # single merged input matmul.
        xc_scr[:, :Hp] = x_emb
        xc_scr[:, Hp:] = ctx
        gi = jnp.dot(xc_scr[...], wxc_ref[...],
                     preferred_element_type=jnp.float32) + b_ih
        gh = jnp.dot(h, whh_ref[...], preferred_element_type=jnp.float32) + b_hh
        h_new = _gru_from_gates(gi, gh, h, Hp)

        # vocab projection
        logits = jnp.dot(h_new, wout_ref[...],
                         preferred_element_type=jnp.float32) + b_out
        logits_ref[i] = logits

        # Feedback embedding for the next step.  The argmax + one-hot
        # embedding matmul only runs on non-teacher-forced steps.
        @pl.when(tf_ref[i] > 0)
        def _():
            xemb_scr[...] = tgtx_ref[i]

        @pl.when(tf_ref[i] == 0)
        def _():
            lmax = jnp.max(logits, axis=-1, keepdims=True)
            best = jnp.min(jnp.where(logits >= lmax, vocab_iota, Vp),
                           axis=-1, keepdims=True).astype(jnp.int32)
            onehot = (vocab_iota == best).astype(jnp.float32)
            # TODO(synk): at realistic vocab sizes replace the one-hot MXU
            # gather with a per-row dynamic gather from emb_ref.
            xemb_scr[...] = jnp.dot(onehot, emb_ref[...],
                                    preferred_element_type=jnp.float32)

        return h_new

    lax.fori_loop(0, T, dec_step, h_enc, unroll=True)


# ----------------------------------------------------------------------------
# pallas_call wrapper (single fused call)
# ----------------------------------------------------------------------------
def run_seq2seq(tf, x_flat, tgt_xemb, x0, attn_mask, padded):
    T, Bp, Hp = tgt_xemb.shape
    SB = x_flat.shape[0]
    SBpad = attn_mask.shape[1]
    Vp = padded["w_out"].shape[1]
    args = (tf, x_flat, tgt_xemb, x0, attn_mask,
            padded["enc_w_ih"], padded["enc_w_hh"],
            padded["enc_b_ih"], padded["enc_b_hh"],
            padded["tgt_emb"],
            padded["dec_w_xc"], padded["dec_w_hh"],
            padded["dec_b_ih"], padded["dec_b_hh"],
            padded["w_out"], padded["b_out"])
    out_bytes = T * Bp * (Vp + SBpad) * 4
    scr_bytes = (SB * 3 * Hp + 2 * SBpad * Hp + Bp * 3 * Hp) * 4
    return pl.pallas_call(
        seq2seq_kernel,
        out_shape=(jax.ShapeDtypeStruct((T, Bp, Vp), jnp.float32),
                   jax.ShapeDtypeStruct((T, Bp, SBpad), jnp.float32)),
        in_specs=[pl.BlockSpec(memory_space=pltpu.MemorySpace.SMEM)]
                 + _vmem_specs(15),
        out_specs=tuple(_vmem_specs(2)),
        scratch_shapes=[
            pltpu.VMEM((SB, 3 * Hp), jnp.float32),      # hoisted enc gates
            pltpu.VMEM((SBpad, Hp), jnp.float32),       # encoder outputs
            pltpu.VMEM((Hp, SBpad), jnp.float32),       # transposed enc outputs
            pltpu.VMEM((Bp, 2 * Hp), jnp.float32),      # [x_emb ; ctx]
            pltpu.VMEM((Bp, Hp), jnp.float32),          # feedback embedding
        ],
        compiler_params=_compiler_params(*args[1:],
                                         extra_bytes=out_bytes + scr_bytes),
    )(*args)


@jax.jit
def _forward_core(inputs_p, targets_p, tf, padded):
    Bp, S = inputs_p.shape
    T = targets_p.shape[1]
    Hp = padded["enc_w_hh"].shape[0]
    SBpad = _round_up(S * Bp, _LANE)

    # XLA-side gathers: source embeddings in time-major order (row = t*Bp+b),
    # teacher-forced target embeddings for all T steps, and the SOS embedding.
    x_flat = jnp.take(padded["src_emb"], inputs_p.T, axis=0).reshape(S * Bp, Hp)
    tgt_xemb = jnp.take(padded["tgt_emb"], targets_p.T, axis=0)     # (T,Bp,Hp)
    x0 = jnp.broadcast_to(padded["tgt_emb"][0:1, :], (Bp, Hp))

    # Strided-diagonal additive mask: column c of the cross-batch score matrix
    # belongs to batch row b iff c % Bp == b and c < S*Bp.
    col = jnp.arange(SBpad)[None, :]
    row = jnp.arange(Bp)[:, None]
    valid = (col < S * Bp) & ((col % Bp) == row)
    attn_mask = jnp.where(valid, 0.0, _NEG).astype(jnp.float32)

    return run_seq2seq(tf, x_flat, tgt_xemb, x0, attn_mask, padded)


def seq2seq_forward(inputs, targets, teacher_force_ratio, params, padded,
                    tf_mask=None):
    """Mirrors seq2seq.forward(inputs, targets, teacher_force_ratio)."""
    B, S = inputs.shape
    T = targets.shape[1]
    V = params["w_out"].shape[1]
    Bp = _round_up(B, _SUBLANE)

    if tf_mask is None:
        # one host-side coin per target step, like `np.random.rand()` in the
        # PyTorch loop (True -> feed the ground-truth target)
        tf_mask = np.random.rand(T) <= teacher_force_ratio
    tf = jnp.asarray(np.asarray(tf_mask), jnp.int32)

    inputs_p = jnp.zeros((Bp, S), jnp.int32).at[:B].set(inputs.astype(jnp.int32))
    targets_p = jnp.zeros((Bp, T), jnp.int32).at[:B].set(targets.astype(jnp.int32))

    logits_all, attn_all = _forward_core(inputs_p, targets_p, tf, padded)

    output = jnp.transpose(logits_all[:, :B, :V], (1, 0, 2))        # (B, T, V)
    # Extract each batch row's own attention from the strided-diagonal layout:
    # weight over source position s for batch b sits at column s*Bp + b.
    attn_diag = jnp.diagonal(attn_all[:, :, :S * Bp].reshape(T, Bp, S, Bp),
                             axis1=1, axis2=3)                      # (T, S, Bp)
    attn_bt = jnp.transpose(attn_diag, (0, 2, 1))                   # (T, Bp, S)
    attention = [attn_bt[i, :B, :] for i in range(T)]
    return output, attention


# ----------------------------------------------------------------------------
# Parameters (unpadded, PyTorch-like) and their padded/merged kernel versions
# ----------------------------------------------------------------------------
def make_params(key, src_vocab, tgt_vocab, H):
    ks = jax.random.split(key, 12)
    s = 0.1
    return {
        "src_emb":    s * jax.random.normal(ks[0], (src_vocab, H), jnp.float32),
        "tgt_emb":    s * jax.random.normal(ks[1], (tgt_vocab, H), jnp.float32),
        "enc_w_ih":   s * jax.random.normal(ks[2], (H, 3 * H), jnp.float32),
        "enc_w_hh":   s * jax.random.normal(ks[3], (H, 3 * H), jnp.float32),
        "enc_b_ih":   s * jax.random.normal(ks[4], (1, 3 * H), jnp.float32),
        "enc_b_hh":   s * jax.random.normal(ks[5], (1, 3 * H), jnp.float32),
        "dec_w_ih_x": s * jax.random.normal(ks[6], (H, 3 * H), jnp.float32),
        "dec_w_ih_c": s * jax.random.normal(ks[7], (H, 3 * H), jnp.float32),
        "dec_w_hh":   s * jax.random.normal(ks[8], (H, 3 * H), jnp.float32),
        "dec_b_ih":   s * jax.random.normal(ks[9], (1, 3 * H), jnp.float32),
        "dec_b_hh":   s * jax.random.normal(ks[10], (1, 3 * H), jnp.float32),
        "w_out":      s * jax.random.normal(ks[11], (H, tgt_vocab), jnp.float32),
        "b_out":      jnp.zeros((1, tgt_vocab), jnp.float32),
    }


def pad_params(params):
    """Zero-pad to (8,128)-friendly shapes; gate blocks land at Hp boundaries.

    Padded hidden columns stay exactly zero through the GRU recurrence
    (weights/biases zero there -> r=z=0.5, n=0, h_pad stays 0), and padded
    vocab columns get a -1e9 bias so they never win the in-kernel argmax.
    """
    H = params["enc_w_hh"].shape[0]
    V = params["w_out"].shape[1]
    Hp = _round_up(H, _LANE)
    Vp = _round_up(V, _LANE)

    def pad_gates_w(w, n_in, n_in_pad):
        out = jnp.zeros((n_in_pad, 3 * Hp), jnp.float32)
        for g in range(3):
            out = out.at[:n_in, g * Hp:g * Hp + H].set(w[:, g * H:(g + 1) * H])
        return out

    def pad_gates_b(b):
        out = jnp.zeros((1, 3 * Hp), jnp.float32)
        for g in range(3):
            out = out.at[:, g * Hp:g * Hp + H].set(b[:, g * H:(g + 1) * H])
        return out

    # merged decoder input weight for concatenated [x_emb(pad Hp) ; ctx(pad Hp)]
    w_xc = jnp.zeros((2 * Hp, 3 * Hp), jnp.float32)
    for g in range(3):
        w_xc = w_xc.at[:H, g * Hp:g * Hp + H].set(
            params["dec_w_ih_x"][:, g * H:(g + 1) * H])
        w_xc = w_xc.at[Hp:Hp + H, g * Hp:g * Hp + H].set(
            params["dec_w_ih_c"][:, g * H:(g + 1) * H])

    src_vocab = params["src_emb"].shape[0]
    return {
        "src_emb":  jnp.zeros((src_vocab, Hp), jnp.float32).at[:, :H].set(params["src_emb"]),
        "tgt_emb":  jnp.zeros((Vp, Hp), jnp.float32).at[:V, :H].set(params["tgt_emb"]),
        "enc_w_ih": pad_gates_w(params["enc_w_ih"], H, Hp),
        "enc_w_hh": pad_gates_w(params["enc_w_hh"], H, Hp),
        "enc_b_ih": pad_gates_b(params["enc_b_ih"]),
        "enc_b_hh": pad_gates_b(params["enc_b_hh"]),
        "dec_w_xc": w_xc,
        "dec_w_hh": pad_gates_w(params["dec_w_hh"], H, Hp),
        "dec_b_ih": pad_gates_b(params["dec_b_ih"]),
        "dec_b_hh": pad_gates_b(params["dec_b_hh"]),
        "w_out":    jnp.zeros((Hp, Vp), jnp.float32).at[:H, :V].set(params["w_out"]),
        "b_out":    jnp.full((1, Vp), _NEG, jnp.float32).at[:, :V].set(params["b_out"]),
    }


# ----------------------------------------------------------------------------
# Pure-JAX reference (unpadded) for validation
# ----------------------------------------------------------------------------
def reference_forward(inputs, targets, tf_mask, params):
    B, S = inputs.shape
    T = targets.shape[1]
    H = params["enc_w_hh"].shape[0]

    src = params["src_emb"][inputs]                       # (B, S, H)
    h = jnp.zeros((B, H), jnp.float32)
    enc_steps = []
    for t in range(S):
        gi = src[:, t, :] @ params["enc_w_ih"] + params["enc_b_ih"]
        gh = h @ params["enc_w_hh"] + params["enc_b_hh"]
        h = _gru_from_gates(gi, gh, h, H)
        enc_steps.append(h)
    enc = jnp.stack(enc_steps, axis=1)                    # (B, S, H)

    dec_h = h
    ids = jnp.zeros((B,), jnp.int32)
    outs, attns = [], []
    for i in range(T):
        x = params["tgt_emb"][ids]
        scores = jnp.einsum('bh,bsh->bs', dec_h, enc)
        attn = jax.nn.softmax(scores, axis=-1)
        ctx = jnp.einsum('bs,bsh->bh', attn, enc)
        gi = (x @ params["dec_w_ih_x"] + ctx @ params["dec_w_ih_c"]
              + params["dec_b_ih"])
        gh = dec_h @ params["dec_w_hh"] + params["dec_b_hh"]
        dec_h = _gru_from_gates(gi, gh, dec_h, H)
        logits = dec_h @ params["w_out"] + params["b_out"]
        outs.append(logits)
        attns.append(attn)
        best = jnp.argmax(logits, axis=-1).astype(jnp.int32)
        ids = targets[:, i].astype(jnp.int32) if bool(tf_mask[i]) else best
    return jnp.stack(outs, axis=1), attns


if __name__ == "__main__":
    key = jax.random.PRNGKey(0)
    k_in, k_tgt, k_par = jax.random.split(key, 3)

    B, S, T, H = 2, 8, 8, 32
    SRC_VOCAB, TGT_VOCAB = 16, 16          # TGT_VOCAB plays the role of len(mal_index2word)

    inputs = jax.random.randint(k_in, (B, S), 0, SRC_VOCAB, dtype=jnp.int32)
    targets = jax.random.randint(k_tgt, (B, T), 0, TGT_VOCAB, dtype=jnp.int32)
    params = make_params(k_par, SRC_VOCAB, TGT_VOCAB, H)
    padded = pad_params(params)

    # --- validation vs pure-JAX reference (fully teacher-forced so the
    #     feedback path is deterministic and comparable modulo fp noise) ---
    tf_all = np.ones(T, dtype=bool)
    out_k, attn_k = seq2seq_forward(inputs, targets, 1.0, params, padded,
                                    tf_mask=tf_all)
    jax.block_until_ready(out_k)
    out_r, attn_r = reference_forward(inputs, targets, tf_all, params)
    np.testing.assert_allclose(np.asarray(out_k), np.asarray(out_r),
                               rtol=5e-2, atol=5e-3)
    np.testing.assert_allclose(np.asarray(attn_k[0]), np.asarray(attn_r[0]),
                               rtol=5e-2, atol=5e-3)
    np.testing.assert_allclose(np.asarray(attn_k[-1]), np.asarray(attn_r[-1]),
                               rtol=5e-2, atol=5e-3)

    # --- mixed greedy / teacher-forced run, as in the PyTorch module ---
    np.random.seed(0)                      # deterministic per-step coin flips
    output, attention = seq2seq_forward(inputs, targets, 0.5, params, padded)
    jax.block_until_ready(output)
    jax.block_until_ready(attention)

    assert output.shape == (B, T, TGT_VOCAB)
    assert len(attention) == T and attention[0].shape == (B, S)
    assert bool(jnp.all(jnp.isfinite(output)))
    for w in attention:   # attention weights must sum to 1 over source positions
        assert bool(jnp.allclose(jnp.sum(w, axis=-1), 1.0, atol=5e-3))
    print("KERNEL_OK")
</pallas_src>

<mosaic_0001>
module attributes {stable_mosaic.version = 11 : i64} {
  func.func @seq2seq_kernel(%arg0: memref<8xi32, #tpu.memory_space<smem>>, %arg1: memref<64x128xf32, #tpu.memory_space<vmem>>, %arg2: memref<8x8x128xf32, #tpu.memory_space<vmem>>, %arg3: memref<8x128xf32, #tpu.memory_space<vmem>>, %arg4: memref<8x128xf32, #tpu.memory_space<vmem>>, %arg5: memref<128x384xf32, #tpu.memory_space<vmem>>, %arg6: memref<128x384xf32, #tpu.memory_space<vmem>>, %arg7: memref<1x384xf32, #tpu.memory_space<vmem>>, %arg8: memref<1x384xf32, #tpu.memory_space<vmem>>, %arg9: memref<128x128xf32, #tpu.memory_space<vmem>>, %arg10: memref<256x384xf32, #tpu.memory_space<vmem>>, %arg11: memref<128x384xf32, #tpu.memory_space<vmem>>, %arg12: memref<1x384xf32, #tpu.memory_space<vmem>>, %arg13: memref<1x384xf32, #tpu.memory_space<vmem>>, %arg14: memref<128x128xf32, #tpu.memory_space<vmem>>, %arg15: memref<1x128xf32, #tpu.memory_space<vmem>>, %arg16: memref<8x8x128xf32, #tpu.memory_space<vmem>>, %arg17: memref<8x8x128xf32, #tpu.memory_space<vmem>>, %arg18: memref<64x384xf32, #tpu.memory_space<vmem>>, %arg19: memref<128x128xf32, #tpu.memory_space<vmem>>, %arg20: memref<128x128xf32, #tpu.memory_space<vmem>>, %arg21: memref<8x256xf32, #tpu.memory_space<vmem>>, %arg22: memref<8x128xf32, #tpu.memory_space<vmem>>) attributes {dimension_semantics = [], scalar_prefetch = 0 : i64, scratch_operands = 5 : i64, tpu.core_type = #tpu.core_type<tc>} {
    %c0 = arith.constant 0 : index
    %c0_0 = arith.constant 0 : index
    %0 = vector.load %arg1[%c0, %c0_0] : memref<64x128xf32, #tpu.memory_space<vmem>>, vector<64x128xf32>
    %c0_1 = arith.constant 0 : index
    %c0_2 = arith.constant 0 : index
    %1 = vector.load %arg5[%c0_1, %c0_2] : memref<128x384xf32, #tpu.memory_space<vmem>>, vector<128x384xf32>
    %cst = arith.constant dense<0.000000e+00> : vector<64x384xf32>
    %2 = tpu.matmul %0, %1, %cst {dimension_numbers = #tpu.dot_dimension_numbers<[1], [0], [0], [1], [0, 0, 1, 1], [], []>} : vector<64x128xf32>, vector<128x384xf32>, vector<64x384xf32> -> vector<64x384xf32>
    %c0_3 = arith.constant 0 : index
    %c0_4 = arith.constant 0 : index
    %3 = vector.load %arg7[%c0_3, %c0_4] : memref<1x384xf32, #tpu.memory_space<vmem>>, vector<1x384xf32>
    %4 = vector.broadcast %3 : vector<1x384xf32> to vector<64x384xf32>
    %5 = arith.addf %2, %4 : vector<64x384xf32>
    %c0_5 = arith.constant 0 : index
    %c0_6 = arith.constant 0 : index
    %6 = vector.load %arg18[%c0_5, %c0_6] : memref<64x384xf32, #tpu.memory_space<vmem>>, vector<64x384xf32>
    tpu.vector_store %arg18[%c0_5, %c0_6], %5 {strides = array<i32>} : memref<64x384xf32, #tpu.memory_space<vmem>>, vector<64x384xf32>,
    %cst_7 = arith.constant 0.000000e+00 : f32
    %7 = vector.broadcast %cst_7 : f32 to vector<128x128xf32>
    %c0_8 = arith.constant 0 : index
    %c0_9 = arith.constant 0 : index
    %8 = vector.load %arg19[%c0_8, %c0_9] : memref<128x128xf32, #tpu.memory_space<vmem>>, vector<128x128xf32>
    tpu.vector_store %arg19[%c0_8, %c0_9], %7 {strides = array<i32>} : memref<128x128xf32, #tpu.memory_space<vmem>>, vector<128x128xf32>,
    %c0_10 = arith.constant 0 : index
    %c0_11 = arith.constant 0 : index
    %9 = vector.load %arg8[%c0_10, %c0_11] : memref<1x384xf32, #tpu.memory_space<vmem>>, vector<1x384xf32>
    %10 = vector.shape_cast %9 : vector<1x384xf32> to vector<1x384xf32>
    %11 = vector.broadcast %10 : vector<1x384xf32> to vector<8x384xf32>
    %cst_12 = arith.constant 0.000000e+00 : f32
    %12 = vector.broadcast %cst_12 : f32 to vector<8x128xf32>
    %c0_i32 = arith.constant 0 : i32
    %c8_i32 = arith.constant 8 : i32
    %13 = arith.muli %c0_i32, %c8_i32 : i32
    %14 = tpu.assume_multiple %13, 8 : i32
    %15 = arith.index_cast %14 : i32 to index
    %c0_13 = arith.constant 0 : index
    %16 = vector.load %arg18[%15, %c0_13] : memref<64x384xf32, #tpu.memory_space<vmem>>, vector<8x384xf32>
    %c0_14 = arith.constant 0 : index
    %c0_15 = arith.constant 0 : index
    %17 = vector.load %arg6[%c0_14, %c0_15] : memref<128x384xf32, #tpu.memory_space<vmem>>, vector<128x384xf32>
    %cst_16 = arith.constant dense<0.000000e+00> : vector<8x384xf32>
    %18 = tpu.matmul %12, %17, %cst_16 {dimension_numbers = #tpu.dot_dimension_numbers<[1], [0], [0], [1], [0, 0, 1, 1], [], []>} : vector<8x128xf32>, vector<128x384xf32>, vector<8x384xf32> -> vector<8x384xf32>
    %19 = arith.addf %18, %11 : vector<8x384xf32>
    %20 = vector.extract_strided_slice %16 {offsets = [0, 0], sizes = [8, 128], strides = [1, 1]} : vector<8x384xf32> to vector<8x128xf32>
    %21 = vector.extract_strided_slice %19 {offsets = [0, 0], sizes = [8, 128], strides = [1, 1]} : vector<8x384xf32> to vector<8x128xf32>
    %22 = arith.addf %20, %21 : vector<8x128xf32>
    %23 = arith.negf %22 : vector<8x128xf32>
    %24 = math.exp %23 : vector<8x128xf32>
    %cst_17 = arith.constant 1.000000e+00 : f32
    %25 = vector.broadcast %cst_17 : f32 to vector<8x128xf32>
    %26 = arith.addf %25, %24 : vector<8x128xf32>
    %27 = arith.divf %25, %26 : vector<8x128xf32>
    %28 = vector.extract_strided_slice %16 {offsets = [0, 128], sizes = [8, 128], strides = [1, 1]} : vector<8x384xf32> to vector<8x128xf32>
    %29 = vector.extract_strided_slice %19 {offsets = [0, 128], sizes = [8, 128], strides = [1, 1]} : vector<8x384xf32> to vector<8x128xf32>
    %30 = arith.addf %28, %29 : vector<8x128xf32>
    %31 = arith.negf %30 : vector<8x128xf32>
    %32 = math.exp %31 : vector<8x128xf32>
    %cst_18 = arith.constant 1.000000e+00 : f32
    %33 = vector.broadcast %cst_18 : f32 to vector<8x128xf32>
    %34 = arith.addf %33, %32 : vector<8x128xf32>
    %35 = arith.divf %33, %34 : vector<8x128xf32>
    %36 = vector.extract_strided_slice %16 {offsets = [0, 256], sizes = [8, 128], strides = [1, 1]} : vector<8x384xf32> to vector<8x128xf32>
    %37 = vector.extract_strided_slice %19 {offsets = [0, 256], sizes = [8, 128], strides = [1, 1]} : vector<8x384xf32> to vector<8x128xf32>
    %38 = arith.mulf %27, %37 : vector<8x128xf32>
    %39 = arith.addf %36, %38 : vector<8x128xf32>
    %40 = math.tanh %39 : vector<8x128xf32>
    %cst_19 = arith.constant 1.000000e+00 : f32
    %41 = vector.broadcast %cst_19 : f32 to vector<8x128xf32>
    %42 = arith.subf %41, %35 : vector<8x128xf32>
    %43 = arith.mulf %42, %40 : vector<8x128xf32>
    %44 = arith.mulf %35, %12 : vector<8x128xf32>
    %45 = arith.addf %43, %44 : vector<8x128xf32>
    %46 = arith.index_cast %14 : i32 to index
    %c0_20 = arith.constant 0 : index
    %47 = vector.load %arg19[%46, %c0_20] : memref<128x128xf32, #tpu.memory_space<vmem>>, vector<8x128xf32>
    tpu.vector_store %arg19[%46, %c0_20], %45 {strides = array<i32>} : memref<128x128xf32, #tpu.memory_space<vmem>>, vector<8x128xf32>,
    %c1_i32 = arith.constant 1 : i32
    %c8_i32_21 = arith.constant 8 : i32
    %48 = arith.muli %c1_i32, %c8_i32_21 : i32
    %49 = tpu.assume_multiple %48, 8 : i32
    %50 = arith.index_cast %49 : i32 to index
    %c0_22 = arith.constant 0 : index
    %51 = vector.load %arg18[%50, %c0_22] : memref<64x384xf32, #tpu.memory_space<vmem>>, vector<8x384xf32>
    %c0_23 = arith.constant 0 : index
    %c0_24 = arith.constant 0 : index
    %52 = vector.load %arg6[%c0_23, %c0_24] : memref<128x384xf32, #tpu.memory_space<vmem>>, vector<128x384xf32>
    %cst_25 = arith.constant dense<0.000000e+00> : vector<8x384xf32>
    %53 = tpu.matmul %45, %52, %cst_25 {dimension_numbers = #tpu.dot_dimension_numbers<[1], [0], [0], [1], [0, 0, 1, 1], [], []>} : vector<8x128xf32>, vector<128x384xf32>, vector<8x384xf32> -> vector<8x384xf32>
    %54 = arith.addf %53, %11 : vector<8x384xf32>
    %55 = vector.extract_strided_slice %51 {offsets = [0, 0], sizes = [8, 128], strides = [1, 1]} : vector<8x384xf32> to vector<8x128xf32>
    %56 = vector.extract_strided_slice %54 {offsets = [0, 0], sizes = [8, 128], strides = [1, 1]} : vector<8x384xf32> to vector<8x128xf32>
    %57 = arith.addf %55, %56 : vector<8x128xf32>
    %58 = arith.negf %57 : vector<8x128xf32>
    %59 = math.exp %58 : vector<8x128xf32>
    %cst_26 = arith.constant 1.000000e+00 : f32
    %60 = vector.broadcast %cst_26 : f32 to vector<8x128xf32>
    %61 = arith.addf %60, %59 : vector<8x128xf32>
    %62 = arith.divf %60, %61 : vector<8x128xf32>
    %63 = vector.extract_strided_slice %51 {offsets = [0, 128], sizes = [8, 128], strides = [1, 1]} : vector<8x384xf32> to vector<8x128xf32>
    %64 = vector.extract_strided_slice %54 {offsets = [0, 128], sizes = [8, 128], strides = [1, 1]} : vector<8x384xf32> to vector<8x128xf32>
    %65 = arith.addf %63, %64 : vector<8x128xf32>
    %66 = arith.negf %65 : vector<8x128xf32>
    %67 = math.exp %66 : vector<8x128xf32>
    %cst_27 = arith.constant 1.000000e+00 : f32
    %68 = vector.broadcast %cst_27 : f32 to vector<8x128xf32>
    %69 = arith.addf %68, %67 : vector<8x128xf32>
    %70 = arith.divf %68, %69 : vector<8x128xf32>
    %71 = vector.extract_strided_slice %51 {offsets = [0, 256], sizes = [8, 128], strides = [1, 1]} : vector<8x384xf32> to vector<8x128xf32>
    %72 = vector.extract_strided_slice %54 {offsets = [0, 256], sizes = [8, 128], strides = [1, 1]} : vector<8x384xf32> to vector<8x128xf32>
    %73 = arith.mulf %62, %72 : vector<8x128xf32>
    %74 = arith.addf %71, %73 : vector<8x128xf32>
    %75 = math.tanh %74 : vector<8x128xf32>
    %cst_28 = arith.constant 1.000000e+00 : f32
    %76 = vector.broadcast %cst_28 : f32 to vector<8x128xf32>
    %77 = arith.subf %76, %70 : vector<8x128xf32>
    %78 = arith.mulf %77, %75 : vector<8x128xf32>
    %79 = arith.mulf %70, %45 : vector<8x128xf32>
    %80 = arith.addf %78, %79 : vector<8x128xf32>
    %81 = arith.index_cast %49 : i32 to index
    %c0_29 = arith.constant 0 : index
    %82 = vector.load %arg19[%81, %c0_29] : memref<128x128xf32, #tpu.memory_space<vmem>>, vector<8x128xf32>
    tpu.vector_store %arg19[%81, %c0_29], %80 {strides = array<i32>} : memref<128x128xf32, #tpu.memory_space<vmem>>, vector<8x128xf32>,
    %c2_i32 = arith.constant 2 : i32
    %c8_i32_30 = arith.constant 8 : i32
    %83 = arith.muli %c2_i32, %c8_i32_30 : i32
    %84 = tpu.assume_multiple %83, 8 : i32
    %85 = arith.index_cast %84 : i32 to index
    %c0_31 = arith.constant 0 : index
    %86 = vector.load %arg18[%85, %c0_31] : memref<64x384xf32, #tpu.memory_space<vmem>>, vector<8x384xf32>
    %c0_32 = arith.constant 0 : index
    %c0_33 = arith.constant 0 : index
    %87 = vector.load %arg6[%c0_32, %c0_33] : memref<128x384xf32, #tpu.memory_space<vmem>>, vector<128x384xf32>
    %cst_34 = arith.constant dense<0.000000e+00> : vector<8x384xf32>
    %88 = tpu.matmul %80, %87, %cst_34 {dimension_numbers = #tpu.dot_dimension_numbers<[1], [0], [0], [1], [0, 0, 1, 1], [], []>} : vector<8x128xf32>, vector<128x384xf32>, vector<8x384xf32> -> vector<8x384xf32>
    %89 = arith.addf %88, %11 : vector<8x384xf32>
    %90 = vector.extract_strided_slice %86 {offsets = [0, 0], sizes = [8, 128], strides = [1, 1]} : vector<8x384xf32> to vector<8x128xf32>
    %91 = vector.extract_strided_slice %89 {offsets = [0, 0], sizes = [8, 128], strides = [1, 1]} : vector<8x384xf32> to vector<8x128xf32>
    %92 = arith.addf %90, %91 : vector<8x128xf32>
    %93 = arith.negf %92 : vector<8x128xf32>
    %94 = math.exp %93 : vector<8x128xf32>
    %cst_35 = arith.constant 1.000000e+00 : f32
    %95 = vector.broadcast %cst_35 : f32 to vector<8x128xf32>
    %96 = arith.addf %95, %94 : vector<8x128xf32>
    %97 = arith.divf %95, %96 : vector<8x128xf32>
    %98 = vector.extract_strided_slice %86 {offsets = [0, 128], sizes = [8, 128], strides = [1, 1]} : vector<8x384xf32> to vector<8x128xf32>
    %99 = vector.extract_strided_slice %89 {offsets = [0, 128], sizes = [8, 128], strides = [1, 1]} : vector<8x384xf32> to vector<8x128xf32>
    %100 = arith.addf %98, %99 : vector<8x128xf32>
    %101 = arith.negf %100 : vector<8x128xf32>
    %102 = math.exp %101 : vector<8x128xf32>
    %cst_36 = arith.constant 1.000000e+00 : f32
    %103 = vector.broadcast %cst_36 : f32 to vector<8x128xf32>
    %104 = arith.addf %103, %102 : vector<8x128xf32>
    %105 = arith.divf %103, %104 : vector<8x128xf32>
    %106 = vector.extract_strided_slice %86 {offsets = [0, 256], sizes = [8, 128], strides = [1, 1]} : vector<8x384xf32> to vector<8x128xf32>
    %107 = vector.extract_strided_slice %89 {offsets = [0, 256], sizes = [8, 128], strides = [1, 1]} : vector<8x384xf32> to vector<8x128xf32>
    %108 = arith.mulf %97, %107 : vector<8x128xf32>
    %109 = arith.addf %106, %108 : vector<8x128xf32>
    %110 = math.tanh %109 : vector<8x128xf32>
    %cst_37 = arith.constant 1.000000e+00 : f32
    %111 = vector.broadcast %cst_37 : f32 to vector<8x128xf32>
    %112 = arith.subf %111, %105 : vector<8x128xf32>
    %113 = arith.mulf %112, %110 : vector<8x128xf32>
    %114 = arith.mulf %105, %80 : vector<8x128xf32>
    %115 = arith.addf %113, %114 : vector<8x128xf32>
    %116 = arith.index_cast %84 : i32 to index
    %c0_38 = arith.constant 0 : index
    %117 = vector.load %arg19[%116, %c0_38] : memref<128x128xf32, #tpu.memory_space<vmem>>, vector<8x128xf32>
    tpu.vector_store %arg19[%116, %c0_38], %115 {strides = array<i32>} : memref<128x128xf32, #tpu.memory_space<vmem>>, vector<8x128xf32>,
    %c3_i32 = arith.constant 3 : i32
    %c8_i32_39 = arith.constant 8 : i32
    %118 = arith.muli %c3_i32, %c8_i32_39 : i32
    %119 = tpu.assume_multiple %118, 8 : i32
    %120 = arith.index_cast %119 : i32 to index
    %c0_40 = arith.constant 0 : index
    %121 = vector.load %arg18[%120, %c0_40] : memref<64x384xf32, #tpu.memory_space<vmem>>, vector<8x384xf32>
    %c0_41 = arith.constant 0 : index
    %c0_42 = arith.constant 0 : index
    %122 = vector.load %arg6[%c0_41, %c0_42] : memref<128x384xf32, #tpu.memory_space<vmem>>, vector<128x384xf32>
    %cst_43 = arith.constant dense<0.000000e+00> : vector<8x384xf32>
    %123 = tpu.matmul %115, %122, %cst_43 {dimension_numbers = #tpu.dot_dimension_numbers<[1], [0], [0], [1], [0, 0, 1, 1], [], []>} : vector<8x128xf32>, vector<128x384xf32>, vector<8x384xf32> -> vector<8x384xf32>
    %124 = arith.addf %123, %11 : vector<8x384xf32>
    %125 = vector.extract_strided_slice %121 {offsets = [0, 0], sizes = [8, 128], strides = [1, 1]} : vector<8x384xf32> to vector<8x128xf32>
    %126 = vector.extract_strided_slice %124 {offsets = [0, 0], sizes = [8, 128], strides = [1, 1]} : vector<8x384xf32> to vector<8x128xf32>
    %127 = arith.addf %125, %126 : vector<8x128xf32>
    %128 = arith.negf %127 : vector<8x128xf32>
    %129 = math.exp %128 : vector<8x128xf32>
    %cst_44 = arith.constant 1.000000e+00 : f32
    %130 = vector.broadcast %cst_44 : f32 to vector<8x128xf32>
    %131 = arith.addf %130, %129 : vector<8x128xf32>
    %132 = arith.divf %130, %131 : vector<8x128xf32>
    %133 = vector.extract_strided_slice %121 {offsets = [0, 128], sizes = [8, 128], strides = [1, 1]} : vector<8x384xf32> to vector<8x128xf32>
    %134 = vector.extract_strided_slice %124 {offsets = [0, 128], sizes = [8, 128], strides = [1, 1]} : vector<8x384xf32> to vector<8x128xf32>
    %135 = arith.addf %133, %134 : vector<8x128xf32>
    %136 = arith.negf %135 : vector<8x128xf32>
    %137 = math.exp %136 : vector<8x128xf32>
    %cst_45 = arith.constant 1.000000e+00 : f32
    %138 = vector.broadcast %cst_45 : f32 to vector<8x128xf32>
    %139 = arith.addf %138, %137 : vector<8x128xf32>
    %140 = arith.divf %138, %139 : vector<8x128xf32>
    %141 = vector.extract_strided_slice %121 {offsets = [0, 256], sizes = [8, 128], strides = [1, 1]} : vector<8x384xf32> to vector<8x128xf32>
    %142 = vector.extract_strided_slice %124 {offsets = [0, 256], sizes = [8, 128], strides = [1, 1]} : vector<8x384xf32> to vector<8x128xf32>
    %143 = arith.mulf %132, %142 : vector<8x128xf32>
    %144 = arith.addf %141, %143 : vector<8x128xf32>
    %145 = math.tanh %144 : vector<8x128xf32>
    %cst_46 = arith.constant 1.000000e+00 : f32
    %146 = vector.broadcast %cst_46 : f32 to vector<8x128xf32>
    %147 = arith.subf %146, %140 : vector<8x128xf32>
    %148 = arith.mulf %147, %145 : vector<8x128xf32>
    %149 = arith.mulf %140, %115 : vector<8x128xf32>
    %150 = arith.addf %148, %149 : vector<8x128xf32>
    %151 = arith.index_cast %119 : i32 to index
    %c0_47 = arith.constant 0 : index
    %152 = vector.load %arg19[%151, %c0_47] : memref<128x128xf32, #tpu.memory_space<vmem>>, vector<8x128xf32>
    tpu.vector_store %arg19[%151, %c0_47], %150 {strides = array<i32>} : memref<128x128xf32, #tpu.memory_space<vmem>>, vector<8x128xf32>,
    %c4_i32 = arith.constant 4 : i32
    %c8_i32_48 = arith.constant 8 : i32
    %153 = arith.muli %c4_i32, %c8_i32_48 : i32
    %154 = tpu.assume_multiple %153, 8 : i32
    %155 = arith.index_cast %154 : i32 to index
    %c0_49 = arith.constant 0 : index
    %156 = vector.load %arg18[%155, %c0_49] : memref<64x384xf32, #tpu.memory_space<vmem>>, vector<8x384xf32>
    %c0_50 = arith.constant 0 : index
    %c0_51 = arith.constant 0 : index
    %157 = vector.load %arg6[%c0_50, %c0_51] : memref<128x384xf32, #tpu.memory_space<vmem>>, vector<128x384xf32>
    %cst_52 = arith.constant dense<0.000000e+00> : vector<8x384xf32>
    %158 = tpu.matmul %150, %157, %cst_52 {dimension_numbers = #tpu.dot_dimension_numbers<[1], [0], [0], [1], [0, 0, 1, 1], [], []>} : vector<8x128xf32>, vector<128x384xf32>, vector<8x384xf32> -> vector<8x384xf32>
    %159 = arith.addf %158, %11 : vector<8x384xf32>
    %160 = vector.extract_strided_slice %156 {offsets = [0, 0], sizes = [8, 128], strides = [1, 1]} : vector<8x384xf32> to vector<8x128xf32>
    %161 = vector.extract_strided_slice %159 {offsets = [0, 0], sizes = [8, 128], strides = [1, 1]} : vector<8x384xf32> to vector<8x128xf32>
    %162 = arith.addf %160, %161 : vector<8x128xf32>
    %163 = arith.negf %162 : vector<8x128xf32>
    %164 = math.exp %163 : vector<8x128xf32>
    %cst_53 = arith.constant 1.000000e+00 : f32
    %165 = vector.broadcast %cst_53 : f32 to vector<8x128xf32>
    %166 = arith.addf %165, %164 : vector<8x128xf32>
    %167 = arith.divf %165, %166 : vector<8x128xf32>
    %168 = vector.extract_strided_slice %156 {offsets = [0, 128], sizes = [8, 128], strides = [1, 1]} : vector<8x384xf32> to vector<8x128xf32>
    %169 = vector.extract_strided_slice %159 {offsets = [0, 128], sizes = [8, 128], strides = [1, 1]} : vector<8x384xf32> to vector<8x128xf32>
    %170 = arith.addf %168, %169 : vector<8x128xf32>
    %171 = arith.negf %170 : vector<8x128xf32>
    %172 = math.exp %171 : vector<8x128xf32>
    %cst_54 = arith.constant 1.000000e+00 : f32
    %173 = vector.broadcast %cst_54 : f32 to vector<8x128xf32>
    %174 = arith.addf %173, %172 : vector<8x128xf32>
    %175 = arith.divf %173, %174 : vector<8x128xf32>
    %176 = vector.extract_strided_slice %156 {offsets = [0, 256], sizes = [8, 128], strides = [1, 1]} : vector<8x384xf32> to vector<8x128xf32>
    %177 = vector.extract_strided_slice %159 {offsets = [0, 256], sizes = [8, 128], strides = [1, 1]} : vector<8x384xf32> to vector<8x128xf32>
    %178 = arith.mulf %167, %177 : vector<8x128xf32>
    %179 = arith.addf %176, %178 : vector<8x128xf32>
    %180 = math.tanh %179 : vector<8x128xf32>
    %cst_55 = arith.constant 1.000000e+00 : f32
    %181 = vector.broadcast %cst_55 : f32 to vector<8x128xf32>
    %182 = arith.subf %181, %175 : vector<8x128xf32>
    %183 = arith.mulf %182, %180 : vector<8x128xf32>
    %184 = arith.mulf %175, %150 : vector<8x128xf32>
    %185 = arith.addf %183, %184 : vector<8x128xf32>
    %186 = arith.index_cast %154 : i32 to index
    %c0_56 = arith.constant 0 : index
    %187 = vector.load %arg19[%186, %c0_56] : memref<128x128xf32, #tpu.memory_space<vmem>>, vector<8x128xf32>
    tpu.vector_store %arg19[%186, %c0_56], %185 {strides = array<i32>} : memref<128x128xf32, #tpu.memory_space<vmem>>, vector<8x128xf32>,
    %c5_i32 = arith.constant 5 : i32
    %c8_i32_57 = arith.constant 8 : i32
    %188 = arith.muli %c5_i32, %c8_i32_57 : i32
    %189 = tpu.assume_multiple %188, 8 : i32
    %190 = arith.index_cast %189 : i32 to index
    %c0_58 = arith.constant 0 : index
    %191 = vector.load %arg18[%190, %c0_58] : memref<64x384xf32, #tpu.memory_space<vmem>>, vector<8x384xf32>
    %c0_59 = arith.constant 0 : index
    %c0_60 = arith.constant 0 : index
    %192 = vector.load %arg6[%c0_59, %c0_60] : memref<128x384xf32, #tpu.memory_space<vmem>>, vector<128x384xf32>
    %cst_61 = arith.constant dense<0.000000e+00> : vector<8x384xf32>
    %193 = tpu.matmul %185, %192, %cst_61 {dimension_numbers = #tpu.dot_dimension_numbers<[1], [0], [0], [1], [0, 0, 1, 1], [], []>} : vector<8x128xf32>, vector<128x384xf32>, vector<8x384xf32> -> vector<8x384xf32>
    %194 = arith.addf %193, %11 : vector<8x384xf32>
    %195 = vector.extract_strided_slice %191 {offsets = [0, 0], sizes = [8, 128], strides = [1, 1]} : vector<8x384xf32> to vector<8x128xf32>
    %196 = vector.extract_strided_slice %194 {offsets = [0, 0], sizes = [8, 128], strides = [1, 1]} : vector<8x384xf32> to vector<8x128xf32>
    %197 = arith.addf %195, %196 : vector<8x128xf32>
    %198 = arith.negf %197 : vector<8x128xf32>
    %199 = math.exp %198 : vector<8x128xf32>
    %cst_62 = arith.constant 1.000000e+00 : f32
    %200 = vector.broadcast %cst_62 : f32 to vector<8x128xf32>
    %201 = arith.addf %200, %199 : vector<8x128xf32>
    %202 = arith.divf %200, %201 : vector<8x128xf32>
    %203 = vector.extract_strided_slice %191 {offsets = [0, 128], sizes = [8, 128], strides = [1, 1]} : vector<8x384xf32> to vector<8x128xf32>
    %204 = vector.extract_strided_slice %194 {offsets = [0, 128], sizes = [8, 128], strides = [1, 1]} : vector<8x384xf32> to vector<8x128xf32>
    %205 = arith.addf %203, %204 : vector<8x128xf32>
    %206 = arith.negf %205 : vector<8x128xf32>
    %207 = math.exp %206 : vector<8x128xf32>
    %cst_63 = arith.constant 1.000000e+00 : f32
    %208 = vector.broadcast %cst_63 : f32 to vector<8x128xf32>
    %209 = arith.addf %208, %207 : vector<8x128xf32>
    %210 = arith.divf %208, %209 : vector<8x128xf32>
    %211 = vector.extract_strided_slice %191 {offsets = [0, 256], sizes = [8, 128], strides = [1, 1]} : vector<8x384xf32> to vector<8x128xf32>
    %212 = vector.extract_strided_slice %194 {offsets = [0, 256], sizes = [8, 128], strides = [1, 1]} : vector<8x384xf32> to vector<8x128xf32>
    %213 = arith.mulf %202, %212 : vector<8x128xf32>
    %214 = arith.addf %211, %213 : vector<8x128xf32>
    %215 = math.tanh %214 : vector<8x128xf32>
    %cst_64 = arith.constant 1.000000e+00 : f32
    %216 = vector.broadcast %cst_64 : f32 to vector<8x128xf32>
    %217 = arith.subf %216, %210 : vector<8x128xf32>
    %218 = arith.mulf %217, %215 : vector<8x128xf32>
    %219 = arith.mulf %210, %185 : vector<8x128xf32>
    %220 = arith.addf %218, %219 : vector<8x128xf32>
    %221 = arith.index_cast %189 : i32 to index
    %c0_65 = arith.constant 0 : index
    %222 = vector.load %arg19[%221, %c0_65] : memref<128x128xf32, #tpu.memory_space<vmem>>, vector<8x128xf32>
    tpu.vector_store %arg19[%221, %c0_65], %220 {strides = array<i32>} : memref<128x128xf32, #tpu.memory_space<vmem>>, vector<8x128xf32>,
    %c6_i32 = arith.constant 6 : i32
    %c8_i32_66 = arith.constant 8 : i32
    %223 = arith.muli %c6_i32, %c8_i32_66 : i32
    %224 = tpu.assume_multiple %223, 8 : i32
    %225 = arith.index_cast %224 : i32 to index
    %c0_67 = arith.constant 0 : index
    %226 = vector.load %arg18[%225, %c0_67] : memref<64x384xf32, #tpu.memory_space<vmem>>, vector<8x384xf32>
    %c0_68 = arith.constant 0 : index
    %c0_69 = arith.constant 0 : index
    %227 = vector.load %arg6[%c0_68, %c0_69] : memref<128x384xf32, #tpu.memory_space<vmem>>, vector<128x384xf32>
    %cst_70 = arith.constant dense<0.000000e+00> : vector<8x384xf32>
    %228 = tpu.matmul %220, %227, %cst_70 {dimension_numbers = #tpu.dot_dimension_numbers<[1], [0], [0], [1], [0, 0, 1, 1], [], []>} : vector<8x128xf32>, vector<128x384xf32>, vector<8x384xf32> -> vector<8x384xf32>
    %229 = arith.addf %228, %11 : vector<8x384xf32>
    %230 = vector.extract_strided_slice %226 {offsets = [0, 0], sizes = [8, 128], strides = [1, 1]} : vector<8x384xf32> to vector<8x128xf32>
    %231 = vector.extract_strided_slice %229 {offsets = [0, 0], sizes = [8, 128], strides = [1, 1]} : vector<8x384xf32> to vector<8x128xf32>
    %232 = arith.addf %230, %231 : vector<8x128xf32>
    %233 = arith.negf %232 : vector<8x128xf32>
    %234 = math.exp %233 : vector<8x128xf32>
    %cst_71 = arith.constant 1.000000e+00 : f32
    %235 = vector.broadcast %cst_71 : f32 to vector<8x128xf32>
    %236 = arith.addf %235, %234 : vector<8x128xf32>
    %237 = arith.divf %235, %236 : vector<8x128xf32>
    %238 = vector.extract_strided_slice %226 {offsets = [0, 128], sizes = [8, 128], strides = [1, 1]} : vector<8x384xf32> to vector<8x128xf32>
    %239 = vector.extract_strided_slice %229 {offsets = [0, 128], sizes = [8, 128], strides = [1, 1]} : vector<8x384xf32> to vector<8x128xf32>
    %240 = arith.addf %238, %239 : vector<8x128xf32>
    %241 = arith.negf %240 : vector<8x128xf32>
    %242 = math.exp %241 : vector<8x128xf32>
    %cst_72 = arith.constant 1.000000e+00 : f32
    %243 = vector.broadcast %cst_72 : f32 to vector<8x128xf32>
    %244 = arith.addf %243, %242 : vector<8x128xf32>
    %245 = arith.divf %243, %244 : vector<8x128xf32>
    %246 = vector.extract_strided_slice %226 {offsets = [0, 256], sizes = [8, 128], strides = [1, 1]} : vector<8x384xf32> to vector<8x128xf32>
    %247 = vector.extract_strided_slice %229 {offsets = [0, 256], sizes = [8, 128], strides = [1, 1]} : vector<8x384xf32> to vector<8x128xf32>
    %248 = arith.mulf %237, %247 : vector<8x128xf32>
    %249 = arith.addf %246, %248 : vector<8x128xf32>
    %250 = math.tanh %249 : vector<8x128xf32>
    %cst_73 = arith.constant 1.000000e+00 : f32
    %251 = vector.broadcast %cst_73 : f32 to vector<8x128xf32>
    %252 = arith.subf %251, %245 : vector<8x128xf32>
    %253 = arith.mulf %252, %250 : vector<8x128xf32>
    %254 = arith.mulf %245, %220 : vector<8x128xf32>
    %255 = arith.addf %253, %254 : vector<8x128xf32>
    %256 = arith.index_cast %224 : i32 to index
    %c0_74 = arith.constant 0 : index
    %257 = vector.load %arg19[%256, %c0_74] : memref<128x128xf32, #tpu.memory_space<vmem>>, vector<8x128xf32>
    tpu.vector_store %arg19[%256, %c0_74], %255 {strides = array<i32>} : memref<128x128xf32, #tpu.memory_space<vmem>>, vector<8x128xf32>,
    %c7_i32 = arith.constant 7 : i32
    %c8_i32_75 = arith.constant 8 : i32
    %258 = arith.muli %c7_i32, %c8_i32_75 : i32
    %259 = tpu.assume_multiple %258, 8 : i32
    %260 = arith.index_cast %259 : i32 to index
    %c0_76 = arith.constant 0 : index
    %261 = vector.load %arg18[%260, %c0_76] : memref<64x384xf32, #tpu.memory_space<vmem>>, vector<8x384xf32>
    %c0_77 = arith.constant 0 : index
    %c0_78 = arith.constant 0 : index
    %262 = vector.load %arg6[%c0_77, %c0_78] : memref<128x384xf32, #tpu.memory_space<vmem>>, vector<128x384xf32>
    %cst_79 = arith.constant dense<0.000000e+00> : vector<8x384xf32>
    %263 = tpu.matmul %255, %262, %cst_79 {dimension_numbers = #tpu.dot_dimension_numbers<[1], [0], [0], [1], [0, 0, 1, 1], [], []>} : vector<8x128xf32>, vector<128x384xf32>, vector<8x384xf32> -> vector<8x384xf32>
    %264 = arith.addf %263, %11 : vector<8x384xf32>
    %265 = vector.extract_strided_slice %261 {offsets = [0, 0], sizes = [8, 128], strides = [1, 1]} : vector<8x384xf32> to vector<8x128xf32>
    %266 = vector.extract_strided_slice %264 {offsets = [0, 0], sizes = [8, 128], strides = [1, 1]} : vector<8x384xf32> to vector<8x128xf32>
    %267 = arith.addf %265, %266 : vector<8x128xf32>
    %268 = arith.negf %267 : vector<8x128xf32>
    %269 = math.exp %268 : vector<8x128xf32>
    %cst_80 = arith.constant 1.000000e+00 : f32
    %270 = vector.broadcast %cst_80 : f32 to vector<8x128xf32>
    %271 = arith.addf %270, %269 : vector<8x128xf32>
    %272 = arith.divf %270, %271 : vector<8x128xf32>
    %273 = vector.extract_strided_slice %261 {offsets = [0, 128], sizes = [8, 128], strides = [1, 1]} : vector<8x384xf32> to vector<8x128xf32>
    %274 = vector.extract_strided_slice %264 {offsets = [0, 128], sizes = [8, 128], strides = [1, 1]} : vector<8x384xf32> to vector<8x128xf32>
    %275 = arith.addf %273, %274 : vector<8x128xf32>
    %276 = arith.negf %275 : vector<8x128xf32>
    %277 = math.exp %276 : vector<8x128xf32>
    %cst_81 = arith.constant 1.000000e+00 : f32
    %278 = vector.broadcast %cst_81 : f32 to vector<8x128xf32>
    %279 = arith.addf %278, %277 : vector<8x128xf32>
    %280 = arith.divf %278, %279 : vector<8x128xf32>
    %281 = vector.extract_strided_slice %261 {offsets = [0, 256], sizes = [8, 128], strides = [1, 1]} : vector<8x384xf32> to vector<8x128xf32>
    %282 = vector.extract_strided_slice %264 {offsets = [0, 256], sizes = [8, 128], strides = [1, 1]} : vector<8x384xf32> to vector<8x128xf32>
    %283 = arith.mulf %272, %282 : vector<8x128xf32>
    %284 = arith.addf %281, %283 : vector<8x128xf32>
    %285 = math.tanh %284 : vector<8x128xf32>
    %cst_82 = arith.constant 1.000000e+00 : f32
    %286 = vector.broadcast %cst_82 : f32 to vector<8x128xf32>
    %287 = arith.subf %286, %280 : vector<8x128xf32>
    %288 = arith.mulf %287, %285 : vector<8x128xf32>
    %289 = arith.mulf %280, %255 : vector<8x128xf32>
    %290 = arith.addf %288, %289 : vector<8x128xf32>
    %291 = arith.index_cast %259 : i32 to index
    %c0_83 = arith.constant 0 : index
    %292 = vector.load %arg19[%291, %c0_83] : memref<128x128xf32, #tpu.memory_space<vmem>>, vector<8x128xf32>
    tpu.vector_store %arg19[%291, %c0_83], %290 {strides = array<i32>} : memref<128x128xf32, #tpu.memory_space<vmem>>, vector<8x128xf32>,
    %c8_i32_84 = arith.constant 8 : i32
    %c0_85 = arith.constant 0 : index
    %c0_86 = arith.constant 0 : index
    %293 = vector.load %arg19[%c0_85, %c0_86] : memref<128x128xf32, #tpu.memory_space<vmem>>, vector<128x128xf32>
    %294 = tpu.transpose %293, [1, 0] : vector<128x128xf32> -> vector<128x128xf32>
    %c0_87 = arith.constant 0 : index
    %c0_88 = arith.constant 0 : index
    %295 = vector.load %arg20[%c0_87, %c0_88] : memref<128x128xf32, #tpu.memory_space<vmem>>, vector<128x128xf32>
    tpu.vector_store %arg20[%c0_87, %c0_88], %294 {strides = array<i32>} : memref<128x128xf32, #tpu.memory_space<vmem>>, vector<128x128xf32>,
    %c0_89 = arith.constant 0 : index
    %c0_90 = arith.constant 0 : index
    %296 = vector.load %arg12[%c0_89, %c0_90] : memref<1x384xf32, #tpu.memory_space<vmem>>, vector<1x384xf32>
    %297 = vector.shape_cast %296 : vector<1x384xf32> to vector<1x384xf32>
    %298 = vector.broadcast %297 : vector<1x384xf32> to vector<8x384xf32>
    %c0_91 = arith.constant 0 : index
    %c0_92 = arith.constant 0 : index
    %299 = vector.load %arg13[%c0_91, %c0_92] : memref<1x384xf32, #tpu.memory_space<vmem>>, vector<1x384xf32>
    %300 = vector.shape_cast %299 : vector<1x384xf32> to vector<1x384xf32>
    %301 = vector.broadcast %300 : vector<1x384xf32> to vector<8x384xf32>
    %c0_93 = arith.constant 0 : index
    %c0_94 = arith.constant 0 : index
    %302 = vector.load %arg15[%c0_93, %c0_94] : memref<1x128xf32, #tpu.memory_space<vmem>>, vector<1x128xf32>
    %303 = vector.shape_cast %302 : vector<1x128xf32> to vector<1x128xf32>
    %304 = vector.broadcast %303 : vector<1x128xf32> to vector<8x128xf32>
    %c0_95 = arith.constant 0 : index
    %c0_96 = arith.constant 0 : index
    %305 = vector.load %arg4[%c0_95, %c0_96] : memref<8x128xf32, #tpu.memory_space<vmem>>, vector<8x128xf32>
    %306 = tpu.iota {dimensions = array<i32: 1>} : vector<8x128xi32>
    %c0_97 = arith.constant 0 : index
    %c0_98 = arith.constant 0 : index
    %307 = vector.load %arg3[%c0_97, %c0_98] : memref<8x128xf32, #tpu.memory_space<vmem>>, vector<8x128xf32>
    %c0_99 = arith.constant 0 : index
    %c0_100 = arith.constant 0 : index
    %308 = vector.load %arg22[%c0_99, %c0_100] : memref<8x128xf32, #tpu.memory_space<vmem>>, vector<8x128xf32>
    tpu.vector_store %arg22[%c0_99, %c0_100], %307 {strides = array<i32>} : memref<8x128xf32, #tpu.memory_space<vmem>>, vector<8x128xf32>,
    %c0_i32_101 = arith.constant 0 : i32
    %c0_102 = arith.constant 0 : index
    %c0_103 = arith.constant 0 : index
    %309 = vector.load %arg22[%c0_102, %c0_103] : memref<8x128xf32, #tpu.memory_space<vmem>>, vector<8x128xf32>
    %c0_104 = arith.constant 0 : index
    %c0_105 = arith.constant 0 : index
    %310 = vector.load %arg20[%c0_104, %c0_105] : memref<128x128xf32, #tpu.memory_space<vmem>>, vector<128x128xf32>
    %cst_106 = arith.constant dense<0.000000e+00> : vector<8x128xf32>
    %311 = tpu.matmul %290, %310, %cst_106 {dimension_numbers = #tpu.dot_dimension_numbers<[1], [0], [0], [1], [0, 0, 1, 1], [], []>} : vector<8x128xf32>, vector<128x128xf32>, vector<8x128xf32> -> vector<8x128xf32>
    %312 = arith.addf %311, %305 : vector<8x128xf32>
    %cst_107 = arith.constant dense<0xFF800000> : vector<8xf32>
    %313 = vector.multi_reduction <maximumf>, %312, %cst_107 [1] : vector<8x128xf32> to vector<8xf32>
    %314 = vector.shape_cast %313 : vector<8xf32> to vector<8x1xf32>
    %315 = vector.broadcast %314 : vector<8x1xf32> to vector<8x128xf32>
    %316 = arith.subf %312, %315 : vector<8x128xf32>
    %317 = math.exp %316 : vector<8x128xf32>
    %cst_108 = arith.constant dense<0.000000e+00> : vector<8xf32>
    %318 = vector.multi_reduction <add>, %317, %cst_108 [1] : vector<8x128xf32> to vector<8xf32>
    %319 = vector.shape_cast %318 : vector<8xf32> to vector<8x1xf32>
    %320 = tpu.reciprocal %319 {approx = true} : vector<8x1xf32> -> vector<8x1xf32>
    %321 = vector.broadcast %320 : vector<8x1xf32> to vector<8x128xf32>
    %322 = arith.mulf %317, %321 : vector<8x128xf32>
    %323 = arith.index_cast %c0_i32_101 : i32 to index
    %c0_109 = arith.constant 0 : index
    %c0_110 = arith.constant 0 : index
    %324 = vector.load %arg17[%323, %c0_109, %c0_110] : memref<8x8x128xf32, #tpu.memory_space<vmem>>, vector<1x8x128xf32>
    %325 = vector.shape_cast %324 : vector<1x8x128xf32> to vector<8x128xf32>
    %326 = vector.shape_cast %322 : vector<8x128xf32> to vector<1x8x128xf32>
    tpu.vector_store %arg17[%323, %c0_109, %c0_110], %326 {strides = array<i32>} : memref<8x8x128xf32, #tpu.memory_space<vmem>>, vector<1x8x128xf32>,
    %c0_111 = arith.constant 0 : index
    %c0_112 = arith.constant 0 : index
    %327 = vector.load %arg19[%c0_111, %c0_112] : memref<128x128xf32, #tpu.memory_space<vmem>>, vector<128x128xf32>
    %cst_113 = arith.constant dense<0.000000e+00> : vector<8x128xf32>
    %328 = tpu.matmul %322, %327, %cst_113 {dimension_numbers = #tpu.dot_dimension_numbers<[1], [0], [0], [1], [0, 0, 1, 1], [], []>} : vector<8x128xf32>, vector<128x128xf32>, vector<8x128xf32> -> vector<8x128xf32>
    %c0_114 = arith.constant 0 : index
    %c0_115 = arith.constant 0 : index
    %329 = vector.load %arg21[%c0_114, %c0_115] : memref<8x256xf32, #tpu.memory_space<vmem>>, vector<8x128xf32>
    tpu.vector_store %arg21[%c0_114, %c0_115], %309 {strides = array<i32>} : memref<8x256xf32, #tpu.memory_space<vmem>>, vector<8x128xf32>,
    %c0_116 = arith.constant 0 : index
    %c128 = arith.constant 128 : index
    %330 = vector.load %arg21[%c0_116, %c128] : memref<8x256xf32, #tpu.memory_space<vmem>>, vector<8x128xf32>
    tpu.vector_store %arg21[%c0_116, %c128], %328 {strides = array<i32>} : memref<8x256xf32, #tpu.memory_space<vmem>>, vector<8x128xf32>,
    %c0_117 = arith.constant 0 : index
    %c0_118 = arith.constant 0 : index
    %331 = vector.load %arg21[%c0_117, %c0_118] : memref<8x256xf32, #tpu.memory_space<vmem>>, vector<8x256xf32>
    %c0_119 = arith.constant 0 : index
    %c0_120 = arith.constant 0 : index
    %332 = vector.load %arg10[%c0_119, %c0_120] : memref<256x384xf32, #tpu.memory_space<vmem>>, vector<256x384xf32>
    %cst_121 = arith.constant dense<0.000000e+00> : vector<8x384xf32>
    %333 = tpu.matmul %331, %332, %cst_121 {dimension_numbers = #tpu.dot_dimension_numbers<[1], [0], [0], [1], [0, 0, 1, 1], [], []>} : vector<8x256xf32>, vector<256x384xf32>, vector<8x384xf32> -> vector<8x384xf32>
    %334 = arith.addf %333, %298 : vector<8x384xf32>
    %c0_122 = arith.constant 0 : index
    %c0_123 = arith.constant 0 : index
    %335 = vector.load %arg11[%c0_122, %c0_123] : memref<128x384xf32, #tpu.memory_space<vmem>>, vector<128x384xf32>
    %cst_124 = arith.constant dense<0.000000e+00> : vector<8x384xf32>
    %336 = tpu.matmul %290, %335, %cst_124 {dimension_numbers = #tpu.dot_dimension_numbers<[1], [0], [0], [1], [0, 0, 1, 1], [], []>} : vector<8x128xf32>, vector<128x384xf32>, vector<8x384xf32> -> vector<8x384xf32>
    %337 = arith.addf %336, %301 : vector<8x384xf32>
    %338 = vector.extract_strided_slice %334 {offsets = [0, 0], sizes = [8, 128], strides = [1, 1]} : vector<8x384xf32> to vector<8x128xf32>
    %339 = vector.extract_strided_slice %337 {offsets = [0, 0], sizes = [8, 128], strides = [1, 1]} : vector<8x384xf32> to vector<8x128xf32>
    %340 = arith.addf %338, %339 : vector<8x128xf32>
    %341 = arith.negf %340 : vector<8x128xf32>
    %342 = math.exp %341 : vector<8x128xf32>
    %cst_125 = arith.constant 1.000000e+00 : f32
    %343 = vector.broadcast %cst_125 : f32 to vector<8x128xf32>
    %344 = arith.addf %343, %342 : vector<8x128xf32>
    %345 = arith.divf %343, %344 : vector<8x128xf32>
    %346 = vector.extract_strided_slice %334 {offsets = [0, 128], sizes = [8, 128], strides = [1, 1]} : vector<8x384xf32> to vector<8x128xf32>
    %347 = vector.extract_strided_slice %337 {offsets = [0, 128], sizes = [8, 128], strides = [1, 1]} : vector<8x384xf32> to vector<8x128xf32>
    %348 = arith.addf %346, %347 : vector<8x128xf32>
    %349 = arith.negf %348 : vector<8x128xf32>
    %350 = math.exp %349 : vector<8x128xf32>
    %cst_126 = arith.constant 1.000000e+00 : f32
    %351 = vector.broadcast %cst_126 : f32 to vector<8x128xf32>
    %352 = arith.addf %351, %350 : vector<8x128xf32>
    %353 = arith.divf %351, %352 : vector<8x128xf32>
    %354 = vector.extract_strided_slice %334 {offsets = [0, 256], sizes = [8, 128], strides = [1, 1]} : vector<8x384xf32> to vector<8x128xf32>
    %355 = vector.extract_strided_slice %337 {offsets = [0, 256], sizes = [8, 128], strides = [1, 1]} : vector<8x384xf32> to vector<8x128xf32>
    %356 = arith.mulf %345, %355 : vector<8x128xf32>
    %357 = arith.addf %354, %356 : vector<8x128xf32>
    %358 = math.tanh %357 : vector<8x128xf32>
    %cst_127 = arith.constant 1.000000e+00 : f32
    %359 = vector.broadcast %cst_127 : f32 to vector<8x128xf32>
    %360 = arith.subf %359, %353 : vector<8x128xf32>
    %361 = arith.mulf %360, %358 : vector<8x128xf32>
    %362 = arith.mulf %353, %290 : vector<8x128xf32>
    %363 = arith.addf %361, %362 : vector<8x128xf32>
    %c0_128 = arith.constant 0 : index
    %c0_129 = arith.constant 0 : index
    %364 = vector.load %arg14[%c0_128, %c0_129] : memref<128x128xf32, #tpu.memory_space<vmem>>, vector<128x128xf32>
    %cst_130 = arith.constant dense<0.000000e+00> : vector<8x128xf32>
    %365 = tpu.matmul %363, %364, %cst_130 {dimension_numbers = #tpu.dot_dimension_numbers<[1], [0], [0], [1], [0, 0, 1, 1], [], []>} : vector<8x128xf32>, vector<128x128xf32>, vector<8x128xf32> -> vector<8x128xf32>
    %366 = arith.addf %365, %304 : vector<8x128xf32>
    %367 = arith.index_cast %c0_i32_101 : i32 to index
    %c0_131 = arith.constant 0 : index
    %c0_132 = arith.constant 0 : index
    %368 = vector.load %arg16[%367, %c0_131, %c0_132] : memref<8x8x128xf32, #tpu.memory_space<vmem>>, vector<1x8x128xf32>
    %369 = vector.shape_cast %368 : vector<1x8x128xf32> to vector<8x128xf32>
    %370 = vector.shape_cast %366 : vector<8x128xf32> to vector<1x8x128xf32>
    tpu.vector_store %arg16[%367, %c0_131, %c0_132], %370 {strides = array<i32>} : memref<8x8x128xf32, #tpu.memory_space<vmem>>, vector<1x8x128xf32>,
    %371 = arith.index_cast %c0_i32_101 : i32 to index
    %372 = memref.load %arg0[%371] : memref<8xi32, #tpu.memory_space<smem>>
    %c0_i32_133 = arith.constant 0 : i32
    %373 = arith.cmpi sgt, %372, %c0_i32_133 : i32
    %374 = arith.extui %373 : i1 to i32
    %c0_i32_134 = arith.constant 0 : i32
    %375 = arith.cmpi ne, %374, %c0_i32_134 : i32
    scf.if %375 {
      %885 = arith.index_cast %c0_i32_101 : i32 to index
      %c0_397 = arith.constant 0 : index
      %c0_398 = arith.constant 0 : index
      %886 = vector.load %arg2[%885, %c0_397, %c0_398] : memref<8x8x128xf32, #tpu.memory_space<vmem>>, vector<1x8x128xf32>
      %887 = vector.shape_cast %886 : vector<1x8x128xf32> to vector<8x128xf32>
      %c0_399 = arith.constant 0 : index
      %c0_400 = arith.constant 0 : index
      %888 = vector.load %arg22[%c0_399, %c0_400] : memref<8x128xf32, #tpu.memory_space<vmem>>, vector<8x128xf32>
      tpu.vector_store %arg22[%c0_399, %c0_400], %887 {strides = array<i32>} : memref<8x128xf32, #tpu.memory_space<vmem>>, vector<8x128xf32>,
    } else {
    }
    %376 = arith.index_cast %c0_i32_101 : i32 to index
    %377 = memref.load %arg0[%376] : memref<8xi32, #tpu.memory_space<smem>>
    %c0_i32_135 = arith.constant 0 : i32
    %378 = arith.cmpi eq, %377, %c0_i32_135 : i32
    %379 = arith.extui %378 : i1 to i32
    %c0_i32_136 = arith.constant 0 : i32
    %380 = arith.cmpi ne, %379, %c0_i32_136 : i32
    scf.if %380 {
      %cst_397 = arith.constant dense<0xFF800000> : vector<8xf32>
      %885 = vector.multi_reduction <maximumf>, %366, %cst_397 [1] : vector<8x128xf32> to vector<8xf32>
      %886 = vector.shape_cast %885 : vector<8xf32> to vector<8x1xf32>
      %887 = vector.broadcast %886 : vector<8x1xf32> to vector<8x128xf32>
      %888 = arith.cmpf oge, %366, %887 : vector<8x128xf32>
      %c128_i32 = arith.constant 128 : i32
      %889 = vector.broadcast %c128_i32 : i32 to vector<8x128xi32>
      %890 = arith.select %888, %306, %889 : vector<8x128xi1>, vector<8x128xi32>
      %cst_398 = arith.constant dense<2147483647> : vector<8xi32>
      %891 = vector.multi_reduction <minsi>, %890, %cst_398 [1] : vector<8x128xi32> to vector<8xi32>
      %892 = vector.shape_cast %891 : vector<8xi32> to vector<8x1xi32>
      %893 = vector.broadcast %892 : vector<8x1xi32> to vector<8x128xi32>
      %894 = arith.cmpi eq, %306, %893 : vector<8x128xi32>
      %895 = arith.extui %894 : vector<8x128xi1> to vector<8x128xi32>
      %896 = arith.sitofp %895 : vector<8x128xi32> to vector<8x128xf32>
      %c0_399 = arith.constant 0 : index
      %c0_400 = arith.constant 0 : index
      %897 = vector.load %arg9[%c0_399, %c0_400] : memref<128x128xf32, #tpu.memory_space<vmem>>, vector<128x128xf32>
      %cst_401 = arith.constant dense<0.000000e+00> : vector<8x128xf32>
      %898 = tpu.matmul %896, %897, %cst_401 {dimension_numbers = #tpu.dot_dimension_numbers<[1], [0], [0], [1], [0, 0, 1, 1], [], []>} : vector<8x128xf32>, vector<128x128xf32>, vector<8x128xf32> -> vector<8x128xf32>
      %c0_402 = arith.constant 0 : index
      %c0_403 = arith.constant 0 : index
      %899 = vector.load %arg22[%c0_402, %c0_403] : memref<8x128xf32, #tpu.memory_space<vmem>>, vector<8x128xf32>
      tpu.vector_store %arg22[%c0_402, %c0_403], %898 {strides = array<i32>} : memref<8x128xf32, #tpu.memory_space<vmem>>, vector<8x128xf32>,
    } else {
    }
    %c1_i32_137 = arith.constant 1 : i32
    %c0_138 = arith.constant 0 : index
    %c0_139 = arith.constant 0 : index
    %381 = vector.load %arg22[%c0_138, %c0_139] : memref<8x128xf32, #tpu.memory_space<vmem>>, vector<8x128xf32>
    %c0_140 = arith.constant 0 : index
    %c0_141 = arith.constant 0 : index
    %382 = vector.load %arg20[%c0_140, %c0_141] : memref<128x128xf32, #tpu.memory_space<vmem>>, vector<128x128xf32>
    %cst_142 = arith.constant dense<0.000000e+00> : vector<8x128xf32>
    %383 = tpu.matmul %363, %382, %cst_142 {dimension_numbers = #tpu.dot_dimension_numbers<[1], [0], [0], [1], [0, 0, 1, 1], [], []>} : vector<8x128xf32>, vector<128x128xf32>, vector<8x128xf32> -> vector<8x128xf32>
    %384 = arith.addf %383, %305 : vector<8x128xf32>
    %cst_143 = arith.constant dense<0xFF800000> : vector<8xf32>
    %385 = vector.multi_reduction <maximumf>, %384, %cst_143 [1] : vector<8x128xf32> to vector<8xf32>
    %386 = vector.shape_cast %385 : vector<8xf32> to vector<8x1xf32>
    %387 = vector.broadcast %386 : vector<8x1xf32> to vector<8x128xf32>
    %388 = arith.subf %384, %387 : vector<8x128xf32>
    %389 = math.exp %388 : vector<8x128xf32>
    %cst_144 = arith.constant dense<0.000000e+00> : vector<8xf32>
    %390 = vector.multi_reduction <add>, %389, %cst_144 [1] : vector<8x128xf32> to vector<8xf32>
    %391 = vector.shape_cast %390 : vector<8xf32> to vector<8x1xf32>
    %392 = tpu.reciprocal %391 {approx = true} : vector<8x1xf32> -> vector<8x1xf32>
    %393 = vector.broadcast %392 : vector<8x1xf32> to vector<8x128xf32>
    %394 = arith.mulf %389, %393 : vector<8x128xf32>
    %395 = arith.index_cast %c1_i32_137 : i32 to index
    %c0_145 = arith.constant 0 : index
    %c0_146 = arith.constant 0 : index
    %396 = vector.load %arg17[%395, %c0_145, %c0_146] : memref<8x8x128xf32, #tpu.memory_space<vmem>>, vector<1x8x128xf32>
    %397 = vector.shape_cast %396 : vector<1x8x128xf32> to vector<8x128xf32>
    %398 = vector.shape_cast %394 : vector<8x128xf32> to vector<1x8x128xf32>
    tpu.vector_store %arg17[%395, %c0_145, %c0_146], %398 {strides = array<i32>} : memref<8x8x128xf32, #tpu.memory_space<vmem>>, vector<1x8x128xf32>,
    %c0_147 = arith.constant 0 : index
    %c0_148 = arith.constant 0 : index
    %399 = vector.load %arg19[%c0_147, %c0_148] : memref<128x128xf32, #tpu.memory_space<vmem>>, vector<128x128xf32>
    %cst_149 = arith.constant dense<0.000000e+00> : vector<8x128xf32>
    %400 = tpu.matmul %394, %399, %cst_149 {dimension_numbers = #tpu.dot_dimension_numbers<[1], [0], [0], [1], [0, 0, 1, 1], [], []>} : vector<8x128xf32>, vector<128x128xf32>, vector<8x128xf32> -> vector<8x128xf32>
    %c0_150 = arith.constant 0 : index
    %c0_151 = arith.constant 0 : index
    %401 = vector.load %arg21[%c0_150, %c0_151] : memref<8x256xf32, #tpu.memory_space<vmem>>, vector<8x128xf32>
    tpu.vector_store %arg21[%c0_150, %c0_151], %381 {strides = array<i32>} : memref<8x256xf32, #tpu.memory_space<vmem>>, vector<8x128xf32>,
    %c0_152 = arith.constant 0 : index
    %c128_153 = arith.constant 128 : index
    %402 = vector.load %arg21[%c0_152, %c128_153] : memref<8x256xf32, #tpu.memory_space<vmem>>, vector<8x128xf32>
    tpu.vector_store %arg21[%c0_152, %c128_153], %400 {strides = array<i32>} : memref<8x256xf32, #tpu.memory_space<vmem>>, vector<8x128xf32>,
    %c0_154 = arith.constant 0 : index
    %c0_155 = arith.constant 0 : index
    %403 = vector.load %arg21[%c0_154, %c0_155] : memref<8x256xf32, #tpu.memory_space<vmem>>, vector<8x256xf32>
    %c0_156 = arith.constant 0 : index
    %c0_157 = arith.constant 0 : index
    %404 = vector.load %arg10[%c0_156, %c0_157] : memref<256x384xf32, #tpu.memory_space<vmem>>, vector<256x384xf32>
    %cst_158 = arith.constant dense<0.000000e+00> : vector<8x384xf32>
    %405 = tpu.matmul %403, %404, %cst_158 {dimension_numbers = #tpu.dot_dimension_numbers<[1], [0], [0], [1], [0, 0, 1, 1], [], []>} : vector<8x256xf32>, vector<256x384xf32>, vector<8x384xf32> -> vector<8x384xf32>
    %406 = arith.addf %405, %298 : vector<8x384xf32>
    %c0_159 = arith.constant 0 : index
    %c0_160 = arith.constant 0 : index
    %407 = vector.load %arg11[%c0_159, %c0_160] : memref<128x384xf32, #tpu.memory_space<vmem>>, vector<128x384xf32>
    %cst_161 = arith.constant dense<0.000000e+00> : vector<8x384xf32>
    %408 = tpu.matmul %363, %407, %cst_161 {dimension_numbers = #tpu.dot_dimension_numbers<[1], [0], [0], [1], [0, 0, 1, 1], [], []>} : vector<8x128xf32>, vector<128x384xf32>, vector<8x384xf32> -> vector<8x384xf32>
    %409 = arith.addf %408, %301 : vector<8x384xf32>
    %410 = vector.extract_strided_slice %406 {offsets = [0, 0], sizes = [8, 128], strides = [1, 1]} : vector<8x384xf32> to vector<8x128xf32>
    %411 = vector.extract_strided_slice %409 {offsets = [0, 0], sizes = [8, 128], strides = [1, 1]} : vector<8x384xf32> to vector<8x128xf32>
    %412 = arith.addf %410, %411 : vector<8x128xf32>
    %413 = arith.negf %412 : vector<8x128xf32>
    %414 = math.exp %413 : vector<8x128xf32>
    %cst_162 = arith.constant 1.000000e+00 : f32
    %415 = vector.broadcast %cst_162 : f32 to vector<8x128xf32>
    %416 = arith.addf %415, %414 : vector<8x128xf32>
    %417 = arith.divf %415, %416 : vector<8x128xf32>
    %418 = vector.extract_strided_slice %406 {offsets = [0, 128], sizes = [8, 128], strides = [1, 1]} : vector<8x384xf32> to vector<8x128xf32>
    %419 = vector.extract_strided_slice %409 {offsets = [0, 128], sizes = [8, 128], strides = [1, 1]} : vector<8x384xf32> to vector<8x128xf32>
    %420 = arith.addf %418, %419 : vector<8x128xf32>
    %421 = arith.negf %420 : vector<8x128xf32>
    %422 = math.exp %421 : vector<8x128xf32>
    %cst_163 = arith.constant 1.000000e+00 : f32
    %423 = vector.broadcast %cst_163 : f32 to vector<8x128xf32>
    %424 = arith.addf %423, %422 : vector<8x128xf32>
    %425 = arith.divf %423, %424 : vector<8x128xf32>
    %426 = vector.extract_strided_slice %406 {offsets = [0, 256], sizes = [8, 128], strides = [1, 1]} : vector<8x384xf32> to vector<8x128xf32>
    %427 = vector.extract_strided_slice %409 {offsets = [0, 256], sizes = [8, 128], strides = [1, 1]} : vector<8x384xf32> to vector<8x128xf32>
    %428 = arith.mulf %417, %427 : vector<8x128xf32>
    %429 = arith.addf %426, %428 : vector<8x128xf32>
    %430 = math.tanh %429 : vector<8x128xf32>
    %cst_164 = arith.constant 1.000000e+00 : f32
    %431 = vector.broadcast %cst_164 : f32 to vector<8x128xf32>
    %432 = arith.subf %431, %425 : vector<8x128xf32>
    %433 = arith.mulf %432, %430 : vector<8x128xf32>
    %434 = arith.mulf %425, %363 : vector<8x128xf32>
    %435 = arith.addf %433, %434 : vector<8x128xf32>
    %c0_165 = arith.constant 0 : index
    %c0_166 = arith.constant 0 : index
    %436 = vector.load %arg14[%c0_165, %c0_166] : memref<128x128xf32, #tpu.memory_space<vmem>>, vector<128x128xf32>
    %cst_167 = arith.constant dense<0.000000e+00> : vector<8x128xf32>
    %437 = tpu.matmul %435, %436, %cst_167 {dimension_numbers = #tpu.dot_dimension_numbers<[1], [0], [0], [1], [0, 0, 1, 1], [], []>} : vector<8x128xf32>, vector<128x128xf32>, vector<8x128xf32> -> vector<8x128xf32>
    %438 = arith.addf %437, %304 : vector<8x128xf32>
    %439 = arith.index_cast %c1_i32_137 : i32 to index
    %c0_168 = arith.constant 0 : index
    %c0_169 = arith.constant 0 : index
    %440 = vector.load %arg16[%439, %c0_168, %c0_169] : memref<8x8x128xf32, #tpu.memory_space<vmem>>, vector<1x8x128xf32>
    %441 = vector.shape_cast %440 : vector<1x8x128xf32> to vector<8x128xf32>
    %442 = vector.shape_cast %438 : vector<8x128xf32> to vector<1x8x128xf32>
    tpu.vector_store %arg16[%439, %c0_168, %c0_169], %442 {strides = array<i32>} : memref<8x8x128xf32, #tpu.memory_space<vmem>>, vector<1x8x128xf32>,
    %443 = arith.index_cast %c1_i32_137 : i32 to index
    %444 = memref.load %arg0[%443] : memref<8xi32, #tpu.memory_space<smem>>
    %c0_i32_170 = arith.constant 0 : i32
    %445 = arith.cmpi sgt, %444, %c0_i32_170 : i32
    %446 = arith.extui %445 : i1 to i32
    %c0_i32_171 = arith.constant 0 : i32
    %447 = arith.cmpi ne, %446, %c0_i32_171 : i32
    scf.if %447 {
      %885 = arith.index_cast %c1_i32_137 : i32 to index
      %c0_397 = arith.constant 0 : index
      %c0_398 = arith.constant 0 : index
      %886 = vector.load %arg2[%885, %c0_397, %c0_398] : memref<8x8x128xf32, #tpu.memory_space<vmem>>, vector<1x8x128xf32>
      %887 = vector.shape_cast %886 : vector<1x8x128xf32> to vector<8x128xf32>
      %c0_399 = arith.constant 0 : index
      %c0_400 = arith.constant 0 : index
      %888 = vector.load %arg22[%c0_399, %c0_400] : memref<8x128xf32, #tpu.memory_space<vmem>>, vector<8x128xf32>
      tpu.vector_store %arg22[%c0_399, %c0_400], %887 {strides = array<i32>} : memref<8x128xf32, #tpu.memory_space<vmem>>, vector<8x128xf32>,
    } else {
    }
    %448 = arith.index_cast %c1_i32_137 : i32 to index
    %449 = memref.load %arg0[%448] : memref<8xi32, #tpu.memory_space<smem>>
    %c0_i32_172 = arith.constant 0 : i32
    %450 = arith.cmpi eq, %449, %c0_i32_172 : i32
    %451 = arith.extui %450 : i1 to i32
    %c0_i32_173 = arith.constant 0 : i32
    %452 = arith.cmpi ne, %451, %c0_i32_173 : i32
    scf.if %452 {
      %cst_397 = arith.constant dense<0xFF800000> : vector<8xf32>
      %885 = vector.multi_reduction <maximumf>, %438, %cst_397 [1] : vector<8x128xf32> to vector<8xf32>
      %886 = vector.shape_cast %885 : vector<8xf32> to vector<8x1xf32>
      %887 = vector.broadcast %886 : vector<8x1xf32> to vector<8x128xf32>
      %888 = arith.cmpf oge, %438, %887 : vector<8x128xf32>
      %c128_i32 = arith.constant 128 : i32
      %889 = vector.broadcast %c128_i32 : i32 to vector<8x128xi32>
      %890 = arith.select %888, %306, %889 : vector<8x128xi1>, vector<8x128xi32>
      %cst_398 = arith.constant dense<2147483647> : vector<8xi32>
      %891 = vector.multi_reduction <minsi>, %890, %cst_398 [1] : vector<8x128xi32> to vector<8xi32>
      %892 = vector.shape_cast %891 : vector<8xi32> to vector<8x1xi32>
      %893 = vector.broadcast %892 : vector<8x1xi32> to vector<8x128xi32>
      %894 = arith.cmpi eq, %306, %893 : vector<8x128xi32>
      %895 = arith.extui %894 : vector<8x128xi1> to vector<8x128xi32>
      %896 = arith.sitofp %895 : vector<8x128xi32> to vector<8x128xf32>
      %c0_399 = arith.constant 0 : index
      %c0_400 = arith.constant 0 : index
      %897 = vector.load %arg9[%c0_399, %c0_400] : memref<128x128xf32, #tpu.memory_space<vmem>>, vector<128x128xf32>
      %cst_401 = arith.constant dense<0.000000e+00> : vector<8x128xf32>
      %898 = tpu.matmul %896, %897, %cst_401 {dimension_numbers = #tpu.dot_dimension_numbers<[1], [0], [0], [1], [0, 0, 1, 1], [], []>} : vector<8x128xf32>, vector<128x128xf32>, vector<8x128xf32> -> vector<8x128xf32>
      %c0_402 = arith.constant 0 : index
      %c0_403 = arith.constant 0 : index
      %899 = vector.load %arg22[%c0_402, %c0_403] : memref<8x128xf32, #tpu.memory_space<vmem>>, vector<8x128xf32>
      tpu.vector_store %arg22[%c0_402, %c0_403], %898 {strides = array<i32>} : memref<8x128xf32, #tpu.memory_space<vmem>>, vector<8x128xf32>,
    } else {
    }
    %c2_i32_174 = arith.constant 2 : i32
    %c0_175 = arith.constant 0 : index
    %c0_176 = arith.constant 0 : index
    %453 = vector.load %arg22[%c0_175, %c0_176] : memref<8x128xf32, #tpu.memory_space<vmem>>, vector<8x128xf32>
    %c0_177 = arith.constant 0 : index
    %c0_178 = arith.constant 0 : index
    %454 = vector.load %arg20[%c0_177, %c0_178] : memref<128x128xf32, #tpu.memory_space<vmem>>, vector<128x128xf32>
    %cst_179 = arith.constant dense<0.000000e+00> : vector<8x128xf32>
    %455 = tpu.matmul %435, %454, %cst_179 {dimension_numbers = #tpu.dot_dimension_numbers<[1], [0], [0], [1], [0, 0, 1, 1], [], []>} : vector<8x128xf32>, vector<128x128xf32>, vector<8x128xf32> -> vector<8x128xf32>
    %456 = arith.addf %455, %305 : vector<8x128xf32>
    %cst_180 = arith.constant dense<0xFF800000> : vector<8xf32>
    %457 = vector.multi_reduction <maximumf>, %456, %cst_180 [1] : vector<8x128xf32> to vector<8xf32>
    %458 = vector.shape_cast %457 : vector<8xf32> to vector<8x1xf32>
    %459 = vector.broadcast %458 : vector<8x1xf32> to vector<8x128xf32>
    %460 = arith.subf %456, %459 : vector<8x128xf32>
    %461 = math.exp %460 : vector<8x128xf32>
    %cst_181 = arith.constant dense<0.000000e+00> : vector<8xf32>
    %462 = vector.multi_reduction <add>, %461, %cst_181 [1] : vector<8x128xf32> to vector<8xf32>
    %463 = vector.shape_cast %462 : vector<8xf32> to vector<8x1xf32>
    %464 = tpu.reciprocal %463 {approx = true} : vector<8x1xf32> -> vector<8x1xf32>
    %465 = vector.broadcast %464 : vector<8x1xf32> to vector<8x128xf32>
    %466 = arith.mulf %461, %465 : vector<8x128xf32>
    %467 = arith.index_cast %c2_i32_174 : i32 to index
    %c0_182 = arith.constant 0 : index
    %c0_183 = arith.constant 0 : index
    %468 = vector.load %arg17[%467, %c0_182, %c0_183] : memref<8x8x128xf32, #tpu.memory_space<vmem>>, vector<1x8x128xf32>
    %469 = vector.shape_cast %468 : vector<1x8x128xf32> to vector<8x128xf32>
    %470 = vector.shape_cast %466 : vector<8x128xf32> to vector<1x8x128xf32>
    tpu.vector_store %arg17[%467, %c0_182, %c0_183], %470 {strides = array<i32>} : memref<8x8x128xf32, #tpu.memory_space<vmem>>, vector<1x8x128xf32>,
    %c0_184 = arith.constant 0 : index
    %c0_185 = arith.constant 0 : index
    %471 = vector.load %arg19[%c0_184, %c0_185] : memref<128x128xf32, #tpu.memory_space<vmem>>, vector<128x128xf32>
    %cst_186 = arith.constant dense<0.000000e+00> : vector<8x128xf32>
    %472 = tpu.matmul %466, %471, %cst_186 {dimension_numbers = #tpu.dot_dimension_numbers<[1], [0], [0], [1], [0, 0, 1, 1], [], []>} : vector<8x128xf32>, vector<128x128xf32>, vector<8x128xf32> -> vector<8x128xf32>
    %c0_187 = arith.constant 0 : index
    %c0_188 = arith.constant 0 : index
    %473 = vector.load %arg21[%c0_187, %c0_188] : memref<8x256xf32, #tpu.memory_space<vmem>>, vector<8x128xf32>
    tpu.vector_store %arg21[%c0_187, %c0_188], %453 {strides = array<i32>} : memref<8x256xf32, #tpu.memory_space<vmem>>, vector<8x128xf32>,
    %c0_189 = arith.constant 0 : index
    %c128_190 = arith.constant 128 : index
    %474 = vector.load %arg21[%c0_189, %c128_190] : memref<8x256xf32, #tpu.memory_space<vmem>>, vector<8x128xf32>
    tpu.vector_store %arg21[%c0_189, %c128_190], %472 {strides = array<i32>} : memref<8x256xf32, #tpu.memory_space<vmem>>, vector<8x128xf32>,
    %c0_191 = arith.constant 0 : index
    %c0_192 = arith.constant 0 : index
    %475 = vector.load %arg21[%c0_191, %c0_192] : memref<8x256xf32, #tpu.memory_space<vmem>>, vector<8x256xf32>
    %c0_193 = arith.constant 0 : index
    %c0_194 = arith.constant 0 : index
    %476 = vector.load %arg10[%c0_193, %c0_194] : memref<256x384xf32, #tpu.memory_space<vmem>>, vector<256x384xf32>
    %cst_195 = arith.constant dense<0.000000e+00> : vector<8x384xf32>
    %477 = tpu.matmul %475, %476, %cst_195 {dimension_numbers = #tpu.dot_dimension_numbers<[1], [0], [0], [1], [0, 0, 1, 1], [], []>} : vector<8x256xf32>, vector<256x384xf32>, vector<8x384xf32> -> vector<8x384xf32>
    %478 = arith.addf %477, %298 : vector<8x384xf32>
    %c0_196 = arith.constant 0 : index
    %c0_197 = arith.constant 0 : index
    %479 = vector.load %arg11[%c0_196, %c0_197] : memref<128x384xf32, #tpu.memory_space<vmem>>, vector<128x384xf32>
    %cst_198 = arith.constant dense<0.000000e+00> : vector<8x384xf32>
    %480 = tpu.matmul %435, %479, %cst_198 {dimension_numbers = #tpu.dot_dimension_numbers<[1], [0], [0], [1], [0, 0, 1, 1], [], []>} : vector<8x128xf32>, vector<128x384xf32>, vector<8x384xf32> -> vector<8x384xf32>
    %481 = arith.addf %480, %301 : vector<8x384xf32>
    %482 = vector.extract_strided_slice %478 {offsets = [0, 0], sizes = [8, 128], strides = [1, 1]} : vector<8x384xf32> to vector<8x128xf32>
    %483 = vector.extract_strided_slice %481 {offsets = [0, 0], sizes = [8, 128], strides = [1, 1]} : vector<8x384xf32> to vector<8x128xf32>
    %484 = arith.addf %482, %483 : vector<8x128xf32>
    %485 = arith.negf %484 : vector<8x128xf32>
    %486 = math.exp %485 : vector<8x128xf32>
    %cst_199 = arith.constant 1.000000e+00 : f32
    %487 = vector.broadcast %cst_199 : f32 to vector<8x128xf32>
    %488 = arith.addf %487, %486 : vector<8x128xf32>
    %489 = arith.divf %487, %488 : vector<8x128xf32>
    %490 = vector.extract_strided_slice %478 {offsets = [0, 128], sizes = [8, 128], strides = [1, 1]} : vector<8x384xf32> to vector<8x128xf32>
    %491 = vector.extract_strided_slice %481 {offsets = [0, 128], sizes = [8, 128], strides = [1, 1]} : vector<8x384xf32> to vector<8x128xf32>
    %492 = arith.addf %490, %491 : vector<8x128xf32>
    %493 = arith.negf %492 : vector<8x128xf32>
    %494 = math.exp %493 : vector<8x128xf32>
    %cst_200 = arith.constant 1.000000e+00 : f32
    %495 = vector.broadcast %cst_200 : f32 to vector<8x128xf32>
    %496 = arith.addf %495, %494 : vector<8x128xf32>
    %497 = arith.divf %495, %496 : vector<8x128xf32>
    %498 = vector.extract_strided_slice %478 {offsets = [0, 256], sizes = [8, 128], strides = [1, 1]} : vector<8x384xf32> to vector<8x128xf32>
    %499 = vector.extract_strided_slice %481 {offsets = [0, 256], sizes = [8, 128], strides = [1, 1]} : vector<8x384xf32> to vector<8x128xf32>
    %500 = arith.mulf %489, %499 : vector<8x128xf32>
    %501 = arith.addf %498, %500 : vector<8x128xf32>
    %502 = math.tanh %501 : vector<8x128xf32>
    %cst_201 = arith.constant 1.000000e+00 : f32
    %503 = vector.broadcast %cst_201 : f32 to vector<8x128xf32>
    %504 = arith.subf %503, %497 : vector<8x128xf32>
    %505 = arith.mulf %504, %502 : vector<8x128xf32>
    %506 = arith.mulf %497, %435 : vector<8x128xf32>
    %507 = arith.addf %505, %506 : vector<8x128xf32>
    %c0_202 = arith.constant 0 : index
    %c0_203 = arith.constant 0 : index
    %508 = vector.load %arg14[%c0_202, %c0_203] : memref<128x128xf32, #tpu.memory_space<vmem>>, vector<128x128xf32>
    %cst_204 = arith.constant dense<0.000000e+00> : vector<8x128xf32>
    %509 = tpu.matmul %507, %508, %cst_204 {dimension_numbers = #tpu.dot_dimension_numbers<[1], [0], [0], [1], [0, 0, 1, 1], [], []>} : vector<8x128xf32>, vector<128x128xf32>, vector<8x128xf32> -> vector<8x128xf32>
    %510 = arith.addf %509, %304 : vector<8x128xf32>
    %511 = arith.index_cast %c2_i32_174 : i32 to index
    %c0_205 = arith.constant 0 : index
    %c0_206 = arith.constant 0 : index
    %512 = vector.load %arg16[%511, %c0_205, %c0_206] : memref<8x8x128xf32, #tpu.memory_space<vmem>>, vector<1x8x128xf32>
    %513 = vector.shape_cast %512 : vector<1x8x128xf32> to vector<8x128xf32>
    %514 = vector.shape_cast %510 : vector<8x128xf32> to vector<1x8x128xf32>
    tpu.vector_store %arg16[%511, %c0_205, %c0_206], %514 {strides = array<i32>} : memref<8x8x128xf32, #tpu.memory_space<vmem>>, vector<1x8x128xf32>,
    %515 = arith.index_cast %c2_i32_174 : i32 to index
    %516 = memref.load %arg0[%515] : memref<8xi32, #tpu.memory_space<smem>>
    %c0_i32_207 = arith.constant 0 : i32
    %517 = arith.cmpi sgt, %516, %c0_i32_207 : i32
    %518 = arith.extui %517 : i1 to i32
    %c0_i32_208 = arith.constant 0 : i32
    %519 = arith.cmpi ne, %518, %c0_i32_208 : i32
    scf.if %519 {
      %885 = arith.index_cast %c2_i32_174 : i32 to index
      %c0_397 = arith.constant 0 : index
      %c0_398 = arith.constant 0 : index
      %886 = vector.load %arg2[%885, %c0_397, %c0_398] : memref<8x8x128xf32, #tpu.memory_space<vmem>>, vector<1x8x128xf32>
      %887 = vector.shape_cast %886 : vector<1x8x128xf32> to vector<8x128xf32>
      %c0_399 = arith.constant 0 : index
      %c0_400 = arith.constant 0 : index
      %888 = vector.load %arg22[%c0_399, %c0_400] : memref<8x128xf32, #tpu.memory_space<vmem>>, vector<8x128xf32>
      tpu.vector_store %arg22[%c0_399, %c0_400], %887 {strides = array<i32>} : memref<8x128xf32, #tpu.memory_space<vmem>>, vector<8x128xf32>,
    } else {
    }
    %520 = arith.index_cast %c2_i32_174 : i32 to index
    %521 = memref.load %arg0[%520] : memref<8xi32, #tpu.memory_space<smem>>
    %c0_i32_209 = arith.constant 0 : i32
    %522 = arith.cmpi eq, %521, %c0_i32_209 : i32
    %523 = arith.extui %522 : i1 to i32
    %c0_i32_210 = arith.constant 0 : i32
    %524 = arith.cmpi ne, %523, %c0_i32_210 : i32
    scf.if %524 {
      %cst_397 = arith.constant dense<0xFF800000> : vector<8xf32>
      %885 = vector.multi_reduction <maximumf>, %510, %cst_397 [1] : vector<8x128xf32> to vector<8xf32>
      %886 = vector.shape_cast %885 : vector<8xf32> to vector<8x1xf32>
      %887 = vector.broadcast %886 : vector<8x1xf32> to vector<8x128xf32>
      %888 = arith.cmpf oge, %510, %887 : vector<8x128xf32>
      %c128_i32 = arith.constant 128 : i32
      %889 = vector.broadcast %c128_i32 : i32 to vector<8x128xi32>
      %890 = arith.select %888, %306, %889 : vector<8x128xi1>, vector<8x128xi32>
      %cst_398 = arith.constant dense<2147483647> : vector<8xi32>
      %891 = vector.multi_reduction <minsi>, %890, %cst_398 [1] : vector<8x128xi32> to vector<8xi32>
      %892 = vector.shape_cast %891 : vector<8xi32> to vector<8x1xi32>
      %893 = vector.broadcast %892 : vector<8x1xi32> to vector<8x128xi32>
      %894 = arith.cmpi eq, %306, %893 : vector<8x128xi32>
      %895 = arith.extui %894 : vector<8x128xi1> to vector<8x128xi32>
      %896 = arith.sitofp %895 : vector<8x128xi32> to vector<8x128xf32>
      %c0_399 = arith.constant 0 : index
      %c0_400 = arith.constant 0 : index
      %897 = vector.load %arg9[%c0_399, %c0_400] : memref<128x128xf32, #tpu.memory_space<vmem>>, vector<128x128xf32>
      %cst_401 = arith.constant dense<0.000000e+00> : vector<8x128xf32>
      %898 = tpu.matmul %896, %897, %cst_401 {dimension_numbers = #tpu.dot_dimension_numbers<[1], [0], [0], [1], [0, 0, 1, 1], [], []>} : vector<8x128xf32>, vector<128x128xf32>, vector<8x128xf32> -> vector<8x128xf32>
      %c0_402 = arith.constant 0 : index
      %c0_403 = arith.constant 0 : index
      %899 = vector.load %arg22[%c0_402, %c0_403] : memref<8x128xf32, #tpu.memory_space<vmem>>, vector<8x128xf32>
      tpu.vector_store %arg22[%c0_402, %c0_403], %898 {strides = array<i32>} : memref<8x128xf32, #tpu.memory_space<vmem>>, vector<8x128xf32>,
    } else {
    }
    %c3_i32_211 = arith.constant 3 : i32
    %c0_212 = arith.constant 0 : index
    %c0_213 = arith.constant 0 : index
    %525 = vector.load %arg22[%c0_212, %c0_213] : memref<8x128xf32, #tpu.memory_space<vmem>>, vector<8x128xf32>
    %c0_214 = arith.constant 0 : index
    %c0_215 = arith.constant 0 : index
    %526 = vector.load %arg20[%c0_214, %c0_215] : memref<128x128xf32, #tpu.memory_space<vmem>>, vector<128x128xf32>
    %cst_216 = arith.constant dense<0.000000e+00> : vector<8x128xf32>
    %527 = tpu.matmul %507, %526, %cst_216 {dimension_numbers = #tpu.dot_dimension_numbers<[1], [0], [0], [1], [0, 0, 1, 1], [], []>} : vector<8x128xf32>, vector<128x128xf32>, vector<8x128xf32> -> vector<8x128xf32>
    %528 = arith.addf %527, %305 : vector<8x128xf32>
    %cst_217 = arith.constant dense<0xFF800000> : vector<8xf32>
    %529 = vector.multi_reduction <maximumf>, %528, %cst_217 [1] : vector<8x128xf32> to vector<8xf32>
    %530 = vector.shape_cast %529 : vector<8xf32> to vector<8x1xf32>
    %531 = vector.broadcast %530 : vector<8x1xf32> to vector<8x128xf32>
    %532 = arith.subf %528, %531 : vector<8x128xf32>
    %533 = math.exp %532 : vector<8x128xf32>
    %cst_218 = arith.constant dense<0.000000e+00> : vector<8xf32>
    %534 = vector.multi_reduction <add>, %533, %cst_218 [1] : vector<8x128xf32> to vector<8xf32>
    %535 = vector.shape_cast %534 : vector<8xf32> to vector<8x1xf32>
    %536 = tpu.reciprocal %535 {approx = true} : vector<8x1xf32> -> vector<8x1xf32>
    %537 = vector.broadcast %536 : vector<8x1xf32> to vector<8x128xf32>
    %538 = arith.mulf %533, %537 : vector<8x128xf32>
    %539 = arith.index_cast %c3_i32_211 : i32 to index
    %c0_219 = arith.constant 0 : index
    %c0_220 = arith.constant 0 : index
    %540 = vector.load %arg17[%539, %c0_219, %c0_220] : memref<8x8x128xf32, #tpu.memory_space<vmem>>, vector<1x8x128xf32>
    %541 = vector.shape_cast %540 : vector<1x8x128xf32> to vector<8x128xf32>
    %542 = vector.shape_cast %538 : vector<8x128xf32> to vector<1x8x128xf32>
    tpu.vector_store %arg17[%539, %c0_219, %c0_220], %542 {strides = array<i32>} : memref<8x8x128xf32, #tpu.memory_space<vmem>>, vector<1x8x128xf32>,
    %c0_221 = arith.constant 0 : index
    %c0_222 = arith.constant 0 : index
    %543 = vector.load %arg19[%c0_221, %c0_222] : memref<128x128xf32, #tpu.memory_space<vmem>>, vector<128x128xf32>
    %cst_223 = arith.constant dense<0.000000e+00> : vector<8x128xf32>
    %544 = tpu.matmul %538, %543, %cst_223 {dimension_numbers = #tpu.dot_dimension_numbers<[1], [0], [0], [1], [0, 0, 1, 1], [], []>} : vector<8x128xf32>, vector<128x128xf32>, vector<8x128xf32> -> vector<8x128xf32>
    %c0_224 = arith.constant 0 : index
    %c0_225 = arith.constant 0 : index
    %545 = vector.load %arg21[%c0_224, %c0_225] : memref<8x256xf32, #tpu.memory_space<vmem>>, vector<8x128xf32>
    tpu.vector_store %arg21[%c0_224, %c0_225], %525 {strides = array<i32>} : memref<8x256xf32, #tpu.memory_space<vmem>>, vector<8x128xf32>,
    %c0_226 = arith.constant 0 : index
    %c128_227 = arith.constant 128 : index
    %546 = vector.load %arg21[%c0_226, %c128_227] : memref<8x256xf32, #tpu.memory_space<vmem>>, vector<8x128xf32>
    tpu.vector_store %arg21[%c0_226, %c128_227], %544 {strides = array<i32>} : memref<8x256xf32, #tpu.memory_space<vmem>>, vector<8x128xf32>,
    %c0_228 = arith.constant 0 : index
    %c0_229 = arith.constant 0 : index
    %547 = vector.load %arg21[%c0_228, %c0_229] : memref<8x256xf32, #tpu.memory_space<vmem>>, vector<8x256xf32>
    %c0_230 = arith.constant 0 : index
    %c0_231 = arith.constant 0 : index
    %548 = vector.load %arg10[%c0_230, %c0_231] : memref<256x384xf32, #tpu.memory_space<vmem>>, vector<256x384xf32>
    %cst_232 = arith.constant dense<0.000000e+00> : vector<8x384xf32>
    %549 = tpu.matmul %547, %548, %cst_232 {dimension_numbers = #tpu.dot_dimension_numbers<[1], [0], [0], [1], [0, 0, 1, 1], [], []>} : vector<8x256xf32>, vector<256x384xf32>, vector<8x384xf32> -> vector<8x384xf32>
    %550 = arith.addf %549, %298 : vector<8x384xf32>
    %c0_233 = arith.constant 0 : index
    %c0_234 = arith.constant 0 : index
    %551 = vector.load %arg11[%c0_233, %c0_234] : memref<128x384xf32, #tpu.memory_space<vmem>>, vector<128x384xf32>
    %cst_235 = arith.constant dense<0.000000e+00> : vector<8x384xf32>
    %552 = tpu.matmul %507, %551, %cst_235 {dimension_numbers = #tpu.dot_dimension_numbers<[1], [0], [0], [1], [0, 0, 1, 1], [], []>} : vector<8x128xf32>, vector<128x384xf32>, vector<8x384xf32> -> vector<8x384xf32>
    %553 = arith.addf %552, %301 : vector<8x384xf32>
    %554 = vector.extract_strided_slice %550 {offsets = [0, 0], sizes = [8, 128], strides = [1, 1]} : vector<8x384xf32> to vector<8x128xf32>
    %555 = vector.extract_strided_slice %553 {offsets = [0, 0], sizes = [8, 128], strides = [1, 1]} : vector<8x384xf32> to vector<8x128xf32>
    %556 = arith.addf %554, %555 : vector<8x128xf32>
    %557 = arith.negf %556 : vector<8x128xf32>
    %558 = math.exp %557 : vector<8x128xf32>
    %cst_236 = arith.constant 1.000000e+00 : f32
    %559 = vector.broadcast %cst_236 : f32 to vector<8x128xf32>
    %560 = arith.addf %559, %558 : vector<8x128xf32>
    %561 = arith.divf %559, %560 : vector<8x128xf32>
    %562 = vector.extract_strided_slice %550 {offsets = [0, 128], sizes = [8, 128], strides = [1, 1]} : vector<8x384xf32> to vector<8x128xf32>
    %563 = vector.extract_strided_slice %553 {offsets = [0, 128], sizes = [8, 128], strides = [1, 1]} : vector<8x384xf32> to vector<8x128xf32>
    %564 = arith.addf %562, %563 : vector<8x128xf32>
    %565 = arith.negf %564 : vector<8x128xf32>
    %566 = math.exp %565 : vector<8x128xf32>
    %cst_237 = arith.constant 1.000000e+00 : f32
    %567 = vector.broadcast %cst_237 : f32 to vector<8x128xf32>
    %568 = arith.addf %567, %566 : vector<8x128xf32>
    %569 = arith.divf %567, %568 : vector<8x128xf32>
    %570 = vector.extract_strided_slice %550 {offsets = [0, 256], sizes = [8, 128], strides = [1, 1]} : vector<8x384xf32> to vector<8x128xf32>
    %571 = vector.extract_strided_slice %553 {offsets = [0, 256], sizes = [8, 128], strides = [1, 1]} : vector<8x384xf32> to vector<8x128xf32>
    %572 = arith.mulf %561, %571 : vector<8x128xf32>
    %573 = arith.addf %570, %572 : vector<8x128xf32>
    %574 = math.tanh %573 : vector<8x128xf32>
    %cst_238 = arith.constant 1.000000e+00 : f32
    %575 = vector.broadcast %cst_238 : f32 to vector<8x128xf32>
    %576 = arith.subf %575, %569 : vector<8x128xf32>
    %577 = arith.mulf %576, %574 : vector<8x128xf32>
    %578 = arith.mulf %569, %507 : vector<8x128xf32>
    %579 = arith.addf %577, %578 : vector<8x128xf32>
    %c0_239 = arith.constant 0 : index
    %c0_240 = arith.constant 0 : index
    %580 = vector.load %arg14[%c0_239, %c0_240] : memref<128x128xf32, #tpu.memory_space<vmem>>, vector<128x128xf32>
    %cst_241 = arith.constant dense<0.000000e+00> : vector<8x128xf32>
    %581 = tpu.matmul %579, %580, %cst_241 {dimension_numbers = #tpu.dot_dimension_numbers<[1], [0], [0], [1], [0, 0, 1, 1], [], []>} : vector<8x128xf32>, vector<128x128xf32>, vector<8x128xf32> -> vector<8x128xf32>
    %582 = arith.addf %581, %304 : vector<8x128xf32>
    %583 = arith.index_cast %c3_i32_211 : i32 to index
    %c0_242 = arith.constant 0 : index
    %c0_243 = arith.constant 0 : index
    %584 = vector.load %arg16[%583, %c0_242, %c0_243] : memref<8x8x128xf32, #tpu.memory_space<vmem>>, vector<1x8x128xf32>
    %585 = vector.shape_cast %584 : vector<1x8x128xf32> to vector<8x128xf32>
    %586 = vector.shape_cast %582 : vector<8x128xf32> to vector<1x8x128xf32>
    tpu.vector_store %arg16[%583, %c0_242, %c0_243], %586 {strides = array<i32>} : memref<8x8x128xf32, #tpu.memory_space<vmem>>, vector<1x8x128xf32>,
    %587 = arith.index_cast %c3_i32_211 : i32 to index
    %588 = memref.load %arg0[%587] : memref<8xi32, #tpu.memory_space<smem>>
    %c0_i32_244 = arith.constant 0 : i32
    %589 = arith.cmpi sgt, %588, %c0_i32_244 : i32
    %590 = arith.extui %589 : i1 to i32
    %c0_i32_245 = arith.constant 0 : i32
    %591 = arith.cmpi ne, %590, %c0_i32_245 : i32
    scf.if %591 {
      %885 = arith.index_cast %c3_i32_211 : i32 to index
      %c0_397 = arith.constant 0 : index
      %c0_398 = arith.constant 0 : index
      %886 = vector.load %arg2[%885, %c0_397, %c0_398] : memref<8x8x128xf32, #tpu.memory_space<vmem>>, vector<1x8x128xf32>
      %887 = vector.shape_cast %886 : vector<1x8x128xf32> to vector<8x128xf32>
      %c0_399 = arith.constant 0 : index
      %c0_400 = arith.constant 0 : index
      %888 = vector.load %arg22[%c0_399, %c0_400] : memref<8x128xf32, #tpu.memory_space<vmem>>, vector<8x128xf32>
      tpu.vector_store %arg22[%c0_399, %c0_400], %887 {strides = array<i32>} : memref<8x128xf32, #tpu.memory_space<vmem>>, vector<8x128xf32>,
    } else {
    }
    %592 = arith.index_cast %c3_i32_211 : i32 to index
    %593 = memref.load %arg0[%592] : memref<8xi32, #tpu.memory_space<smem>>
    %c0_i32_246 = arith.constant 0 : i32
    %594 = arith.cmpi eq, %593, %c0_i32_246 : i32
    %595 = arith.extui %594 : i1 to i32
    %c0_i32_247 = arith.constant 0 : i32
    %596 = arith.cmpi ne, %595, %c0_i32_247 : i32
    scf.if %596 {
      %cst_397 = arith.constant dense<0xFF800000> : vector<8xf32>
      %885 = vector.multi_reduction <maximumf>, %582, %cst_397 [1] : vector<8x128xf32> to vector<8xf32>
      %886 = vector.shape_cast %885 : vector<8xf32> to vector<8x1xf32>
      %887 = vector.broadcast %886 : vector<8x1xf32> to vector<8x128xf32>
      %888 = arith.cmpf oge, %582, %887 : vector<8x128xf32>
      %c128_i32 = arith.constant 128 : i32
      %889 = vector.broadcast %c128_i32 : i32 to vector<8x128xi32>
      %890 = arith.select %888, %306, %889 : vector<8x128xi1>, vector<8x128xi32>
      %cst_398 = arith.constant dense<2147483647> : vector<8xi32>
      %891 = vector.multi_reduction <minsi>, %890, %cst_398 [1] : vector<8x128xi32> to vector<8xi32>
      %892 = vector.shape_cast %891 : vector<8xi32> to vector<8x1xi32>
      %893 = vector.broadcast %892 : vector<8x1xi32> to vector<8x128xi32>
      %894 = arith.cmpi eq, %306, %893 : vector<8x128xi32>
      %895 = arith.extui %894 : vector<8x128xi1> to vector<8x128xi32>
      %896 = arith.sitofp %895 : vector<8x128xi32> to vector<8x128xf32>
      %c0_399 = arith.constant 0 : index
      %c0_400 = arith.constant 0 : index
      %897 = vector.load %arg9[%c0_399, %c0_400] : memref<128x128xf32, #tpu.memory_space<vmem>>, vector<128x128xf32>
      %cst_401 = arith.constant dense<0.000000e+00> : vector<8x128xf32>
      %898 = tpu.matmul %896, %897, %cst_401 {dimension_numbers = #tpu.dot_dimension_numbers<[1], [0], [0], [1], [0, 0, 1, 1], [], []>} : vector<8x128xf32>, vector<128x128xf32>, vector<8x128xf32> -> vector<8x128xf32>
      %c0_402 = arith.constant 0 : index
      %c0_403 = arith.constant 0 : index
      %899 = vector.load %arg22[%c0_402, %c0_403] : memref<8x128xf32, #tpu.memory_space<vmem>>, vector<8x128xf32>
      tpu.vector_store %arg22[%c0_402, %c0_403], %898 {strides = array<i32>} : memref<8x128xf32, #tpu.memory_space<vmem>>, vector<8x128xf32>,
    } else {
    }
    %c4_i32_248 = arith.constant 4 : i32
    %c0_249 = arith.constant 0 : index
    %c0_250 = arith.constant 0 : index
    %597 = vector.load %arg22[%c0_249, %c0_250] : memref<8x128xf32, #tpu.memory_space<vmem>>, vector<8x128xf32>
    %c0_251 = arith.constant 0 : index
    %c0_252 = arith.constant 0 : index
    %598 = vector.load %arg20[%c0_251, %c0_252] : memref<128x128xf32, #tpu.memory_space<vmem>>, vector<128x128xf32>
    %cst_253 = arith.constant dense<0.000000e+00> : vector<8x128xf32>
    %599 = tpu.matmul %579, %598, %cst_253 {dimension_numbers = #tpu.dot_dimension_numbers<[1], [0], [0], [1], [0, 0, 1, 1], [], []>} : vector<8x128xf32>, vector<128x128xf32>, vector<8x128xf32> -> vector<8x128xf32>
    %600 = arith.addf %599, %305 : vector<8x128xf32>
    %cst_254 = arith.constant dense<0xFF800000> : vector<8xf32>
    %601 = vector.multi_reduction <maximumf>, %600, %cst_254 [1] : vector<8x128xf32> to vector<8xf32>
    %602 = vector.shape_cast %601 : vector<8xf32> to vector<8x1xf32>
    %603 = vector.broadcast %602 : vector<8x1xf32> to vector<8x128xf32>
    %604 = arith.subf %600, %603 : vector<8x128xf32>
    %605 = math.exp %604 : vector<8x128xf32>
    %cst_255 = arith.constant dense<0.000000e+00> : vector<8xf32>
    %606 = vector.multi_reduction <add>, %605, %cst_255 [1] : vector<8x128xf32> to vector<8xf32>
    %607 = vector.shape_cast %606 : vector<8xf32> to vector<8x1xf32>
    %608 = tpu.reciprocal %607 {approx = true} : vector<8x1xf32> -> vector<8x1xf32>
    %609 = vector.broadcast %608 : vector<8x1xf32> to vector<8x128xf32>
    %610 = arith.mulf %605, %609 : vector<8x128xf32>
    %611 = arith.index_cast %c4_i32_248 : i32 to index
    %c0_256 = arith.constant 0 : index
    %c0_257 = arith.constant 0 : index
    %612 = vector.load %arg17[%611, %c0_256, %c0_257] : memref<8x8x128xf32, #tpu.memory_space<vmem>>, vector<1x8x128xf32>
    %613 = vector.shape_cast %612 : vector<1x8x128xf32> to vector<8x128xf32>
    %614 = vector.shape_cast %610 : vector<8x128xf32> to vector<1x8x128xf32>
    tpu.vector_store %arg17[%611, %c0_256, %c0_257], %614 {strides = array<i32>} : memref<8x8x128xf32, #tpu.memory_space<vmem>>, vector<1x8x128xf32>,
    %c0_258 = arith.constant 0 : index
    %c0_259 = arith.constant 0 : index
    %615 = vector.load %arg19[%c0_258, %c0_259] : memref<128x128xf32, #tpu.memory_space<vmem>>, vector<128x128xf32>
    %cst_260 = arith.constant dense<0.000000e+00> : vector<8x128xf32>
    %616 = tpu.matmul %610, %615, %cst_260 {dimension_numbers = #tpu.dot_dimension_numbers<[1], [0], [0], [1], [0, 0, 1, 1], [], []>} : vector<8x128xf32>, vector<128x128xf32>, vector<8x128xf32> -> vector<8x128xf32>
    %c0_261 = arith.constant 0 : index
    %c0_262 = arith.constant 0 : index
    %617 = vector.load %arg21[%c0_261, %c0_262] : memref<8x256xf32, #tpu.memory_space<vmem>>, vector<8x128xf32>
    tpu.vector_store %arg21[%c0_261, %c0_262], %597 {strides = array<i32>} : memref<8x256xf32, #tpu.memory_space<vmem>>, vector<8x128xf32>,
    %c0_263 = arith.constant 0 : index
    %c128_264 = arith.constant 128 : index
    %618 = vector.load %arg21[%c0_263, %c128_264] : memref<8x256xf32, #tpu.memory_space<vmem>>, vector<8x128xf32>
    tpu.vector_store %arg21[%c0_263, %c128_264], %616 {strides = array<i32>} : memref<8x256xf32, #tpu.memory_space<vmem>>, vector<8x128xf32>,
    %c0_265 = arith.constant 0 : index
    %c0_266 = arith.constant 0 : index
    %619 = vector.load %arg21[%c0_265, %c0_266] : memref<8x256xf32, #tpu.memory_space<vmem>>, vector<8x256xf32>
    %c0_267 = arith.constant 0 : index
    %c0_268 = arith.constant 0 : index
    %620 = vector.load %arg10[%c0_267, %c0_268] : memref<256x384xf32, #tpu.memory_space<vmem>>, vector<256x384xf32>
    %cst_269 = arith.constant dense<0.000000e+00> : vector<8x384xf32>
    %621 = tpu.matmul %619, %620, %cst_269 {dimension_numbers = #tpu.dot_dimension_numbers<[1], [0], [0], [1], [0, 0, 1, 1], [], []>} : vector<8x256xf32>, vector<256x384xf32>, vector<8x384xf32> -> vector<8x384xf32>
    %622 = arith.addf %621, %298 : vector<8x384xf32>
    %c0_270 = arith.constant 0 : index
    %c0_271 = arith.constant 0 : index
    %623 = vector.load %arg11[%c0_270, %c0_271] : memref<128x384xf32, #tpu.memory_space<vmem>>, vector<128x384xf32>
    %cst_272 = arith.constant dense<0.000000e+00> : vector<8x384xf32>
    %624 = tpu.matmul %579, %623, %cst_272 {dimension_numbers = #tpu.dot_dimension_numbers<[1], [0], [0], [1], [0, 0, 1, 1], [], []>} : vector<8x128xf32>, vector<128x384xf32>, vector<8x384xf32> -> vector<8x384xf32>
    %625 = arith.addf %624, %301 : vector<8x384xf32>
    %626 = vector.extract_strided_slice %622 {offsets = [0, 0], sizes = [8, 128], strides = [1, 1]} : vector<8x384xf32> to vector<8x128xf32>
    %627 = vector.extract_strided_slice %625 {offsets = [0, 0], sizes = [8, 128], strides = [1, 1]} : vector<8x384xf32> to vector<8x128xf32>
    %628 = arith.addf %626, %627 : vector<8x128xf32>
    %629 = arith.negf %628 : vector<8x128xf32>
    %630 = math.exp %629 : vector<8x128xf32>
    %cst_273 = arith.constant 1.000000e+00 : f32
    %631 = vector.broadcast %cst_273 : f32 to vector<8x128xf32>
    %632 = arith.addf %631, %630 : vector<8x128xf32>
    %633 = arith.divf %631, %632 : vector<8x128xf32>
    %634 = vector.extract_strided_slice %622 {offsets = [0, 128], sizes = [8, 128], strides = [1, 1]} : vector<8x384xf32> to vector<8x128xf32>
    %635 = vector.extract_strided_slice %625 {offsets = [0, 128], sizes = [8, 128], strides = [1, 1]} : vector<8x384xf32> to vector<8x128xf32>
    %636 = arith.addf %634, %635 : vector<8x128xf32>
    %637 = arith.negf %636 : vector<8x128xf32>
    %638 = math.exp %637 : vector<8x128xf32>
    %cst_274 = arith.constant 1.000000e+00 : f32
    %639 = vector.broadcast %cst_274 : f32 to vector<8x128xf32>
    %640 = arith.addf %639, %638 : vector<8x128xf32>
    %641 = arith.divf %639, %640 : vector<8x128xf32>
    %642 = vector.extract_strided_slice %622 {offsets = [0, 256], sizes = [8, 128], strides = [1, 1]} : vector<8x384xf32> to vector<8x128xf32>
    %643 = vector.extract_strided_slice %625 {offsets = [0, 256], sizes = [8, 128], strides = [1, 1]} : vector<8x384xf32> to vector<8x128xf32>
    %644 = arith.mulf %633, %643 : vector<8x128xf32>
    %645 = arith.addf %642, %644 : vector<8x128xf32>
    %646 = math.tanh %645 : vector<8x128xf32>
    %cst_275 = arith.constant 1.000000e+00 : f32
    %647 = vector.broadcast %cst_275 : f32 to vector<8x128xf32>
    %648 = arith.subf %647, %641 : vector<8x128xf32>
    %649 = arith.mulf %648, %646 : vector<8x128xf32>
    %650 = arith.mulf %641, %579 : vector<8x128xf32>
    %651 = arith.addf %649, %650 : vector<8x128xf32>
    %c0_276 = arith.constant 0 : index
    %c0_277 = arith.constant 0 : index
    %652 = vector.load %arg14[%c0_276, %c0_277] : memref<128x128xf32, #tpu.memory_space<vmem>>, vector<128x128xf32>
    %cst_278 = arith.constant dense<0.000000e+00> : vector<8x128xf32>
    %653 = tpu.matmul %651, %652, %cst_278 {dimension_numbers = #tpu.dot_dimension_numbers<[1], [0], [0], [1], [0, 0, 1, 1], [], []>} : vector<8x128xf32>, vector<128x128xf32>, vector<8x128xf32> -> vector<8x128xf32>
    %654 = arith.addf %653, %304 : vector<8x128xf32>
    %655 = arith.index_cast %c4_i32_248 : i32 to index
    %c0_279 = arith.constant 0 : index
    %c0_280 = arith.constant 0 : index
    %656 = vector.load %arg16[%655, %c0_279, %c0_280] : memref<8x8x128xf32, #tpu.memory_space<vmem>>, vector<1x8x128xf32>
    %657 = vector.shape_cast %656 : vector<1x8x128xf32> to vector<8x128xf32>
    %658 = vector.shape_cast %654 : vector<8x128xf32> to vector<1x8x128xf32>
    tpu.vector_store %arg16[%655, %c0_279, %c0_280], %658 {strides = array<i32>} : memref<8x8x128xf32, #tpu.memory_space<vmem>>, vector<1x8x128xf32>,
    %659 = arith.index_cast %c4_i32_248 : i32 to index
    %660 = memref.load %arg0[%659] : memref<8xi32, #tpu.memory_space<smem>>
    %c0_i32_281 = arith.constant 0 : i32
    %661 = arith.cmpi sgt, %660, %c0_i32_281 : i32
    %662 = arith.extui %661 : i1 to i32
    %c0_i32_282 = arith.constant 0 : i32
    %663 = arith.cmpi ne, %662, %c0_i32_282 : i32
    scf.if %663 {
      %885 = arith.index_cast %c4_i32_248 : i32 to index
      %c0_397 = arith.constant 0 : index
      %c0_398 = arith.constant 0 : index
      %886 = vector.load %arg2[%885, %c0_397, %c0_398] : memref<8x8x128xf32, #tpu.memory_space<vmem>>, vector<1x8x128xf32>
      %887 = vector.shape_cast %886 : vector<1x8x128xf32> to vector<8x128xf32>
      %c0_399 = arith.constant 0 : index
      %c0_400 = arith.constant 0 : index
      %888 = vector.load %arg22[%c0_399, %c0_400] : memref<8x128xf32, #tpu.memory_space<vmem>>, vector<8x128xf32>
      tpu.vector_store %arg22[%c0_399, %c0_400], %887 {strides = array<i32>} : memref<8x128xf32, #tpu.memory_space<vmem>>, vector<8x128xf32>,
    } else {
    }
    %664 = arith.index_cast %c4_i32_248 : i32 to index
    %665 = memref.load %arg0[%664] : memref<8xi32, #tpu.memory_space<smem>>
    %c0_i32_283 = arith.constant 0 : i32
    %666 = arith.cmpi eq, %665, %c0_i32_283 : i32
    %667 = arith.extui %666 : i1 to i32
    %c0_i32_284 = arith.constant 0 : i32
    %668 = arith.cmpi ne, %667, %c0_i32_284 : i32
    scf.if %668 {
      %cst_397 = arith.constant dense<0xFF800000> : vector<8xf32>
      %885 = vector.multi_reduction <maximumf>, %654, %cst_397 [1] : vector<8x128xf32> to vector<8xf32>
      %886 = vector.shape_cast %885 : vector<8xf32> to vector<8x1xf32>
      %887 = vector.broadcast %886 : vector<8x1xf32> to vector<8x128xf32>
      %888 = arith.cmpf oge, %654, %887 : vector<8x128xf32>
      %c128_i32 = arith.constant 128 : i32
      %889 = vector.broadcast %c128_i32 : i32 to vector<8x128xi32>
      %890 = arith.select %888, %306, %889 : vector<8x128xi1>, vector<8x128xi32>
      %cst_398 = arith.constant dense<2147483647> : vector<8xi32>
      %891 = vector.multi_reduction <minsi>, %890, %cst_398 [1] : vector<8x128xi32> to vector<8xi32>
      %892 = vector.shape_cast %891 : vector<8xi32> to vector<8x1xi32>
      %893 = vector.broadcast %892 : vector<8x1xi32> to vector<8x128xi32>
      %894 = arith.cmpi eq, %306, %893 : vector<8x128xi32>
      %895 = arith.extui %894 : vector<8x128xi1> to vector<8x128xi32>
      %896 = arith.sitofp %895 : vector<8x128xi32> to vector<8x128xf32>
      %c0_399 = arith.constant 0 : index
      %c0_400 = arith.constant 0 : index
      %897 = vector.load %arg9[%c0_399, %c0_400] : memref<128x128xf32, #tpu.memory_space<vmem>>, vector<128x128xf32>
      %cst_401 = arith.constant dense<0.000000e+00> : vector<8x128xf32>
      %898 = tpu.matmul %896, %897, %cst_401 {dimension_numbers = #tpu.dot_dimension_numbers<[1], [0], [0], [1], [0, 0, 1, 1], [], []>} : vector<8x128xf32>, vector<128x128xf32>, vector<8x128xf32> -> vector<8x128xf32>
      %c0_402 = arith.constant 0 : index
      %c0_403 = arith.constant 0 : index
      %899 = vector.load %arg22[%c0_402, %c0_403] : memref<8x128xf32, #tpu.memory_space<vmem>>, vector<8x128xf32>
      tpu.vector_store %arg22[%c0_402, %c0_403], %898 {strides = array<i32>} : memref<8x128xf32, #tpu.memory_space<vmem>>, vector<8x128xf32>,
    } else {
    }
    %c5_i32_285 = arith.constant 5 : i32
    %c0_286 = arith.constant 0 : index
    %c0_287 = arith.constant 0 : index
    %669 = vector.load %arg22[%c0_286, %c0_287] : memref<8x128xf32, #tpu.memory_space<vmem>>, vector<8x128xf32>
    %c0_288 = arith.constant 0 : index
    %c0_289 = arith.constant 0 : index
    %670 = vector.load %arg20[%c0_288, %c0_289] : memref<128x128xf32, #tpu.memory_space<vmem>>, vector<128x128xf32>
    %cst_290 = arith.constant dense<0.000000e+00> : vector<8x128xf32>
    %671 = tpu.matmul %651, %670, %cst_290 {dimension_numbers = #tpu.dot_dimension_numbers<[1], [0], [0], [1], [0, 0, 1, 1], [], []>} : vector<8x128xf32>, vector<128x128xf32>, vector<8x128xf32> -> vector<8x128xf32>
    %672 = arith.addf %671, %305 : vector<8x128xf32>
    %cst_291 = arith.constant dense<0xFF800000> : vector<8xf32>
    %673 = vector.multi_reduction <maximumf>, %672, %cst_291 [1] : vector<8x128xf32> to vector<8xf32>
    %674 = vector.shape_cast %673 : vector<8xf32> to vector<8x1xf32>
    %675 = vector.broadcast %674 : vector<8x1xf32> to vector<8x128xf32>
    %676 = arith.subf %672, %675 : vector<8x128xf32>
    %677 = math.exp %676 : vector<8x128xf32>
    %cst_292 = arith.constant dense<0.000000e+00> : vector<8xf32>
    %678 = vector.multi_reduction <add>, %677, %cst_292 [1] : vector<8x128xf32> to vector<8xf32>
    %679 = vector.shape_cast %678 : vector<8xf32> to vector<8x1xf32>
    %680 = tpu.reciprocal %679 {approx = true} : vector<8x1xf32> -> vector<8x1xf32>
    %681 = vector.broadcast %680 : vector<8x1xf32> to vector<8x128xf32>
    %682 = arith.mulf %677, %681 : vector<8x128xf32>
    %683 = arith.index_cast %c5_i32_285 : i32 to index
    %c0_293 = arith.constant 0 : index
    %c0_294 = arith.constant 0 : index
    %684 = vector.load %arg17[%683, %c0_293, %c0_294] : memref<8x8x128xf32, #tpu.memory_space<vmem>>, vector<1x8x128xf32>
    %685 = vector.shape_cast %684 : vector<1x8x128xf32> to vector<8x128xf32>
    %686 = vector.shape_cast %682 : vector<8x128xf32> to vector<1x8x128xf32>
    tpu.vector_store %arg17[%683, %c0_293, %c0_294], %686 {strides = array<i32>} : memref<8x8x128xf32, #tpu.memory_space<vmem>>, vector<1x8x128xf32>,
    %c0_295 = arith.constant 0 : index
    %c0_296 = arith.constant 0 : index
    %687 = vector.load %arg19[%c0_295, %c0_296] : memref<128x128xf32, #tpu.memory_space<vmem>>, vector<128x128xf32>
    %cst_297 = arith.constant dense<0.000000e+00> : vector<8x128xf32>
    %688 = tpu.matmul %682, %687, %cst_297 {dimension_numbers = #tpu.dot_dimension_numbers<[1], [0], [0], [1], [0, 0, 1, 1], [], []>} : vector<8x128xf32>, vector<128x128xf32>, vector<8x128xf32> -> vector<8x128xf32>
    %c0_298 = arith.constant 0 : index
    %c0_299 = arith.constant 0 : index
    %689 = vector.load %arg21[%c0_298, %c0_299] : memref<8x256xf32, #tpu.memory_space<vmem>>, vector<8x128xf32>
    tpu.vector_store %arg21[%c0_298, %c0_299], %669 {strides = array<i32>} : memref<8x256xf32, #tpu.memory_space<vmem>>, vector<8x128xf32>,
    %c0_300 = arith.constant 0 : index
    %c128_301 = arith.constant 128 : index
    %690 = vector.load %arg21[%c0_300, %c128_301] : memref<8x256xf32, #tpu.memory_space<vmem>>, vector<8x128xf32>
    tpu.vector_store %arg21[%c0_300, %c128_301], %688 {strides = array<i32>} : memref<8x256xf32, #tpu.memory_space<vmem>>, vector<8x128xf32>,
    %c0_302 = arith.constant 0 : index
    %c0_303 = arith.constant 0 : index
    %691 = vector.load %arg21[%c0_302, %c0_303] : memref<8x256xf32, #tpu.memory_space<vmem>>, vector<8x256xf32>
    %c0_304 = arith.constant 0 : index
    %c0_305 = arith.constant 0 : index
    %692 = vector.load %arg10[%c0_304, %c0_305] : memref<256x384xf32, #tpu.memory_space<vmem>>, vector<256x384xf32>
    %cst_306 = arith.constant dense<0.000000e+00> : vector<8x384xf32>
    %693 = tpu.matmul %691, %692, %cst_306 {dimension_numbers = #tpu.dot_dimension_numbers<[1], [0], [0], [1], [0, 0, 1, 1], [], []>} : vector<8x256xf32>, vector<256x384xf32>, vector<8x384xf32> -> vector<8x384xf32>
    %694 = arith.addf %693, %298 : vector<8x384xf32>
    %c0_307 = arith.constant 0 : index
    %c0_308 = arith.constant 0 : index
    %695 = vector.load %arg11[%c0_307, %c0_308] : memref<128x384xf32, #tpu.memory_space<vmem>>, vector<128x384xf32>
    %cst_309 = arith.constant dense<0.000000e+00> : vector<8x384xf32>
    %696 = tpu.matmul %651, %695, %cst_309 {dimension_numbers = #tpu.dot_dimension_numbers<[1], [0], [0], [1], [0, 0, 1, 1], [], []>} : vector<8x128xf32>, vector<128x384xf32>, vector<8x384xf32> -> vector<8x384xf32>
    %697 = arith.addf %696, %301 : vector<8x384xf32>
    %698 = vector.extract_strided_slice %694 {offsets = [0, 0], sizes = [8, 128], strides = [1, 1]} : vector<8x384xf32> to vector<8x128xf32>
    %699 = vector.extract_strided_slice %697 {offsets = [0, 0], sizes = [8, 128], strides = [1, 1]} : vector<8x384xf32> to vector<8x128xf32>
    %700 = arith.addf %698, %699 : vector<8x128xf32>
    %701 = arith.negf %700 : vector<8x128xf32>
    %702 = math.exp %701 : vector<8x128xf32>
    %cst_310 = arith.constant 1.000000e+00 : f32
    %703 = vector.broadcast %cst_310 : f32 to vector<8x128xf32>
    %704 = arith.addf %703, %702 : vector<8x128xf32>
    %705 = arith.divf %703, %704 : vector<8x128xf32>
    %706 = vector.extract_strided_slice %694 {offsets = [0, 128], sizes = [8, 128], strides = [1, 1]} : vector<8x384xf32> to vector<8x128xf32>
    %707 = vector.extract_strided_slice %697 {offsets = [0, 128], sizes = [8, 128], strides = [1, 1]} : vector<8x384xf32> to vector<8x128xf32>
    %708 = arith.addf %706, %707 : vector<8x128xf32>
    %709 = arith.negf %708 : vector<8x128xf32>
    %710 = math.exp %709 : vector<8x128xf32>
    %cst_311 = arith.constant 1.000000e+00 : f32
    %711 = vector.broadcast %cst_311 : f32 to vector<8x128xf32>
    %712 = arith.addf %711, %710 : vector<8x128xf32>
    %713 = arith.divf %711, %712 : vector<8x128xf32>
    %714 = vector.extract_strided_slice %694 {offsets = [0, 256], sizes = [8, 128], strides = [1, 1]} : vector<8x384xf32> to vector<8x128xf32>
    %715 = vector.extract_strided_slice %697 {offsets = [0, 256], sizes = [8, 128], strides = [1, 1]} : vector<8x384xf32> to vector<8x128xf32>
    %716 = arith.mulf %705, %715 : vector<8x128xf32>
    %717 = arith.addf %714, %716 : vector<8x128xf32>
    %718 = math.tanh %717 : vector<8x128xf32>
    %cst_312 = arith.constant 1.000000e+00 : f32
    %719 = vector.broadcast %cst_312 : f32 to vector<8x128xf32>
    %720 = arith.subf %719, %713 : vector<8x128xf32>
    %721 = arith.mulf %720, %718 : vector<8x128xf32>
    %722 = arith.mulf %713, %651 : vector<8x128xf32>
    %723 = arith.addf %721, %722 : vector<8x128xf32>
    %c0_313 = arith.constant 0 : index
    %c0_314 = arith.constant 0 : index
    %724 = vector.load %arg14[%c0_313, %c0_314] : memref<128x128xf32, #tpu.memory_space<vmem>>, vector<128x128xf32>
    %cst_315 = arith.constant dense<0.000000e+00> : vector<8x128xf32>
    %725 = tpu.matmul %723, %724, %cst_315 {dimension_numbers = #tpu.dot_dimension_numbers<[1], [0], [0], [1], [0, 0, 1, 1], [], []>} : vector<8x128xf32>, vector<128x128xf32>, vector<8x128xf32> -> vector<8x128xf32>
    %726 = arith.addf %725, %304 : vector<8x128xf32>
    %727 = arith.index_cast %c5_i32_285 : i32 to index
    %c0_316 = arith.constant 0 : index
    %c0_317 = arith.constant 0 : index
    %728 = vector.load %arg16[%727, %c0_316, %c0_317] : memref<8x8x128xf32, #tpu.memory_space<vmem>>, vector<1x8x128xf32>
    %729 = vector.shape_cast %728 : vector<1x8x128xf32> to vector<8x128xf32>
    %730 = vector.shape_cast %726 : vector<8x128xf32> to vector<1x8x128xf32>
    tpu.vector_store %arg16[%727, %c0_316, %c0_317], %730 {strides = array<i32>} : memref<8x8x128xf32, #tpu.memory_space<vmem>>, vector<1x8x128xf32>,
    %731 = arith.index_cast %c5_i32_285 : i32 to index
    %732 = memref.load %arg0[%731] : memref<8xi32, #tpu.memory_space<smem>>
    %c0_i32_318 = arith.constant 0 : i32
    %733 = arith.cmpi sgt, %732, %c0_i32_318 : i32
    %734 = arith.extui %733 : i1 to i32
    %c0_i32_319 = arith.constant 0 : i32
    %735 = arith.cmpi ne, %734, %c0_i32_319 : i32
    scf.if %735 {
      %885 = arith.index_cast %c5_i32_285 : i32 to index
      %c0_397 = arith.constant 0 : index
      %c0_398 = arith.constant 0 : index
      %886 = vector.load %arg2[%885, %c0_397, %c0_398] : memref<8x8x128xf32, #tpu.memory_space<vmem>>, vector<1x8x128xf32>
      %887 = vector.shape_cast %886 : vector<1x8x128xf32> to vector<8x128xf32>
      %c0_399 = arith.constant 0 : index
      %c0_400 = arith.constant 0 : index
      %888 = vector.load %arg22[%c0_399, %c0_400] : memref<8x128xf32, #tpu.memory_space<vmem>>, vector<8x128xf32>
      tpu.vector_store %arg22[%c0_399, %c0_400], %887 {strides = array<i32>} : memref<8x128xf32, #tpu.memory_space<vmem>>, vector<8x128xf32>,
    } else {
    }
    %736 = arith.index_cast %c5_i32_285 : i32 to index
    %737 = memref.load %arg0[%736] : memref<8xi32, #tpu.memory_space<smem>>
    %c0_i32_320 = arith.constant 0 : i32
    %738 = arith.cmpi eq, %737, %c0_i32_320 : i32
    %739 = arith.extui %738 : i1 to i32
    %c0_i32_321 = arith.constant 0 : i32
    %740 = arith.cmpi ne, %739, %c0_i32_321 : i32
    scf.if %740 {
      %cst_397 = arith.constant dense<0xFF800000> : vector<8xf32>
      %885 = vector.multi_reduction <maximumf>, %726, %cst_397 [1] : vector<8x128xf32> to vector<8xf32>
      %886 = vector.shape_cast %885 : vector<8xf32> to vector<8x1xf32>
      %887 = vector.broadcast %886 : vector<8x1xf32> to vector<8x128xf32>
      %888 = arith.cmpf oge, %726, %887 : vector<8x128xf32>
      %c128_i32 = arith.constant 128 : i32
      %889 = vector.broadcast %c128_i32 : i32 to vector<8x128xi32>
      %890 = arith.select %888, %306, %889 : vector<8x128xi1>, vector<8x128xi32>
      %cst_398 = arith.constant dense<2147483647> : vector<8xi32>
      %891 = vector.multi_reduction <minsi>, %890, %cst_398 [1] : vector<8x128xi32> to vector<8xi32>
      %892 = vector.shape_cast %891 : vector<8xi32> to vector<8x1xi32>
      %893 = vector.broadcast %892 : vector<8x1xi32> to vector<8x128xi32>
      %894 = arith.cmpi eq, %306, %893 : vector<8x128xi32>
      %895 = arith.extui %894 : vector<8x128xi1> to vector<8x128xi32>
      %896 = arith.sitofp %895 : vector<8x128xi32> to vector<8x128xf32>
      %c0_399 = arith.constant 0 : index
      %c0_400 = arith.constant 0 : index
      %897 = vector.load %arg9[%c0_399, %c0_400] : memref<128x128xf32, #tpu.memory_space<vmem>>, vector<128x128xf32>
      %cst_401 = arith.constant dense<0.000000e+00> : vector<8x128xf32>
      %898 = tpu.matmul %896, %897, %cst_401 {dimension_numbers = #tpu.dot_dimension_numbers<[1], [0], [0], [1], [0, 0, 1, 1], [], []>} : vector<8x128xf32>, vector<128x128xf32>, vector<8x128xf32> -> vector<8x128xf32>
      %c0_402 = arith.constant 0 : index
      %c0_403 = arith.constant 0 : index
      %899 = vector.load %arg22[%c0_402, %c0_403] : memref<8x128xf32, #tpu.memory_space<vmem>>, vector<8x128xf32>
      tpu.vector_store %arg22[%c0_402, %c0_403], %898 {strides = array<i32>} : memref<8x128xf32, #tpu.memory_space<vmem>>, vector<8x128xf32>,
    } else {
    }
    %c6_i32_322 = arith.constant 6 : i32
    %c0_323 = arith.constant 0 : index
    %c0_324 = arith.constant 0 : index
    %741 = vector.load %arg22[%c0_323, %c0_324] : memref<8x128xf32, #tpu.memory_space<vmem>>, vector<8x128xf32>
    %c0_325 = arith.constant 0 : index
    %c0_326 = arith.constant 0 : index
    %742 = vector.load %arg20[%c0_325, %c0_326] : memref<128x128xf32, #tpu.memory_space<vmem>>, vector<128x128xf32>
    %cst_327 = arith.constant dense<0.000000e+00> : vector<8x128xf32>
    %743 = tpu.matmul %723, %742, %cst_327 {dimension_numbers = #tpu.dot_dimension_numbers<[1], [0], [0], [1], [0, 0, 1, 1], [], []>} : vector<8x128xf32>, vector<128x128xf32>, vector<8x128xf32> -> vector<8x128xf32>
    %744 = arith.addf %743, %305 : vector<8x128xf32>
    %cst_328 = arith.constant dense<0xFF800000> : vector<8xf32>
    %745 = vector.multi_reduction <maximumf>, %744, %cst_328 [1] : vector<8x128xf32> to vector<8xf32>
    %746 = vector.shape_cast %745 : vector<8xf32> to vector<8x1xf32>
    %747 = vector.broadcast %746 : vector<8x1xf32> to vector<8x128xf32>
    %748 = arith.subf %744, %747 : vector<8x128xf32>
    %749 = math.exp %748 : vector<8x128xf32>
    %cst_329 = arith.constant dense<0.000000e+00> : vector<8xf32>
    %750 = vector.multi_reduction <add>, %749, %cst_329 [1] : vector<8x128xf32> to vector<8xf32>
    %751 = vector.shape_cast %750 : vector<8xf32> to vector<8x1xf32>
    %752 = tpu.reciprocal %751 {approx = true} : vector<8x1xf32> -> vector<8x1xf32>
    %753 = vector.broadcast %752 : vector<8x1xf32> to vector<8x128xf32>
    %754 = arith.mulf %749, %753 : vector<8x128xf32>
    %755 = arith.index_cast %c6_i32_322 : i32 to index
    %c0_330 = arith.constant 0 : index
    %c0_331 = arith.constant 0 : index
    %756 = vector.load %arg17[%755, %c0_330, %c0_331] : memref<8x8x128xf32, #tpu.memory_space<vmem>>, vector<1x8x128xf32>
    %757 = vector.shape_cast %756 : vector<1x8x128xf32> to vector<8x128xf32>
    %758 = vector.shape_cast %754 : vector<8x128xf32> to vector<1x8x128xf32>
    tpu.vector_store %arg17[%755, %c0_330, %c0_331], %758 {strides = array<i32>} : memref<8x8x128xf32, #tpu.memory_space<vmem>>, vector<1x8x128xf32>,
    %c0_332 = arith.constant 0 : index
    %c0_333 = arith.constant 0 : index
    %759 = vector.load %arg19[%c0_332, %c0_333] : memref<128x128xf32, #tpu.memory_space<vmem>>, vector<128x128xf32>
    %cst_334 = arith.constant dense<0.000000e+00> : vector<8x128xf32>
    %760 = tpu.matmul %754, %759, %cst_334 {dimension_numbers = #tpu.dot_dimension_numbers<[1], [0], [0], [1], [0, 0, 1, 1], [], []>} : vector<8x128xf32>, vector<128x128xf32>, vector<8x128xf32> -> vector<8x128xf32>
    %c0_335 = arith.constant 0 : index
    %c0_336 = arith.constant 0 : index
    %761 = vector.load %arg21[%c0_335, %c0_336] : memref<8x256xf32, #tpu.memory_space<vmem>>, vector<8x128xf32>
    tpu.vector_store %arg21[%c0_335, %c0_336], %741 {strides = array<i32>} : memref<8x256xf32, #tpu.memory_space<vmem>>, vector<8x128xf32>,
    %c0_337 = arith.constant 0 : index
    %c128_338 = arith.constant 128 : index
    %762 = vector.load %arg21[%c0_337, %c128_338] : memref<8x256xf32, #tpu.memory_space<vmem>>, vector<8x128xf32>
    tpu.vector_store %arg21[%c0_337, %c128_338], %760 {strides = array<i32>} : memref<8x256xf32, #tpu.memory_space<vmem>>, vector<8x128xf32>,
    %c0_339 = arith.constant 0 : index
    %c0_340 = arith.constant 0 : index
    %763 = vector.load %arg21[%c0_339, %c0_340] : memref<8x256xf32, #tpu.memory_space<vmem>>, vector<8x256xf32>
    %c0_341 = arith.constant 0 : index
    %c0_342 = arith.constant 0 : index
    %764 = vector.load %arg10[%c0_341, %c0_342] : memref<256x384xf32, #tpu.memory_space<vmem>>, vector<256x384xf32>
    %cst_343 = arith.constant dense<0.000000e+00> : vector<8x384xf32>
    %765 = tpu.matmul %763, %764, %cst_343 {dimension_numbers = #tpu.dot_dimension_numbers<[1], [0], [0], [1], [0, 0, 1, 1], [], []>} : vector<8x256xf32>, vector<256x384xf32>, vector<8x384xf32> -> vector<8x384xf32>
    %766 = arith.addf %765, %298 : vector<8x384xf32>
    %c0_344 = arith.constant 0 : index
    %c0_345 = arith.constant 0 : index
    %767 = vector.load %arg11[%c0_344, %c0_345] : memref<128x384xf32, #tpu.memory_space<vmem>>, vector<128x384xf32>
    %cst_346 = arith.constant dense<0.000000e+00> : vector<8x384xf32>
    %768 = tpu.matmul %723, %767, %cst_346 {dimension_numbers = #tpu.dot_dimension_numbers<[1], [0], [0], [1], [0, 0, 1, 1], [], []>} : vector<8x128xf32>, vector<128x384xf32>, vector<8x384xf32> -> vector<8x384xf32>
    %769 = arith.addf %768, %301 : vector<8x384xf32>
    %770 = vector.extract_strided_slice %766 {offsets = [0, 0], sizes = [8, 128], strides = [1, 1]} : vector<8x384xf32> to vector<8x128xf32>
    %771 = vector.extract_strided_slice %769 {offsets = [0, 0], sizes = [8, 128], strides = [1, 1]} : vector<8x384xf32> to vector<8x128xf32>
    %772 = arith.addf %770, %771 : vector<8x128xf32>
    %773 = arith.negf %772 : vector<8x128xf32>
    %774 = math.exp %773 : vector<8x128xf32>
    %cst_347 = arith.constant 1.000000e+00 : f32
    %775 = vector.broadcast %cst_347 : f32 to vector<8x128xf32>
    %776 = arith.addf %775, %774 : vector<8x128xf32>
    %777 = arith.divf %775, %776 : vector<8x128xf32>
    %778 = vector.extract_strided_slice %766 {offsets = [0, 128], sizes = [8, 128], strides = [1, 1]} : vector<8x384xf32> to vector<8x128xf32>
    %779 = vector.extract_strided_slice %769 {offsets = [0, 128], sizes = [8, 128], strides = [1, 1]} : vector<8x384xf32> to vector<8x128xf32>
    %780 = arith.addf %778, %779 : vector<8x128xf32>
    %781 = arith.negf %780 : vector<8x128xf32>
    %782 = math.exp %781 : vector<8x128xf32>
    %cst_348 = arith.constant 1.000000e+00 : f32
    %783 = vector.broadcast %cst_348 : f32 to vector<8x128xf32>
    %784 = arith.addf %783, %782 : vector<8x128xf32>
    %785 = arith.divf %783, %784 : vector<8x128xf32>
    %786 = vector.extract_strided_slice %766 {offsets = [0, 256], sizes = [8, 128], strides = [1, 1]} : vector<8x384xf32> to vector<8x128xf32>
    %787 = vector.extract_strided_slice %769 {offsets = [0, 256], sizes = [8, 128], strides = [1, 1]} : vector<8x384xf32> to vector<8x128xf32>
    %788 = arith.mulf %777, %787 : vector<8x128xf32>
    %789 = arith.addf %786, %788 : vector<8x128xf32>
    %790 = math.tanh %789 : vector<8x128xf32>
    %cst_349 = arith.constant 1.000000e+00 : f32
    %791 = vector.broadcast %cst_349 : f32 to vector<8x128xf32>
    %792 = arith.subf %791, %785 : vector<8x128xf32>
    %793 = arith.mulf %792, %790 : vector<8x128xf32>
    %794 = arith.mulf %785, %723 : vector<8x128xf32>
    %795 = arith.addf %793, %794 : vector<8x128xf32>
    %c0_350 = arith.constant 0 : index
    %c0_351 = arith.constant 0 : index
    %796 = vector.load %arg14[%c0_350, %c0_351] : memref<128x128xf32, #tpu.memory_space<vmem>>, vector<128x128xf32>
    %cst_352 = arith.constant dense<0.000000e+00> : vector<8x128xf32>
    %797 = tpu.matmul %795, %796, %cst_352 {dimension_numbers = #tpu.dot_dimension_numbers<[1], [0], [0], [1], [0, 0, 1, 1], [], []>} : vector<8x128xf32>, vector<128x128xf32>, vector<8x128xf32> -> vector<8x128xf32>
    %798 = arith.addf %797, %304 : vector<8x128xf32>
    %799 = arith.index_cast %c6_i32_322 : i32 to index
    %c0_353 = arith.constant 0 : index
    %c0_354 = arith.constant 0 : index
    %800 = vector.load %arg16[%799, %c0_353, %c0_354] : memref<8x8x128xf32, #tpu.memory_space<vmem>>, vector<1x8x128xf32>
    %801 = vector.shape_cast %800 : vector<1x8x128xf32> to vector<8x128xf32>
    %802 = vector.shape_cast %798 : vector<8x128xf32> to vector<1x8x128xf32>
    tpu.vector_store %arg16[%799, %c0_353, %c0_354], %802 {strides = array<i32>} : memref<8x8x128xf32, #tpu.memory_space<vmem>>, vector<1x8x128xf32>,
    %803 = arith.index_cast %c6_i32_322 : i32 to index
    %804 = memref.load %arg0[%803] : memref<8xi32, #tpu.memory_space<smem>>
    %c0_i32_355 = arith.constant 0 : i32
    %805 = arith.cmpi sgt, %804, %c0_i32_355 : i32
    %806 = arith.extui %805 : i1 to i32
    %c0_i32_356 = arith.constant 0 : i32
    %807 = arith.cmpi ne, %806, %c0_i32_356 : i32
    scf.if %807 {
      %885 = arith.index_cast %c6_i32_322 : i32 to index
      %c0_397 = arith.constant 0 : index
      %c0_398 = arith.constant 0 : index
      %886 = vector.load %arg2[%885, %c0_397, %c0_398] : memref<8x8x128xf32, #tpu.memory_space<vmem>>, vector<1x8x128xf32>
      %887 = vector.shape_cast %886 : vector<1x8x128xf32> to vector<8x128xf32>
      %c0_399 = arith.constant 0 : index
      %c0_400 = arith.constant 0 : index
      %888 = vector.load %arg22[%c0_399, %c0_400] : memref<8x128xf32, #tpu.memory_space<vmem>>, vector<8x128xf32>
      tpu.vector_store %arg22[%c0_399, %c0_400], %887 {strides = array<i32>} : memref<8x128xf32, #tpu.memory_space<vmem>>, vector<8x128xf32>,
    } else {
    }
    %808 = arith.index_cast %c6_i32_322 : i32 to index
    %809 = memref.load %arg0[%808] : memref<8xi32, #tpu.memory_space<smem>>
    %c0_i32_357 = arith.constant 0 : i32
    %810 = arith.cmpi eq, %809, %c0_i32_357 : i32
    %811 = arith.extui %810 : i1 to i32
    %c0_i32_358 = arith.constant 0 : i32
    %812 = arith.cmpi ne, %811, %c0_i32_358 : i32
    scf.if %812 {
      %cst_397 = arith.constant dense<0xFF800000> : vector<8xf32>
      %885 = vector.multi_reduction <maximumf>, %798, %cst_397 [1] : vector<8x128xf32> to vector<8xf32>
      %886 = vector.shape_cast %885 : vector<8xf32> to vector<8x1xf32>
      %887 = vector.broadcast %886 : vector<8x1xf32> to vector<8x128xf32>
      %888 = arith.cmpf oge, %798, %887 : vector<8x128xf32>
      %c128_i32 = arith.constant 128 : i32
      %889 = vector.broadcast %c128_i32 : i32 to vector<8x128xi32>
      %890 = arith.select %888, %306, %889 : vector<8x128xi1>, vector<8x128xi32>
      %cst_398 = arith.constant dense<2147483647> : vector<8xi32>
      %891 = vector.multi_reduction <minsi>, %890, %cst_398 [1] : vector<8x128xi32> to vector<8xi32>
      %892 = vector.shape_cast %891 : vector<8xi32> to vector<8x1xi32>
      %893 = vector.broadcast %892 : vector<8x1xi32> to vector<8x128xi32>
      %894 = arith.cmpi eq, %306, %893 : vector<8x128xi32>
      %895 = arith.extui %894 : vector<8x128xi1> to vector<8x128xi32>
      %896 = arith.sitofp %895 : vector<8x128xi32> to vector<8x128xf32>
      %c0_399 = arith.constant 0 : index
      %c0_400 = arith.constant 0 : index
      %897 = vector.load %arg9[%c0_399, %c0_400] : memref<128x128xf32, #tpu.memory_space<vmem>>, vector<128x128xf32>
      %cst_401 = arith.constant dense<0.000000e+00> : vector<8x128xf32>
      %898 = tpu.matmul %896, %897, %cst_401 {dimension_numbers = #tpu.dot_dimension_numbers<[1], [0], [0], [1], [0, 0, 1, 1], [], []>} : vector<8x128xf32>, vector<128x128xf32>, vector<8x128xf32> -> vector<8x128xf32>
      %c0_402 = arith.constant 0 : index
      %c0_403 = arith.constant 0 : index
      %899 = vector.load %arg22[%c0_402, %c0_403] : memref<8x128xf32, #tpu.memory_space<vmem>>, vector<8x128xf32>
      tpu.vector_store %arg22[%c0_402, %c0_403], %898 {strides = array<i32>} : memref<8x128xf32, #tpu.memory_space<vmem>>, vector<8x128xf32>,
    } else {
    }
    %c7_i32_359 = arith.constant 7 : i32
    %c0_360 = arith.constant 0 : index
    %c0_361 = arith.constant 0 : index
    %813 = vector.load %arg22[%c0_360, %c0_361] : memref<8x128xf32, #tpu.memory_space<vmem>>, vector<8x128xf32>
    %c0_362 = arith.constant 0 : index
    %c0_363 = arith.constant 0 : index
    %814 = vector.load %arg20[%c0_362, %c0_363] : memref<128x128xf32, #tpu.memory_space<vmem>>, vector<128x128xf32>
    %cst_364 = arith.constant dense<0.000000e+00> : vector<8x128xf32>
    %815 = tpu.matmul %795, %814, %cst_364 {dimension_numbers = #tpu.dot_dimension_numbers<[1], [0], [0], [1], [0, 0, 1, 1], [], []>} : vector<8x128xf32>, vector<128x128xf32>, vector<8x128xf32> -> vector<8x128xf32>
    %816 = arith.addf %815, %305 : vector<8x128xf32>
    %cst_365 = arith.constant dense<0xFF800000> : vector<8xf32>
    %817 = vector.multi_reduction <maximumf>, %816, %cst_365 [1] : vector<8x128xf32> to vector<8xf32>
    %818 = vector.shape_cast %817 : vector<8xf32> to vector<8x1xf32>
    %819 = vector.broadcast %818 : vector<8x1xf32> to vector<8x128xf32>
    %820 = arith.subf %816, %819 : vector<8x128xf32>
    %821 = math.exp %820 : vector<8x128xf32>
    %cst_366 = arith.constant dense<0.000000e+00> : vector<8xf32>
    %822 = vector.multi_reduction <add>, %821, %cst_366 [1] : vector<8x128xf32> to vector<8xf32>
    %823 = vector.shape_cast %822 : vector<8xf32> to vector<8x1xf32>
    %824 = tpu.reciprocal %823 {approx = true} : vector<8x1xf32> -> vector<8x1xf32>
    %825 = vector.broadcast %824 : vector<8x1xf32> to vector<8x128xf32>
    %826 = arith.mulf %821, %825 : vector<8x128xf32>
    %827 = arith.index_cast %c7_i32_359 : i32 to index
    %c0_367 = arith.constant 0 : index
    %c0_368 = arith.constant 0 : index
    %828 = vector.load %arg17[%827, %c0_367, %c0_368] : memref<8x8x128xf32, #tpu.memory_space<vmem>>, vector<1x8x128xf32>
    %829 = vector.shape_cast %828 : vector<1x8x128xf32> to vector<8x128xf32>
    %830 = vector.shape_cast %826 : vector<8x128xf32> to vector<1x8x128xf32>
    tpu.vector_store %arg17[%827, %c0_367, %c0_368], %830 {strides = array<i32>} : memref<8x8x128xf32, #tpu.memory_space<vmem>>, vector<1x8x128xf32>,
    %c0_369 = arith.constant 0 : index
    %c0_370 = arith.constant 0 : index
    %831 = vector.load %arg19[%c0_369, %c0_370] : memref<128x128xf32, #tpu.memory_space<vmem>>, vector<128x128xf32>
    %cst_371 = arith.constant dense<0.000000e+00> : vector<8x128xf32>
    %832 = tpu.matmul %826, %831, %cst_371 {dimension_numbers = #tpu.dot_dimension_numbers<[1], [0], [0], [1], [0, 0, 1, 1], [], []>} : vector<8x128xf32>, vector<128x128xf32>, vector<8x128xf32> -> vector<8x128xf32>
    %c0_372 = arith.constant 0 : index
    %c0_373 = arith.constant 0 : index
    %833 = vector.load %arg21[%c0_372, %c0_373] : memref<8x256xf32, #tpu.memory_space<vmem>>, vector<8x128xf32>
    tpu.vector_store %arg21[%c0_372, %c0_373], %813 {strides = array<i32>} : memref<8x256xf32, #tpu.memory_space<vmem>>, vector<8x128xf32>,
    %c0_374 = arith.constant 0 : index
    %c128_375 = arith.constant 128 : index
    %834 = vector.load %arg21[%c0_374, %c128_375] : memref<8x256xf32, #tpu.memory_space<vmem>>, vector<8x128xf32>
    tpu.vector_store %arg21[%c0_374, %c128_375], %832 {strides = array<i32>} : memref<8x256xf32, #tpu.memory_space<vmem>>, vector<8x128xf32>,
    %c0_376 = arith.constant 0 : index
    %c0_377 = arith.constant 0 : index
    %835 = vector.load %arg21[%c0_376, %c0_377] : memref<8x256xf32, #tpu.memory_space<vmem>>, vector<8x256xf32>
    %c0_378 = arith.constant 0 : index
    %c0_379 = arith.constant 0 : index
    %836 = vector.load %arg10[%c0_378, %c0_379] : memref<256x384xf32, #tpu.memory_space<vmem>>, vector<256x384xf32>
    %cst_380 = arith.constant dense<0.000000e+00> : vector<8x384xf32>
    %837 = tpu.matmul %835, %836, %cst_380 {dimension_numbers = #tpu.dot_dimension_numbers<[1], [0], [0], [1], [0, 0, 1, 1], [], []>} : vector<8x256xf32>, vector<256x384xf32>, vector<8x384xf32> -> vector<8x384xf32>
    %838 = arith.addf %837, %298 : vector<8x384xf32>
    %c0_381 = arith.constant 0 : index
    %c0_382 = arith.constant 0 : index
    %839 = vector.load %arg11[%c0_381, %c0_382] : memref<128x384xf32, #tpu.memory_space<vmem>>, vector<128x384xf32>
    %cst_383 = arith.constant dense<0.000000e+00> : vector<8x384xf32>
    %840 = tpu.matmul %795, %839, %cst_383 {dimension_numbers = #tpu.dot_dimension_numbers<[1], [0], [0], [1], [0, 0, 1, 1], [], []>} : vector<8x128xf32>, vector<128x384xf32>, vector<8x384xf32> -> vector<8x384xf32>
    %841 = arith.addf %840, %301 : vector<8x384xf32>
    %842 = vector.extract_strided_slice %838 {offsets = [0, 0], sizes = [8, 128], strides = [1, 1]} : vector<8x384xf32> to vector<8x128xf32>
    %843 = vector.extract_strided_slice %841 {offsets = [0, 0], sizes = [8, 128], strides = [1, 1]} : vector<8x384xf32> to vector<8x128xf32>
    %844 = arith.addf %842, %843 : vector<8x128xf32>
    %845 = arith.negf %844 : vector<8x128xf32>
    %846 = math.exp %845 : vector<8x128xf32>
    %cst_384 = arith.constant 1.000000e+00 : f32
    %847 = vector.broadcast %cst_384 : f32 to vector<8x128xf32>
    %848 = arith.addf %847, %846 : vector<8x128xf32>
    %849 = arith.divf %847, %848 : vector<8x128xf32>
    %850 = vector.extract_strided_slice %838 {offsets = [0, 128], sizes = [8, 128], strides = [1, 1]} : vector<8x384xf32> to vector<8x128xf32>
    %851 = vector.extract_strided_slice %841 {offsets = [0, 128], sizes = [8, 128], strides = [1, 1]} : vector<8x384xf32> to vector<8x128xf32>
    %852 = arith.addf %850, %851 : vector<8x128xf32>
    %853 = arith.negf %852 : vector<8x128xf32>
    %854 = math.exp %853 : vector<8x128xf32>
    %cst_385 = arith.constant 1.000000e+00 : f32
    %855 = vector.broadcast %cst_385 : f32 to vector<8x128xf32>
    %856 = arith.addf %855, %854 : vector<8x128xf32>
    %857 = arith.divf %855, %856 : vector<8x128xf32>
    %858 = vector.extract_strided_slice %838 {offsets = [0, 256], sizes = [8, 128], strides = [1, 1]} : vector<8x384xf32> to vector<8x128xf32>
    %859 = vector.extract_strided_slice %841 {offsets = [0, 256], sizes = [8, 128], strides = [1, 1]} : vector<8x384xf32> to vector<8x128xf32>
    %860 = arith.mulf %849, %859 : vector<8x128xf32>
    %861 = arith.addf %858, %860 : vector<8x128xf32>
    %862 = math.tanh %861 : vector<8x128xf32>
    %cst_386 = arith.constant 1.000000e+00 : f32
    %863 = vector.broadcast %cst_386 : f32 to vector<8x128xf32>
    %864 = arith.subf %863, %857 : vector<8x128xf32>
    %865 = arith.mulf %864, %862 : vector<8x128xf32>
    %866 = arith.mulf %857, %795 : vector<8x128xf32>
    %867 = arith.addf %865, %866 : vector<8x128xf32>
    %c0_387 = arith.constant 0 : index
    %c0_388 = arith.constant 0 : index
    %868 = vector.load %arg14[%c0_387, %c0_388] : memref<128x128xf32, #tpu.memory_space<vmem>>, vector<128x128xf32>
    %cst_389 = arith.constant dense<0.000000e+00> : vector<8x128xf32>
    %869 = tpu.matmul %867, %868, %cst_389 {dimension_numbers = #tpu.dot_dimension_numbers<[1], [0], [0], [1], [0, 0, 1, 1], [], []>} : vector<8x128xf32>, vector<128x128xf32>, vector<8x128xf32> -> vector<8x128xf32>
    %870 = arith.addf %869, %304 : vector<8x128xf32>
    %871 = arith.index_cast %c7_i32_359 : i32 to index
    %c0_390 = arith.constant 0 : index
    %c0_391 = arith.constant 0 : index
    %872 = vector.load %arg16[%871, %c0_390, %c0_391] : memref<8x8x128xf32, #tpu.memory_space<vmem>>, vector<1x8x128xf32>
    %873 = vector.shape_cast %872 : vector<1x8x128xf32> to vector<8x128xf32>
    %874 = vector.shape_cast %870 : vector<8x128xf32> to vector<1x8x128xf32>
    tpu.vector_store %arg16[%871, %c0_390, %c0_391], %874 {strides = array<i32>} : memref<8x8x128xf32, #tpu.memory_space<vmem>>, vector<1x8x128xf32>,
    %875 = arith.index_cast %c7_i32_359 : i32 to index
    %876 = memref.load %arg0[%875] : memref<8xi32, #tpu.memory_space<smem>>
    %c0_i32_392 = arith.constant 0 : i32
    %877 = arith.cmpi sgt, %876, %c0_i32_392 : i32
    %878 = arith.extui %877 : i1 to i32
    %c0_i32_393 = arith.constant 0 : i32
    %879 = arith.cmpi ne, %878, %c0_i32_393 : i32
    scf.if %879 {
      %885 = arith.index_cast %c7_i32_359 : i32 to index
      %c0_397 = arith.constant 0 : index
      %c0_398 = arith.constant 0 : index
      %886 = vector.load %arg2[%885, %c0_397, %c0_398] : memref<8x8x128xf32, #tpu.memory_space<vmem>>, vector<1x8x128xf32>
      %887 = vector.shape_cast %886 : vector<1x8x128xf32> to vector<8x128xf32>
      %c0_399 = arith.constant 0 : index
      %c0_400 = arith.constant 0 : index
      %888 = vector.load %arg22[%c0_399, %c0_400] : memref<8x128xf32, #tpu.memory_space<vmem>>, vector<8x128xf32>
      tpu.vector_store %arg22[%c0_399, %c0_400], %887 {strides = array<i32>} : memref<8x128xf32, #tpu.memory_space<vmem>>, vector<8x128xf32>,
    } else {
    }
    %880 = arith.index_cast %c7_i32_359 : i32 to index
    %881 = memref.load %arg0[%880] : memref<8xi32, #tpu.memory_space<smem>>
    %c0_i32_394 = arith.constant 0 : i32
    %882 = arith.cmpi eq, %881, %c0_i32_394 : i32
    %883 = arith.extui %882 : i1 to i32
    %c0_i32_395 = arith.constant 0 : i32
    %884 = arith.cmpi ne, %883, %c0_i32_395 : i32
    scf.if %884 {
      %cst_397 = arith.constant dense<0xFF800000> : vector<8xf32>
      %885 = vector.multi_reduction <maximumf>, %870, %cst_397 [1] : vector<8x128xf32> to vector<8xf32>
      %886 = vector.shape_cast %885 : vector<8xf32> to vector<8x1xf32>
      %887 = vector.broadcast %886 : vector<8x1xf32> to vector<8x128xf32>
      %888 = arith.cmpf oge, %870, %887 : vector<8x128xf32>
      %c128_i32 = arith.constant 128 : i32
      %889 = vector.broadcast %c128_i32 : i32 to vector<8x128xi32>
      %890 = arith.select %888, %306, %889 : vector<8x128xi1>, vector<8x128xi32>
      %cst_398 = arith.constant dense<2147483647> : vector<8xi32>
      %891 = vector.multi_reduction <minsi>, %890, %cst_398 [1] : vector<8x128xi32> to vector<8xi32>
      %892 = vector.shape_cast %891 : vector<8xi32> to vector<8x1xi32>
      %893 = vector.broadcast %892 : vector<8x1xi32> to vector<8x128xi32>
      %894 = arith.cmpi eq, %306, %893 : vector<8x128xi32>
      %895 = arith.extui %894 : vector<8x128xi1> to vector<8x128xi32>
      %896 = arith.sitofp %895 : vector<8x128xi32> to vector<8x128xf32>
      %c0_399 = arith.constant 0 : index
      %c0_400 = arith.constant 0 : index
      %897 = vector.load %arg9[%c0_399, %c0_400] : memref<128x128xf32, #tpu.memory_space<vmem>>, vector<128x128xf32>
      %cst_401 = arith.constant dense<0.000000e+00> : vector<8x128xf32>
      %898 = tpu.matmul %896, %897, %cst_401 {dimension_numbers = #tpu.dot_dimension_numbers<[1], [0], [0], [1], [0, 0, 1, 1], [], []>} : vector<8x128xf32>, vector<128x128xf32>, vector<8x128xf32> -> vector<8x128xf32>
      %c0_402 = arith.constant 0 : index
      %c0_403 = arith.constant 0 : index
      %899 = vector.load %arg22[%c0_402, %c0_403] : memref<8x128xf32, #tpu.memory_space<vmem>>, vector<8x128xf32>
      tpu.vector_store %arg22[%c0_402, %c0_403], %898 {strides = array<i32>} : memref<8x128xf32, #tpu.memory_space<vmem>>, vector<8x128xf32>,
    } else {
    }
    %c8_i32_396 = arith.constant 8 : i32
    return
  }
}

</mosaic_0001>

<bundles_post_ra>
// kernel: _forward_core.1
= control target key start
LH: loop header
LB: loop body
LE: loop exit
PB: predicated region body
PF: predicated region fallthrough
CT: control target
= control target key end

     0   :  { %s11149_s0 = inlined_call_operand.vmem [shape: s32[8], index: 0, kind: input, shape index: {}]   ;;  %s11150_s1 = inlined_call_operand.vmem [shape: f32[64,128], index: 1, kind: input, shape index: {}]   ;;  %s11151_s2 = inlined_call_operand.vmem [shape: f32[8,8,128], index: 2, kind: input, shape index: {}]   ;;  %s11152_s3 = inlined_call_operand.vmem [shape: f32[8,128], index: 3, kind: input, shape index: {}]   ;;  %s11153_s4 = inlined_call_operand.vmem [shape: f32[8,128], index: 4, kind: input, shape index: {}]   ;;  %s11154_s5 = inlined_call_operand.vmem [shape: f32[128,384], index: 5, kind: input, shape index: {}]   ;;  %s11155_s6 = inlined_call_operand.hbm [shape: f32[128,384], index: 6, kind: input, shape index: {}]   ;;  %s11156_s7 = inlined_call_operand.vmem [shape: f32[1,384], index: 7, kind: input, shape index: {}]   ;;  %s11157_s8 = inlined_call_operand.vmem [shape: f32[1,384], index: 8, kind: input, shape index: {}]   ;;  %s11158_s9 = inlined_call_operand.vmem [shape: f32[128,128], index: 9, kind: input, shape index: {}]   ;;  %s11159_s10 = inlined_call_operand.vmem [shape: f32[256,384], index: 10, kind: input, shape index: {}]   ;;  %s11160_s11 = inlined_call_operand.hbm [shape: f32[128,384], index: 11, kind: input, shape index: {}]   ;;  %s11161_s12 = inlined_call_operand.vmem [shape: f32[1,384], index: 12, kind: input, shape index: {}]   ;;  %s11162_s13 = inlined_call_operand.vmem [shape: f32[1,384], index: 13, kind: input, shape index: {}]   ;;  %s11163_s14 = inlined_call_operand.vmem [shape: f32[128,128], index: 14, kind: input, shape index: {}]   ;;  %s11164_s15 = inlined_call_operand.vmem [shape: f32[1,128], index: 15, kind: input, shape index: {}]   ;;  %s11165_s16 = inlined_call_operand.hbm [shape: f32[8,8,128], index: 16, kind: output, shape index: {0}]   ;;  %s11166_s17 = inlined_call_operand.hbm [shape: f32[8,8,128], index: 17, kind: output, shape index: {1}]  }
   0x1   :  { %11176 = sst [smem:[#allocation42_spill]] %s11149_s0 }
   0x2   :  { %11177 = sst [smem:[#allocation43_spill]] %s11150_s1 }
   0x3   :  { %23 = vsyncpa [#allocation10], 0 }
   0x4   :  { %24 = vsyncpa [#allocation8], 0 }
   0x5   :  { %25 = vsyncpa [#allocation13], 0 }
   0x6   :  { %26 = vsyncpa [#allocation9], 0 }
   0x7   :  { %27 = vsyncpa [#allocation16], 0  ;;  %s11178_s26 = sld [smem:[#allocation42_spill]]  ;;  %s51_s0 = sshll.u32 %s11155_s6, 4  ;;  %s52_s0 = int_to_ptr.hbm [resolvable:$true] %s51_s0 }
   0x8   :  { %s6731_s30 = smov [#allocation7]   ;;  %s6732_s18 = smov [#allocation11]  }
   0x9   :  { %s53_s19 = sshll.u32 %s6732_s18, 4  ;;  %s6733_s1 = smov 384   ;;  %s54_s19 = int_to_ptr.vmem [resolvable:$true] %s53_s19 }
   0xa   :  { %s6734_s20 = smov 24   ;;  %s72_s23 = sshll.u32 %s11160_s11, 4  ;;  %s73_s23 = int_to_ptr.hbm [resolvable:$true] %s72_s23 }
   0xb   :  { %59 = dma.hbm_to_vmem [thread:$0]  %s52_s0, 6144, %s54_s19, [#allocation8], %s6733_s1, %s6733_s1, %s6734_s20  }
   0xc   :  { %s6735_s24 = smov [#allocation12]  }
   0xd   :  { %s33_s27 = sshll.u32 %s11178_s26, 4  ;;  %s74_s25 = sshll.u32 %s6735_s24, 4  ;;  %s34_s27 = int_to_ptr.vmem [resolvable:$true] %s33_s27  ;;  %s75_s25 = int_to_ptr.vmem [resolvable:$true] %s74_s25 }
   0xe   :  { %36 = dma.vmem_to_smem %s34_s27, 16, %s6731_s30, [#allocation10]  }
   0xf   :  { %80 = dma.hbm_to_vmem [thread:$0]  %s73_s23, 6144, %s75_s25, [#allocation13], %s6733_s1, %s6733_s1, %s6734_s20  }
  0x10   :  { %6721 = dma.done.wait [#allocation10], 16  }
  0x11   :  { %6722 = vsyncadd [#allocation10], 4294967280 }
  0x12   :  { %6723 = dma.done.wait [#allocation8], 6144  }
  0x13   :  { %6724 = vsyncadd [#allocation8], 4294961152 }
  0x14   :  { %6725 = dma.done.wait [#allocation13], 6144  }
  0x15   :  { %6726 = vsyncadd [#allocation13], 4294961152 }
  0x16   :  { %101 = sfence }
  0x17   :  { %v155_v0 = vld [vmem:[%s11154_s5 + $0x168] sm:$0xff]  ;;  %v6851_v1 = vld [vmem:[#allocation11 + $0x168] sm:$0xff]  ;;  %v6857_v3 = vld [vmem:[#allocation11 + $0x150] sm:$0xff]  ;;  %v6736_v4 = vmov 0.0   ;;  %s11179_s26 = sld [smem:[#allocation43_spill]] }
  0x18   :  { %v152_v2 = vld [vmem:[%s11154_s5 + $0x150] sm:$0xff]  ;;  %166 = vmatpush.msra.mxu0 %v155_v0  ;;  %391 = vmatpush.msra.mxu3 %v6851_v1  ;;  %321 = vst [vmem:[#allocation3 + $0x40] sm:$0xff] %v6736_v4  ;;  %v149_v5 = vld [vmem:[%s11154_s5 + $0x138] sm:$0xff]  ;;  %v6863_v6 = vld [vmem:[#allocation11 + $0x138] sm:$0xff]  ;;  %s2224_s21 = sld [smem:[#allocation7]] }
  0x19   :  { %322 = vst [vmem:[#allocation3 + $0x20] sm:$0xff] %v6736_v4  ;;  %v146_v7 = vld [vmem:[%s11154_s5 + $0x120] sm:$0xff]  ;;  %v6871_v8 = vld [vmem:[#allocation11 + $0x120] sm:$0xff]  ;;  %v6879_v10 = vld [vmem:[#allocation11 + $0x108] sm:$0xff] }
  0x1a   :  { %167 = vmatpush.msra.mxu0 %v152_v2  ;;  %392 = vmatpush.msra.mxu3 %v6857_v3  ;;  %323 = vst [vmem:[#allocation3 + $0x10] sm:$0xff] %v6736_v4  ;;  %v143_v9 = vld [vmem:[%s11154_s5 + $0x108] sm:$0xff]  ;;  %v140_v11 = vld [vmem:[%s11154_s5 + $0xf0] sm:$0xff]  ;;  %v6887_v12 = vld [vmem:[#allocation11 + $0xf0] sm:$0xff] }
  0x1b   :  { %324 = vst [vmem:[#allocation3 + $0x38] sm:$0xff] %v6736_v4  ;;  %v137_v13 = vld [vmem:[%s11154_s5 + $0xd8] sm:$0xff]  ;;  %v6894_v14 = vld [vmem:[#allocation11 + $0xd8] sm:$0xff]  ;;  %v6900_v16 = vld [vmem:[#allocation11 + $0xc0] sm:$0xff] }
  0x1c   :  { %168 = vmatpush.msra.mxu0 %v149_v5  ;;  %393 = vmatpush.msra.mxu3 %v6863_v6  ;;  %325 = vst [vmem:[#allocation3 + $0x60] sm:$0xff] %v6736_v4  ;;  %v134_v15 = vld [vmem:[%s11154_s5 + $0xc0] sm:$0xff]  ;;  %v156_v17 = vld [vmem:[%s11154_s5 + $0x170] sm:$0xff]  ;;  %v153_v18 = vld [vmem:[%s11154_s5 + $0x158] sm:$0xff] }
  0x1d   :  { %326 = vst [vmem:[#allocation3 + $0x70] sm:$0xff] %v6736_v4  ;;  %v131_v19 = vld [vmem:[%s11154_s5 + $0xa8] sm:$0xff]  ;;  %v6912_v20 = vld [vmem:[#allocation11 + $0xa8] sm:$0xff]  ;;  %207 = vmatpush.msra.mxu1 %v156_v17  ;;  %v150_v21 = vld [vmem:[%s11154_s5 + $0x140] sm:$0xff] }
  0x1e   :  { %169 = vmatpush.msra.mxu0 %v146_v7  ;;  %394 = vmatpush.msra.mxu3 %v6871_v8  ;;  %327 = vst [vmem:[#allocation3 + $0x78] sm:$0xff] %v6736_v4  ;;  %v128_v22 = vld [vmem:[%s11154_s5 + $0x90] sm:$0xff]  ;;  %v6921_v23 = vld [vmem:[#allocation11 + $0x90] sm:$0xff]  ;;  %v147_v24 = vld [vmem:[%s11154_s5 + $0x128] sm:$0xff]  ;;  %p6334_p0 = scmp.le.s32.totalorder %s2224_s21, 0 }
  0x1f   :  { %328 = vst [vmem:[#allocation3 + $0x28] sm:$0xff] %v6736_v4  ;;  %208 = vmatpush.msra.mxu1 %v153_v18  ;;  %v125_v25 = vld [vmem:[%s11154_s5 + $0x78] sm:$0xff]  ;;  %v6930_v26 = vld [vmem:[#allocation11 + $0x78] sm:$0xff]  ;;  %v144_v27 = vld [vmem:[%s11154_s5 + $0x110] sm:$0xff] }
  0x20   :  { %170 = vmatpush.msra.mxu0 %v143_v9  ;;  %395 = vmatpush.msra.mxu3 %v6879_v10  ;;  %v122_v28 = vld [vmem:[%s11154_s5 + $0x60] sm:$0xff]  ;;  %v6939_v29 = vld [vmem:[#allocation11 + $0x60] sm:$0xff]  ;;  %v141_v30 = vld [vmem:[%s11154_s5 + $0xf8] sm:$0xff] }
  0x21   :  { %209 = vmatpush.msra.mxu1 %v150_v21  ;;  %v119_v31 = vld [vmem:[%s11154_s5 + $0x48] sm:$0xff]  ;;  %v6948_v32 = vld [vmem:[#allocation11 + $0x48] sm:$0xff]  ;;  %v138_v33 = vld [vmem:[%s11154_s5 + $0xe0] sm:$0xff] }
  0x22   :  { %171 = vmatpush.msra.mxu0 %v140_v11  ;;  %396 = vmatpush.msra.mxu3 %v6887_v12  ;;  %v116_v34 = vld [vmem:[%s11154_s5 + $0x30] sm:$0xff]  ;;  %v6957_v35 = vld [vmem:[#allocation11 + $0x30] sm:$0xff]  ;;  %v135_v36 = vld [vmem:[%s11154_s5 + $0xc8] sm:$0xff] }
  0x23   :  { %210 = vmatpush.msra.mxu1 %v147_v24  ;;  %v113_v37 = vld [vmem:[%s11154_s5 + $0x18] sm:$0xff]  ;;  %v6966_v38 = vld [vmem:[#allocation11 + $0x18] sm:$0xff]  ;;  %v132_v39 = vld [vmem:[%s11154_s5 + $0xb0] sm:$0xff] }
  0x24   :  { %172 = vmatpush.msra.mxu0 %v137_v13  ;;  %397 = vmatpush.msra.mxu3 %v6894_v14  ;;  %v110_v40 = vld [vmem:[%s11154_s5] sm:$0xff]  ;;  %v6975_v41 = vld [vmem:[#allocation11] sm:$0xff]  ;;  %v157_v43 = vld [vmem:[%s11154_s5 + $0x178] sm:$0xff] }
  0x25   :  { %211 = vmatpush.msra.mxu1 %v144_v27  ;;  %v6981_v42 = vld [vmem:[%s11179_s26] sm:$0xff]  ;;  %v6986_v44 = vld [vmem:[#allocation11 + $0x170] sm:$0xff]  ;;  %248 = vmatpush.msra.mxu2 %v157_v43  ;;  %v7001_v49 = vld [vmem:[#allocation11 + $0x160] sm:$0xff] }
  0x26   :  { %173 = vmatpush.msra.mxu0 %v134_v15  ;;  %398 = vmatpush.msra.mxu3 %v6900_v16  ;;  %v6988_v45 = vld [vmem:[#allocation11 + $0x178] sm:$0xff]  ;;  %v129_v46 = vld [vmem:[%s11154_s5 + $0x98] sm:$0xff]  ;;  %v151_v51 = vld [vmem:[%s11154_s5 + $0x148] sm:$0xff] }
  0x27   :  { %212 = vmatpush.msra.mxu1 %v141_v30  ;;  %v154_v47 = vld [vmem:[%s11154_s5 + $0x160] sm:$0xff]  ;;  %v7011_v52 = vld [vmem:[#allocation11 + $0x140] sm:$0xff]  ;;  %v7013_v53 = vld [vmem:[#allocation11 + $0x148] sm:$0xff] }
  0x28   :  { %174 = vmatpush.msra.mxu0 %v131_v19  ;;  %399 = vmatpush.msra.mxu3 %v6912_v20  ;;  %v6999_v48 = vld [vmem:[#allocation11 + $0x158] sm:$0xff]  ;;  %v123_v54 = vld [vmem:[%s11154_s5 + $0x68] sm:$0xff]  ;;  %v148_v55 = vld [vmem:[%s11154_s5 + $0x130] sm:$0xff] }
  0x29   :  { %213 = vmatpush.msra.mxu1 %v138_v33  ;;  %v126_v50 = vld [vmem:[%s11154_s5 + $0x80] sm:$0xff]  ;;  %249 = vmatpush.msra.mxu2 %v154_v47  ;;  %v7023_v56 = vld [vmem:[#allocation11 + $0x128] sm:$0xff]  ;;  %v7025_v57 = vld [vmem:[#allocation11 + $0x130] sm:$0xff] }
  0x2a   :  { %175 = vmatpush.msra.mxu0 %v128_v22  ;;  %400 = vmatpush.msra.mxu3 %v6921_v23  ;;  %v7031_v58 = vld [vmem:[%s11179_s26 + $0x8] sm:$0xff]  ;;  %v120_v59 = vld [vmem:[%s11154_s5 + $0x50] sm:$0xff]  ;;  %v7037_v60 = vld [vmem:[#allocation11 + $0x110] sm:$0xff] }
  0x2b   :  { %214 = vmatpush.msra.mxu1 %v135_v36  ;;  %250 = vmatpush.msra.mxu2 %v151_v51  ;;  %v7039_v61 = vld [vmem:[#allocation11 + $0x118] sm:$0xff]  ;;  %v117_v62 = vld [vmem:[%s11154_s5 + $0x38] sm:$0xff]  ;;  %v7052_v2 = vld [vmem:[#allocation11 + $0x100] sm:$0xff] }
  0x2c   :  { %176 = vmatpush.msra.mxu0 %v125_v25  ;;  %401 = vmatpush.msra.mxu3 %v6930_v26  ;;  %v145_v63 = vld [vmem:[%s11154_s5 + $0x118] sm:$0xff]  ;;  %v7050_v0 = vld [vmem:[#allocation11 + $0xf8] sm:$0xff]  ;;  %v7062_v9 = vld [vmem:[#allocation11 + $0xe0] sm:$0xff] }
  0x2d   :  { %215 = vmatpush.msra.mxu1 %v132_v39  ;;  %251 = vmatpush.msra.mxu2 %v148_v55  ;;  %v114_v5 = vld [vmem:[%s11154_s5 + $0x20] sm:$0xff]  ;;  %v7064_v11 = vld [vmem:[#allocation11 + $0xe8] sm:$0xff]  ;;  %v111_v13 = vld [vmem:[%s11154_s5 + $0x8] sm:$0xff] }
  0x2e   :  { %177 = vmatpush.msra.mxu0 %v122_v28  ;;  %402 = vmatpush.msra.mxu3 %v6939_v29  ;;  %v142_v7 = vld [vmem:[%s11154_s5 + $0x100] sm:$0xff]  ;;  %v139_v15 = vld [vmem:[%s11154_s5 + $0xe8] sm:$0xff]  ;;  %v7074_v17 = vld [vmem:[#allocation11 + $0xc8] sm:$0xff] }
  0x2f   :  { %216 = vmatpush.msra.mxu1 %v129_v46  ;;  %252 = vmatpush.msra.mxu2 %v145_v63  ;;  %v7076_v18 = vld [vmem:[#allocation11 + $0xd0] sm:$0xff]  ;;  %v7082_v19 = vld [vmem:[%s11179_s26 + $0x10] sm:$0xff]  ;;  %v7087_v22 = vld [vmem:[#allocation11 + $0xb8] sm:$0xff] }
  0x30   :  { %178 = vmatpush.msra.mxu0 %v119_v31  ;;  %403 = vmatpush.msra.mxu3 %v6948_v32  ;;  %v7085_v21 = vld [vmem:[#allocation11 + $0xb0] sm:$0xff]  ;;  %v136_v24 = vld [vmem:[%s11154_s5 + $0xd0] sm:$0xff]  ;;  %v7095_v25 = vld [vmem:[#allocation11 + $0x98] sm:$0xff] }
  0x31   :  { %217 = vmatpush.msra.mxu1 %v126_v50  ;;  %253 = vmatpush.msra.mxu2 %v142_v7  ;;  %v7097_v27 = vld [vmem:[#allocation11 + $0xa0] sm:$0xff]  ;;  %v133_v28 = vld [vmem:[%s11154_s5 + $0xb8] sm:$0xff]  ;;  %v7107_v31 = vld [vmem:[#allocation11 + $0x88] sm:$0xff] }
  0x32   :  { %179 = vmatpush.msra.mxu0 %v116_v34  ;;  %404 = vmatpush.msra.mxu3 %v6957_v35  ;;  %v7105_v30 = vld [vmem:[#allocation11 + $0x80] sm:$0xff]  ;;  %v130_v33 = vld [vmem:[%s11154_s5 + $0xa0] sm:$0xff]  ;;  %v7115_v34 = vld [vmem:[#allocation11 + $0x68] sm:$0xff] }
  0x33   :  { %218 = vmatpush.msra.mxu1 %v123_v54  ;;  %254 = vmatpush.msra.mxu2 %v139_v15  ;;  %v7117_v36 = vld [vmem:[#allocation11 + $0x70] sm:$0xff]  ;;  %v127_v39 = vld [vmem:[%s11154_s5 + $0x88] sm:$0xff]  ;;  %v7132_v43 = vld [vmem:[#allocation11 + $0x58] sm:$0xff] }
  0x34   :  { %180 = vmatpush.msra.mxu0 %v113_v37  ;;  %405 = vmatpush.msra.mxu3 %v6966_v38  ;;  %v7124_v37 = vld [vmem:[%s11179_s26 + $0x18] sm:$0xff]  ;;  %v124_v46 = vld [vmem:[%s11154_s5 + $0x70] sm:$0xff]  ;;  %v7141_v47 = vld [vmem:[#allocation11 + $0x38] sm:$0xff] }
  0x35   :  { %219 = vmatpush.msra.mxu1 %v120_v59  ;;  %255 = vmatpush.msra.mxu2 %v136_v24  ;;  %v7143_v50 = vld [vmem:[#allocation11 + $0x40] sm:$0xff]  ;;  %v121_v51 = vld [vmem:[%s11154_s5 + $0x58] sm:$0xff]  ;;  %v7152_v55 = vld [vmem:[#allocation11 + $0x28] sm:$0xff] }
  0x36   :  { %181 = vmatpush.msra.mxu0 %v110_v40  ;;  %406 = vmatpush.msra.mxu3 %v6975_v41  ;;  %v7130_v40 = vld [vmem:[#allocation11 + $0x50] sm:$0xff]  ;;  %v7150_v54 = vld [vmem:[#allocation11 + $0x20] sm:$0xff]  ;;  %v118_v59 = vld [vmem:[%s11154_s5 + $0x40] sm:$0xff] }
  0x37   :  { %182 = vmatmul.f32.vlgmr.msra.gmra.mxu0 %v6981_v42  ;;  %407 = vmatmul.f32.vlgmr.msra.gmra.mxu3 %v6736_v4  ;;  %v7162_v63 = vld [vmem:[#allocation11 + $0x10] sm:$0xff]  ;;  %v115_v7 = vld [vmem:[%s11154_s5 + $0x28] sm:$0xff] }
  0x38   :  { %411 = vmatpush.msrb.mxu3 %v6986_v44  ;;  %431 = vmatpush.msrb.mxu0 %v6988_v45  ;;  %v7192_v15 = vld [vmem:[%s11179_s26 + $0x28] sm:$0xff] }
  0x39   :  { %220 = vmatpush.msra.mxu1 %v117_v62  ;;  %256 = vmatpush.msra.mxu2 %v133_v28  ;;  %v7160_v62 = vld [vmem:[#allocation11 + $0x8] sm:$0xff] }
  0x3a   :  { %412 = vmatpush.msrb.mxu3 %v6999_v48  ;;  %432 = vmatpush.msrb.mxu0 %v7001_v49 }
  0x3b   :  { %221 = vmatpush.msra.mxu1 %v114_v5  ;;  %257 = vmatpush.msra.mxu2 %v130_v33  ;;  %v7169_v5 = vld [vmem:[%s11179_s26 + $0x20] sm:$0xff] }
  0x3c   :  { %413 = vmatpush.msrb.mxu3 %v7011_v52  ;;  %433 = vmatpush.msrb.mxu0 %v7013_v53 }
  0x3d   :  { %222 = vmatpush.msra.mxu1 %v111_v13  ;;  %258 = vmatpush.msra.mxu2 %v127_v39  ;;  %v112_v13 = vld [vmem:[%s11154_s5 + $0x10] sm:$0xff] }
  0x3e   :  { %414 = vmatpush.msrb.mxu3 %v7023_v56  ;;  %434 = vmatpush.msrb.mxu0 %v7025_v57 }
  0x3f   :  { %185 = vmatmul.f32.gmra.mxu0 %v7031_v58  ;;  %223 = vmatmul.f32.vlgmr.msra.gmra.mxu1 %v6981_v42 }
  0x40   :  { %415 = vmatpush.msrb.mxu3 %v7037_v60  ;;  %435 = vmatpush.msrb.mxu0 %v7039_v61 }
  0x41   :  { %553 = vmatpush.msrb.mxu1 %v6851_v1  ;;  %259 = vmatpush.msra.mxu2 %v124_v46 }
  0x42   :  { %416 = vmatpush.msrb.mxu3 %v7050_v0  ;;  %436 = vmatpush.msrb.mxu0 %v7052_v2 }
  0x43   :  { %554 = vmatpush.msrb.mxu1 %v6857_v3  ;;  %260 = vmatpush.msra.mxu2 %v121_v51 }
  0x44   :  { %417 = vmatpush.msrb.mxu3 %v7062_v9  ;;  %437 = vmatpush.msrb.mxu0 %v7064_v11 }
  0x45   :  { %555 = vmatpush.msrb.mxu1 %v6863_v6  ;;  %261 = vmatpush.msra.mxu2 %v118_v59 }
  0x46   :  { %418 = vmatpush.msrb.mxu3 %v7074_v17  ;;  %438 = vmatpush.msrb.mxu0 %v7076_v18 }
  0x47   :  { %188 = vmatmul.f32.gmra.mxu0 %v7082_v19  ;;  %226 = vmatmul.f32.gmra.mxu1 %v7031_v58 }
  0x48   :  { %419 = vmatpush.msrb.mxu3 %v7085_v21  ;;  %439 = vmatpush.msrb.mxu0 %v7087_v22 }
  0x49   :  { %556 = vmatpush.msrb.mxu1 %v6871_v8  ;;  %262 = vmatpush.msra.mxu2 %v115_v7 }
  0x4a   :  { %420 = vmatpush.msrb.mxu3 %v7095_v25  ;;  %440 = vmatpush.msrb.mxu0 %v7097_v27 }
  0x4b   :  { %557 = vmatpush.msrb.mxu1 %v6879_v10  ;;  %263 = vmatpush.msra.mxu2 %v112_v13 }
  0x4c   :  { %421 = vmatpush.msrb.mxu3 %v7105_v30  ;;  %441 = vmatpush.msrb.mxu0 %v7107_v31 }
  0x4d   :  { %558 = vmatpush.msrb.mxu1 %v6887_v12  ;;  %264 = vmatmul.f32.vlgmr.msra.gmra.mxu2 %v6981_v42 }
  0x4e   :  { %422 = vmatpush.msrb.mxu3 %v7115_v34  ;;  %442 = vmatpush.msrb.mxu0 %v7117_v36 }
  0x4f   :  { %191 = vmatmul.f32.gmra.mxu0 %v7124_v37  ;;  %229 = vmatmul.f32.gmra.mxu1 %v7082_v19 }
  0x50   :  { %423 = vmatpush.msrb.mxu3 %v7130_v40  ;;  %443 = vmatpush.msrb.mxu0 %v7132_v43 }
  0x51   :  { %559 = vmatpush.msrb.mxu1 %v6894_v14  ;;  %573 = vmatpush.msrb.mxu2 %v6986_v44 }
  0x52   :  { %424 = vmatpush.msrb.mxu3 %v7141_v47  ;;  %444 = vmatpush.msrb.mxu0 %v7143_v50 }
  0x53   :  { %560 = vmatpush.msrb.mxu1 %v6900_v16  ;;  %574 = vmatpush.msrb.mxu2 %v6999_v48 }
  0x54   :  { %425 = vmatpush.msrb.mxu3 %v7150_v54  ;;  %445 = vmatpush.msrb.mxu0 %v7152_v55 }
  0x55   :  { %561 = vmatpush.msrb.mxu1 %v6912_v20  ;;  %575 = vmatpush.msrb.mxu2 %v7011_v52 }
  0x56   :  { %426 = vmatpush.msrb.mxu3 %v7160_v62  ;;  %446 = vmatpush.msrb.mxu0 %v7162_v63 }
  0x57   :  { %427 = vmatmul.f32.vlgmr.msrb.gmra.mxu3 %v6736_v4  ;;  %194 = vmatmul.f32.gmra.mxu0 %v7169_v5 }
  0x58   :  { %593 = vmatpush.msra.mxu3 %v6988_v45  ;;  %716 = vmatpush.msra.mxu0 %v6851_v1  ;;  %v7213_v1 = vld [vmem:[%s11179_s26 + $0x30] sm:$0xff] }
  0x59   :  { %562 = vmatpush.msrb.mxu1 %v6921_v23  ;;  %576 = vmatpush.msrb.mxu2 %v7023_v56 }
  0x5a   :  { %594 = vmatpush.msra.mxu3 %v7001_v49  ;;  %232 = vmatmul.f32.gmra.mxu1 %v7124_v37 }
  0x5b   :  { %563 = vmatpush.msrb.mxu1 %v6930_v26  ;;  %267 = vmatmul.f32.gmra.mxu2 %v7031_v58 }
  0x5c   :  { %595 = vmatpush.msra.mxu3 %v7013_v53  ;;  %577 = vmatpush.msrb.mxu2 %v7037_v60 }
  0x5d   :  { %564 = vmatpush.msrb.mxu1 %v6939_v29  ;;  %717 = vmatpush.msra.mxu0 %v6857_v3  ;;  %v109_v3 = vld [vmem:[%s11179_s26 + $0x38] sm:$0xff] }
  0x5e   :  { %596 = vmatpush.msra.mxu3 %v7025_v57  ;;  %578 = vmatpush.msrb.mxu2 %v7050_v0 }
  0x5f   :  { %197 = vmatmul.f32.gmra.mxu0 %v7192_v15  ;;  %565 = vmatpush.msrb.mxu1 %v6948_v32 }
  0x60   :  { %597 = vmatpush.msra.mxu3 %v7039_v61  ;;  %579 = vmatpush.msrb.mxu2 %v7062_v9 }
  0x61   :  { %566 = vmatpush.msrb.mxu1 %v6957_v35  ;;  %718 = vmatpush.msra.mxu0 %v6863_v6  ;;  %v158_v6 = vld [vmem:[%s11156_s7] sm:$0x7] }
  0x62   :  { %598 = vmatpush.msra.mxu3 %v7052_v2  ;;  %235 = vmatmul.f32.gmra.mxu1 %v7169_v5 }
  0x63   :  { %580 = vmatpush.msrb.mxu2 %v7074_v17  ;;  %567 = vmatpush.msrb.mxu1 %v6966_v38 }
  0x64   :  { %599 = vmatpush.msra.mxu3 %v7064_v11  ;;  %270 = vmatmul.f32.gmra.mxu2 %v7082_v19 }
  0x65   :  { %581 = vmatpush.msrb.mxu2 %v7085_v21  ;;  %568 = vmatpush.msrb.mxu1 %v6975_v41 }
  0x66   :  { %600 = vmatpush.msra.mxu3 %v7076_v18  ;;  %719 = vmatpush.msra.mxu0 %v6871_v8  ;;  %v329_v8 = vld [vmem:[%s11157_s8] sm:$0x7] }
  0x67   :  { %200 = vmatmul.f32.gmra.mxu0 %v7213_v1  ;;  %736 = vmatpush.msra.mxu1 %v6986_v44 }
  0x68   :  { %601 = vmatpush.msra.mxu3 %v7087_v22  ;;  %582 = vmatpush.msrb.mxu2 %v7095_v25 }
  0x69   :  { %737 = vmatpush.msra.mxu1 %v6999_v48  ;;  %720 = vmatpush.msra.mxu0 %v6879_v10  ;;  %v160_v10 = vperm.slane %v158_v6, 0 }
  0x6a   :  { %602 = vmatpush.msra.mxu3 %v7097_v27  ;;  %583 = vmatpush.msrb.mxu2 %v7105_v30 }
  0x6b   :  { %238 = vmatmul.f32.gmra.mxu1 %v7192_v15  ;;  %721 = vmatpush.msra.mxu0 %v6887_v12 }
  0x6c   :  { %603 = vmatpush.msra.mxu3 %v7107_v31  ;;  %584 = vmatpush.msrb.mxu2 %v7115_v34 }
  0x6d   :  { %738 = vmatpush.msra.mxu1 %v7011_v52  ;;  %273 = vmatmul.f32.gmra.mxu2 %v7124_v37 }
  0x6e   :  { %604 = vmatpush.msra.mxu3 %v7117_v36  ;;  %585 = vmatpush.msrb.mxu2 %v7130_v40 }
  0x6f   :  { %203 = vmatmul.f32.gmra.mxu0 %v109_v3  ;;  %739 = vmatpush.msra.mxu1 %v7023_v56  ;;  %v7314_v56 = vperm.slane %v329_v8, 1 }
  0x70   :  { %605 = vmatpush.msra.mxu3 %v7132_v43  ;;  %586 = vmatpush.msrb.mxu2 %v7141_v47 }
  0x71   :  { %740 = vmatpush.msra.mxu1 %v7037_v60  ;;  %722 = vmatpush.msra.mxu0 %v6894_v14  ;;  %v7301_v14 = vperm.slane %v329_v8, 0  ;;  %11184 = vst [vmem:[#allocation26_spill] sm:$0xff] %v7314_v56 }
  0x72   :  { %606 = vmatpush.msra.mxu3 %v7143_v50  ;;  %587 = vmatpush.msrb.mxu2 %v7150_v54 }
  0x73   :  { %241 = vmatmul.f32.gmra.mxu1 %v7213_v1  ;;  %723 = vmatpush.msra.mxu0 %v6900_v16  ;;  %11180 = vst [vmem:[#allocation22_spill] sm:$0xff] %v7301_v14 }
  0x74   :  { %607 = vmatpush.msra.mxu3 %v7152_v55  ;;  %588 = vmatpush.msrb.mxu2 %v7160_v62 }
  0x75   :  { %741 = vmatpush.msra.mxu1 %v7050_v0  ;;  %276 = vmatmul.f32.gmra.mxu2 %v7169_v5 }
  0x76   :  { %608 = vmatpush.msra.mxu3 %v7162_v63  ;;  %756 = vmatpush.msra.mxu2 %v6988_v45 }
  0x77   :  { %447 = vmatmul.f32.vlgmr.msrb.gmra.mxu0 %v6736_v4  ;;  %742 = vmatpush.msra.mxu1 %v7062_v9 }
  0x78   :  { %757 = vmatpush.msra.mxu2 %v7001_v49  ;;  %724 = vmatpush.msra.mxu0 %v6912_v20  ;;  %v7312_v49 = vperm.slane %v158_v6, 1 }
  0x79   :  { %743 = vmatpush.msra.mxu1 %v7074_v17 }
  0x7a   :  { %758 = vmatpush.msra.mxu2 %v7013_v53  ;;  %11183 = vst [vmem:[#allocation25_spill] sm:$0xff] %v7312_v49 }
  0x7b   :  { %744 = vmatpush.msra.mxu1 %v7085_v21 }
  0x7c   :  { %244 = vmatmul.f32.gmra.mxu1 %v109_v3  ;;  %759 = vmatpush.msra.mxu2 %v7025_v57 }
  0x7d   :  { %745 = vmatpush.msra.mxu1 %v7095_v25  ;;  %279 = vmatmul.f32.gmra.mxu2 %v7192_v15 }
  0x7e   :  { %760 = vmatpush.msra.mxu2 %v7039_v61 }
  0x7f   :  { %746 = vmatpush.msra.mxu1 %v7105_v30 }
  0x80   :  { %761 = vmatpush.msra.mxu2 %v7052_v2 }
  0x81   :  { %747 = vmatpush.msra.mxu1 %v7115_v34 }
  0x82   :  { %762 = vmatpush.msra.mxu2 %v7064_v11 }
  0x83   :  { %748 = vmatpush.msra.mxu1 %v7130_v40 }
  0x84   :  { %763 = vmatpush.msra.mxu2 %v7076_v18 }
  0x85   :  { %749 = vmatpush.msra.mxu1 %v7141_v47  ;;  %282 = vmatmul.f32.gmra.mxu2 %v7213_v1  ;;  %v7332_v47 = vperm.slane %v329_v8, 2 }
  0x86   :  { %764 = vmatpush.msra.mxu2 %v7087_v22  ;;  %v7322_v22 = vperm.slane %v158_v6, 2 }
  0x87   :  { %750 = vmatpush.msra.mxu1 %v7150_v54 }
  0x88   :  { %765 = vmatpush.msra.mxu2 %v7097_v27  ;;  %11187 = vst [vmem:[#allocation29_spill] sm:$0xff] %v7322_v22 }
  0x89   :  { %751 = vmatpush.msra.mxu1 %v7160_v62 }
  0x8a   :  { %766 = vmatpush.msra.mxu2 %v7107_v31 }
  0x8c   :  { %767 = vmatpush.msra.mxu2 %v7117_v36 }
  0x8d   :  { %285 = vmatmul.f32.gmra.mxu2 %v109_v3 }
  0x8e   :  { %768 = vmatpush.msra.mxu2 %v7132_v43 }
  0x90   :  { %769 = vmatpush.msra.mxu2 %v7143_v50 }
  0x92   :  { %770 = vmatpush.msra.mxu2 %v7152_v55 }
  0x94   :  { %771 = vmatpush.msra.mxu2 %v7162_v63 }
  0xb4   :  { %v183_v4 = vpop.f32.mrf.mxu0 }
  0xb5   :  { %v184_v26 = vadd.f32 %v183_v4, %v160_v10 }
  0xba   :  { %v408_v20 = vpop.f32.mrf.mxu3 }
  0xbb   :  { %v409_v23 = vadd.f32 %v408_v20, %v7301_v14 }
  0xbc   :  { %v186_v12 = vpop.f32.mrf.mxu0  ;;  %v224_v53 = vpop.f32.mrf.mxu1 }
  0xbd   :  { %v7303_v16 = vadd.f32 %v186_v12, %v160_v10  ;;  %v451_v32 = vadd.f32 %v409_v23, %v184_v26  ;;  %v225_v57 = vadd.f32 %v224_v53, %v7312_v49 }
  0xbf   :  { %v6316_v38 = vmul.f32 -1.442695, %v451_v32 }
  0xc1   :  { %6420 = vpow2.f32 %v6316_v38 }
  0xc4   :  { %v189_v29 = vpop.f32.mrf.mxu0 }
  0xc5   :  { %v7306_v35 = vadd.f32 %v189_v29, %v160_v10 }
  0xc7   :  { %v6421_v44 = vpop.eup %6420 }
  0xc8   :  { %v455_v52 = vadd.f32 1.0, %v6421_v44 }
  0xca   :  { %6422 = vrcp.f32 %v455_v52  ;;  %v467_v40 = vand.u32 2147483648, %v455_v52  ;;  %vm461_vm1 = vweird.f32 %v455_v52  ;;  %v465_v50 = vand.u32 2147483647, %v455_v52 }
  0xcc   :  { %v192_v41 = vpop.f32.mrf.mxu0  ;;  %v468_v59 = vor.u32 1.1754944e-38, %v467_v40  ;;  %vm466_vm3 = vcmp.eq.f32.partialorder %v465_v50, 8.507059e+37  ;;  %v7382_v40 = vld [vmem:[#allocation11 + $0x48] sm:$0xff]  ;;  %v7385_v50 = vld [vmem:[#allocation11 + $0x30] sm:$0xff] }
  0xcd   :  { %v7308_v42 = vadd.f32 %v192_v41, %v160_v10 }
  0xcf   :  { %11181 = vst [vmem:[#allocation23_spill] sm:$0xff] %v7308_v42 }
  0xd0   :  { %v265_v11 = vpop.f32.mrf.mxu2  ;;  %v6423_v17 = vpop.eup %6422 }
  0xd1   :  { %v457_v18 = vmul.f32 %v6423_v17, %v455_v52  ;;  %vm462_vm0 = vweird.f32 %v6423_v17  ;;  %v266_v5 = vadd.f32 %v265_v11, %v7322_v22 }
  0xd2   :  { %vm463_vm2 = vmor %vm461_vm1, %vm462_vm0 }
  0xd3   :  { %v458_v25 = vsub.f32 1.0, %v457_v18 }
  0xd4   :  { %v195_v45 = vpop.f32.mrf.mxu0 }
  0xd5   :  { %v7310_v48 = vadd.f32 %v195_v45, %v160_v10  ;;  %v459_v31 = vmul.f32 %v6423_v17, %v458_v25 }
  0xd7   :  { %11182 = vst [vmem:[#allocation24_spill] sm:$0xff] %v7310_v48  ;;  %v460_v36 = vadd.f32 %v6423_v17, %v459_v31  ;;  %v7374_v31 = vld [vmem:[#allocation11 + $0x78] sm:$0xff] }
  0xd9   :  { %v464_v54 = vsel %vm463_vm2, %v6423_v17, %v460_v36 }
  0xda   :  { %v428_v58 = vpop.f32.mrf.mxu3  ;;  %v469_v7 = vsel %vm466_vm3, %v468_v59, %v464_v54 }
  0xdb   :  { %v429_v60 = vadd.f32 %v428_v58, %v7314_v56  ;;  %v227_v58 = vpop.f32.mrf.mxu1 }
  0xdc   :  { %v198_v61 = vpop.f32.mrf.mxu0  ;;  %v228_v36 = vadd.f32 %v227_v58, %v7312_v49 }
  0xdd   :  { %v471_v0 = vadd.f32 %v429_v60, %v225_v57  ;;  %v7318_v2 = vadd.f32 %v198_v61, %v160_v10 }
  0xde   :  { %v268_v27 = vpop.f32.mrf.mxu2 }
  0xdf   :  { %11185 = vst [vmem:[#allocation27_spill] sm:$0xff] %v7318_v2  ;;  %v6317_v9 = vmul.f32 -1.442695, %v471_v0  ;;  %v7325_v30 = vadd.f32 %v268_v27, %v7322_v22  ;;  %v7371_v27 = vld [vmem:[#allocation11 + $0x90] sm:$0xff] }
  0xe0   :  { %725 = vmatpush.msra.mxu0 %v7371_v27 }
  0xe1   :  { %6424 = vpow2.f32 %v6317_v9 }
  0xe2   :  { %726 = vmatpush.msra.mxu0 %v7374_v31 }
  0xe3   :  { %v7355_v60 = vpop.f32.mrf.mxu1 }
  0xe4   :  { %v201_v19 = vpop.f32.mrf.mxu0 }
  0xe5   :  { %v7320_v21 = vadd.f32 %v201_v19, %v160_v10 }
  0xe7   :  { %11186 = vst [vmem:[#allocation28_spill] sm:$0xff] %v7320_v21  ;;  %v6425_v24 = vpop.eup %6424  ;;  %v271_v37 = vpop.f32.mrf.mxu2  ;;  %v7542_v21 = vld [vmem:[#allocation11 + $0x8] sm:$0xff] }
  0xe8   :  { %v475_v28 = vadd.f32 1.0, %v6425_v24  ;;  %v7330_v43 = vadd.f32 %v271_v37, %v7322_v22 }
  0xea   :  { %6426 = vrcp.f32 %v475_v28  ;;  %vm481_vm4 = vweird.f32 %v475_v28  ;;  %v487_v13 = vand.u32 2147483648, %v475_v28  ;;  %v485_v4 = vand.u32 2147483647, %v475_v28 }
  0xeb   :  { %v7357_v61 = vpop.f32.mrf.mxu1 }
  0xec   :  { %v204_v33 = vpop.f32.mrf.mxu0  ;;  %v488_v12 = vor.u32 1.1754944e-38, %v487_v13  ;;  %vm486_vm7 = vcmp.eq.f32.partialorder %v485_v4, 8.507059e+37  ;;  %11193 = vst [vmem:[#allocation35_spill] sm:$0xff] %v7357_v61 }
  0xed   :  { %v7327_v34 = vadd.f32 %v204_v33, %v160_v10 }
  0xef   :  { %11188 = vst [vmem:[#allocation30_spill] sm:$0xff] %v7327_v34  ;;  %v7506_v34 = vld [vmem:[#allocation11 + $0x80] sm:$0xff] }
  0xf0   :  { %v6427_v39 = vpop.eup %6426  ;;  %v274_v3 = vpop.f32.mrf.mxu2 }
  0xf1   :  { %v477_v46 = vmul.f32 %v6427_v39, %v475_v28  ;;  %vm482_vm5 = vweird.f32 %v6427_v39  ;;  %v7337_v6 = vadd.f32 %v274_v3, %v7322_v22 }
  0xf2   :  { %vm483_vm6 = vmor %vm481_vm4, %vm482_vm5 }
  0xf3   :  { %v478_v51 = vsub.f32 1.0, %v477_v46  ;;  %11189 = vst [vmem:[#allocation31_spill] sm:$0xff] %v7337_v6  ;;  %v7359_v0 = vpop.f32.mrf.mxu1 }
  0xf4   :  { %v448_v55 = vpop.f32.mrf.mxu0  ;;  %11194 = vst [vmem:[#allocation36_spill] sm:$0xff] %v7359_v0 }
  0xf5   :  { %v479_v62 = vmul.f32 %v6427_v39, %v478_v51  ;;  %v449_v63 = vadd.f32 %v448_v55, %v7332_v47  ;;  %v7388_v51 = vld [vmem:[#allocation11 + $0x18] sm:$0xff]  ;;  %v7390_v55 = vld [vmem:[#allocation11] sm:$0xff] }
  0xf7   :  { %v491_v15 = vmul.f32 %v469_v7, %v449_v63  ;;  %v480_v1 = vadd.f32 %v6427_v39, %v479_v62 }
  0xf8   :  { %v277_v23 = vpop.f32.mrf.mxu2 }
  0xf9   :  { %v492_v8 = vadd.f32 %v491_v15, %v266_v5  ;;  %v484_v10 = vsel %vm483_vm6, %v6427_v39, %v480_v1  ;;  %v7340_v29 = vadd.f32 %v277_v23, %v7322_v22  ;;  %v7379_v39 = vld [vmem:[#allocation11 + $0x60] sm:$0xff] }
  0xfa   :  { %v489_v20 = vsel %vm486_vm7, %v488_v12, %v484_v10  ;;  %727 = vmatpush.msra.mxu0 %v7379_v39 }
  0xfb   :  { %6428 = vtanh.f32 %v492_v8  ;;  %v494_v26 = vsub.f32 1.0, %v489_v20  ;;  %11190 = vst [vmem:[#allocation32_spill] sm:$0xff] %v7340_v29  ;;  %v496_v41 = vmul.f32 0.0, %v489_v20  ;;  %v7361_v9 = vpop.f32.mrf.mxu1 }
  0xfc   :  { %11195 = vst [vmem:[#allocation37_spill] sm:$0xff] %v7361_v9  ;;  %728 = vmatpush.msra.mxu0 %v7382_v40  ;;  %v7547_v9 = vld [vmem:[#allocation11 + $0x10] sm:$0xff] }
  0xfe   :  { %729 = vmatpush.msra.mxu0 %v7385_v50 }
 0x100   :  { %v280_v45 = vpop.f32.mrf.mxu2  ;;  %730 = vmatpush.msra.mxu0 %v7388_v51 }
 0x101   :  { %v6429_v32 = vpop.eup %6428  ;;  %v7350_v52 = vadd.f32 %v280_v45, %v7322_v22 }
 0x102   :  { %v495_v38 = vmul.f32 %v6429_v32, %v494_v26  ;;  %731 = vmatpush.msra.mxu0 %v7390_v55 }
 0x103   :  { %11191 = vst [vmem:[#allocation33_spill] sm:$0xff] %v7350_v52  ;;  %v7363_v11 = vpop.f32.mrf.mxu1 }
 0x104   :  { %v7342_v44 = vadd.f32 %v496_v41, %v495_v38  ;;  %11196 = vst [vmem:[#allocation38_spill] sm:$0xff] %v7363_v11 }
 0x106   :  { %498 = vst [vmem:[#allocation3 + $0x30] sm:$0xff] %v7342_v44  ;;  %569 = vmatmul.f32.vlgmr.msrb.gmra.mxu1 %v7342_v44  ;;  %589 = vmatmul.f32.vlgmr.msrb.gmra.mxu2 %v7342_v44 }
 0x107   :  { %609 = vmatmul.f32.vlgmr.msra.gmra.mxu3 %v7342_v44  ;;  %1656 = vxpose.xlu0.b32.start [1/16] %v7342_v44, 128 }
 0x108   :  { %v283_v53 = vpop.f32.mrf.mxu2 }
 0x109   :  { %v7353_v57 = vadd.f32 %v283_v53, %v7322_v22 }
 0x10b   :  { %11192 = vst [vmem:[#allocation34_spill] sm:$0xff] %v7353_v57  ;;  %v7365_v17 = vpop.f32.mrf.mxu1 }
 0x10c   :  { %11197 = vst [vmem:[#allocation39_spill] sm:$0xff] %v7365_v17  ;;  %v7539_v17 = vld [vmem:[#allocation11 + $0x28] sm:$0xff] }
 0x110   :  { %v7367_v18 = vpop.f32.mrf.mxu2 }
 0x111   :  { %11198 = vst [vmem:[#allocation40_spill] sm:$0xff] %v7367_v18 }
 0x183   :  { %v570_v19 = vpop.f32.mrf.mxu1 }
 0x184   :  { %v571_v24 = vadd.f32 %v570_v19, %v7301_v14 }
 0x186   :  { %v613_v25 = vadd.f32 %v571_v24, %v7303_v16 }
 0x188   :  { %v6318_v28 = vmul.f32 -1.442695, %v613_v25 }
 0x189   :  { %v590_v33 = vpop.f32.mrf.mxu2 }
 0x18a   :  { %6430 = vpow2.f32 %v6318_v28  ;;  %v591_v37 = vadd.f32 %v590_v33, %v7314_v56  ;;  %v610_v8 = vpop.f32.mrf.mxu3 }
 0x18b   :  { %v611_v26 = vadd.f32 %v610_v8, %v7332_v47  ;;  %v7443_v8 = vld [vmem:[#allocation11 + $0x108] sm:$0xff] }
 0x18c   :  { %v633_v16 = vadd.f32 %v591_v37, %v228_v36 }
 0x18e   :  { %v6319_v46 = vmul.f32 -1.442695, %v633_v16 }
 0x190   :  { %v6431_v54 = vpop.eup %6430  ;;  %6432 = vpow2.f32 %v6319_v46 }
 0x191   :  { %v617_v59 = vadd.f32 1.0, %v6431_v54 }
 0x193   :  { %6434 = vrcp.f32 %v617_v59  ;;  %v629_v15 = vand.u32 2147483648, %v617_v59  ;;  %v627_v3 = vand.u32 2147483647, %v617_v59  ;;  %vm623_vm9 = vweird.f32 %v617_v59 }
 0x195   :  { %v630_v20 = vor.u32 1.1754944e-38, %v629_v15  ;;  %vm628_vm11 = vcmp.eq.f32.partialorder %v627_v3, 8.507059e+37  ;;  %v7427_v15 = vld [vmem:[#allocation11 + $0x148] sm:$0xff] }
 0x196   :  { %v6433_v62 = vpop.eup %6432  ;;  %v7435_v3 = vld [vmem:[#allocation11 + $0x128] sm:$0xff] }
 0x197   :  { %v637_v63 = vadd.f32 1.0, %v6433_v62  ;;  %v7408_v62 = vld [vmem:[#allocation11 + $0x178] sm:$0xff] }
 0x198   :  { %919 = vmatpush.msrb.mxu1 %v7408_v62 }
 0x199   :  { %v6435_v5 = vpop.eup %6434  ;;  %6436 = vrcp.f32 %v637_v63  ;;  %v649_v45 = vand.u32 2147483648, %v637_v63  ;;  %v647_v58 = vand.u32 2147483647, %v637_v63  ;;  %vm643_vm13 = vweird.f32 %v637_v63 }
 0x19a   :  { %v619_v7 = vmul.f32 %v6435_v5, %v617_v59  ;;  %vm624_vm8 = vweird.f32 %v6435_v5  ;;  %v7406_v59 = vld [vmem:[#allocation11 + $0x170] sm:$0xff] }
 0x19b   :  { %vm625_vm10 = vmor %vm623_vm9, %vm624_vm8  ;;  %v650_v25 = vor.u32 1.1754944e-38, %v649_v45  ;;  %vm648_vm15 = vcmp.eq.f32.partialorder %v647_v58, 8.507059e+37  ;;  %899 = vmatpush.msrb.mxu0 %v7406_v59  ;;  %v7473_v45 = vld [vmem:[#allocation11 + $0xc0] sm:$0xff]  ;;  %v7477_v58 = vld [vmem:[#allocation11 + $0xd0] sm:$0xff] }
 0x19c   :  { %v620_v13 = vsub.f32 1.0, %v619_v7  ;;  %v7423_v7 = vld [vmem:[#allocation11 + $0x138] sm:$0xff] }
 0x19e   :  { %v621_v1 = vmul.f32 %v6435_v5, %v620_v13  ;;  %v7425_v13 = vld [vmem:[#allocation11 + $0x140] sm:$0xff] }
 0x19f   :  { %v6437_v4 = vpop.eup %6436 }
 0x1a0   :  { %v639_v10 = vmul.f32 %v6437_v4, %v637_v63  ;;  %v622_v12 = vadd.f32 %v6435_v5, %v621_v1  ;;  %vm644_vm12 = vweird.f32 %v6437_v4  ;;  %v7415_v63 = vld [vmem:[#allocation11 + $0x158] sm:$0xff]  ;;  %v7433_v1 = vld [vmem:[#allocation11 + $0x120] sm:$0xff] }
 0x1a1   :  { %vm645_vm14 = vmor %vm643_vm13, %vm644_vm12  ;;  %900 = vmatpush.msrb.mxu0 %v7415_v63 }
 0x1a2   :  { %v640_v23 = vsub.f32 1.0, %v639_v10  ;;  %v626_v32 = vsel %vm625_vm10, %v6435_v5, %v622_v12  ;;  %v7417_v5 = vld [vmem:[#allocation11 + $0x160] sm:$0xff]  ;;  %v7445_v10 = vld [vmem:[#allocation11 + $0x110] sm:$0xff]  ;;  %v7447_v12 = vld [vmem:[#allocation11 + $0x118] sm:$0xff] }
 0x1a3   :  { %v631_v38 = vsel %vm628_vm11, %v630_v20, %v626_v32  ;;  %920 = vmatpush.msrb.mxu1 %v7417_v5  ;;  %901 = vmatpush.msrb.mxu0 %v7425_v13  ;;  %v7453_v20 = vld [vmem:[#allocation11 + $0xf0] sm:$0xff]  ;;  %v7463_v32 = vld [vmem:[#allocation11 + $0xd8] sm:$0xff] }
 0x1a4   :  { %v641_v41 = vmul.f32 %v6437_v4, %v640_v23  ;;  %v653_v53 = vmul.f32 %v631_v38, %v611_v26  ;;  %v7455_v23 = vld [vmem:[#allocation11 + $0xf8] sm:$0xff]  ;;  %v7457_v26 = vld [vmem:[#allocation11 + $0x100] sm:$0xff] }
 0x1a5   :  { %921 = vmatpush.msrb.mxu1 %v7427_v15  ;;  %902 = vmatpush.msrb.mxu0 %v7435_v3  ;;  %11199 = vst [vmem:[#allocation41_spill] sm:$0xff] %v7455_v23  ;;  %v7465_v38 = vld [vmem:[#allocation11 + $0xe0] sm:$0xff] }
 0x1a6   :  { %v642_v19 = vadd.f32 %v6437_v4, %v641_v41  ;;  %v654_v24 = vadd.f32 %v653_v53, %v7325_v30  ;;  %v7404_v30 = vld [vmem:[#allocation11 + $0x168] sm:$0xff] }
 0x1a7   :  { %879 = vmatpush.msrb.mxu3 %v7404_v30  ;;  %1042 = vmatpush.msrb.mxu2 %v7404_v30  ;;  %v7467_v41 = vld [vmem:[#allocation11 + $0xe8] sm:$0xff] }
 0x1a8   :  { %v646_v28 = vsel %vm645_vm14, %v6437_v4, %v642_v19  ;;  %6438 = vtanh.f32 %v654_v24  ;;  %v7437_v4 = vld [vmem:[#allocation11 + $0x130] sm:$0xff]  ;;  %903 = vmatpush.msrb.mxu0 %v7445_v10  ;;  %v7475_v53 = vld [vmem:[#allocation11 + $0xc8] sm:$0xff] }
 0x1a9   :  { %v651_v33 = vsel %vm648_vm15, %v650_v25, %v646_v28  ;;  %922 = vmatpush.msrb.mxu1 %v7437_v4  ;;  %v231_v25 = vadd.f32 %v7355_v60, %v7312_v49 }
 0x1aa   :  { %v656_v36 = vsub.f32 1.0, %v651_v33  ;;  %v658_v46 = vmul.f32 %v651_v33, %v7342_v44  ;;  %v7413_v44 = vld [vmem:[#allocation11 + $0x150] sm:$0xff]  ;;  %904 = vmatpush.msrb.mxu0 %v7455_v23 }
 0x1ab   :  { %880 = vmatpush.msrb.mxu3 %v7413_v44  ;;  %1043 = vmatpush.msrb.mxu2 %v7413_v44 }
 0x1ac   :  { %923 = vmatpush.msrb.mxu1 %v7447_v12  ;;  %905 = vmatpush.msrb.mxu0 %v7465_v38 }
 0x1ad   :  { %881 = vmatpush.msrb.mxu3 %v7423_v7  ;;  %1044 = vmatpush.msrb.mxu2 %v7423_v7 }
 0x1ae   :  { %v6439_v37 = vpop.eup %6438  ;;  %924 = vmatpush.msrb.mxu1 %v7457_v26  ;;  %906 = vmatpush.msrb.mxu0 %v7475_v53 }
 0x1af   :  { %v657_v16 = vmul.f32 %v6439_v37, %v656_v36  ;;  %882 = vmatpush.msrb.mxu3 %v7433_v1  ;;  %1045 = vmatpush.msrb.mxu2 %v7433_v1  ;;  %v7487_v36 = vld [vmem:[#allocation11 + $0xa8] sm:$0xff]  ;;  %v7489_v37 = vld [vmem:[#allocation11 + $0xb0] sm:$0xff] }
 0x1b0   :  { %925 = vmatpush.msrb.mxu1 %v7467_v41  ;;  %907 = vmatpush.msrb.mxu0 %v7489_v37 }
 0x1b1   :  { %v7397_v54 = vadd.f32 %v658_v46, %v657_v16  ;;  %883 = vmatpush.msrb.mxu3 %v7443_v8  ;;  %1046 = vmatpush.msrb.mxu2 %v7443_v8  ;;  %v7491_v16 = vld [vmem:[#allocation11 + $0xb8] sm:$0xff] }
 0x1b2   :  { %926 = vmatpush.msrb.mxu1 %v7477_v58 }
 0x1b3   :  { %661 = vst [vmem:[#allocation3] sm:$0xff] %v7397_v54  ;;  %732 = vmatmul.f32.vlgmr.msra.gmra.mxu0 %v7397_v54  ;;  %752 = vmatmul.f32.vlgmr.msra.gmra.mxu1 %v7397_v54 }
 0x1b4   :  { %772 = vmatmul.f32.vlgmr.msra.gmra.mxu2 %v7397_v54  ;;  %1657 = vxpose.xlu0.b32.cont [2/16] %v7397_v54, 128 }
 0x1b5   :  { %884 = vmatpush.msrb.mxu3 %v7453_v20  ;;  %1047 = vmatpush.msrb.mxu2 %v7453_v20 }
 0x1b6   :  { %927 = vmatpush.msrb.mxu1 %v7491_v16 }
 0x1b7   :  { %885 = vmatpush.msrb.mxu3 %v7463_v32  ;;  %1048 = vmatpush.msrb.mxu2 %v7463_v32 }
 0x1b9   :  { %886 = vmatpush.msrb.mxu3 %v7473_v45  ;;  %1049 = vmatpush.msrb.mxu2 %v7473_v45 }
 0x1bb   :  { %887 = vmatpush.msrb.mxu3 %v7487_v36  ;;  %1050 = vmatpush.msrb.mxu2 %v7487_v36 }
 0x1bd   :  { %888 = vmatpush.msrb.mxu3 %v7371_v27  ;;  %1051 = vmatpush.msrb.mxu2 %v7371_v27 }
 0x1bf   :  { %889 = vmatpush.msrb.mxu3 %v7374_v31  ;;  %1052 = vmatpush.msrb.mxu2 %v7374_v31 }
 0x1c1   :  { %890 = vmatpush.msrb.mxu3 %v7379_v39  ;;  %1053 = vmatpush.msrb.mxu2 %v7379_v39 }
 0x1c3   :  { %891 = vmatpush.msrb.mxu3 %v7382_v40  ;;  %1054 = vmatpush.msrb.mxu2 %v7382_v40 }
 0x1c5   :  { %892 = vmatpush.msrb.mxu3 %v7385_v50  ;;  %1055 = vmatpush.msrb.mxu2 %v7385_v50 }
 0x1c7   :  { %893 = vmatpush.msrb.mxu3 %v7388_v51  ;;  %1056 = vmatpush.msrb.mxu2 %v7388_v51 }
 0x1c9   :  { %894 = vmatpush.msrb.mxu3 %v7390_v55  ;;  %1057 = vmatpush.msrb.mxu2 %v7390_v55 }
 0x1cb   :  { %1062 = vmatpush.msra.mxu3 %v7406_v59  ;;  %1225 = vmatpush.msra.mxu2 %v7406_v59 }
 0x1cd   :  { %1063 = vmatpush.msra.mxu3 %v7415_v63  ;;  %1226 = vmatpush.msra.mxu2 %v7415_v63 }
 0x1cf   :  { %1064 = vmatpush.msra.mxu3 %v7425_v13  ;;  %1227 = vmatpush.msra.mxu2 %v7425_v13 }
 0x1d1   :  { %1065 = vmatpush.msra.mxu3 %v7435_v3  ;;  %1228 = vmatpush.msra.mxu2 %v7435_v3 }
 0x1d3   :  { %1066 = vmatpush.msra.mxu3 %v7445_v10  ;;  %1229 = vmatpush.msra.mxu2 %v7445_v10 }
 0x1d5   :  { %1067 = vmatpush.msra.mxu3 %v7455_v23  ;;  %1230 = vmatpush.msra.mxu2 %v7455_v23 }
 0x1d7   :  { %1068 = vmatpush.msra.mxu3 %v7465_v38  ;;  %1231 = vmatpush.msra.mxu2 %v7465_v38 }
 0x1d9   :  { %1069 = vmatpush.msra.mxu3 %v7475_v53  ;;  %1232 = vmatpush.msra.mxu2 %v7475_v53 }
 0x1db   :  { %1070 = vmatpush.msra.mxu3 %v7489_v37  ;;  %1233 = vmatpush.msra.mxu2 %v7489_v37 }
 0x230   :  { %v733_v19 = vpop.f32.mrf.mxu0  ;;  %v753_v24 = vpop.f32.mrf.mxu1 }
 0x231   :  { %v734_v28 = vadd.f32 %v733_v19, %v7301_v14  ;;  %v754_v33 = vadd.f32 %v753_v24, %v7314_v56  ;;  %v7498_v19 = vld [vmem:[#allocation11 + $0x98] sm:$0xff]  ;;  %v7500_v24 = vld [vmem:[#allocation11 + $0xa0] sm:$0xff] }
 0x232   :  { %908 = vmatpush.msrb.mxu0 %v7498_v19  ;;  %928 = vmatpush.msrb.mxu1 %v7500_v24 }
 0x233   :  { %v776_v60 = vadd.f32 %v734_v28, %v7306_v35  ;;  %v796_v46 = vadd.f32 %v754_v33, %v231_v25  ;;  %v7508_v35 = vld [vmem:[#allocation11 + $0x88] sm:$0xff]  ;;  %v7516_v28 = vld [vmem:[#allocation11 + $0x70] sm:$0xff]  ;;  %1071 = vmatpush.msra.mxu3 %v7498_v19  ;;  %1234 = vmatpush.msra.mxu2 %v7498_v19 }
 0x234   :  { %909 = vmatpush.msrb.mxu0 %v7506_v34  ;;  %929 = vmatpush.msrb.mxu1 %v7508_v35  ;;  %v7514_v25 = vld [vmem:[#allocation11 + $0x68] sm:$0xff]  ;;  %v7522_v33 = vld [vmem:[#allocation11 + $0x50] sm:$0xff] }
 0x235   :  { %v6320_v18 = vmul.f32 -1.442695, %v776_v60  ;;  %v6321_v22 = vmul.f32 -1.442695, %v796_v46  ;;  %v7524_v60 = vld [vmem:[#allocation11 + $0x58] sm:$0xff]  ;;  %v7537_v46 = vld [vmem:[#allocation11 + $0x20] sm:$0xff]  ;;  %1072 = vmatpush.msra.mxu3 %v7506_v34  ;;  %1235 = vmatpush.msra.mxu2 %v7506_v34 }
 0x236   :  { %910 = vmatpush.msrb.mxu0 %v7514_v25  ;;  %930 = vmatpush.msrb.mxu1 %v7516_v28 }
 0x237   :  { %6440 = vpow2.f32 %v6320_v18  ;;  %v7530_v18 = vld [vmem:[#allocation11 + $0x38] sm:$0xff]  ;;  %1073 = vmatpush.msra.mxu3 %v7514_v25  ;;  %1236 = vmatpush.msra.mxu2 %v7514_v25 }
 0x238   :  { %6442 = vpow2.f32 %v6321_v22  ;;  %911 = vmatpush.msrb.mxu0 %v7522_v33  ;;  %931 = vmatpush.msrb.mxu1 %v7524_v60  ;;  %v7532_v22 = vld [vmem:[#allocation11 + $0x40] sm:$0xff] }
 0x239   :  { %1074 = vmatpush.msra.mxu3 %v7522_v33  ;;  %1237 = vmatpush.msra.mxu2 %v7522_v33 }
 0x23a   :  { %912 = vmatpush.msrb.mxu0 %v7530_v18  ;;  %932 = vmatpush.msrb.mxu1 %v7532_v22 }
 0x23b   :  { %1075 = vmatpush.msra.mxu3 %v7530_v18  ;;  %1238 = vmatpush.msra.mxu2 %v7530_v18 }
 0x23c   :  { %913 = vmatpush.msrb.mxu0 %v7537_v46  ;;  %933 = vmatpush.msrb.mxu1 %v7539_v17 }
 0x23d   :  { %v6441_v57 = vpop.eup %6440  ;;  %1076 = vmatpush.msra.mxu3 %v7537_v46  ;;  %1239 = vmatpush.msra.mxu2 %v7537_v46 }
 0x23e   :  { %v6443_v11 = vpop.eup %6442  ;;  %v780_v52 = vadd.f32 1.0, %v6441_v57  ;;  %914 = vmatpush.msrb.mxu0 %v7542_v21  ;;  %934 = vmatpush.msrb.mxu1 %v7547_v9 }
 0x23f   :  { %v7549_v2 = vadd.f32 1.0, %v6443_v11  ;;  %1077 = vmatpush.msra.mxu3 %v7542_v21  ;;  %1240 = vmatpush.msra.mxu2 %v7542_v21 }
 0x240   :  { %6444 = vrcp.f32 %v780_v52  ;;  %1082 = vmatpush.msra.mxu0 %v7408_v62  ;;  %1205 = vmatpush.msra.mxu1 %v7404_v30  ;;  %v792_v42 = vand.u32 2147483648, %v780_v52  ;;  %v790_v56 = vand.u32 2147483647, %v780_v52  ;;  %vm786_vm1 = vweird.f32 %v780_v52 }
 0x241   :  { %6446 = vrcp.f32 %v7549_v2  ;;  %vm806_vm5 = vweird.f32 %v7549_v2 }
 0x242   :  { %1083 = vmatpush.msra.mxu0 %v7417_v5  ;;  %1206 = vmatpush.msra.mxu1 %v7413_v44  ;;  %vm791_vm3 = vcmp.eq.f32.partialorder %v790_v56, 8.507059e+37  ;;  %v810_v56 = vand.u32 2147483647, %v7549_v2 }
 0x244   :  { %1084 = vmatpush.msra.mxu0 %v7427_v15  ;;  %1207 = vmatpush.msra.mxu1 %v7423_v7  ;;  %vm811_vm7 = vcmp.eq.f32.partialorder %v810_v56, 8.507059e+37 }
 0x246   :  { %v6445_v57 = vpop.eup %6444  ;;  %1085 = vmatpush.msra.mxu0 %v7437_v4  ;;  %1208 = vmatpush.msra.mxu1 %v7433_v1 }
 0x247   :  { %v7568_v11 = vpop.eup %6446  ;;  %v782_v29 = vmul.f32 %v6445_v57, %v780_v52  ;;  %vm787_vm0 = vweird.f32 %v6445_v57 }
 0x248   :  { %v802_v48 = vmul.f32 %v7568_v11, %v7549_v2  ;;  %1086 = vmatpush.msra.mxu0 %v7447_v12  ;;  %1209 = vmatpush.msra.mxu1 %v7443_v8  ;;  %vm788_vm2 = vmor %vm786_vm1, %vm787_vm0  ;;  %vm807_vm4 = vweird.f32 %v7568_v11 }
 0x249   :  { %v783_v0 = vsub.f32 1.0, %v782_v29  ;;  %v773_v29 = vpop.f32.mrf.mxu2  ;;  %vm808_vm6 = vmor %vm806_vm5, %vm807_vm4 }
 0x24a   :  { %v803_v6 = vsub.f32 1.0, %v802_v48  ;;  %1087 = vmatpush.msra.mxu0 %v7457_v26  ;;  %1210 = vmatpush.msra.mxu1 %v7453_v20  ;;  %v774_v49 = vadd.f32 %v773_v29, %v7332_v47 }
 0x24b   :  { %v784_v14 = vmul.f32 %v6445_v57, %v783_v0  ;;  %v793_v0 = vor.u32 1.1754944e-38, %v792_v42  ;;  %v812_v42 = vand.u32 2147483648, %v7549_v2 }
 0x24c   :  { %v804_v61 = vmul.f32 %v7568_v11, %v803_v6  ;;  %1088 = vmatpush.msra.mxu0 %v7467_v41  ;;  %1211 = vmatpush.msra.mxu1 %v7463_v32 }
 0x24d   :  { %v785_v48 = vadd.f32 %v6445_v57, %v784_v14 }
 0x24e   :  { %v805_v52 = vadd.f32 %v7568_v11, %v804_v61  ;;  %1089 = vmatpush.msra.mxu0 %v7477_v58  ;;  %1212 = vmatpush.msra.mxu1 %v7473_v45 }
 0x24f   :  { %v789_v6 = vsel %vm788_vm2, %v6445_v57, %v785_v48  ;;  %v813_v57 = vor.u32 1.1754944e-38, %v812_v42 }
 0x250   :  { %v794_v14 = vsel %vm791_vm3, %v793_v0, %v789_v6  ;;  %1090 = vmatpush.msra.mxu0 %v7491_v16  ;;  %1213 = vmatpush.msra.mxu1 %v7487_v36 }
 0x251   :  { %v816_v23 = vmul.f32 %v794_v14, %v774_v49  ;;  %v809_v49 = vsel %vm808_vm6, %v7568_v11, %v805_v52 }
 0x252   :  { %1091 = vmatpush.msra.mxu0 %v7500_v24  ;;  %1214 = vmatpush.msra.mxu1 %v7371_v27  ;;  %v814_v2 = vsel %vm811_vm7, %v813_v57, %v809_v49  ;;  %v11206_v49 = vld [vmem:[#allocation31_spill] sm:$0xff] }
 0x253   :  { %v817_v61 = vadd.f32 %v816_v23, %v7330_v43  ;;  %v819_v43 = vsub.f32 1.0, %v814_v2 }
 0x254   :  { %1092 = vmatpush.msra.mxu0 %v7508_v35  ;;  %1215 = vmatpush.msra.mxu1 %v7374_v31  ;;  %v821_v31 = vmul.f32 %v814_v2, %v7397_v54  ;;  %v11203_v54 = vld [vmem:[#allocation26_spill] sm:$0xff] }
 0x255   :  { %6448 = vtanh.f32 %v817_v61 }
 0x256   :  { %1093 = vmatpush.msra.mxu0 %v7516_v28  ;;  %1216 = vmatpush.msra.mxu1 %v7379_v39 }
 0x258   :  { %1094 = vmatpush.msra.mxu0 %v7524_v60  ;;  %1217 = vmatpush.msra.mxu1 %v7382_v40  ;;  %v11200_v40 = vld [vmem:[#allocation41_spill] sm:$0xff] }
 0x25a   :  { %1095 = vmatpush.msra.mxu0 %v7532_v22  ;;  %1218 = vmatpush.msra.mxu1 %v7385_v50 }
 0x25b   :  { %v6449_v27 = vpop.eup %6448 }
 0x25c   :  { %v820_v23 = vmul.f32 %v6449_v27, %v819_v43  ;;  %1096 = vmatpush.msra.mxu0 %v7539_v17  ;;  %1219 = vmatpush.msra.mxu1 %v7388_v51  ;;  %v11202_v51 = vld [vmem:[#allocation35_spill] sm:$0xff] }
 0x25e   :  { %v7628_v39 = vadd.f32 %v821_v31, %v820_v23  ;;  %1097 = vmatpush.msra.mxu0 %v7547_v9  ;;  %1220 = vmatpush.msra.mxu1 %v7390_v55 }
 0x260   :  { %824 = vst [vmem:[#allocation3 + $0x58] sm:$0xff] %v7628_v39  ;;  %895 = vmatmul.f32.vlgmr.msrb.gmra.mxu3 %v7628_v39  ;;  %915 = vmatmul.f32.vlgmr.msrb.gmra.mxu0 %v7628_v39 }
 0x261   :  { %935 = vmatmul.f32.vlgmr.msrb.gmra.mxu1 %v7628_v39  ;;  %1658 = vxpose.xlu0.b32.cont [3/16] %v7628_v39, 128 }
 0x262   :  { %1245 = vmatpush.msrb.mxu3 %v7408_v62  ;;  %1368 = vmatpush.msrb.mxu0 %v7404_v30 }
 0x263   :  { %1388 = vmatpush.msrb.mxu1 %v7406_v59 }
 0x264   :  { %1246 = vmatpush.msrb.mxu3 %v7417_v5  ;;  %1369 = vmatpush.msrb.mxu0 %v7413_v44 }
 0x265   :  { %1389 = vmatpush.msrb.mxu1 %v7415_v63 }
 0x266   :  { %1247 = vmatpush.msrb.mxu3 %v7427_v15  ;;  %1370 = vmatpush.msrb.mxu0 %v7423_v7  ;;  %v11204_v7 = vld [vmem:[#allocation22_spill] sm:$0xff] }
 0x267   :  { %1390 = vmatpush.msrb.mxu1 %v7425_v13 }
 0x268   :  { %1248 = vmatpush.msrb.mxu3 %v7437_v4  ;;  %1371 = vmatpush.msrb.mxu0 %v7433_v1  ;;  %v11205_v1 = vld [vmem:[#allocation23_spill] sm:$0xff] }
 0x269   :  { %1391 = vmatpush.msrb.mxu1 %v7435_v3 }
 0x26a   :  { %1249 = vmatpush.msrb.mxu3 %v7447_v12  ;;  %1372 = vmatpush.msrb.mxu0 %v7443_v8 }
 0x26b   :  { %1392 = vmatpush.msrb.mxu1 %v7445_v10 }
 0x26c   :  { %1250 = vmatpush.msrb.mxu3 %v7457_v26  ;;  %1373 = vmatpush.msrb.mxu0 %v7453_v20 }
 0x26d   :  { %1393 = vmatpush.msrb.mxu1 %v11200_v40 }
 0x26e   :  { %1251 = vmatpush.msrb.mxu3 %v7467_v41  ;;  %1374 = vmatpush.msrb.mxu0 %v7463_v32 }
 0x26f   :  { %1394 = vmatpush.msrb.mxu1 %v7465_v38 }
 0x270   :  { %1252 = vmatpush.msrb.mxu3 %v7477_v58  ;;  %1375 = vmatpush.msrb.mxu0 %v7473_v45 }
 0x271   :  { %1395 = vmatpush.msrb.mxu1 %v7475_v53 }
 0x272   :  { %1253 = vmatpush.msrb.mxu3 %v7491_v16  ;;  %1376 = vmatpush.msrb.mxu0 %v7487_v36 }
 0x273   :  { %1396 = vmatpush.msrb.mxu1 %v7489_v37 }
 0x274   :  { %1254 = vmatpush.msrb.mxu3 %v7500_v24 }
 0x275   :  { %1397 = vmatpush.msrb.mxu1 %v7498_v19 }
 0x276   :  { %1255 = vmatpush.msrb.mxu3 %v7508_v35 }
 0x277   :  { %1398 = vmatpush.msrb.mxu1 %v7506_v34  ;;  %v11201_v34 = vld [vmem:[#allocation25_spill] sm:$0xff] }
 0x278   :  { %1256 = vmatpush.msrb.mxu3 %v7516_v28  ;;  %v234_v55 = vadd.f32 %v11202_v51, %v11201_v34 }
 0x279   :  { %1399 = vmatpush.msrb.mxu1 %v7514_v25 }
 0x27a   :  { %1257 = vmatpush.msrb.mxu3 %v7524_v60 }
 0x27b   :  { %1400 = vmatpush.msrb.mxu1 %v7522_v33 }
 0x27c   :  { %1258 = vmatpush.msrb.mxu3 %v7532_v22 }
 0x27d   :  { %1401 = vmatpush.msrb.mxu1 %v7530_v18 }
 0x27e   :  { %1259 = vmatpush.msrb.mxu3 %v7539_v17 }
 0x27f   :  { %1402 = vmatpush.msrb.mxu1 %v7537_v46 }
 0x280   :  { %1260 = vmatpush.msrb.mxu3 %v7547_v9 }
 0x281   :  { %1403 = vmatpush.msrb.mxu1 %v7542_v21 }
 0x2dd   :  { %v916_v50 = vpop.f32.mrf.mxu0 }
 0x2de   :  { %v917_v30 = vadd.f32 %v916_v50, %v11203_v54  ;;  %v936_v11 = vpop.f32.mrf.mxu1 }
 0x2df   :  { %v937_v0 = vadd.f32 %v936_v11, %v7332_v47 }
 0x2e0   :  { %v959_v59 = vadd.f32 %v917_v30, %v234_v55 }
 0x2e2   :  { %v6323_v44 = vmul.f32 -1.442695, %v959_v59 }
 0x2e3   :  { %v896_v63 = vpop.f32.mrf.mxu3 }
 0x2e4   :  { %6450 = vpow2.f32 %v6323_v44  ;;  %v897_v13 = vadd.f32 %v896_v63, %v11204_v7 }
 0x2e6   :  { %v939_v3 = vadd.f32 %v897_v13, %v11205_v1 }
 0x2e8   :  { %v6322_v8 = vmul.f32 -1.442695, %v939_v3 }
 0x2ea   :  { %v6451_v10 = vpop.eup %6450  ;;  %6452 = vpow2.f32 %v6322_v8 }
 0x2eb   :  { %v963_v20 = vadd.f32 1.0, %v6451_v10 }
 0x2ed   :  { %6454 = vrcp.f32 %v963_v20  ;;  %v975_v42 = vand.u32 2147483648, %v963_v20  ;;  %vm969_vm13 = vweird.f32 %v963_v20  ;;  %v973_v61 = vand.u32 2147483647, %v963_v20 }
 0x2ef   :  { %v976_v43 = vor.u32 1.1754944e-38, %v975_v42  ;;  %vm974_vm15 = vcmp.eq.f32.partialorder %v973_v61, 8.507059e+37  ;;  %v11210_v42 = vld [vmem:[#allocation27_spill] sm:$0xff]  ;;  %v7732_v61 = vld [vmem:[#allocation11 + $0x90] sm:$0xff] }
 0x2f0   :  { %v6453_v21 = vpop.eup %6452  ;;  %1377 = vmatpush.msrb.mxu0 %v7732_v61 }
 0x2f1   :  { %v943_v32 = vadd.f32 1.0, %v6453_v21 }
 0x2f3   :  { %6456 = vrcp.f32 %v943_v32  ;;  %v6455_v38 = vpop.eup %6454  ;;  %v955_v25 = vand.u32 2147483648, %v943_v32  ;;  %v953_v18 = vand.u32 2147483647, %v943_v32  ;;  %vm949_vm9 = vweird.f32 %v943_v32 }
 0x2f4   :  { %v965_v45 = vmul.f32 %v6455_v38, %v963_v20  ;;  %vm970_vm12 = vweird.f32 %v6455_v38 }
 0x2f5   :  { %v956_v48 = vor.u32 1.1754944e-38, %v955_v25  ;;  %vm954_vm11 = vcmp.eq.f32.partialorder %v953_v18, 8.507059e+37  ;;  %vm971_vm14 = vmor %vm969_vm13, %vm970_vm12 }
 0x2f6   :  { %v966_v37 = vsub.f32 1.0, %v965_v45 }
 0x2f8   :  { %v967_v46 = vmul.f32 %v6455_v38, %v966_v37 }
 0x2f9   :  { %v6457_v53 = vpop.eup %6456 }
 0x2fa   :  { %v945_v36 = vmul.f32 %v6457_v53, %v943_v32  ;;  %vm950_vm8 = vweird.f32 %v6457_v53  ;;  %v968_v52 = vadd.f32 %v6455_v38, %v967_v46 }
 0x2fb   :  { %vm951_vm10 = vmor %vm949_vm9, %vm950_vm8 }
 0x2fc   :  { %v946_v19 = vsub.f32 1.0, %v945_v36  ;;  %v972_v2 = vsel %vm971_vm14, %v6455_v38, %v968_v52 }
 0x2fd   :  { %v977_v27 = vsel %vm974_vm15, %v976_v43, %v972_v2  ;;  %v11211_v43 = vld [vmem:[#allocation37_spill] sm:$0xff] }
 0x2fe   :  { %v947_v33 = vmul.f32 %v6457_v53, %v946_v19  ;;  %v982_v23 = vsub.f32 1.0, %v977_v27  ;;  %v984_v50 = vmul.f32 %v977_v27, %v7628_v39  ;;  %v11209_v19 = vld [vmem:[#allocation32_spill] sm:$0xff]  ;;  %v240_v27 = vadd.f32 %v11211_v43, %v11201_v34 }
 0x2ff   :  { %v1517_v43 = vld [vmem:[#allocation11 + $0x110] sm:$0xff] }
 0x300   :  { %v948_v29 = vadd.f32 %v6457_v53, %v947_v33 }
 0x302   :  { %v952_v6 = vsel %vm951_vm10, %v6457_v53, %v948_v29 }
 0x303   :  { %v957_v14 = vsel %vm954_vm11, %v956_v48, %v952_v6 }
 0x304   :  { %v979_v56 = vmul.f32 %v957_v14, %v937_v0 }
 0x306   :  { %v980_v57 = vadd.f32 %v979_v56, %v11206_v49 }
 0x308   :  { %6458 = vtanh.f32 %v980_v57  ;;  %v7735_v57 = vld [vmem:[#allocation11 + $0x78] sm:$0xff] }
 0x309   :  { %1378 = vmatpush.msrb.mxu0 %v7735_v57 }
 0x30e   :  { %v6459_v31 = vpop.eup %6458 }
 0x30f   :  { %v983_v40 = vmul.f32 %v6459_v31, %v982_v23  ;;  %v7741_v31 = vld [vmem:[#allocation11 + $0x60] sm:$0xff] }
 0x310   :  { %1379 = vmatpush.msrb.mxu0 %v7741_v31 }
 0x311   :  { %v7692_v51 = vadd.f32 %v984_v50, %v983_v40  ;;  %v7744_v50 = vld [vmem:[#allocation11 + $0x48] sm:$0xff] }
 0x312   :  { %1380 = vmatpush.msrb.mxu0 %v7744_v50 }
 0x313   :  { %987 = vst [vmem:[#allocation3 + $0x18] sm:$0xff] %v7692_v51  ;;  %1058 = vmatmul.f32.vlgmr.msrb.gmra.mxu2 %v7692_v51  ;;  %1078 = vmatmul.f32.vlgmr.msra.gmra.mxu3 %v7692_v51 }
 0x314   :  { %1098 = vmatmul.f32.vlgmr.msra.gmra.mxu0 %v7692_v51  ;;  %1659 = vxpose.xlu0.b32.cont [4/16] %v7692_v51, 128 }
 0x315   :  { %1408 = vmatpush.msrb.mxu2 %v7408_v62 }
 0x317   :  { %1409 = vmatpush.msrb.mxu2 %v7417_v5 }
 0x319   :  { %1410 = vmatpush.msrb.mxu2 %v7427_v15  ;;  %v11207_v15 = vld [vmem:[#allocation36_spill] sm:$0xff] }
 0x31b   :  { %1411 = vmatpush.msrb.mxu2 %v7437_v4  ;;  %v237_v4 = vadd.f32 %v11207_v15, %v11201_v34 }
 0x31d   :  { %1412 = vmatpush.msrb.mxu2 %v7447_v12 }
 0x31f   :  { %1413 = vmatpush.msrb.mxu2 %v7457_v26 }
 0x321   :  { %1414 = vmatpush.msrb.mxu2 %v7467_v41  ;;  %v11208_v41 = vld [vmem:[#allocation24_spill] sm:$0xff] }
 0x323   :  { %1415 = vmatpush.msrb.mxu2 %v7477_v58 }
 0x325   :  { %1416 = vmatpush.msrb.mxu2 %v7491_v16 }
 0x327   :  { %1417 = vmatpush.msrb.mxu2 %v7500_v24 }
 0x329   :  { %1418 = vmatpush.msrb.mxu2 %v7508_v35 }
 0x32b   :  { %1419 = vmatpush.msrb.mxu2 %v7516_v28 }
 0x32d   :  { %1420 = vmatpush.msrb.mxu2 %v7524_v60 }
 0x32f   :  { %1421 = vmatpush.msrb.mxu2 %v7532_v22 }
 0x331   :  { %1422 = vmatpush.msrb.mxu2 %v7539_v17 }
 0x333   :  { %1423 = vmatpush.msrb.mxu2 %v7547_v9 }
 0x391   :  { %v1099_v3 = vpop.f32.mrf.mxu0 }
 0x392   :  { %v1100_v21 = vadd.f32 %v1099_v3, %v7332_v47 }
 0x396   :  { %v1059_v62 = vpop.f32.mrf.mxu2  ;;  %v1079_v5 = vpop.f32.mrf.mxu3 }
 0x397   :  { %v1060_v12 = vadd.f32 %v1059_v62, %v11204_v7  ;;  %v1080_v26 = vadd.f32 %v1079_v5, %v11203_v54  ;;  %v7747_v62 = vld [vmem:[#allocation11 + $0x30] sm:$0xff]  ;;  %v7750_v5 = vld [vmem:[#allocation11 + $0x18] sm:$0xff] }
 0x398   :  { %1381 = vmatpush.msrb.mxu0 %v7747_v62 }
 0x399   :  { %v1102_v58 = vadd.f32 %v1060_v12, %v11208_v41  ;;  %v1122_v16 = vadd.f32 %v1080_v26, %v237_v4  ;;  %v7752_v4 = vld [vmem:[#allocation11] sm:$0xff] }
 0x39a   :  { %1382 = vmatpush.msrb.mxu0 %v7750_v5 }
 0x39b   :  { %v6324_v24 = vmul.f32 -1.442695, %v1102_v58  ;;  %v6325_v35 = vmul.f32 -1.442695, %v1122_v16 }
 0x39c   :  { %1383 = vmatpush.msrb.mxu0 %v7752_v4 }
 0x39d   :  { %6460 = vpow2.f32 %v6324_v24 }
 0x39e   :  { %6462 = vpow2.f32 %v6325_v35 }
 0x3a3   :  { %v6461_v28 = vpop.eup %6460 }
 0x3a4   :  { %v6463_v17 = vpop.eup %6462  ;;  %v1106_v60 = vadd.f32 1.0, %v6461_v28 }
 0x3a5   :  { %v1126_v9 = vadd.f32 1.0, %v6463_v17 }
 0x3a6   :  { %6464 = vrcp.f32 %v1106_v60  ;;  %v1118_v44 = vand.u32 2147483648, %v1106_v60  ;;  %v1116_v1 = vand.u32 2147483647, %v1106_v60  ;;  %vm1112_vm1 = vweird.f32 %v1106_v60 }
 0x3a7   :  { %6466 = vrcp.f32 %v1126_v9  ;;  %v1138_v36 = vand.u32 2147483648, %v1126_v9  ;;  %vm1132_vm5 = vweird.f32 %v1126_v9  ;;  %v1136_v37 = vand.u32 2147483647, %v1126_v9 }
 0x3a8   :  { %v1119_v20 = vor.u32 1.1754944e-38, %v1118_v44  ;;  %vm1117_vm3 = vcmp.eq.f32.partialorder %v1116_v1, 8.507059e+37 }
 0x3a9   :  { %v1139_v18 = vor.u32 1.1754944e-38, %v1138_v36  ;;  %vm1137_vm7 = vcmp.eq.f32.partialorder %v1136_v37, 8.507059e+37 }
 0x3ac   :  { %v6465_v22 = vpop.eup %6464 }
 0x3ad   :  { %v6467_v39 = vpop.eup %6466  ;;  %v1108_v55 = vmul.f32 %v6465_v22, %v1106_v60  ;;  %vm1113_vm0 = vweird.f32 %v6465_v22 }
 0x3ae   :  { %v1128_v30 = vmul.f32 %v6467_v39, %v1126_v9  ;;  %vm1114_vm2 = vmor %vm1112_vm1, %vm1113_vm0  ;;  %vm1133_vm4 = vweird.f32 %v6467_v39 }
 0x3af   :  { %v1109_v59 = vsub.f32 1.0, %v1108_v55  ;;  %vm1134_vm6 = vmor %vm1132_vm5, %vm1133_vm4 }
 0x3b0   :  { %v1129_v63 = vsub.f32 1.0, %v1128_v30 }
 0x3b1   :  { %v1110_v13 = vmul.f32 %v6465_v22, %v1109_v59 }
 0x3b2   :  { %v1130_v8 = vmul.f32 %v6467_v39, %v1129_v63 }
 0x3b3   :  { %v1111_v10 = vadd.f32 %v6465_v22, %v1110_v13 }
 0x3b4   :  { %v1131_v45 = vadd.f32 %v6467_v39, %v1130_v8 }
 0x3b5   :  { %v1115_v32 = vsel %vm1114_vm2, %v6465_v22, %v1111_v10 }
 0x3b6   :  { %v1120_v38 = vsel %vm1117_vm3, %v1119_v20, %v1115_v32  ;;  %v1135_v33 = vsel %vm1134_vm6, %v6467_v39, %v1131_v45  ;;  %v11212_v20 = vld [vmem:[#allocation33_spill] sm:$0xff] }
 0x3b7   :  { %v1142_v53 = vmul.f32 %v1120_v38, %v1100_v21  ;;  %v1140_v46 = vsel %vm1137_vm7, %v1139_v18, %v1135_v33  ;;  %v1528_v33 = vld [vmem:[#allocation11 + $0x168] sm:$0xff]  ;;  %v1529_v18 = vld [vmem:[#allocation11 + $0x170] sm:$0xff] }
 0x3b8   :  { %v1145_v11 = vsub.f32 1.0, %v1140_v46  ;;  %v1147_v0 = vmul.f32 %v1140_v46, %v7692_v51  ;;  %v1530_v46 = vld [vmem:[#allocation11 + $0x178] sm:$0xff]  ;;  %1531 = vmatpush.msra.mxu3 %v1528_v33  ;;  %1551 = vmatpush.msra.mxu0 %v1529_v18  ;;  %v1485_v33 = vld [vmem:[#allocation11 + $0x10] sm:$0xff] }
 0x3b9   :  { %v1143_v25 = vadd.f32 %v1142_v53, %v11209_v19 }
 0x3bb   :  { %6468 = vtanh.f32 %v1143_v25 }
 0x3c1   :  { %v6469_v29 = vpop.eup %6468 }
 0x3c2   :  { %v1146_v48 = vmul.f32 %v6469_v29, %v1145_v11  ;;  %v1525_v11 = vld [vmem:[#allocation11 + $0x150] sm:$0xff]  ;;  %v1526_v29 = vld [vmem:[#allocation11 + $0x158] sm:$0xff] }
 0x3c3   :  { %1532 = vmatpush.msra.mxu3 %v1525_v11  ;;  %1552 = vmatpush.msra.mxu0 %v1526_v29 }
 0x3c4   :  { %v7723_v6 = vadd.f32 %v1147_v0, %v1146_v48  ;;  %v1527_v48 = vld [vmem:[#allocation11 + $0x160] sm:$0xff]  ;;  %v1522_v0 = vld [vmem:[#allocation11 + $0x138] sm:$0xff] }
 0x3c5   :  { %1533 = vmatpush.msra.mxu3 %v1522_v0  ;;  %v1849_v0 = vld [vmem:[%s11159_s10 + $0x108] sm:$0xff] }
 0x3c6   :  { %1150 = vst [vmem:[#allocation3 + $0x50] sm:$0xff] %v7723_v6  ;;  %1221 = vmatmul.f32.vlgmr.msra.gmra.mxu1 %v7723_v6  ;;  %1241 = vmatmul.f32.vlgmr.msra.gmra.mxu2 %v7723_v6 }
 0x3c7   :  { %1261 = vmatmul.f32.vlgmr.msrb.gmra.mxu3 %v7723_v6  ;;  %1660 = vxpose.xlu0.b32.cont [5/16] %v7723_v6, 128 }
 0x3c8   :  { %1571 = vmatpush.msra.mxu1 %v1530_v46  ;;  %v1852_v46 = vld [vmem:[%s11159_s10 + $0x120] sm:$0xff] }
 0x3ca   :  { %1572 = vmatpush.msra.mxu1 %v1527_v48 }
 0x443   :  { %v1222_v14 = vpop.f32.mrf.mxu1 }
 0x444   :  { %v1223_v52 = vadd.f32 %v1222_v14, %v11204_v7  ;;  %v1523_v14 = vld [vmem:[#allocation11 + $0x140] sm:$0xff] }
 0x445   :  { %1553 = vmatpush.msra.mxu0 %v1523_v14 }
 0x446   :  { %v1265_v56 = vadd.f32 %v1223_v52, %v11210_v42  ;;  %v1524_v52 = vld [vmem:[#allocation11 + $0x148] sm:$0xff]  ;;  %v1519_v42 = vld [vmem:[#allocation11 + $0x120] sm:$0xff] }
 0x447   :  { %1573 = vmatpush.msra.mxu1 %v1524_v52  ;;  %1534 = vmatpush.msra.mxu3 %v1519_v42  ;;  %v1846_v42 = vld [vmem:[%s11159_s10 + $0xf0] sm:$0xff] }
 0x448   :  { %v6326_v49 = vmul.f32 -1.442695, %v1265_v56  ;;  %v1520_v56 = vld [vmem:[#allocation11 + $0x128] sm:$0xff] }
 0x449   :  { %v1242_v2 = vpop.f32.mrf.mxu2  ;;  %1554 = vmatpush.msra.mxu0 %v1520_v56 }
 0x44a   :  { %6470 = vpow2.f32 %v6326_v49  ;;  %v1243_v23 = vadd.f32 %v1242_v2, %v11203_v54  ;;  %v1262_v9 = vpop.f32.mrf.mxu3  ;;  %v1521_v49 = vld [vmem:[#allocation11 + $0x130] sm:$0xff]  ;;  %v1516_v2 = vld [vmem:[#allocation11 + $0x108] sm:$0xff] }
 0x44b   :  { %v1263_v59 = vadd.f32 %v1262_v9, %v7332_v47  ;;  %1574 = vmatpush.msra.mxu1 %v1521_v49  ;;  %1535 = vmatpush.msra.mxu3 %v1516_v2 }
 0x44c   :  { %v1285_v40 = vadd.f32 %v1243_v23, %v240_v27  ;;  %v1518_v27 = vld [vmem:[#allocation11 + $0x118] sm:$0xff]  ;;  %1555 = vmatpush.msra.mxu0 %v1517_v43  ;;  %v1513_v23 = vld [vmem:[#allocation11 + $0xf0] sm:$0xff] }
 0x44d   :  { %1575 = vmatpush.msra.mxu1 %v1518_v27  ;;  %1536 = vmatpush.msra.mxu3 %v1513_v23  ;;  %v1843_v27 = vld [vmem:[%s11159_s10 + $0xd8] sm:$0xff] }
 0x44e   :  { %v6327_v51 = vmul.f32 -1.442695, %v1285_v40  ;;  %v1514_v40 = vld [vmem:[#allocation11 + $0xf8] sm:$0xff] }
 0x44f   :  { %1556 = vmatpush.msra.mxu0 %v1514_v40 }
 0x450   :  { %v6471_v15 = vpop.eup %6470  ;;  %6472 = vpow2.f32 %v6327_v51  ;;  %v1515_v51 = vld [vmem:[#allocation11 + $0x100] sm:$0xff] }
 0x451   :  { %v1269_v12 = vadd.f32 1.0, %v6471_v15  ;;  %1576 = vmatpush.msra.mxu1 %v1515_v51  ;;  %v1510_v15 = vld [vmem:[#allocation11 + $0xd8] sm:$0xff] }
 0x452   :  { %1537 = vmatpush.msra.mxu3 %v1510_v15  ;;  %v1840_v15 = vld [vmem:[%s11159_s10 + $0xc0] sm:$0xff] }
 0x453   :  { %6474 = vrcp.f32 %v1269_v12  ;;  %v1281_v35 = vand.u32 2147483648, %v1269_v12  ;;  %v1279_v17 = vand.u32 2147483647, %v1269_v12  ;;  %vm1275_vm9 = vweird.f32 %v1269_v12 }
 0x455   :  { %v1282_v55 = vor.u32 1.1754944e-38, %v1281_v35  ;;  %vm1280_vm11 = vcmp.eq.f32.partialorder %v1279_v17, 8.507059e+37 }
 0x456   :  { %v6473_v26 = vpop.eup %6472 }
 0x457   :  { %v1289_v41 = vadd.f32 1.0, %v6473_v26  ;;  %v1512_v26 = vld [vmem:[#allocation11 + $0xe8] sm:$0xff] }
 0x458   :  { %1577 = vmatpush.msra.mxu1 %v1512_v26 }
 0x459   :  { %v6475_v58 = vpop.eup %6474  ;;  %6476 = vrcp.f32 %v1289_v41  ;;  %v1301_v1 = vand.u32 2147483648, %v1289_v41  ;;  %v1299_v8 = vand.u32 2147483647, %v1289_v41  ;;  %vm1295_vm13 = vweird.f32 %v1289_v41 }
 0x45a   :  { %v1271_v16 = vmul.f32 %v6475_v58, %v1269_v12  ;;  %vm1276_vm8 = vweird.f32 %v6475_v58  ;;  %v1511_v12 = vld [vmem:[#allocation11 + $0xe0] sm:$0xff] }
 0x45b   :  { %vm1277_vm10 = vmor %vm1275_vm9, %vm1276_vm8  ;;  %v1302_v32 = vor.u32 1.1754944e-38, %v1301_v1  ;;  %vm1300_vm15 = vcmp.eq.f32.partialorder %v1299_v8, 8.507059e+37  ;;  %1557 = vmatpush.msra.mxu0 %v1511_v12  ;;  %v1499_v8 = vld [vmem:[#allocation11 + $0x80] sm:$0xff] }
 0x45c   :  { %v1272_v24 = vsub.f32 1.0, %v1271_v16  ;;  %v1509_v16 = vld [vmem:[#allocation11 + $0xd0] sm:$0xff] }
 0x45d   :  { %1578 = vmatpush.msra.mxu1 %v1509_v16 }
 0x45e   :  { %v1273_v28 = vmul.f32 %v6475_v58, %v1272_v24 }
 0x45f   :  { %v6477_v60 = vpop.eup %6476 }
 0x460   :  { %v1291_v22 = vmul.f32 %v6477_v60, %v1289_v41  ;;  %v1274_v39 = vadd.f32 %v6475_v58, %v1273_v28  ;;  %vm1296_vm12 = vweird.f32 %v6477_v60  ;;  %v1507_v41 = vld [vmem:[#allocation11 + $0xc0] sm:$0xff] }
 0x461   :  { %vm1297_vm14 = vmor %vm1295_vm13, %vm1296_vm12  ;;  %1538 = vmatpush.msra.mxu3 %v1507_v41  ;;  %v11213_v28 = vld [vmem:[#allocation38_spill] sm:$0xff] }
 0x462   :  { %v1292_v30 = vsub.f32 1.0, %v1291_v22  ;;  %v1278_v44 = vsel %vm1277_vm10, %v6475_v58, %v1274_v39  ;;  %v1508_v58 = vld [vmem:[#allocation11 + $0xc8] sm:$0xff]  ;;  %v243_v17 = vadd.f32 %v11213_v28, %v11201_v34  ;;  %v1505_v39 = vld [vmem:[#allocation11 + $0xb0] sm:$0xff] }
 0x463   :  { %v1283_v63 = vsel %vm1280_vm11, %v1282_v55, %v1278_v44  ;;  %1558 = vmatpush.msra.mxu0 %v1508_v58  ;;  %v1504_v22 = vld [vmem:[#allocation11 + $0xa8] sm:$0xff]  ;;  %v1506_v55 = vld [vmem:[#allocation11 + $0xb8] sm:$0xff]  ;;  %v1837_v58 = vld [vmem:[%s11159_s10 + $0xa8] sm:$0xff] }
 0x464   :  { %v1293_v13 = vmul.f32 %v6477_v60, %v1292_v30  ;;  %v1305_v3 = vmul.f32 %v1283_v63, %v1263_v59  ;;  %1539 = vmatpush.msra.mxu3 %v1504_v22  ;;  %v11214_v30 = vld [vmem:[#allocation28_spill] sm:$0xff]  ;;  %1579 = vmatpush.msra.mxu1 %v1506_v55  ;;  %v1502_v63 = vld [vmem:[#allocation11 + $0x98] sm:$0xff] }
 0x465   :  { %1559 = vmatpush.msra.mxu0 %v1505_v39  ;;  %v1831_v39 = vld [vmem:[%s11159_s10 + $0x78] sm:$0xff] }
 0x466   :  { %v1294_v10 = vadd.f32 %v6477_v60, %v1293_v13  ;;  %v1306_v21 = vadd.f32 %v1305_v3, %v11212_v20  ;;  %v1503_v13 = vld [vmem:[#allocation11 + $0xa0] sm:$0xff]  ;;  %1540 = vmatpush.msra.mxu3 %v7732_v61  ;;  %v1496_v20 = vld [vmem:[#allocation11 + $0x68] sm:$0xff]  ;;  %v1494_v61 = vld [vmem:[#allocation11 + $0x58] sm:$0xff] }
 0x467   :  { %1560 = vmatpush.msra.mxu0 %v1502_v63  ;;  %1580 = vmatpush.msra.mxu1 %v1503_v13  ;;  %v1825_v63 = vld [vmem:[%s11159_s10 + $0x48] sm:$0xff]  ;;  %v1822_v13 = vld [vmem:[%s11159_s10 + $0x30] sm:$0xff] }
 0x468   :  { %v1298_v38 = vsel %vm1297_vm14, %v6477_v60, %v1294_v10  ;;  %6478 = vtanh.f32 %v1306_v21  ;;  %v1500_v10 = vld [vmem:[#allocation11 + $0x88] sm:$0xff]  ;;  %1541 = vmatpush.msra.mxu3 %v7735_v57  ;;  %v1497_v21 = vld [vmem:[#allocation11 + $0x70] sm:$0xff]  ;;  %v1487_v57 = vld [vmem:[#allocation11 + $0x20] sm:$0xff] }
 0x469   :  { %v1303_v45 = vsel %vm1300_vm15, %v1302_v32, %v1298_v38  ;;  %1561 = vmatpush.msra.mxu0 %v1499_v8  ;;  %1581 = vmatpush.msra.mxu1 %v1500_v10  ;;  %v1493_v32 = vld [vmem:[#allocation11 + $0x50] sm:$0xff]  ;;  %v1490_v38 = vld [vmem:[#allocation11 + $0x38] sm:$0xff] }
 0x46a   :  { %v1308_v53 = vsub.f32 1.0, %v1303_v45  ;;  %v1310_v19 = vmul.f32 %v1303_v45, %v7723_v6  ;;  %1542 = vmatpush.msra.mxu3 %v7741_v31  ;;  %v1491_v45 = vld [vmem:[#allocation11 + $0x40] sm:$0xff]  ;;  %v1819_v8 = vld [vmem:[%s11159_s10 + $0x18] sm:$0xff] }
 0x46b   :  { %1562 = vmatpush.msra.mxu0 %v1496_v20  ;;  %1582 = vmatpush.msra.mxu1 %v1497_v21 }
 0x46c   :  { %1543 = vmatpush.msra.mxu3 %v7744_v50  ;;  %v1861_v50 = vld [vmem:[%s11159_s10 + $0x168] sm:$0xff] }
 0x46d   :  { %1563 = vmatpush.msra.mxu0 %v1493_v32  ;;  %1583 = vmatpush.msra.mxu1 %v1494_v61  ;;  %v1816_v32 = vld [vmem:[%s11159_s10] sm:$0xff]  ;;  %v1863_v61 = vld [vmem:[%s11159_s10 + $0x178] sm:$0xff] }
 0x46e   :  { %v6479_v36 = vpop.eup %6478  ;;  %1544 = vmatpush.msra.mxu3 %v7747_v62  ;;  %v1858_v62 = vld [vmem:[%s11159_s10 + $0x150] sm:$0xff] }
 0x46f   :  { %v1309_v37 = vmul.f32 %v6479_v36, %v1308_v53  ;;  %1564 = vmatpush.msra.mxu0 %v1490_v38  ;;  %v1488_v53 = vld [vmem:[#allocation11 + $0x28] sm:$0xff]  ;;  %1584 = vmatpush.msra.mxu1 %v1491_v45  ;;  %v1860_v38 = vld [vmem:[%s11159_s10 + $0x160] sm:$0xff]  ;;  %v1857_v45 = vld [vmem:[%s11159_s10 + $0x148] sm:$0xff] }
 0x470   :  { %1545 = vmatpush.msra.mxu3 %v7750_v5  ;;  %v7787_v5 = vld [vmem:[#allocation3 + $0x40] sm:$0xff] }
 0x471   :  { %v7759_v25 = vadd.f32 %v1310_v19, %v1309_v37  ;;  %v1484_v37 = vld [vmem:[#allocation11 + $0x8] sm:$0xff]  ;;  %1565 = vmatpush.msra.mxu0 %v1487_v57  ;;  %1585 = vmatpush.msra.mxu1 %v1488_v53  ;;  %v1851_v53 = vld [vmem:[%s11159_s10 + $0x118] sm:$0xff] }
 0x472   :  { %1546 = vmatpush.msra.mxu3 %v7752_v4  ;;  %v1855_v4 = vld [vmem:[%s11159_s10 + $0x138] sm:$0xff]  ;;  %v1854_v57 = vld [vmem:[%s11159_s10 + $0x130] sm:$0xff] }
 0x473   :  { %1313 = vst [vmem:[#allocation3 + $0x68] sm:$0xff] %v7759_v25  ;;  %1384 = vmatmul.f32.vlgmr.msrb.gmra.mxu0 %v7759_v25  ;;  %1404 = vmatmul.f32.vlgmr.msrb.gmra.mxu1 %v7759_v25 }
 0x474   :  { %1424 = vmatmul.f32.vlgmr.msrb.gmra.mxu2 %v7759_v25  ;;  %1661 = vxpose.xlu0.b32.cont [6/16] %v7759_v25, 128 }
 0x475   :  { %1566 = vmatpush.msra.mxu0 %v1484_v37  ;;  %1586 = vmatpush.msra.mxu1 %v1485_v33  ;;  %v1845_v37 = vld [vmem:[%s11159_s10 + $0xe8] sm:$0xff]  ;;  %v1836_v33 = vld [vmem:[%s11159_s10 + $0xa0] sm:$0xff] }
 0x476   :  { %1792 = vmatpush.msrb.mxu3 %v7787_v5 }
 0x477   :  { %1912 = vmatpush.msrb.mxu0 %v1861_v50  ;;  %v1830_v50 = vld [vmem:[%s11159_s10 + $0x70] sm:$0xff] }
 0x478   :  { %1793 = vmatpush.msrb.mxu3 %v7787_v5 }
 0x479   :  { %1913 = vmatpush.msrb.mxu0 %v1858_v62  ;;  %v1827_v62 = vld [vmem:[%s11159_s10 + $0x58] sm:$0xff] }
 0x47a   :  { %1794 = vmatpush.msrb.mxu3 %v7787_v5 }
 0x47b   :  { %1914 = vmatpush.msrb.mxu0 %v1855_v4  ;;  %v1824_v4 = vld [vmem:[%s11159_s10 + $0x40] sm:$0xff] }
 0x47c   :  { %1795 = vmatpush.msrb.mxu3 %v7787_v5 }
 0x47d   :  { %1915 = vmatpush.msrb.mxu0 %v1852_v46  ;;  %v1821_v46 = vld [vmem:[%s11159_s10 + $0x28] sm:$0xff] }
 0x47e   :  { %1796 = vmatpush.msrb.mxu3 %v7787_v5 }
 0x47f   :  { %1916 = vmatpush.msrb.mxu0 %v1849_v0  ;;  %v2076_v0 = vld [vmem:[#allocation12 + $0x160] sm:$0xff] }
 0x480   :  { %1797 = vmatpush.msrb.mxu3 %v7787_v5 }
 0x481   :  { %1917 = vmatpush.msrb.mxu0 %v1846_v42  ;;  %v2067_v42 = vld [vmem:[#allocation12 + $0x118] sm:$0xff] }
 0x482   :  { %1798 = vmatpush.msrb.mxu3 %v7787_v5 }
 0x483   :  { %1918 = vmatpush.msrb.mxu0 %v1843_v27  ;;  %v2064_v27 = vld [vmem:[#allocation12 + $0x100] sm:$0xff] }
 0x484   :  { %1799 = vmatpush.msrb.mxu3 %v7787_v5 }
 0x485   :  { %1919 = vmatpush.msrb.mxu0 %v1840_v15  ;;  %v2058_v15 = vld [vmem:[#allocation12 + $0xd0] sm:$0xff] }
 0x487   :  { %1920 = vmatpush.msrb.mxu0 %v1837_v58  ;;  %v11217_v58 = vld [vmem:[#allocation30_spill] sm:$0xff] }
 0x4f0   :  { %v1385_v24 = vpop.f32.mrf.mxu0  ;;  %v1405_v35 = vpop.f32.mrf.mxu1 }
 0x4f1   :  { %v1386_v60 = vadd.f32 %v1385_v24, %v11204_v7  ;;  %v1406_v9 = vadd.f32 %v1405_v35, %v11203_v54 }
 0x4f3   :  { %v1428_v59 = vadd.f32 %v1386_v60, %v11214_v30  ;;  %v1448_v44 = vadd.f32 %v1406_v9, %v243_v17  ;;  %v1834_v17 = vld [vmem:[%s11159_s10 + $0x90] sm:$0xff]  ;;  %v11215_v9 = vld [vmem:[#allocation34_spill] sm:$0xff] }
 0x4f4   :  { %1921 = vmatpush.msrb.mxu0 %v1834_v17 }
 0x4f5   :  { %v6328_v1 = vmul.f32 -1.442695, %v1428_v59  ;;  %v6329_v3 = vmul.f32 -1.442695, %v1448_v44  ;;  %v1828_v59 = vld [vmem:[%s11159_s10 + $0x60] sm:$0xff] }
 0x4f6   :  { %1922 = vmatpush.msrb.mxu0 %v1831_v39 }
 0x4f7   :  { %6480 = vpow2.f32 %v6328_v1  ;;  %v1425_v40 = vpop.f32.mrf.mxu2 }
 0x4f8   :  { %6482 = vpow2.f32 %v6329_v3  ;;  %v1426_v26 = vadd.f32 %v1425_v40, %v7332_v47  ;;  %1923 = vmatpush.msrb.mxu0 %v1828_v59  ;;  %v2061_v40 = vld [vmem:[#allocation12 + $0xe8] sm:$0xff] }
 0x4fa   :  { %1924 = vmatpush.msrb.mxu0 %v1825_v63 }
 0x4fc   :  { %1925 = vmatpush.msrb.mxu0 %v1822_v13 }
 0x4fd   :  { %v6481_v36 = vpop.eup %6480 }
 0x4fe   :  { %v6483_v19 = vpop.eup %6482  ;;  %v1432_v31 = vadd.f32 1.0, %v6481_v36  ;;  %1926 = vmatpush.msrb.mxu0 %v1819_v8  ;;  %v1848_v36 = vld [vmem:[%s11159_s10 + $0x100] sm:$0xff] }
 0x4ff   :  { %v7777_v18 = vadd.f32 1.0, %v6483_v19  ;;  %v1842_v19 = vld [vmem:[%s11159_s10 + $0xd0] sm:$0xff] }
 0x500   :  { %6484 = vrcp.f32 %v1432_v31  ;;  %v1444_v49 = vand.u32 2147483648, %v1432_v31  ;;  %v1442_v43 = vand.u32 2147483647, %v1432_v31  ;;  %vm1438_vm1 = vweird.f32 %v1432_v31  ;;  %1927 = vmatpush.msrb.mxu0 %v1816_v32 }
 0x501   :  { %6486 = vrcp.f32 %v7777_v18  ;;  %v1464_v35 = vand.u32 2147483648, %v7777_v18  ;;  %vm1458_vm5 = vweird.f32 %v7777_v18  ;;  %v1462_v60 = vand.u32 2147483647, %v7777_v18 }
 0x502   :  { %v1445_v12 = vor.u32 1.1754944e-38, %v1444_v49  ;;  %vm1443_vm3 = vcmp.eq.f32.partialorder %v1442_v43, 8.507059e+37  ;;  %v11216_v49 = vld [vmem:[#allocation39_spill] sm:$0xff] }
 0x503   :  { %v1465_v30 = vor.u32 1.1754944e-38, %v1464_v35  ;;  %vm1463_vm7 = vcmp.eq.f32.partialorder %v1462_v60, 8.507059e+37  ;;  %v2046_v35 = vld [vmem:[#allocation12 + $0x70] sm:$0xff]  ;;  %v2043_v60 = vld [vmem:[#allocation12 + $0x58] sm:$0xff] }
 0x506   :  { %v6485_v11 = vpop.eup %6484 }
 0x507   :  { %v6487_v29 = vpop.eup %6486  ;;  %v1434_v48 = vmul.f32 %v6485_v11, %v1432_v31  ;;  %vm1439_vm0 = vweird.f32 %v6485_v11  ;;  %v1839_v31 = vld [vmem:[%s11159_s10 + $0xb8] sm:$0xff] }
 0x508   :  { %v1454_v14 = vmul.f32 %v6487_v29, %v7777_v18  ;;  %vm1440_vm2 = vmor %vm1438_vm1, %vm1439_vm0  ;;  %vm1459_vm4 = vweird.f32 %v6487_v29  ;;  %v1833_v18 = vld [vmem:[%s11159_s10 + $0x88] sm:$0xff] }
 0x509   :  { %v1435_v52 = vsub.f32 1.0, %v1434_v48  ;;  %vm1460_vm6 = vmor %vm1458_vm5, %vm1459_vm4  ;;  %v2079_v48 = vld [vmem:[#allocation12 + $0x178] sm:$0xff] }
 0x50a   :  { %v1455_v56 = vsub.f32 1.0, %v1454_v14  ;;  %v2073_v14 = vld [vmem:[#allocation12 + $0x148] sm:$0xff] }
 0x50b   :  { %v1436_v2 = vmul.f32 %v6485_v11, %v1435_v52  ;;  %v2070_v52 = vld [vmem:[#allocation12 + $0x130] sm:$0xff] }
 0x50c   :  { %v1456_v23 = vmul.f32 %v6487_v29, %v1455_v56 }
 0x50d   :  { %v1437_v51 = vadd.f32 %v6485_v11, %v1436_v2  ;;  %v246_v2 = vadd.f32 %v11216_v49, %v11201_v34  ;;  %v2052_v34 = vld [vmem:[#allocation12 + $0xa0] sm:$0xff]  ;;  %v1777_v49 = vld [vmem:[#allocation3] sm:$0xff] }
 0x50e   :  { %v1457_v24 = vadd.f32 %v6487_v29, %v1456_v23 }
 0x50f   :  { %v1441_v41 = vsel %vm1440_vm2, %v6485_v11, %v1437_v51  ;;  %v1818_v11 = vld [vmem:[%s11159_s10 + $0x10] sm:$0xff] }
 0x510   :  { %v1446_v16 = vsel %vm1443_vm3, %v1445_v12, %v1441_v41  ;;  %v1461_v55 = vsel %vm1460_vm6, %v6487_v29, %v1457_v24  ;;  %v7904_v29 = vld [vmem:[%s11152_s3] sm:$0xff] }
 0x511   :  { %v1468_v28 = vmul.f32 %v1446_v16, %v1426_v26  ;;  %v1466_v44 = vsel %vm1463_vm7, %v1465_v30, %v1461_v55  ;;  %1728 = vst [vmem:[#allocation6] sm:$0xff] %v7904_v29  ;;  %v2055_v41 = vld [vmem:[#allocation12 + $0xb8] sm:$0xff]  ;;  %v2034_v55 = vld [vmem:[#allocation12 + $0x10] sm:$0xff] }
 0x512   :  { %v1471_v1 = vsub.f32 1.0, %v1466_v44  ;;  %v1473_v20 = vmul.f32 %v1466_v44, %v7759_v25 }
 0x513   :  { %v1469_v22 = vadd.f32 %v1468_v28, %v11215_v9  ;;  %v2040_v9 = vld [vmem:[#allocation12 + $0x40] sm:$0xff] }
 0x515   :  { %6488 = vtanh.f32 %v1469_v22 }
 0x51b   :  { %v6489_v3 = vpop.eup %6488 }
 0x51c   :  { %v1472_v10 = vmul.f32 %v6489_v3, %v1471_v1 }
 0x51e   :  { %v7843_v21 = vadd.f32 %v1473_v20, %v1472_v10 }
 0x520   :  { %1476 = vst [vmem:[#allocation3 + $0x8] sm:$0xff] %v7843_v21  ;;  %1547 = vmatmul.f32.vlgmr.msra.gmra.mxu3 %v7843_v21  ;;  %1567 = vmatmul.f32.vlgmr.msra.gmra.mxu0 %v7843_v21 }
 0x521   :  { %1587 = vmatmul.f32.vlgmr.msra.gmra.mxu1 %v7843_v21  ;;  %1662 = vxpose.xlu0.b32.cont [7/16] %v7843_v21, 128 }
 0x522   :  { %1992 = vmatpush.msra.mxu0 %v1863_v61 }
 0x524   :  { %1993 = vmatpush.msra.mxu0 %v1860_v38 }
 0x526   :  { %1994 = vmatpush.msra.mxu0 %v1857_v45 }
 0x528   :  { %1995 = vmatpush.msra.mxu0 %v1854_v57 }
 0x529   :  { %1928 = vmatmul.f32.vlgmr.msrb.gmra.mxu0 %v7904_v29 }
 0x52a   :  { %1996 = vmatpush.msra.mxu0 %v1851_v53 }
 0x52c   :  { %1997 = vmatpush.msra.mxu0 %v1848_v36 }
 0x52e   :  { %1998 = vmatpush.msra.mxu0 %v1845_v37  ;;  %v11218_v37 = vld [vmem:[#allocation29_spill] sm:$0xff] }
 0x530   :  { %1999 = vmatpush.msra.mxu0 %v1842_v19  ;;  %v11219_v19 = vld [vmem:[#allocation40_spill] sm:$0xff] }
 0x532   :  { %2000 = vmatpush.msra.mxu0 %v1839_v31  ;;  %v287_v31 = vadd.f32 %v11219_v19, %v11218_v37  ;;  %v2047_v37 = vld [vmem:[#allocation12 + $0x78] sm:$0xff]  ;;  %v2044_v19 = vld [vmem:[#allocation12 + $0x60] sm:$0xff] }
 0x534   :  { %2001 = vmatpush.msra.mxu0 %v1836_v33 }
 0x536   :  { %2002 = vmatpush.msra.mxu0 %v1833_v18 }
 0x538   :  { %2003 = vmatpush.msra.mxu0 %v1830_v50 }
 0x53a   :  { %2004 = vmatpush.msra.mxu0 %v1827_v62 }
 0x53c   :  { %2005 = vmatpush.msra.mxu0 %v1824_v4 }
 0x53e   :  { %2006 = vmatpush.msra.mxu0 %v1821_v46 }
 0x540   :  { %2007 = vmatpush.msra.mxu0 %v1818_v11 }
 0x541   :  { %2008 = vmatmul.f32.vlgmr.msra.gmra.mxu0 %v7904_v29 }
 0x542   :  { %2120 = vmatpush.msrb.mxu0 %v2079_v48 }
 0x544   :  { %2121 = vmatpush.msrb.mxu0 %v2076_v0 }
 0x546   :  { %2122 = vmatpush.msrb.mxu0 %v2073_v14 }
 0x548   :  { %2123 = vmatpush.msrb.mxu0 %v2070_v52 }
 0x54a   :  { %2124 = vmatpush.msrb.mxu0 %v2067_v42  ;;  %v1779_v42 = vld [vmem:[#allocation3 + $0x18] sm:$0xff] }
 0x54c   :  { %2125 = vmatpush.msrb.mxu0 %v2064_v27 }
 0x54e   :  { %2126 = vmatpush.msrb.mxu0 %v2061_v40 }
 0x550   :  { %2127 = vmatpush.msrb.mxu0 %v2058_v15 }
 0x552   :  { %2128 = vmatpush.msrb.mxu0 %v2055_v41  ;;  %v1725_v41 = vlaneseq }
 0x554   :  { %2129 = vmatpush.msrb.mxu0 %v2052_v34 }
 0x59d   :  { %v1568_v56 = vpop.f32.mrf.mxu0 }
 0x59e   :  { %v1569_v43 = vadd.f32 %v1568_v56, %v11203_v54  ;;  %v2049_v54 = vld [vmem:[#allocation12 + $0x88] sm:$0xff]  ;;  %v1588_v32 = vpop.f32.mrf.mxu1  ;;  %v1778_v56 = vld [vmem:[#allocation3 + $0x58] sm:$0xff] }
 0x59f   :  { %2130 = vmatpush.msrb.mxu0 %v2049_v54  ;;  %v1589_v45 = vadd.f32 %v1588_v32, %v7332_v47  ;;  %v2068_v32 = vld [vmem:[#allocation12 + $0x120] sm:$0xff] }
 0x5a0   :  { %v1611_v23 = vadd.f32 %v1569_v43, %v246_v2  ;;  %v1776_v2 = vld [vmem:[#allocation3 + $0x30] sm:$0xff] }
 0x5a1   :  { %2131 = vmatpush.msrb.mxu0 %v2046_v35  ;;  %v1862_v35 = vld [vmem:[%s11159_s10 + $0x170] sm:$0xff] }
 0x5a2   :  { %v6331_v51 = vmul.f32 -1.442695, %v1611_v23 }
 0x5a3   :  { %v1548_v12 = vpop.f32.mrf.mxu3  ;;  %2132 = vmatpush.msrb.mxu0 %v2043_v60  ;;  %v1853_v60 = vld [vmem:[%s11159_s10 + $0x128] sm:$0xff] }
 0x5a4   :  { %6490 = vpow2.f32 %v6331_v51  ;;  %v1549_v26 = vadd.f32 %v1548_v12, %v11204_v7  ;;  %v2037_v7 = vld [vmem:[#allocation12 + $0x28] sm:$0xff] }
 0x5a5   :  { %2133 = vmatpush.msrb.mxu0 %v2040_v9  ;;  %v1850_v9 = vld [vmem:[%s11159_s10 + $0x110] sm:$0xff] }
 0x5a6   :  { %v1591_v16 = vadd.f32 %v1549_v26, %v11217_v58  ;;  %v7935_v58 = vand.u32 127, %v1725_v41  ;;  %v1882_v41 = vld [vmem:[%s11159_s10 + $0x210] sm:$0xff] }
 0x5a7   :  { %2134 = vmatpush.msrb.mxu0 %v2037_v7  ;;  %v1847_v7 = vld [vmem:[%s11159_s10 + $0xf8] sm:$0xff] }
 0x5a8   :  { %v6330_v24 = vmul.f32 -1.442695, %v1591_v16 }
 0x5a9   :  { %2135 = vmatpush.msrb.mxu0 %v2034_v55  ;;  %v1838_v55 = vld [vmem:[%s11159_s10 + $0xb0] sm:$0xff] }
 0x5aa   :  { %v6491_v28 = vpop.eup %6490  ;;  %6492 = vpow2.f32 %v6330_v24 }
 0x5ab   :  { %v1615_v17 = vadd.f32 1.0, %v6491_v28  ;;  %v1859_v28 = vld [vmem:[%s11159_s10 + $0x158] sm:$0xff] }
 0x5ad   :  { %6494 = vrcp.f32 %v1615_v17  ;;  %v1627_v33 = vand.u32 2147483648, %v1615_v17  ;;  %vm1621_vm13 = vweird.f32 %v1615_v17  ;;  %v1625_v50 = vand.u32 2147483647, %v1615_v17 }
 0x5af   :  { %v1628_v46 = vor.u32 1.1754944e-38, %v1627_v33  ;;  %vm1626_vm15 = vcmp.eq.f32.partialorder %v1625_v50, 8.507059e+37  ;;  %v2035_v33 = vld [vmem:[#allocation12 + $0x18] sm:$0xff] }
 0x5b0   :  { %v6493_v22 = vpop.eup %6492  ;;  %v7991_v50 = vld [vmem:[%s11153_s4] sm:$0xff] }
 0x5b1   :  { %v1595_v39 = vadd.f32 1.0, %v6493_v22  ;;  %v1844_v22 = vld [vmem:[%s11159_s10 + $0xe0] sm:$0xff] }
 0x5b3   :  { %6496 = vrcp.f32 %v1595_v39  ;;  %v6495_v30 = vpop.eup %6494  ;;  %v1607_v3 = vand.u32 2147483648, %v1595_v39  ;;  %v1605_v10 = vand.u32 2147483647, %v1595_v39  ;;  %vm1601_vm9 = vweird.f32 %v1595_v39 }
 0x5b4   :  { %v1617_v59 = vmul.f32 %v6495_v30, %v1615_v17  ;;  %vm1622_vm12 = vweird.f32 %v6495_v30  ;;  %v1856_v17 = vld [vmem:[%s11159_s10 + $0x140] sm:$0xff] }
 0x5b5   :  { %v1608_v38 = vor.u32 1.1754944e-38, %v1607_v3  ;;  %vm1606_vm11 = vcmp.eq.f32.partialorder %v1605_v10, 8.507059e+37  ;;  %vm1623_vm14 = vmor %vm1621_vm13, %vm1622_vm12  ;;  %v1817_v3 = vld [vmem:[%s11159_s10 + $0x8] sm:$0xff]  ;;  %v2074_v10 = vld [vmem:[#allocation12 + $0x150] sm:$0xff] }
 0x5b6   :  { %v1618_v13 = vsub.f32 1.0, %v1617_v59  ;;  %v1832_v59 = vld [vmem:[%s11159_s10 + $0x80] sm:$0xff] }
 0x5b8   :  { %v1619_v20 = vmul.f32 %v6495_v30, %v1618_v13  ;;  %v1823_v13 = vld [vmem:[%s11159_s10 + $0x38] sm:$0xff] }
 0x5b9   :  { %v6497_v44 = vpop.eup %6496 }
 0x5ba   :  { %v1597_v63 = vmul.f32 %v6497_v44, %v1595_v39  ;;  %vm1602_vm8 = vweird.f32 %v6497_v44  ;;  %v1620_v53 = vadd.f32 %v6495_v30, %v1619_v20  ;;  %v1841_v39 = vld [vmem:[%s11159_s10 + $0xc8] sm:$0xff]  ;;  %v2071_v20 = vld [vmem:[#allocation12 + $0x138] sm:$0xff] }
 0x5bb   :  { %vm1603_vm10 = vmor %vm1601_vm9, %vm1602_vm8 }
 0x5bc   :  { %v1598_v1 = vsub.f32 1.0, %v1597_v63  ;;  %v1624_v4 = vsel %vm1623_vm14, %v6495_v30, %v1620_v53  ;;  %v1835_v30 = vld [vmem:[%s11159_s10 + $0x98] sm:$0xff]  ;;  %v1826_v63 = vld [vmem:[%s11159_s10 + $0x50] sm:$0xff] }
 0x5bd   :  { %v1629_v11 = vsel %vm1626_vm15, %v1628_v46, %v1624_v4  ;;  %v2053_v53 = vld [vmem:[#allocation12 + $0xa8] sm:$0xff] }
 0x5be   :  { %v1599_v8 = vmul.f32 %v6497_v44, %v1598_v1  ;;  %v1634_v47 = vsub.f32 1.0, %v1629_v11  ;;  %v1636_v14 = vmul.f32 %v1629_v11, %v7843_v21  ;;  %v1820_v1 = vld [vmem:[%s11159_s10 + $0x20] sm:$0xff] }
 0x5c0   :  { %v1600_v61 = vadd.f32 %v6497_v44, %v1599_v8  ;;  %v2077_v8 = vld [vmem:[#allocation12 + $0x168] sm:$0xff] }
 0x5c2   :  { %v1604_v57 = vsel %vm1603_vm10, %v6497_v44, %v1600_v61  ;;  %v1829_v44 = vld [vmem:[%s11159_s10 + $0x68] sm:$0xff]  ;;  %v2065_v61 = vld [vmem:[#allocation12 + $0x108] sm:$0xff] }
 0x5c3   :  { %v1609_v36 = vsel %vm1606_vm11, %v1608_v38, %v1604_v57  ;;  %v2062_v38 = vld [vmem:[#allocation12 + $0xf0] sm:$0xff]  ;;  %v2056_v57 = vld [vmem:[#allocation12 + $0xc0] sm:$0xff] }
 0x5c4   :  { %v1631_v18 = vmul.f32 %v1609_v36, %v1589_v45  ;;  %v2059_v45 = vld [vmem:[#allocation12 + $0xd8] sm:$0xff]  ;;  %v2050_v36 = vld [vmem:[#allocation12 + $0x90] sm:$0xff] }
 0x5c6   :  { %v1632_v62 = vadd.f32 %v1631_v18, %v287_v31  ;;  %v2038_v31 = vld [vmem:[#allocation12 + $0x30] sm:$0xff]  ;;  %v2032_v18 = vld [vmem:[#allocation12] sm:$0xff] }
 0x5c8   :  { %6498 = vtanh.f32 %v1632_v62 }
 0x5ce   :  { %v6499_v48 = vpop.eup %6498 }
 0x5cf   :  { %v1635_v0 = vmul.f32 %v6499_v48, %v1634_v47 }
 0x5d1   :  { %v7918_v52 = vadd.f32 %v1636_v14, %v1635_v0  ;;  %v1909_v0 = vld [vmem:[%s11159_s10 + $0x2e8] sm:$0xff]  ;;  %v1910_v14 = vld [vmem:[%s11159_s10 + $0x2f0] sm:$0xff] }
 0x5d2   :  { %1932 = vmatpush.msrb.mxu1 %v1909_v0  ;;  %v1872_v0 = vld [vmem:[%s11159_s10 + $0x1c0] sm:$0xff] }
 0x5d3   :  { %2136 = vmatmul.f32.vlgmr.msrb.gmra.mxu0 %v7918_v52  ;;  %1639 = vst [vmem:[#allocation3 + $0x48] sm:$0xff] %v7918_v52  ;;  %1800 = vmatpush.msrb.mxu3 %v7918_v52 }
 0x5d4   :  { %1663 = vxpose.xlu0.b32.cont [8/16] %v7918_v52, 128 }
 0x5d5   :  { %1801 = vmatpush.msrb.mxu3 %v7843_v21 }
 0x5d7   :  { %1802 = vmatpush.msrb.mxu3 %v7759_v25 }
 0x5d9   :  { %1803 = vmatpush.msrb.mxu3 %v7723_v6 }
 0x5db   :  { %1804 = vmatpush.msrb.mxu3 %v1779_v42  ;;  %v1906_v42 = vld [vmem:[%s11159_s10 + $0x2d0] sm:$0xff] }
 0x5dc   :  { %1664 = vxpose.xlu0.b32.cont [9/16] %v7787_v5, 128  ;;  %1933 = vmatpush.msrb.mxu1 %v1906_v42  ;;  %v1869_v42 = vld [vmem:[%s11159_s10 + $0x1a8] sm:$0xff] }
 0x5dd   :  { %1805 = vmatpush.msrb.mxu3 %v1778_v56  ;;  %v1907_v56 = vld [vmem:[%s11159_s10 + $0x2d8] sm:$0xff] }
 0x5df   :  { %1806 = vmatpush.msrb.mxu3 %v1777_v49  ;;  %v1903_v49 = vld [vmem:[%s11159_s10 + $0x2b8] sm:$0xff] }
 0x5e0   :  { %1934 = vmatpush.msrb.mxu1 %v1903_v49  ;;  %v1866_v49 = vld [vmem:[%s11159_s10 + $0x190] sm:$0xff] }
 0x5e1   :  { %1807 = vmatpush.msrb.mxu3 %v1776_v2  ;;  %v1904_v2 = vld [vmem:[%s11159_s10 + $0x2c0] sm:$0xff] }
 0x5e3   :  { %1972 = vmatpush.msra.mxu3 %v1910_v14  ;;  %v2039_v14 = vld [vmem:[#allocation12 + $0x38] sm:$0xff] }
 0x5e4   :  { %1665 = vxpose.xlu0.b32.cont [10/16] %v7787_v5, 128 }
 0x5e5   :  { %1973 = vmatpush.msra.mxu3 %v1907_v56  ;;  %v2036_v56 = vld [vmem:[#allocation12 + $0x20] sm:$0xff] }
 0x5e7   :  { %1974 = vmatpush.msra.mxu3 %v1904_v2  ;;  %v2033_v2 = vld [vmem:[#allocation12 + $0x8] sm:$0xff] }
 0x5ec   :  { %1666 = vxpose.xlu0.b32.cont [11/16] %v7787_v5, 128 }
 0x5f4   :  { %1667 = vxpose.xlu0.b32.cont [12/16] %v7787_v5, 128 }
 0x5fc   :  { %1668 = vxpose.xlu0.b32.cont [13/16] %v7787_v5, 128 }
 0x604   :  { %1669 = vxpose.xlu0.b32.cont [14/16] %v7787_v5, 128 }
 0x60c   :  { %1670 = vxpose.xlu0.b32.cont [15/16] %v7787_v5, 128 }
 0x614   :  { %1671 = vxpose.xlu0.b32.end [16/16] %v7787_v5, 128 }
 0x640   :  { %v1672_v6 = vpop.trf.xlu0 }
 0x641   :  { %1688 = vst [vmem:[#allocation4 + $0x28] sm:$0xff] %v1672_v6 }
 0x648   :  { %v1673_v25 = vpop.trf.xlu0 }
 0x649   :  { %1689 = vst [vmem:[#allocation4 + $0x68] sm:$0xff] %v1673_v25 }
 0x650   :  { %v1674_v21 = vpop.trf.xlu0 }
 0x651   :  { %1690 = vst [vmem:[#allocation4 + $0x10] sm:$0xff] %v1674_v21 }
 0x658   :  { %v1675_v43 = vpop.trf.xlu0 }
 0x659   :  { %1691 = vst [vmem:[#allocation4 + $0x40] sm:$0xff] %v1675_v43 }
 0x660   :  { %v1676_v27 = vpop.trf.xlu0 }
 0x661   :  { %1692 = vst [vmem:[#allocation4 + $0x48] sm:$0xff] %v1676_v27 }
 0x668   :  { %v1677_v23 = vpop.trf.xlu0 }
 0x669   :  { %1693 = vst [vmem:[#allocation4 + $0x30] sm:$0xff] %v1677_v23 }
 0x670   :  { %v1678_v40 = vpop.trf.xlu0 }
 0x671   :  { %1694 = vst [vmem:[#allocation4 + $0x70] sm:$0xff] %v1678_v40 }
 0x678   :  { %v1679_v51 = vpop.trf.xlu0 }
 0x679   :  { %1695 = vst [vmem:[#allocation4 + $0x38] sm:$0xff] %v1679_v51 }
 0x680   :  { %v1680_v15 = vpop.trf.xlu0 }
 0x681   :  { %1696 = vst [vmem:[#allocation4 + $0x20] sm:$0xff] %v1680_v15 }
 0x688   :  { %v1681_v12 = vpop.trf.xlu0 }
 0x689   :  { %1697 = vst [vmem:[#allocation4 + $0x78] sm:$0xff] %v1681_v12 }
 0x690   :  { %v1682_v5 = vpop.trf.xlu0 }
 0x691   :  { %1698 = vst [vmem:[#allocation4 + $0x18] sm:$0xff] %v1682_v5 }
 0x698   :  { %v1683_v26 = vpop.trf.xlu0 }
 0x699   :  { %1699 = vst [vmem:[#allocation4 + $0x58] sm:$0xff] %v1683_v26 }
 0x6a0   :  { %v1684_v16 = vpop.trf.xlu0 }
 0x6a1   :  { %1700 = vst [vmem:[#allocation4] sm:$0xff] %v1684_v16 }
 0x6a8   :  { %v1685_v34 = vpop.trf.xlu0 }
 0x6a9   :  { %1701 = vst [vmem:[#allocation4 + $0x8] sm:$0xff] %v1685_v34 }
 0x6b0   :  { %v1686_v24 = vpop.trf.xlu0 }
 0x6b1   :  { %1702 = vst [vmem:[#allocation4 + $0x60] sm:$0xff] %v1686_v24 }
 0x6b8   :  { %v1687_v54 = vpop.trf.xlu0 }
 0x6b9   :  { %1703 = vst [vmem:[#allocation4 + $0x50] sm:$0xff] %v1687_v54  ;;  %1746 = vmatpush.msra.mxu2 %v1687_v54  ;;  %v1876_v54 = vld [vmem:[%s11159_s10 + $0x1e0] sm:$0xff] }
 0x6bb   :  { %1747 = vmatpush.msra.mxu2 %v1686_v24  ;;  %v1880_v24 = vld [vmem:[%s11159_s10 + $0x200] sm:$0xff] }
 0x6bd   :  { %1748 = vmatpush.msra.mxu2 %v1685_v34  ;;  %v1879_v34 = vld [vmem:[%s11159_s10 + $0x1f8] sm:$0xff] }
 0x6bf   :  { %1749 = vmatpush.msra.mxu2 %v1684_v16  ;;  %v1883_v16 = vld [vmem:[%s11159_s10 + $0x218] sm:$0xff] }
 0x6c1   :  { %1750 = vmatpush.msra.mxu2 %v1683_v26  ;;  %v1886_v26 = vld [vmem:[%s11159_s10 + $0x230] sm:$0xff] }
 0x6c3   :  { %1751 = vmatpush.msra.mxu2 %v1682_v5  ;;  %v1885_v5 = vld [vmem:[%s11159_s10 + $0x228] sm:$0xff] }
 0x6c5   :  { %1752 = vmatpush.msra.mxu2 %v1681_v12  ;;  %v1889_v12 = vld [vmem:[%s11159_s10 + $0x248] sm:$0xff] }
 0x6c7   :  { %1753 = vmatpush.msra.mxu2 %v1680_v15  ;;  %v1888_v15 = vld [vmem:[%s11159_s10 + $0x240] sm:$0xff] }
 0x6c9   :  { %1754 = vmatpush.msra.mxu2 %v1679_v51  ;;  %v1892_v51 = vld [vmem:[%s11159_s10 + $0x260] sm:$0xff] }
 0x6cb   :  { %1755 = vmatpush.msra.mxu2 %v1678_v40  ;;  %v1891_v40 = vld [vmem:[%s11159_s10 + $0x258] sm:$0xff] }
 0x6cd   :  { %1756 = vmatpush.msra.mxu2 %v1677_v23  ;;  %v1895_v23 = vld [vmem:[%s11159_s10 + $0x278] sm:$0xff] }
 0x6cf   :  { %1757 = vmatpush.msra.mxu2 %v1676_v27  ;;  %v1894_v27 = vld [vmem:[%s11159_s10 + $0x270] sm:$0xff] }
 0x6d1   :  { %1758 = vmatpush.msra.mxu2 %v1675_v43  ;;  %v1898_v43 = vld [vmem:[%s11159_s10 + $0x290] sm:$0xff] }
 0x6d3   :  { %1759 = vmatpush.msra.mxu2 %v1674_v21  ;;  %v1897_v21 = vld [vmem:[%s11159_s10 + $0x288] sm:$0xff] }
 0x6d5   :  { %1760 = vmatpush.msra.mxu2 %v1673_v25  ;;  %v1901_v25 = vld [vmem:[%s11159_s10 + $0x2a8] sm:$0xff] }
 0x6d6   :  { %1975 = vmatpush.msra.mxu3 %v1901_v25 }
 0x6d7   :  { %1761 = vmatpush.msra.mxu2 %v1672_v6  ;;  %v1900_v6 = vld [vmem:[%s11159_s10 + $0x2a0] sm:$0xff] }
 0x6d8   :  { %1762 = vmatmul.f32.vlgmr.msra.gmra.mxu2 %v7918_v52  ;;  %1935 = vmatpush.msrb.mxu1 %v1900_v6 }
 0x6d9   :  { %1952 = vmatpush.msrb.mxu2 %v1862_v35  ;;  %1976 = vmatpush.msra.mxu3 %v1898_v43  ;;  %v1877_v35 = vld [vmem:[%s11159_s10 + $0x1e8] sm:$0xff]  ;;  %v2202_v43 = vld [vmem:[%s11163_s14 + $0x78] sm:$0xff] }
 0x6da   :  { %1936 = vmatpush.msrb.mxu1 %v1897_v21  ;;  %v8146_v21 = vld [vmem:[%s11161_s12] sm:$0x7] }
 0x6db   :  { %1953 = vmatpush.msrb.mxu2 %v1859_v28  ;;  %1977 = vmatpush.msra.mxu3 %v1895_v23  ;;  %v8155_v23 = vperm.slane %v8146_v21, 0 }
 0x6dc   :  { %1937 = vmatpush.msrb.mxu1 %v1894_v27  ;;  %v2201_v27 = vld [vmem:[%s11163_s14 + $0x70] sm:$0xff] }
 0x6dd   :  { %1954 = vmatpush.msrb.mxu2 %v1856_v17  ;;  %1978 = vmatpush.msra.mxu3 %v1892_v51  ;;  %v1873_v17 = vld [vmem:[%s11159_s10 + $0x1c8] sm:$0xff]  ;;  %v1929_v51 = vpop.f32.mrf.mxu0 }
 0x6de   :  { %1938 = vmatpush.msrb.mxu1 %v1891_v40  ;;  %v2200_v40 = vld [vmem:[%s11163_s14 + $0x68] sm:$0xff] }
 0x6df   :  { %1955 = vmatpush.msrb.mxu2 %v1853_v60  ;;  %1979 = vmatpush.msra.mxu3 %v1889_v12  ;;  %v1874_v60 = vld [vmem:[%s11159_s10 + $0x1d0] sm:$0xff]  ;;  %v2199_v12 = vld [vmem:[%s11163_s14 + $0x60] sm:$0xff] }
 0x6e0   :  { %1939 = vmatpush.msrb.mxu1 %v1888_v15  ;;  %v1712_v15 = vld [vmem:[%s11162_s13] sm:$0x7] }
 0x6e1   :  { %1956 = vmatpush.msrb.mxu2 %v1850_v9  ;;  %1980 = vmatpush.msra.mxu3 %v1886_v26  ;;  %v1870_v9 = vld [vmem:[%s11159_s10 + $0x1b0] sm:$0xff]  ;;  %v8167_v26 = vperm.slane %v1712_v15, 0 }
 0x6e2   :  { %1940 = vmatpush.msrb.mxu1 %v1885_v5  ;;  %v1930_v5 = vadd.f32 %v1929_v51, %v8155_v23 }
 0x6e3   :  { %1957 = vmatpush.msrb.mxu2 %v1847_v7  ;;  %1981 = vmatpush.msra.mxu3 %v1883_v16  ;;  %v1871_v7 = vld [vmem:[%s11159_s10 + $0x1b8] sm:$0xff] }
 0x6e4   :  { %1941 = vmatpush.msrb.mxu1 %v1882_v41  ;;  %v2198_v16 = vld [vmem:[%s11163_s14 + $0x58] sm:$0xff] }
 0x6e5   :  { %1958 = vmatpush.msrb.mxu2 %v1844_v22  ;;  %1982 = vmatpush.msra.mxu3 %v1880_v24  ;;  %v1867_v22 = vld [vmem:[%s11159_s10 + $0x198] sm:$0xff]  ;;  %v2197_v24 = vld [vmem:[%s11163_s14 + $0x50] sm:$0xff] }
 0x6e6   :  { %1942 = vmatpush.msrb.mxu1 %v1879_v34 }
 0x6e7   :  { %1959 = vmatpush.msrb.mxu2 %v1841_v39  ;;  %1983 = vmatpush.msra.mxu3 %v1877_v35  ;;  %v1868_v39 = vld [vmem:[%s11159_s10 + $0x1a0] sm:$0xff] }
 0x6e8   :  { %1943 = vmatpush.msrb.mxu1 %v1876_v54 }
 0x6e9   :  { %1960 = vmatpush.msrb.mxu2 %v1838_v55  ;;  %1984 = vmatpush.msra.mxu3 %v1874_v60  ;;  %v1864_v55 = vld [vmem:[%s11159_s10 + $0x180] sm:$0xff] }
 0x6ea   :  { %1944 = vmatpush.msrb.mxu1 %v1873_v17  ;;  %v2195_v60 = vld [vmem:[%s11163_s14 + $0x40] sm:$0xff] }
 0x6eb   :  { %1961 = vmatpush.msrb.mxu2 %v1835_v30  ;;  %1985 = vmatpush.msra.mxu3 %v1871_v7  ;;  %v1865_v30 = vld [vmem:[%s11159_s10 + $0x188] sm:$0xff] }
 0x6ec   :  { %1945 = vmatpush.msrb.mxu1 %v1870_v9 }
 0x6ed   :  { %1962 = vmatpush.msrb.mxu2 %v1832_v59  ;;  %1986 = vmatpush.msra.mxu3 %v1868_v39  ;;  %v2193_v39 = vld [vmem:[%s11163_s14 + $0x30] sm:$0xff] }
 0x6ee   :  { %1946 = vmatpush.msrb.mxu1 %v1867_v22  ;;  %v2194_v22 = vld [vmem:[%s11163_s14 + $0x38] sm:$0xff] }
 0x6ef   :  { %1963 = vmatpush.msrb.mxu2 %v1829_v44  ;;  %v1911_v44 = vld [vmem:[%s11159_s10 + $0x2f8] sm:$0xff]  ;;  %1987 = vmatpush.msra.mxu3 %v1865_v30  ;;  %v8192_v30 = vperm.slane %v8146_v21, 1 }
 0x6f0   :  { %1947 = vmatpush.msrb.mxu1 %v1864_v55  ;;  %v2192_v55 = vld [vmem:[%s11163_s14 + $0x28] sm:$0xff] }
 0x6f1   :  { %1964 = vmatpush.msrb.mxu2 %v1826_v63 }
 0x6f2   :  { %2012 = vmatpush.msra.mxu1 %v1911_v44  ;;  %v8197_v44 = vperm.slane %v1712_v15, 1 }
 0x6f3   :  { %1965 = vmatpush.msrb.mxu2 %v1823_v13  ;;  %v2078_v13 = vld [vmem:[#allocation12 + $0x170] sm:$0xff] }
 0x6f5   :  { %1966 = vmatpush.msrb.mxu2 %v1820_v1  ;;  %v1908_v1 = vld [vmem:[%s11159_s10 + $0x2e0] sm:$0xff] }
 0x6f6   :  { %2013 = vmatpush.msra.mxu1 %v1908_v1 }
 0x6f7   :  { %1967 = vmatpush.msrb.mxu2 %v1817_v3  ;;  %v2075_v3 = vld [vmem:[#allocation12 + $0x158] sm:$0xff] }
 0x6f8   :  { %1968 = vmatmul.f32.vlgmr.msrb.gmra.mxu2 %v7904_v29  ;;  %v2041_v29 = vld [vmem:[#allocation12 + $0x48] sm:$0xff] }
 0x6f9   :  { %2080 = vmatpush.msra.mxu2 %v2077_v8  ;;  %v1905_v8 = vld [vmem:[%s11159_s10 + $0x2c8] sm:$0xff] }
 0x6fa   :  { %2014 = vmatpush.msra.mxu1 %v1905_v8 }
 0x6fb   :  { %2081 = vmatpush.msra.mxu2 %v2074_v10  ;;  %v2072_v10 = vld [vmem:[#allocation12 + $0x140] sm:$0xff] }
 0x6fd   :  { %2082 = vmatpush.msra.mxu2 %v2071_v20  ;;  %v1902_v20 = vld [vmem:[%s11159_s10 + $0x2b0] sm:$0xff] }
 0x6fe   :  { %2015 = vmatpush.msra.mxu1 %v1902_v20 }
 0x6ff   :  { %2083 = vmatpush.msra.mxu2 %v2068_v32  ;;  %v2069_v32 = vld [vmem:[#allocation12 + $0x128] sm:$0xff] }
 0x701   :  { %2084 = vmatpush.msra.mxu2 %v2065_v61  ;;  %v1899_v61 = vld [vmem:[%s11159_s10 + $0x298] sm:$0xff] }
 0x702   :  { %2016 = vmatpush.msra.mxu1 %v1899_v61  ;;  %v2188_v61 = vld [vmem:[%s11163_s14 + $0x8] sm:$0xff] }
 0x703   :  { %2085 = vmatpush.msra.mxu2 %v2062_v38  ;;  %v2066_v38 = vld [vmem:[#allocation12 + $0x110] sm:$0xff] }
 0x705   :  { %2086 = vmatpush.msra.mxu2 %v2059_v45  ;;  %v1896_v45 = vld [vmem:[%s11159_s10 + $0x280] sm:$0xff] }
 0x706   :  { %2017 = vmatpush.msra.mxu1 %v1896_v45  ;;  %v2187_v45 = vld [vmem:[%s11163_s14] sm:$0xff] }
 0x707   :  { %2087 = vmatpush.msra.mxu2 %v2056_v57  ;;  %v2063_v57 = vld [vmem:[#allocation12 + $0xf8] sm:$0xff] }
 0x709   :  { %2088 = vmatpush.msra.mxu2 %v2053_v53  ;;  %v1893_v53 = vld [vmem:[%s11159_s10 + $0x268] sm:$0xff] }
 0x70a   :  { %2018 = vmatpush.msra.mxu1 %v1893_v53 }
 0x70b   :  { %2089 = vmatpush.msra.mxu2 %v2050_v36  ;;  %v2060_v36 = vld [vmem:[#allocation12 + $0xe0] sm:$0xff] }
 0x70d   :  { %2090 = vmatpush.msra.mxu2 %v2047_v37  ;;  %v1890_v37 = vld [vmem:[%s11159_s10 + $0x250] sm:$0xff] }
 0x70e   :  { %2019 = vmatpush.msra.mxu1 %v1890_v37 }
 0x70f   :  { %2091 = vmatpush.msra.mxu2 %v2044_v19  ;;  %v2057_v19 = vld [vmem:[#allocation12 + $0xc8] sm:$0xff] }
 0x711   :  { %2092 = vmatpush.msra.mxu2 %v2041_v29  ;;  %v1887_v29 = vld [vmem:[%s11159_s10 + $0x238] sm:$0xff] }
 0x712   :  { %2020 = vmatpush.msra.mxu1 %v1887_v29 }
 0x713   :  { %2093 = vmatpush.msra.mxu2 %v2038_v31  ;;  %v2054_v31 = vld [vmem:[#allocation12 + $0xb0] sm:$0xff] }
 0x715   :  { %2094 = vmatpush.msra.mxu2 %v2035_v33  ;;  %v1884_v33 = vld [vmem:[%s11159_s10 + $0x220] sm:$0xff] }
 0x716   :  { %2021 = vmatpush.msra.mxu1 %v1884_v33 }
 0x717   :  { %2095 = vmatpush.msra.mxu2 %v2032_v18  ;;  %v2051_v18 = vld [vmem:[#allocation12 + $0x98] sm:$0xff] }
 0x718   :  { %2096 = vmatmul.f32.vlgmr.msra.gmra.mxu2 %v7918_v52 }
 0x75b   :  { %v1763_v62 = vpop.f32.mrf.mxu2 }
 0x75c   :  { %v1764_v4 = vadd.f32 %v1763_v62, %v7991_v50  ;;  %v1881_v62 = vld [vmem:[%s11159_s10 + $0x208] sm:$0xff] }
 0x75d   :  { %2022 = vmatpush.msra.mxu1 %v1881_v62  ;;  %v8214_v62 = vperm.slane %v8146_v21, 2 }
 0x75e   :  { %1766 = vmax.xlane.f32.xlu1 %v1764_v4 }
 0x77b   :  { %v1969_v25 = vpop.f32.mrf.mxu2 }
 0x77c   :  { %v1970_v1 = vadd.f32 %v1969_v25, %v8192_v30 }
 0x79b   :  { %v2097_v41 = vpop.f32.mrf.mxu2 }
 0x79c   :  { %v2098_v54 = vadd.f32 %v2097_v41, %v8167_v26 }
 0x7d1   :  { %v1767_v46 = vpop.xlane.xlu1 %1766 }
 0x7d2   :  { %v1768_v11 = vsub.f32 %v1764_v4, %v1767_v46  ;;  %v2048_v4 = vld [vmem:[#allocation12 + $0x80] sm:$0xff]  ;;  %v1878_v46 = vld [vmem:[%s11159_s10 + $0x1f0] sm:$0xff] }
 0x7d3   :  { %2023 = vmatpush.msra.mxu1 %v1878_v46 }
 0x7d4   :  { %v1769_v47 = vmul.f32 1.442695, %v1768_v11  ;;  %v2045_v11 = vld [vmem:[#allocation12 + $0x68] sm:$0xff] }
 0x7d6   :  { %6500 = vpow2.f32 %v1769_v47  ;;  %v1875_v47 = vld [vmem:[%s11159_s10 + $0x1d8] sm:$0xff] }
 0x7d7   :  { %2024 = vmatpush.msra.mxu1 %v1875_v47 }
 0x7d9   :  { %2025 = vmatpush.msra.mxu1 %v1872_v0 }
 0x7db   :  { %2026 = vmatpush.msra.mxu1 %v1869_v42 }
 0x7dc   :  { %v7994_v48 = vpop.eup %6500 }
 0x7dd   :  { %1771 = vadd.xlane.f32.xlu1 %v7994_v48  ;;  %2027 = vmatpush.msra.mxu1 %v1866_v49 }
 0x850   :  { %v1772_v28 = vpop.xlane.xlu1 %1771 }
 0x851   :  { %6502 = vrcp.f32 %v1772_v28  ;;  %v2196_v28 = vld [vmem:[%s11163_s14 + $0x48] sm:$0xff] }
 0x857   :  { %v6503_v59 = vpop.eup %6502 }
 0x858   :  { %v1774_v63 = vmul.f32 %v6503_v59, %v7994_v48  ;;  %v2042_v48 = vld [vmem:[#allocation12 + $0x50] sm:$0xff]  ;;  %v2191_v59 = vld [vmem:[%s11163_s14 + $0x20] sm:$0xff] }
 0x85a   :  { %1775 = vst [vmem:[#allocation15] sm:$0xff] %v1774_v63  ;;  %1808 = vmatmul.f32.vlgmr.msrb.gmra.mxu3 %v1774_v63  ;;  %v2190_v63 = vld [vmem:[%s11163_s14 + $0x18] sm:$0xff] }
 0x85b   :  { %2100 = vmatpush.msrb.mxu3 %v2078_v13 }
 0x85d   :  { %2101 = vmatpush.msrb.mxu3 %v2075_v3 }
 0x85f   :  { %2102 = vmatpush.msrb.mxu3 %v2072_v10  ;;  %v2189_v10 = vld [vmem:[%s11163_s14 + $0x10] sm:$0xff] }
 0x861   :  { %2103 = vmatpush.msrb.mxu3 %v2069_v32 }
 0x863   :  { %2104 = vmatpush.msrb.mxu3 %v2066_v38 }
 0x865   :  { %2105 = vmatpush.msrb.mxu3 %v2063_v57  ;;  %v2009_v57 = vpop.f32.mrf.mxu0 }
 0x867   :  { %2106 = vmatpush.msrb.mxu3 %v2060_v36 }
 0x869   :  { %2107 = vmatpush.msrb.mxu3 %v2057_v19 }
 0x86b   :  { %2108 = vmatpush.msrb.mxu3 %v2054_v31 }
 0x86d   :  { %2109 = vmatpush.msrb.mxu3 %v2051_v18 }
 0x86f   :  { %2110 = vmatpush.msrb.mxu3 %v2048_v4  ;;  %v8216_v4 = vperm.slane %v1712_v15, 2 }
 0x871   :  { %2111 = vmatpush.msrb.mxu3 %v2045_v11  ;;  %v2137_v11 = vpop.f32.mrf.mxu0 }
 0x872   :  { %v2138_v42 = vadd.f32 %v2137_v11, %v8216_v4 }
 0x873   :  { %2112 = vmatpush.msrb.mxu3 %v2042_v48 }
 0x875   :  { %2113 = vmatpush.msrb.mxu3 %v2039_v14  ;;  %v2010_v14 = vadd.f32 %v2009_v57, %v8214_v62 }
 0x877   :  { %2114 = vmatpush.msrb.mxu3 %v2036_v56 }
 0x879   :  { %2115 = vmatpush.msrb.mxu3 %v2033_v2 }
 0x8dd   :  { %v1809_v6 = vpop.f32.mrf.mxu3 }
 0x8de   :  { %1948 = vmatmul.f32.vlgmr.msrb.gmra.mxu1 %v1809_v6  ;;  %1988 = vmatmul.f32.vlgmr.msra.gmra.mxu3 %v1809_v6 }
 0x8df   :  { %2203 = vmatpush.msrb.mxu1 %v2202_v43 }
 0x8e1   :  { %2204 = vmatpush.msrb.mxu1 %v2201_v27 }
 0x8e3   :  { %2205 = vmatpush.msrb.mxu1 %v2200_v40 }
 0x8e5   :  { %2206 = vmatpush.msrb.mxu1 %v2199_v12 }
 0x8e6   :  { %2028 = vmatmul.f32.vlgmr.msra.gmra.mxu1 %v1809_v6  ;;  %2116 = vmatmul.f32.vlgmr.msrb.gmra.mxu3 %v7918_v52 }
 0x8e7   :  { %2207 = vmatpush.msrb.mxu1 %v2198_v16 }
 0x8e9   :  { %2208 = vmatpush.msrb.mxu1 %v2197_v24 }
 0x8eb   :  { %2209 = vmatpush.msrb.mxu1 %v2196_v28 }
 0x8ed   :  { %2210 = vmatpush.msrb.mxu1 %v2195_v60 }
 0x8ef   :  { %2211 = vmatpush.msrb.mxu1 %v2194_v22 }
 0x8f1   :  { %2212 = vmatpush.msrb.mxu1 %v2193_v39 }
 0x8f3   :  { %2213 = vmatpush.msrb.mxu1 %v2192_v55 }
 0x8f5   :  { %2214 = vmatpush.msrb.mxu1 %v2191_v59 }
 0x8f7   :  { %2215 = vmatpush.msrb.mxu1 %v2190_v63 }
 0x8f9   :  { %2216 = vmatpush.msrb.mxu1 %v2189_v10 }
 0x8fb   :  { %2217 = vmatpush.msrb.mxu1 %v2188_v61 }
 0x8fd   :  { %2218 = vmatpush.msrb.mxu1 %v2187_v45 }
 0x95b   :  { %v1949_v34 = vpop.f32.mrf.mxu1 }
 0x95c   :  { %v1950_v35 = vadd.f32 %v1949_v34, %v1930_v5 }
 0x95e   :  { %v2140_v17 = vadd.f32 %v2098_v54, %v1950_v35 }
 0x960   :  { %v6332_v9 = vmul.f32 -1.442695, %v2140_v17  ;;  %v8227_v17 = vld [vmem:[%s11164_s15] ss:$0 sm:$0xff] }
 0x961   :  { %v1989_v7 = vpop.f32.mrf.mxu3 }
 0x962   :  { %6504 = vpow2.f32 %v6332_v9  ;;  %v1990_v20 = vadd.f32 %v1989_v7, %v1970_v1 }
 0x963   :  { %v2029_v49 = vpop.f32.mrf.mxu1 }
 0x964   :  { %v2030_v25 = vadd.f32 %v2029_v49, %v2010_v14 }
 0x968   :  { %v6505_v13 = vpop.eup %6504 }
 0x969   :  { %v2144_v3 = vadd.f32 1.0, %v6505_v13  ;;  %v2117_v8 = vpop.f32.mrf.mxu3 }
 0x96a   :  { %v2118_v32 = vadd.f32 %v2117_v8, %v8197_v44 }
 0x96b   :  { %6506 = vrcp.f32 %v2144_v3  ;;  %v2156_v29 = vand.u32 2147483648, %v2144_v3  ;;  %v2154_v18 = vand.u32 2147483647, %v2144_v3  ;;  %vm2150_vm1 = vweird.f32 %v2144_v3 }
 0x96c   :  { %v2160_v38 = vadd.f32 %v2118_v32, %v1990_v20 }
 0x96d   :  { %v2157_v48 = vor.u32 1.1754944e-38, %v2156_v29  ;;  %vm2155_vm3 = vcmp.eq.f32.partialorder %v2154_v18, 8.507059e+37 }
 0x96e   :  { %v6333_v53 = vmul.f32 -1.442695, %v2160_v38 }
 0x970   :  { %6508 = vpow2.f32 %v6333_v53 }
 0x971   :  { %v6507_v36 = vpop.eup %6506 }
 0x972   :  { %v2146_v37 = vmul.f32 %v6507_v36, %v2144_v3  ;;  %vm2151_vm0 = vweird.f32 %v6507_v36 }
 0x973   :  { %vm2152_vm2 = vmor %vm2150_vm1, %vm2151_vm0 }
 0x974   :  { %v2147_v19 = vsub.f32 1.0, %v2146_v37 }
 0x976   :  { %v6509_v31 = vpop.eup %6508  ;;  %v2148_v33 = vmul.f32 %v6507_v36, %v2147_v19 }
 0x977   :  { %v2164_v46 = vadd.f32 1.0, %v6509_v31 }
 0x978   :  { %v2149_v47 = vadd.f32 %v6507_v36, %v2148_v33 }
 0x979   :  { %6510 = vrcp.f32 %v2164_v46  ;;  %v2176_v40 = vand.u32 2147483648, %v2164_v46  ;;  %v2174_v15 = vand.u32 2147483647, %v2164_v46  ;;  %vm2170_vm5 = vweird.f32 %v2164_v46 }
 0x97a   :  { %v2153_v0 = vsel %vm2152_vm2, %v6507_v36, %v2149_v47 }
 0x97b   :  { %v2158_v56 = vsel %vm2155_vm3, %v2157_v48, %v2153_v0  ;;  %v2177_v5 = vor.u32 1.1754944e-38, %v2176_v40  ;;  %vm2175_vm7 = vcmp.eq.f32.partialorder %v2174_v15, 8.507059e+37 }
 0x97c   :  { %v2180_v2 = vmul.f32 %v2158_v56, %v2138_v42 }
 0x97e   :  { %v2181_v43 = vadd.f32 %v2180_v2, %v2030_v25 }
 0x97f   :  { %v6511_v6 = vpop.eup %6510 }
 0x980   :  { %v2166_v21 = vmul.f32 %v6511_v6, %v2164_v46  ;;  %vm2171_vm4 = vweird.f32 %v6511_v6  ;;  %6512 = vtanh.f32 %v2181_v43 }
 0x981   :  { %vm2172_vm6 = vmor %vm2170_vm5, %vm2171_vm4 }
 0x982   :  { %v2167_v27 = vsub.f32 1.0, %v2166_v21 }
 0x984   :  { %v2168_v51 = vmul.f32 %v6511_v6, %v2167_v27 }
 0x986   :  { %v2169_v12 = vadd.f32 %v6511_v6, %v2168_v51  ;;  %v6513_v24 = vpop.eup %6512 }
 0x988   :  { %v2173_v41 = vsel %vm2172_vm6, %v6511_v6, %v2169_v12 }
 0x989   :  { %v2178_v16 = vsel %vm2175_vm7, %v2177_v5, %v2173_v41 }
 0x98a   :  { %v2183_v34 = vsub.f32 1.0, %v2178_v16  ;;  %v2185_v35 = vmul.f32 %v2178_v16, %v7918_v52 }
 0x98c   :  { %v2184_v54 = vmul.f32 %v6513_v24, %v2183_v34 }
 0x98e   :  { %v8221_v28 = vadd.f32 %v2185_v35, %v2184_v54 }
 0x990   :  { %2219 = vmatmul.f32.vlgmr.msrb.gmra.mxu1 %v8221_v28 }
 0xa0c   :  { %2228 = sbr.rel (%p6334_p0) target bundleno = 2579 (0xa13), region = 81 }
 0xa0d   :  { %v2220_v60 = vpop.f32.mrf.mxu1 }
 0xa0e   :  { %v2221_v9 = vadd.f32 %v8227_v17, %v2220_v60 }
 0xa10   :  { %2223 = vst [vmem:[#allocation14] sm:$0xff] %v2221_v9 }
 0xa11   :  { %v2229_v52 = vld [vmem:[%s11151_s2] sm:$0xff] }
 0xa12   :  { %2230 = vst [vmem:[#allocation6] sm:$0xff] %v2229_v52 }
 0xa13 PF:  { %s2231_s24 = sld [smem:[#allocation7]] }
 0xa19   :  { %p6335_p1 = scmp.ne.s32.totalorder %s2231_s24, 0 }
 0xa1b   :  { %2235 = sbr.rel (%p6335_p1) target bundleno = 3080 (0xc08), region = 85 }
 0xa20   :  { %2236 = vmax.xlane.f32.xlu0 %v2221_v9  ;;  %v2272_v59 = vld [vmem:[%s11158_s9 + $0x78] sm:$0xff]  ;;  %v2271_v63 = vld [vmem:[%s11158_s9 + $0x70] sm:$0xff]  ;;  %v2270_v13 = vld [vmem:[%s11158_s9 + $0x68] sm:$0xff]  ;;  %v6737_v0 = vmov 1.0  }
 0xa21   :  { %2273 = vmatpush.msra.mxu0 %v2272_v59  ;;  %v2269_v1 = vld [vmem:[%s11158_s9 + $0x60] sm:$0xff]  ;;  %v2268_v3 = vld [vmem:[%s11158_s9 + $0x58] sm:$0xff]  ;;  %v2267_v8 = vld [vmem:[%s11158_s9 + $0x50] sm:$0xff] }
 0xa22   :  { %v2266_v10 = vld [vmem:[%s11158_s9 + $0x48] sm:$0xff]  ;;  %v2265_v20 = vld [vmem:[%s11158_s9 + $0x40] sm:$0xff]  ;;  %v2264_v32 = vld [vmem:[%s11158_s9 + $0x38] sm:$0xff] }
 0xa23   :  { %2274 = vmatpush.msra.mxu0 %v2271_v63  ;;  %v2263_v61 = vld [vmem:[%s11158_s9 + $0x30] sm:$0xff]  ;;  %v2262_v38 = vld [vmem:[%s11158_s9 + $0x28] sm:$0xff]  ;;  %v2261_v45 = vld [vmem:[%s11158_s9 + $0x20] sm:$0xff] }
 0xa24   :  { %v2260_v57 = vld [vmem:[%s11158_s9 + $0x18] sm:$0xff]  ;;  %v2259_v29 = vld [vmem:[%s11158_s9 + $0x10] sm:$0xff]  ;;  %v2258_v31 = vld [vmem:[%s11158_s9 + $0x8] sm:$0xff] }
 0xa25   :  { %2275 = vmatpush.msra.mxu0 %v2270_v13  ;;  %v2257_v33 = vld [vmem:[%s11158_s9] sm:$0xff] }
 0xa27   :  { %2276 = vmatpush.msra.mxu0 %v2269_v1 }
 0xa29   :  { %2277 = vmatpush.msra.mxu0 %v2268_v3 }
 0xa2b   :  { %2278 = vmatpush.msra.mxu0 %v2267_v8 }
 0xa2d   :  { %2279 = vmatpush.msra.mxu0 %v2266_v10 }
 0xa2f   :  { %2280 = vmatpush.msra.mxu0 %v2265_v20 }
 0xa31   :  { %2281 = vmatpush.msra.mxu0 %v2264_v32 }
 0xa33   :  { %2282 = vmatpush.msra.mxu0 %v2263_v61 }
 0xa35   :  { %2283 = vmatpush.msra.mxu0 %v2262_v38 }
 0xa37   :  { %2284 = vmatpush.msra.mxu0 %v2261_v45 }
 0xa39   :  { %2285 = vmatpush.msra.mxu0 %v2260_v57 }
 0xa3b   :  { %2286 = vmatpush.msra.mxu0 %v2259_v29 }
 0xa3d   :  { %2287 = vmatpush.msra.mxu0 %v2258_v31 }
 0xa3f   :  { %2288 = vmatpush.msra.mxu0 %v2257_v33 }
 0xa93   :  { %v2237_v7 = vpop.xlane.xlu0 %2236 }
 0xa94   :  { %vm2238_vm8 = vcmp.ge.f32.partialorder %v2221_v9, %v2237_v7 }
 0xa95   :  { %v2239_v22 = vsel %vm2238_vm8, %v7935_v58, 128 }
 0xa96   :  { %v2241_v39 = vshra.s32 %v2239_v22, 16  ;;  %v2240_v53 = vand.u32 65535, %v2239_v22 }
 0xa98   :  { %v2243_v55 = vcvt.s32.f32 %v2241_v39  ;;  %v2242_v37 = vcvt.s32.f32 %v2240_v53 }
 0xa9a   :  { %2244 = vmin.xlane.f32.xlu0 %v2243_v55 }
 0xb0d   :  { %v2245_v36 = vpop.xlane.xlu0 %2244 }
 0xb0e   :  { %vm2246_vm9 = vcmp.eq.f32.partialorder %v2243_v55, %v2245_v36  ;;  %v2251_v18 = vcvt.f32.s32 %v2245_v36 }
 0xb0f   :  { %v2247_v19 = vsel %vm2246_vm9, %v2242_v37, inf }
 0xb10   :  { %2248 = vmin.xlane.f32.xlu1 %v2247_v19  ;;  %v2252_v11 = vshll.u32 %v2251_v18, 16 }
 0xb83   :  { %v2249_v46 = vpop.xlane.xlu1 %2248 }
 0xb84   :  { %v2250_v47 = vcvt.f32.s32 %v2249_v46 }
 0xb86   :  { %v2253_v48 = vadd.s32 %v2252_v11, %v2250_v47 }
 0xb88   :  { %vm2254_vm10 = vcmp.eq.s32.totalorder %v7935_v58, %v2253_v48 }
 0xb89   :  { %6337 = vmatmul.msk.f32.vlgmr.msra.gmra.mxu0 %vm2254_vm10, %v6737_v0 }
 0xc06   :  { %v2290_v14 = vpop.f32.mrf.mxu0 }
 0xc07   :  { %2293 = vst [vmem:[#allocation6] sm:$0xff] %v2290_v14 }
 0xc08 PF:  { %v2310_v42 = vld [vmem:[#allocation4 + $0x50] sm:$0xff]  ;;  %v2309_v56 = vld [vmem:[#allocation4 + $0x60] sm:$0xff]  ;;  %v2308_v49 = vld [vmem:[#allocation4 + $0x8] sm:$0xff]  ;;  %s6340_s27 = sld [smem:[#allocation7 + $0x1]] }
 0xc09   :  { %2311 = vmatpush.msra.mxu0 %v2310_v42  ;;  %v2307_v2 = vld [vmem:[#allocation4] sm:$0xff]  ;;  %v2306_v6 = vld [vmem:[#allocation4 + $0x58] sm:$0xff]  ;;  %v2301_v40 = vld [vmem:[#allocation4 + $0x70] sm:$0xff] }
 0xc0a   :  { %v2305_v25 = vld [vmem:[#allocation4 + $0x18] sm:$0xff]  ;;  %v2303_v43 = vld [vmem:[#allocation4 + $0x20] sm:$0xff]  ;;  %v2300_v51 = vld [vmem:[#allocation4 + $0x30] sm:$0xff] }
 0xc0b   :  { %2312 = vmatpush.msra.mxu0 %v2309_v56  ;;  %v2304_v21 = vld [vmem:[#allocation4 + $0x78] sm:$0xff]  ;;  %v2299_v15 = vld [vmem:[#allocation4 + $0x48] sm:$0xff]  ;;  %v2298_v12 = vld [vmem:[#allocation4 + $0x40] sm:$0xff] }
 0xc0c   :  { %v2302_v27 = vld [vmem:[#allocation4 + $0x38] sm:$0xff]  ;;  %v2297_v5 = vld [vmem:[#allocation4 + $0x10] sm:$0xff]  ;;  %v2296_v41 = vld [vmem:[#allocation4 + $0x68] sm:$0xff] }
 0xc0d   :  { %2313 = vmatpush.msra.mxu0 %v2308_v49  ;;  %v2295_v16 = vld [vmem:[#allocation4 + $0x28] sm:$0xff]  ;;  %v2356_v35 = vld [vmem:[#allocation3 + $0x78] sm:$0xff]  ;;  %v2355_v60 = vld [vmem:[#allocation3 + $0x70] sm:$0xff] }
 0xc0e   :  { %v2357_v54 = vld [vmem:[#allocation3 + $0x28] sm:$0xff]  ;;  %v2354_v9 = vld [vmem:[#allocation3 + $0x60] sm:$0xff]  ;;  %v2353_v52 = vld [vmem:[#allocation3 + $0x38] sm:$0xff]  ;;  %p6341_p2 = scmp.le.s32.totalorder %s6340_s27, 0 }
 0xc0f   :  { %2314 = vmatpush.msra.mxu0 %v2307_v2  ;;  %2358 = vmatpush.msra.mxu1 %v2357_v54  ;;  %v2352_v7 = vld [vmem:[#allocation3 + $0x10] sm:$0xff]  ;;  %v2351_v22 = vld [vmem:[#allocation3 + $0x20] sm:$0xff]  ;;  %v2349_v55 = vld [vmem:[#allocation3 + $0x48] sm:$0xff] }
 0xc10   :  { %v2350_v39 = vld [vmem:[#allocation3 + $0x40] sm:$0xff]  ;;  %v2348_v59 = vld [vmem:[#allocation3 + $0x8] sm:$0xff]  ;;  %v2346_v10 = vld [vmem:[#allocation3 + $0x50] sm:$0xff] }
 0xc11   :  { %2315 = vmatpush.msra.mxu0 %v2306_v6  ;;  %2359 = vmatpush.msra.mxu1 %v2356_v35  ;;  %v2347_v63 = vld [vmem:[#allocation3 + $0x68] sm:$0xff]  ;;  %v2345_v20 = vld [vmem:[#allocation3 + $0x18] sm:$0xff]  ;;  %v2343_v61 = vld [vmem:[#allocation3] sm:$0xff] }
 0xc12   :  { %v2344_v32 = vld [vmem:[#allocation3 + $0x58] sm:$0xff]  ;;  %v2342_v38 = vld [vmem:[#allocation3 + $0x30] sm:$0xff]  ;;  %v2427_v45 = vld [vmem:[%s11159_s10 + $0x168] sm:$0xff] }
 0xc13   :  { %2316 = vmatpush.msra.mxu0 %v2305_v25  ;;  %2360 = vmatpush.msra.mxu1 %v2355_v60  ;;  %v2424_v57 = vld [vmem:[%s11159_s10 + $0x150] sm:$0xff]  ;;  %v2421_v53 = vld [vmem:[%s11159_s10 + $0x138] sm:$0xff]  ;;  %v2475_v37 = vld [vmem:[%s11159_s10 + $0x2e8] sm:$0xff] }
 0xc14   :  { %2478 = vmatpush.msra.mxu2 %v2427_v45  ;;  %v2428_v36 = vld [vmem:[%s11159_s10 + $0x170] sm:$0xff]  ;;  %v2425_v19 = vld [vmem:[%s11159_s10 + $0x158] sm:$0xff]  ;;  %2498 = vmatpush.msra.mxu3 %v2475_v37  ;;  %v2422_v33 = vld [vmem:[%s11159_s10 + $0x140] sm:$0xff] }
 0xc15   :  { %2317 = vmatpush.msra.mxu0 %v2304_v21  ;;  %2361 = vmatpush.msra.mxu1 %v2354_v9  ;;  %v2476_v29 = vld [vmem:[%s11159_s10 + $0x2f0] sm:$0xff]  ;;  %v2418_v18 = vld [vmem:[%s11159_s10 + $0x120] sm:$0xff]  ;;  %v2473_v46 = vld [vmem:[%s11159_s10 + $0x2d8] sm:$0xff] }
 0xc16   :  { %2479 = vmatpush.msra.mxu2 %v2424_v57  ;;  %v2472_v31 = vld [vmem:[%s11159_s10 + $0x2d0] sm:$0xff]  ;;  %v2469_v11 = vld [vmem:[%s11159_s10 + $0x2b8] sm:$0xff]  ;;  %v2419_v47 = vld [vmem:[%s11159_s10 + $0x128] sm:$0xff] }
 0xc17   :  { %2318 = vmatpush.msra.mxu0 %v2303_v43  ;;  %2362 = vmatpush.msra.mxu1 %v2353_v52  ;;  %v2470_v48 = vld [vmem:[%s11159_s10 + $0x2c0] sm:$0xff]  ;;  %v2415_v0 = vld [vmem:[%s11159_s10 + $0x108] sm:$0xff]  ;;  %v2416_v42 = vld [vmem:[%s11159_s10 + $0x110] sm:$0xff] }
 0xc18   :  { %2480 = vmatpush.msra.mxu2 %v2421_v53  ;;  %2499 = vmatpush.msra.mxu3 %v2472_v31  ;;  %v2466_v14 = vld [vmem:[%s11159_s10 + $0x2a0] sm:$0xff]  ;;  %v2467_v56 = vld [vmem:[%s11159_s10 + $0x2a8] sm:$0xff]  ;;  %v2412_v49 = vld [vmem:[%s11159_s10 + $0xf0] sm:$0xff] }
 0xc19   :  { %2319 = vmatpush.msra.mxu0 %v2302_v27  ;;  %2363 = vmatpush.msra.mxu1 %v2352_v7  ;;  %v2463_v2 = vld [vmem:[%s11159_s10 + $0x288] sm:$0xff]  ;;  %v2413_v6 = vld [vmem:[%s11159_s10 + $0xf8] sm:$0xff]  ;;  %v2464_v25 = vld [vmem:[%s11159_s10 + $0x290] sm:$0xff] }
 0xc1a   :  { %2481 = vmatpush.msra.mxu2 %v2418_v18  ;;  %2500 = vmatpush.msra.mxu3 %v2469_v11  ;;  %v2409_v21 = vld [vmem:[%s11159_s10 + $0xd8] sm:$0xff]  ;;  %v2460_v43 = vld [vmem:[%s11159_s10 + $0x270] sm:$0xff]  ;;  %v2410_v27 = vld [vmem:[%s11159_s10 + $0xe0] sm:$0xff] }
 0xc1b   :  { %2320 = vmatpush.msra.mxu0 %v2301_v40  ;;  %2364 = vmatpush.msra.mxu1 %v2351_v22  ;;  %v2461_v40 = vld [vmem:[%s11159_s10 + $0x278] sm:$0xff]  ;;  %v2400_v54 = vld [vmem:[%s11159_s10 + $0x90] sm:$0xff]  ;;  %v2451_v35 = vld [vmem:[%s11159_s10 + $0x228] sm:$0xff] }
 0xc1c   :  { %2482 = vmatpush.msra.mxu2 %v2415_v0  ;;  %2501 = vmatpush.msra.mxu3 %v2466_v14  ;;  %v2401_v60 = vld [vmem:[%s11159_s10 + $0x98] sm:$0xff]  ;;  %v2452_v9 = vld [vmem:[%s11159_s10 + $0x230] sm:$0xff]  ;;  %v2398_v22 = vld [vmem:[%s11159_s10 + $0x80] sm:$0xff] }
 0xc1d   :  { %2321 = vmatpush.msra.mxu0 %v2300_v51  ;;  %2365 = vmatpush.msra.mxu1 %v2350_v39  ;;  %v2406_v51 = vld [vmem:[%s11159_s10 + $0xc0] sm:$0xff]  ;;  %v2397_v52 = vld [vmem:[%s11159_s10 + $0x78] sm:$0xff]  ;;  %v2448_v7 = vld [vmem:[%s11159_s10 + $0x210] sm:$0xff] }
 0xc1e   :  { %2483 = vmatpush.msra.mxu2 %v2412_v49  ;;  %2502 = vmatpush.msra.mxu3 %v2463_v2  ;;  %v2449_v39 = vld [vmem:[%s11159_s10 + $0x218] sm:$0xff]  ;;  %v2440_v57 = vld [vmem:[%s11159_s10 + $0x1d0] sm:$0xff]  ;;  %v2386_v37 = vld [vmem:[%s11159_s10 + $0x20] sm:$0xff] }
 0xc1f   :  { %2322 = vmatpush.msra.mxu0 %v2299_v15  ;;  %2366 = vmatpush.msra.mxu1 %v2349_v55  ;;  %v2457_v15 = vld [vmem:[%s11159_s10 + $0x258] sm:$0xff]  ;;  %v2394_v55 = vld [vmem:[%s11159_s10 + $0x60] sm:$0xff]  ;;  %v2383_v11 = vld [vmem:[%s11159_s10 + $0x8] sm:$0xff] }
 0xc20   :  { %2484 = vmatpush.msra.mxu2 %v2409_v21  ;;  %2503 = vmatpush.msra.mxu3 %v2460_v43  ;;  %v2389_v45 = vld [vmem:[%s11159_s10 + $0x38] sm:$0xff]  ;;  %v2643_v0 = vld [vmem:[#allocation12 + $0x168] sm:$0xff]  ;;  %v2431_v14 = vld [vmem:[%s11159_s10 + $0x188] sm:$0xff] }
 0xc21   :  { %2323 = vmatpush.msra.mxu0 %v2298_v12  ;;  %2367 = vmatpush.msra.mxu1 %v2348_v59  ;;  %v2407_v12 = vld [vmem:[%s11159_s10 + $0xc8] sm:$0xff]  ;;  %v2445_v59 = vld [vmem:[%s11159_s10 + $0x1f8] sm:$0xff]  ;;  %v2637_v21 = vld [vmem:[#allocation12 + $0x138] sm:$0xff] }
 0xc22   :  { %2485 = vmatpush.msra.mxu2 %v2406_v51  ;;  %2504 = vmatpush.msra.mxu3 %v2457_v15  ;;  %v2385_v53 = vld [vmem:[%s11159_s10 + $0x18] sm:$0xff]  ;;  %v2641_v43 = vld [vmem:[#allocation12 + $0x158] sm:$0xff]  ;;  %v2634_v51 = vld [vmem:[#allocation12 + $0x120] sm:$0xff] }
 0xc23   :  { %2324 = vmatpush.msra.mxu0 %v2297_v5  ;;  %2368 = vmatpush.msra.mxu1 %v2347_v63  ;;  %v2458_v5 = vld [vmem:[%s11159_s10 + $0x260] sm:$0xff]  ;;  %v2395_v63 = vld [vmem:[%s11159_s10 + $0x68] sm:$0xff]  ;;  %v2433_v31 = vld [vmem:[%s11159_s10 + $0x198] sm:$0xff] }
 0xc24   :  { %v2429_v18 = vld [vmem:[%s11159_s10 + $0x178] sm:$0xff]  ;;  %v2638_v15 = vld [vmem:[#allocation12 + $0x140] sm:$0xff] }
 0xc25   :  { %2325 = vmatpush.msra.mxu0 %v2296_v41  ;;  %2369 = vmatpush.msra.mxu1 %v2346_v10  ;;  %v2403_v41 = vld [vmem:[%s11159_s10 + $0xa8] sm:$0xff]  ;;  %v2442_v10 = vld [vmem:[%s11159_s10 + $0x1e0] sm:$0xff]  ;;  %v2640_v49 = vld [vmem:[#allocation12 + $0x150] sm:$0xff] }
 0xc26   :  { %2486 = vmatpush.msra.mxu2 %v2403_v41  ;;  %v2644_v2 = vld [vmem:[#allocation12 + $0x170] sm:$0xff]  ;;  %v2631_v41 = vld [vmem:[#allocation12 + $0x108] sm:$0xff] }
 0xc27   :  { %2326 = vmatpush.msra.mxu0 %v2295_v16  ;;  %2370 = vmatpush.msra.mxu1 %v2345_v20  ;;  %v2454_v16 = vld [vmem:[%s11159_s10 + $0x240] sm:$0xff]  ;;  %v2392_v20 = vld [vmem:[%s11159_s10 + $0x50] sm:$0xff] }
 0xc28   :  { %2327 = vmatmul.f32.vlgmr.msra.gmra.mxu0 %v8221_v28  ;;  %2505 = vmatpush.msra.mxu3 %v2454_v16  ;;  %v2635_v16 = vld [vmem:[#allocation12 + $0x128] sm:$0xff] }
 0xc29   :  { %2371 = vmatpush.msra.mxu1 %v2344_v32  ;;  %2518 = vmatpush.msrb.mxu0 %v2428_v36  ;;  %v2443_v32 = vld [vmem:[%s11159_s10 + $0x1e8] sm:$0xff]  ;;  %v2436_v36 = vld [vmem:[%s11159_s10 + $0x1b0] sm:$0xff] }
 0xc2a   :  { %2487 = vmatpush.msra.mxu2 %v2400_v54  ;;  %2506 = vmatpush.msra.mxu3 %v2451_v35  ;;  %v2628_v54 = vld [vmem:[#allocation12 + $0xf0] sm:$0xff] }
 0xc2b   :  { %2372 = vmatpush.msra.mxu1 %v2343_v61  ;;  %2519 = vmatpush.msrb.mxu0 %v2425_v19  ;;  %v2388_v61 = vld [vmem:[%s11159_s10 + $0x30] sm:$0xff]  ;;  %v2437_v19 = vld [vmem:[%s11159_s10 + $0x1b8] sm:$0xff] }
 0xc2c   :  { %2488 = vmatpush.msra.mxu2 %v2397_v52  ;;  %2507 = vmatpush.msra.mxu3 %v2448_v7  ;;  %v2632_v35 = vld [vmem:[#allocation12 + $0x110] sm:$0xff]  ;;  %v2625_v52 = vld [vmem:[#allocation12 + $0xd8] sm:$0xff] }
 0xc2d   :  { %2373 = vmatpush.msra.mxu1 %v2342_v38  ;;  %2520 = vmatpush.msrb.mxu0 %v2422_v33  ;;  %v2439_v38 = vld [vmem:[%s11159_s10 + $0x1c8] sm:$0xff]  ;;  %v2629_v7 = vld [vmem:[#allocation12 + $0xf8] sm:$0xff] }
 0xc2e   :  { %2489 = vmatpush.msra.mxu2 %v2394_v55  ;;  %2508 = vmatpush.msra.mxu3 %v2445_v59  ;;  %v2622_v55 = vld [vmem:[#allocation12 + $0xc0] sm:$0xff] }
 0xc2f   :  { %2538 = vmatpush.msrb.mxu1 %v2476_v29  ;;  %2521 = vmatpush.msrb.mxu0 %v2419_v47  ;;  %v2382_v29 = vld [vmem:[%s11159_s10] sm:$0xff]  ;;  %v2626_v59 = vld [vmem:[#allocation12 + $0xe0] sm:$0xff] }
 0xc30   :  { %2509 = vmatpush.msra.mxu3 %v2442_v10  ;;  %v2434_v47 = vld [vmem:[%s11159_s10 + $0x1a0] sm:$0xff]  ;;  %v2619_v10 = vld [vmem:[#allocation12 + $0xa8] sm:$0xff] }
 0xc31   :  { %2539 = vmatpush.msrb.mxu1 %v2473_v46  ;;  %2522 = vmatpush.msrb.mxu0 %v2416_v42  ;;  %v2423_v42 = vld [vmem:[%s11159_s10 + $0x148] sm:$0xff] }
 0xc32   :  { %2510 = vmatpush.msra.mxu3 %v2439_v38  ;;  %v2616_v38 = vld [vmem:[#allocation12 + $0x90] sm:$0xff] }
 0xc33   :  { %2540 = vmatpush.msrb.mxu1 %v2470_v48  ;;  %2523 = vmatpush.msrb.mxu0 %v2413_v6  ;;  %v2426_v48 = vld [vmem:[%s11159_s10 + $0x160] sm:$0xff]  ;;  %v2420_v6 = vld [vmem:[%s11159_s10 + $0x130] sm:$0xff] }
 0xc34   :  { %2511 = vmatpush.msra.mxu3 %v2436_v36  ;;  %v2613_v36 = vld [vmem:[#allocation12 + $0x78] sm:$0xff] }
 0xc35   :  { %2541 = vmatpush.msrb.mxu1 %v2467_v56  ;;  %2524 = vmatpush.msrb.mxu0 %v2410_v27  ;;  %v2477_v56 = vld [vmem:[%s11159_s10 + $0x2f8] sm:$0xff] }
 0xc36   :  { %2512 = vmatpush.msra.mxu3 %v2433_v31  ;;  %v2417_v27 = vld [vmem:[%s11159_s10 + $0x118] sm:$0xff]  ;;  %v2610_v31 = vld [vmem:[#allocation12 + $0x60] sm:$0xff] }
 0xc37   :  { %2542 = vmatpush.msrb.mxu1 %v2464_v25  ;;  %2525 = vmatpush.msrb.mxu0 %v2407_v12  ;;  %v2474_v25 = vld [vmem:[%s11159_s10 + $0x2e0] sm:$0xff] }
 0xc38   :  { %v2414_v12 = vld [vmem:[%s11159_s10 + $0x100] sm:$0xff] }
 0xc39   :  { %2543 = vmatpush.msrb.mxu1 %v2461_v40  ;;  %v2471_v40 = vld [vmem:[%s11159_s10 + $0x2c8] sm:$0xff] }
 0xc3b   :  { %2544 = vmatpush.msrb.mxu1 %v2458_v5  ;;  %v2468_v5 = vld [vmem:[%s11159_s10 + $0x2b0] sm:$0xff] }
 0xca5   :  { %v2328_v34 = vpop.f32.mrf.mxu0 }
 0xca6   :  { %v2329_v24 = vadd.f32 %v2328_v34, %v7991_v50  ;;  %v2404_v34 = vld [vmem:[%s11159_s10 + $0xb0] sm:$0xff] }
 0xca7   :  { %2526 = vmatpush.msrb.mxu0 %v2404_v34  ;;  %v2411_v34 = vld [vmem:[%s11159_s10 + $0xe8] sm:$0xff] }
 0xca8   :  { %2331 = vmax.xlane.f32.xlu0 %v2329_v24 }
 0xca9   :  { %2527 = vmatpush.msrb.mxu0 %v2401_v60  ;;  %v2408_v60 = vld [vmem:[%s11159_s10 + $0xd0] sm:$0xff] }
 0xcab   :  { %2528 = vmatpush.msrb.mxu0 %v2398_v22  ;;  %v2405_v22 = vld [vmem:[%s11159_s10 + $0xb8] sm:$0xff] }
 0xcad   :  { %2529 = vmatpush.msrb.mxu0 %v2395_v63  ;;  %v2402_v63 = vld [vmem:[%s11159_s10 + $0xa0] sm:$0xff] }
 0xcaf   :  { %2530 = vmatpush.msrb.mxu0 %v2392_v20  ;;  %v2623_v20 = vld [vmem:[#allocation12 + $0xc8] sm:$0xff] }
 0xcb1   :  { %2531 = vmatpush.msrb.mxu0 %v2389_v45  ;;  %v2620_v45 = vld [vmem:[#allocation12 + $0xb0] sm:$0xff] }
 0xcb3   :  { %2532 = vmatpush.msrb.mxu0 %v2386_v37  ;;  %v2617_v37 = vld [vmem:[#allocation12 + $0x98] sm:$0xff] }
 0xcb5   :  { %2533 = vmatpush.msrb.mxu0 %v2383_v11  ;;  %v2444_v11 = vld [vmem:[%s11159_s10 + $0x1f0] sm:$0xff] }
 0xcb7   :  { %2646 = vmatpush.msra.mxu0 %v2643_v0  ;;  %v2645_v0 = vld [vmem:[#allocation12 + $0x178] sm:$0xff] }
 0xcb9   :  { %2647 = vmatpush.msra.mxu0 %v2640_v49  ;;  %v2438_v49 = vld [vmem:[%s11159_s10 + $0x1c0] sm:$0xff] }
 0xcbb   :  { %2648 = vmatpush.msra.mxu0 %v2637_v21  ;;  %v2435_v21 = vld [vmem:[%s11159_s10 + $0x1a8] sm:$0xff] }
 0xcbd   :  { %2649 = vmatpush.msra.mxu0 %v2634_v51  ;;  %v2432_v51 = vld [vmem:[%s11159_s10 + $0x190] sm:$0xff] }
 0xcbf   :  { %2650 = vmatpush.msra.mxu0 %v2631_v41  ;;  %v2627_v41 = vld [vmem:[#allocation12 + $0xe8] sm:$0xff] }
 0xcc1   :  { %2651 = vmatpush.msra.mxu0 %v2628_v54  ;;  %v2615_v54 = vld [vmem:[#allocation12 + $0x88] sm:$0xff] }
 0xcc3   :  { %2652 = vmatpush.msra.mxu0 %v2625_v52  ;;  %v2603_v52 = vld [vmem:[#allocation12 + $0x28] sm:$0xff] }
 0xcc5   :  { %2653 = vmatpush.msra.mxu0 %v2622_v55 }
 0xcc7   :  { %2654 = vmatpush.msra.mxu0 %v2619_v10 }
 0xcc9   :  { %2655 = vmatpush.msra.mxu0 %v2616_v38 }
 0xccb   :  { %2656 = vmatpush.msra.mxu0 %v2613_v36 }
 0xccd   :  { %2657 = vmatpush.msra.mxu0 %v2610_v31 }
 0xd1b   :  { %v2332_v13 = vpop.xlane.xlu0 %2331 }
 0xd1c   :  { %v2333_v1 = vsub.f32 %v2329_v24, %v2332_v13  ;;  %v2455_v24 = vld [vmem:[%s11159_s10 + $0x248] sm:$0xff]  ;;  %v2446_v13 = vld [vmem:[%s11159_s10 + $0x200] sm:$0xff] }
 0xd1d   :  { %2545 = vmatpush.msrb.mxu1 %v2455_v24  ;;  %v2465_v24 = vld [vmem:[%s11159_s10 + $0x298] sm:$0xff] }
 0xd1e   :  { %v2334_v3 = vmul.f32 1.442695, %v2333_v1 }
 0xd1f   :  { %2546 = vmatpush.msrb.mxu1 %v2452_v9  ;;  %v2462_v9 = vld [vmem:[%s11159_s10 + $0x280] sm:$0xff] }
 0xd20   :  { %6515 = vpow2.f32 %v2334_v3  ;;  %v2391_v3 = vld [vmem:[%s11159_s10 + $0x48] sm:$0xff] }
 0xd21   :  { %2547 = vmatpush.msrb.mxu1 %v2449_v39  ;;  %2490 = vmatpush.msra.mxu2 %v2391_v3  ;;  %v2459_v39 = vld [vmem:[%s11159_s10 + $0x268] sm:$0xff]  ;;  %v2456_v3 = vld [vmem:[%s11159_s10 + $0x250] sm:$0xff] }
 0xd23   :  { %2548 = vmatpush.msrb.mxu1 %v2446_v13  ;;  %2491 = vmatpush.msra.mxu2 %v2388_v61  ;;  %v2399_v13 = vld [vmem:[%s11159_s10 + $0x88] sm:$0xff]  ;;  %v2453_v61 = vld [vmem:[%s11159_s10 + $0x238] sm:$0xff] }
 0xd25   :  { %2549 = vmatpush.msrb.mxu1 %v2443_v32  ;;  %2492 = vmatpush.msra.mxu2 %v2385_v53  ;;  %v2393_v32 = vld [vmem:[%s11159_s10 + $0x58] sm:$0xff]  ;;  %v2450_v53 = vld [vmem:[%s11159_s10 + $0x220] sm:$0xff] }
 0xd26   :  { %v8285_v8 = vpop.eup %6515 }
 0xd27   :  { %2336 = vadd.xlane.f32.xlu0 %v8285_v8  ;;  %2550 = vmatpush.msrb.mxu1 %v2440_v57  ;;  %v2390_v57 = vld [vmem:[%s11159_s10 + $0x40] sm:$0xff] }
 0xd28   :  { %2493 = vmatpush.msra.mxu2 %v2382_v29  ;;  %v2447_v29 = vld [vmem:[%s11159_s10 + $0x208] sm:$0xff] }
 0xd29   :  { %2551 = vmatpush.msrb.mxu1 %v2437_v19  ;;  %v2387_v19 = vld [vmem:[%s11159_s10 + $0x28] sm:$0xff] }
 0xd2a   :  { %2558 = vmatpush.msrb.mxu2 %v2429_v18  ;;  %v2294_v18 = vld [vmem:[#allocation6] sm:$0xff] }
 0xd2b   :  { %2552 = vmatpush.msrb.mxu1 %v2434_v47  ;;  %2494 = vmatmul.f32.vlgmr.msra.gmra.mxu2 %v2294_v18  ;;  %v2607_v47 = vld [vmem:[#allocation12 + $0x48] sm:$0xff] }
 0xd2c   :  { %2559 = vmatpush.msrb.mxu2 %v2426_v48  ;;  %v2611_v48 = vld [vmem:[#allocation12 + $0x68] sm:$0xff]  ;;  %2534 = vmatmul.f32.vlgmr.msrb.gmra.mxu0 %v2294_v18 }
 0xd2d   :  { %2553 = vmatpush.msrb.mxu1 %v2431_v14  ;;  %2658 = vmatpush.msra.mxu0 %v2607_v47  ;;  %v2604_v14 = vld [vmem:[#allocation12 + $0x30] sm:$0xff] }
 0xd2e   :  { %2560 = vmatpush.msrb.mxu2 %v2423_v42  ;;  %v2608_v42 = vld [vmem:[#allocation12 + $0x50] sm:$0xff] }
 0xd2f   :  { %2659 = vmatpush.msra.mxu0 %v2604_v14  ;;  %v2756_v14 = vld [vmem:[%s11163_s14 + $0x18] sm:$0xff] }
 0xd30   :  { %2561 = vmatpush.msrb.mxu2 %v2420_v6  ;;  %v2605_v6 = vld [vmem:[#allocation12 + $0x38] sm:$0xff] }
 0xd32   :  { %2562 = vmatpush.msrb.mxu2 %v2417_v27  ;;  %v2602_v27 = vld [vmem:[#allocation12 + $0x20] sm:$0xff] }
 0xd34   :  { %2563 = vmatpush.msrb.mxu2 %v2414_v12  ;;  %v2633_v12 = vld [vmem:[#allocation12 + $0x118] sm:$0xff] }
 0xd36   :  { %2564 = vmatpush.msrb.mxu2 %v2411_v34  ;;  %v2621_v34 = vld [vmem:[#allocation12 + $0xb8] sm:$0xff] }
 0xd38   :  { %2565 = vmatpush.msrb.mxu2 %v2408_v60  ;;  %v2609_v60 = vld [vmem:[#allocation12 + $0x58] sm:$0xff] }
 0xd3a   :  { %2566 = vmatpush.msrb.mxu2 %v2405_v22 }
 0xd3c   :  { %2567 = vmatpush.msrb.mxu2 %v2402_v63  ;;  %v2766_v63 = vld [vmem:[%s11163_s14 + $0x68] sm:$0xff] }
 0xd3e   :  { %2568 = vmatpush.msrb.mxu2 %v2399_v13  ;;  %v2765_v13 = vld [vmem:[%s11163_s14 + $0x60] sm:$0xff] }
 0xd9a   :  { %v2337_v1 = vpop.xlane.xlu0 %2336 }
 0xd9b   :  { %6517 = vrcp.f32 %v2337_v1  ;;  %v2396_v1 = vld [vmem:[%s11159_s10 + $0x70] sm:$0xff] }
 0xd9c   :  { %2569 = vmatpush.msrb.mxu2 %v2396_v1  ;;  %v2764_v1 = vld [vmem:[%s11163_s14 + $0x58] sm:$0xff] }
 0xd9e   :  { %2570 = vmatpush.msrb.mxu2 %v2393_v32  ;;  %v2762_v32 = vld [vmem:[%s11163_s14 + $0x48] sm:$0xff] }
 0xda0   :  { %2571 = vmatpush.msrb.mxu2 %v2390_v57 }
 0xda1   :  { %v6518_v33 = vpop.eup %6517 }
 0xda2   :  { %v2339_v46 = vmul.f32 %v6518_v33, %v8285_v8  ;;  %v2430_v8 = vld [vmem:[%s11159_s10 + $0x180] sm:$0xff]  ;;  %2572 = vmatpush.msrb.mxu2 %v2387_v19  ;;  %v2614_v33 = vld [vmem:[#allocation12 + $0x80] sm:$0xff]  ;;  %v2760_v19 = vld [vmem:[%s11163_s14 + $0x38] sm:$0xff] }
 0xda3   :  { %2513 = vmatpush.msra.mxu3 %v2430_v8  ;;  %v2441_v8 = vld [vmem:[%s11159_s10 + $0x1d8] sm:$0xff] }
 0xda4   :  { %2341 = vst [vmem:[#allocation15 + $0x8] sm:$0xff] %v2339_v46  ;;  %2374 = vmatmul.f32.vlgmr.msra.gmra.mxu1 %v2339_v46  ;;  %v2384_v46 = vld [vmem:[%s11159_s10 + $0x10] sm:$0xff] }
 0xda5   :  { %2578 = vmatpush.msrb.mxu3 %v2477_v56  ;;  %2666 = vmatpush.msra.mxu1 %v2644_v2  ;;  %v2642_v56 = vld [vmem:[#allocation12 + $0x160] sm:$0xff]  ;;  %v2601_v2 = vld [vmem:[#allocation12 + $0x18] sm:$0xff] }
 0xda6   :  { %2573 = vmatpush.msrb.mxu2 %v2384_v46  ;;  %2660 = vmatpush.msra.mxu0 %v2601_v2  ;;  %v2759_v46 = vld [vmem:[%s11163_s14 + $0x30] sm:$0xff]  ;;  %v2753_v2 = vld [vmem:[%s11163_s14] sm:$0xff] }
 0xda7   :  { %2579 = vmatpush.msrb.mxu3 %v2474_v25  ;;  %2667 = vmatpush.msra.mxu1 %v2641_v43  ;;  %v2639_v25 = vld [vmem:[#allocation12 + $0x148] sm:$0xff]  ;;  %v2598_v43 = vld [vmem:[#allocation12] sm:$0xff] }
 0xda8   :  { %2686 = vmatpush.msra.mxu2 %v2645_v0  ;;  %2661 = vmatpush.msra.mxu0 %v2598_v43  ;;  %v2757_v0 = vld [vmem:[%s11163_s14 + $0x20] sm:$0xff] }
 0xda9   :  { %2580 = vmatpush.msrb.mxu3 %v2471_v40  ;;  %2668 = vmatpush.msra.mxu1 %v2638_v15  ;;  %v2636_v40 = vld [vmem:[#allocation12 + $0x130] sm:$0xff]  ;;  %v2599_v15 = vld [vmem:[#allocation12 + $0x8] sm:$0xff]  ;;  %v2535_v55 = vpop.f32.mrf.mxu0 }
 0xdaa   :  { %2687 = vmatpush.msra.mxu2 %v2642_v56  ;;  %2662 = vmatmul.f32.vlgmr.msra.gmra.mxu0 %v8221_v28  ;;  %v2754_v56 = vld [vmem:[%s11163_s14 + $0x8] sm:$0xff] }
 0xdab   :  { %2581 = vmatpush.msrb.mxu3 %v2468_v5  ;;  %2669 = vmatpush.msra.mxu1 %v2635_v16  ;;  %v2630_v5 = vld [vmem:[#allocation12 + $0x100] sm:$0xff]  ;;  %v2624_v16 = vld [vmem:[#allocation12 + $0xd0] sm:$0xff] }
 0xdac   :  { %2688 = vmatpush.msra.mxu2 %v2639_v25 }
 0xdad   :  { %2582 = vmatpush.msrb.mxu3 %v2465_v24  ;;  %2670 = vmatpush.msra.mxu1 %v2632_v35  ;;  %v2618_v24 = vld [vmem:[#allocation12 + $0xa0] sm:$0xff]  ;;  %v2612_v35 = vld [vmem:[#allocation12 + $0x70] sm:$0xff] }
 0xdae   :  { %2689 = vmatpush.msra.mxu2 %v2636_v40  ;;  %v2495_v10 = vpop.f32.mrf.mxu2 }
 0xdaf   :  { %2583 = vmatpush.msrb.mxu3 %v2462_v9  ;;  %2671 = vmatpush.msra.mxu1 %v2629_v7  ;;  %v2606_v9 = vld [vmem:[#allocation12 + $0x40] sm:$0xff]  ;;  %v2600_v7 = vld [vmem:[#allocation12 + $0x10] sm:$0xff]  ;;  %v2496_v38 = vadd.f32 %v2495_v10, %v8155_v23 }
 0xdb0   :  { %2574 = vmatmul.f32.vlgmr.msrb.gmra.mxu2 %v2294_v18 }
 0xdb1   :  { %2584 = vmatpush.msrb.mxu3 %v2459_v39  ;;  %2672 = vmatpush.msra.mxu1 %v2626_v59  ;;  %v2768_v39 = vld [vmem:[%s11163_s14 + $0x78] sm:$0xff]  ;;  %v2767_v59 = vld [vmem:[%s11163_s14 + $0x70] sm:$0xff] }
 0xdb2   :  { %2690 = vmatpush.msra.mxu2 %v2633_v12 }
 0xdb3   :  { %2585 = vmatpush.msrb.mxu3 %v2456_v3  ;;  %2673 = vmatpush.msra.mxu1 %v2623_v20  ;;  %v2763_v20 = vld [vmem:[%s11163_s14 + $0x50] sm:$0xff] }
 0xdb4   :  { %2691 = vmatpush.msra.mxu2 %v2630_v5 }
 0xdb5   :  { %2586 = vmatpush.msrb.mxu3 %v2453_v61  ;;  %2674 = vmatpush.msra.mxu1 %v2620_v45  ;;  %v2536_v45 = vadd.f32 %v2535_v55, %v8192_v30 }
 0xdb6   :  { %2692 = vmatpush.msra.mxu2 %v2627_v41 }
 0xdb7   :  { %2587 = vmatpush.msrb.mxu3 %v2450_v53  ;;  %2675 = vmatpush.msra.mxu1 %v2617_v37  ;;  %v2761_v53 = vld [vmem:[%s11163_s14 + $0x40] sm:$0xff] }
 0xdb8   :  { %2693 = vmatpush.msra.mxu2 %v2624_v16 }
 0xdb9   :  { %2588 = vmatpush.msrb.mxu3 %v2447_v29  ;;  %2676 = vmatpush.msra.mxu1 %v2614_v33 }
 0xdba   :  { %2694 = vmatpush.msra.mxu2 %v2621_v34 }
 0xdbb   :  { %2589 = vmatpush.msrb.mxu3 %v2444_v11  ;;  %2677 = vmatpush.msra.mxu1 %v2611_v48  ;;  %v2758_v48 = vld [vmem:[%s11163_s14 + $0x28] sm:$0xff] }
 0xdbc   :  { %2695 = vmatpush.msra.mxu2 %v2618_v24 }
 0xdbd   :  { %2590 = vmatpush.msrb.mxu3 %v2441_v8  ;;  %2678 = vmatpush.msra.mxu1 %v2608_v42  ;;  %v2755_v42 = vld [vmem:[%s11163_s14 + $0x10] sm:$0xff] }
 0xdbe   :  { %2696 = vmatpush.msra.mxu2 %v2615_v54 }
 0xdbf   :  { %2591 = vmatpush.msrb.mxu3 %v2438_v49  ;;  %2679 = vmatpush.msra.mxu1 %v2605_v6 }
 0xdc0   :  { %2697 = vmatpush.msra.mxu2 %v2612_v35 }
 0xdc1   :  { %2592 = vmatpush.msrb.mxu3 %v2435_v21  ;;  %2680 = vmatpush.msra.mxu1 %v2602_v27 }
 0xdc2   :  { %2698 = vmatpush.msra.mxu2 %v2609_v60 }
 0xdc3   :  { %2593 = vmatpush.msrb.mxu3 %v2432_v51  ;;  %2681 = vmatpush.msra.mxu1 %v2599_v15 }
 0xdc4   :  { %2699 = vmatpush.msra.mxu2 %v2606_v9 }
 0xdc6   :  { %2700 = vmatpush.msra.mxu2 %v2603_v52 }
 0xdc8   :  { %2701 = vmatpush.msra.mxu2 %v2600_v7 }
 0xdc9   :  { %2702 = vmatmul.f32.vlgmr.msra.gmra.mxu2 %v8221_v28 }
 0xe21   :  { %v2375_v22 = vpop.f32.mrf.mxu1 }
 0xe22   :  { %2514 = vmatmul.f32.vlgmr.msra.gmra.mxu3 %v2375_v22  ;;  %2554 = vmatmul.f32.vlgmr.msrb.gmra.mxu1 %v2375_v22 }
 0xe23   :  { %2769 = vmatpush.msra.mxu3 %v2768_v39 }
 0xe25   :  { %2770 = vmatpush.msra.mxu3 %v2767_v59 }
 0xe27   :  { %2771 = vmatpush.msra.mxu3 %v2766_v63  ;;  %v2663_v61 = vpop.f32.mrf.mxu0 }
 0xe28   :  { %v2664_v57 = vadd.f32 %v2663_v61, %v8167_v26 }
 0xe29   :  { %2772 = vmatpush.msra.mxu3 %v2765_v13 }
 0xe2a   :  { %2594 = vmatmul.f32.vlgmr.msrb.gmra.mxu3 %v2375_v22  ;;  %2682 = vmatmul.f32.vlgmr.msra.gmra.mxu1 %v8221_v28 }
 0xe2b   :  { %2773 = vmatpush.msra.mxu3 %v2764_v1 }
 0xe2d   :  { %2774 = vmatpush.msra.mxu3 %v2763_v20 }
 0xe2f   :  { %2775 = vmatpush.msra.mxu3 %v2762_v32 }
 0xe31   :  { %2776 = vmatpush.msra.mxu3 %v2761_v53 }
 0xe33   :  { %2777 = vmatpush.msra.mxu3 %v2760_v19  ;;  %v2575_v43 = vpop.f32.mrf.mxu2 }
 0xe34   :  { %v2576_v54 = vadd.f32 %v2575_v43, %v8214_v62 }
 0xe35   :  { %2778 = vmatpush.msra.mxu3 %v2759_v46 }
 0xe37   :  { %2779 = vmatpush.msra.mxu3 %v2758_v48 }
 0xe39   :  { %2780 = vmatpush.msra.mxu3 %v2757_v0 }
 0xe3b   :  { %2781 = vmatpush.msra.mxu3 %v2756_v14 }
 0xe3d   :  { %2782 = vmatpush.msra.mxu3 %v2755_v42 }
 0xe3f   :  { %2783 = vmatpush.msra.mxu3 %v2754_v56 }
 0xe41   :  { %2784 = vmatpush.msra.mxu3 %v2753_v2 }
 0xe4c   :  { %v2703_v5 = vpop.f32.mrf.mxu2 }
 0xe4d   :  { %v2704_v35 = vadd.f32 %v2703_v5, %v8216_v4 }
 0xe9f   :  { %v2555_v3 = vpop.f32.mrf.mxu1 }
 0xea0   :  { %v2556_v31 = vadd.f32 %v2555_v3, %v2536_v45 }
 0xea5   :  { %v2515_v36 = vpop.f32.mrf.mxu3 }
 0xea6   :  { %v2516_v37 = vadd.f32 %v2515_v36, %v2496_v38 }
 0xea7   :  { %v2683_v29 = vpop.f32.mrf.mxu1 }
 0xea8   :  { %v2706_v33 = vadd.f32 %v2664_v57, %v2516_v37  ;;  %v2684_v18 = vadd.f32 %v2683_v29, %v8197_v44 }
 0xeaa   :  { %v6338_v11 = vmul.f32 -1.442695, %v2706_v33  ;;  %v2726_v47 = vadd.f32 %v2684_v18, %v2556_v31 }
 0xeac   :  { %6519 = vpow2.f32 %v6338_v11  ;;  %v6339_v8 = vmul.f32 -1.442695, %v2726_v47 }
 0xead   :  { %v2595_v52 = vpop.f32.mrf.mxu3 }
 0xeae   :  { %6521 = vpow2.f32 %v6339_v8  ;;  %v2596_v59 = vadd.f32 %v2595_v52, %v2576_v54 }
 0xeb2   :  { %v6520_v49 = vpop.eup %6519 }
 0xeb3   :  { %v2710_v6 = vadd.f32 1.0, %v6520_v49 }
 0xeb4   :  { %v6522_v25 = vpop.eup %6521 }
 0xeb5   :  { %6523 = vrcp.f32 %v2710_v6  ;;  %v2730_v21 = vadd.f32 1.0, %v6522_v25  ;;  %v2722_v41 = vand.u32 2147483648, %v2710_v6  ;;  %v2720_v24 = vand.u32 2147483647, %v2710_v6 }
 0xeb6   :  { %vm2716_vm12 = vweird.f32 %v2710_v6 }
 0xeb7   :  { %6525 = vrcp.f32 %v2730_v21  ;;  %v2723_v7 = vor.u32 1.1754944e-38, %v2722_v41  ;;  %vm2721_vm14 = vcmp.eq.f32.partialorder %v2720_v24, 8.507059e+37  ;;  %v2742_v13 = vand.u32 2147483648, %v2730_v21 }
 0xeb8   :  { %vm2736_vm0 = vweird.f32 %v2730_v21  ;;  %v2740_v1 = vand.u32 2147483647, %v2730_v21 }
 0xeb9   :  { %v2743_v20 = vor.u32 1.1754944e-38, %v2742_v13 }
 0xeba   :  { %vm2741_vm2 = vcmp.eq.f32.partialorder %v2740_v1, 8.507059e+37 }
 0xebb   :  { %v6524_v27 = vpop.eup %6523 }
 0xebc   :  { %v2712_v40 = vmul.f32 %v6524_v27, %v2710_v6  ;;  %vm2717_vm11 = vweird.f32 %v6524_v27 }
 0xebd   :  { %v6526_v51 = vpop.eup %6525  ;;  %vm2718_vm13 = vmor %vm2716_vm12, %vm2717_vm11 }
 0xebe   :  { %v2732_v15 = vmul.f32 %v6526_v51, %v2730_v21  ;;  %v2713_v12 = vsub.f32 1.0, %v2712_v40  ;;  %vm2737_vm15 = vweird.f32 %v6526_v51 }
 0xebf   :  { %vm2738_vm1 = vmor %vm2736_vm0, %vm2737_vm15 }
 0xec0   :  { %v2733_v16 = vsub.f32 1.0, %v2732_v15  ;;  %v2714_v34 = vmul.f32 %v6524_v27, %v2713_v12 }
 0xec2   :  { %v2715_v60 = vadd.f32 %v6524_v27, %v2714_v34  ;;  %v2734_v9 = vmul.f32 %v6526_v51, %v2733_v16 }
 0xec4   :  { %v2719_v22 = vsel %vm2718_vm13, %v6524_v27, %v2715_v60  ;;  %v2735_v55 = vadd.f32 %v6526_v51, %v2734_v9 }
 0xec5   :  { %v2724_v39 = vsel %vm2721_vm14, %v2723_v7, %v2719_v22 }
 0xec6   :  { %v2746_v63 = vmul.f32 %v2724_v39, %v2704_v35  ;;  %v2739_v10 = vsel %vm2738_vm1, %v6526_v51, %v2735_v55 }
 0xec7   :  { %v2744_v32 = vsel %vm2741_vm2, %v2743_v20, %v2739_v10 }
 0xec8   :  { %v2747_v3 = vadd.f32 %v2746_v63, %v2596_v59  ;;  %v2749_v61 = vsub.f32 1.0, %v2744_v32  ;;  %v2751_v57 = vmul.f32 %v2744_v32, %v8221_v28 }
 0xeca   :  { %6527 = vtanh.f32 %v2747_v3 }
 0xed0   :  { %v6528_v38 = vpop.eup %6527 }
 0xed1   :  { %v2750_v45 = vmul.f32 %v6528_v38, %v2749_v61 }
 0xed3   :  { %v8635_v53 = vadd.f32 %v2751_v57, %v2750_v45 }
 0xed5   :  { %2785 = vmatmul.f32.vlgmr.msra.gmra.mxu3 %v8635_v53 }
 0xf57   :  { %2795 = sbr.rel (%p6341_p2) target bundleno = 3934 (0xf5e), region = 89 }
 0xf58   :  { %v2786_v36 = vpop.f32.mrf.mxu3 }
 0xf59   :  { %v2787_v37 = vadd.f32 %v8227_v17, %v2786_v36 }
 0xf5b   :  { %2790 = vst [vmem:[#allocation14 + $0x8] sm:$0xff] %v2787_v37 }
 0xf5c   :  { %v6342_v19 = vld [vmem:[%s11151_s2 + $0x8] sm:$0xff] }
 0xf5d   :  { %2798 = vst [vmem:[#allocation6] sm:$0xff] %v6342_v19 }
 0xf5e PF:  { %s6343_s28 = sld [smem:[#allocation7 + $0x1]] }
 0xf64   :  { %p6344_p3 = scmp.ne.s32.totalorder %s6343_s28, 0 }
 0xf66   :  { %2803 = sbr.rel (%p6344_p3) target bundleno = 4435 (0x1153), region = 93 }
 0xf6b   :  { %2804 = vmax.xlane.f32.xlu0 %v2787_v37  ;;  %v2840_v18 = vld [vmem:[%s11158_s9 + $0x78] sm:$0xff]  ;;  %v2839_v46 = vld [vmem:[%s11158_s9 + $0x70] sm:$0xff]  ;;  %v2838_v11 = vld [vmem:[%s11158_s9 + $0x68] sm:$0xff]  ;;  %v6738_v24 = vmov 1.0  }
 0xf6c   :  { %2841 = vmatpush.msra.mxu0 %v2840_v18  ;;  %v2837_v47 = vld [vmem:[%s11158_s9 + $0x60] sm:$0xff]  ;;  %v2836_v48 = vld [vmem:[%s11158_s9 + $0x58] sm:$0xff]  ;;  %v2835_v0 = vld [vmem:[%s11158_s9 + $0x50] sm:$0xff] }
 0xf6d   :  { %v2834_v8 = vld [vmem:[%s11158_s9 + $0x48] sm:$0xff]  ;;  %v2833_v14 = vld [vmem:[%s11158_s9 + $0x40] sm:$0xff]  ;;  %v2832_v42 = vld [vmem:[%s11158_s9 + $0x38] sm:$0xff] }
 0xf6e   :  { %2842 = vmatpush.msra.mxu0 %v2839_v46  ;;  %v2831_v56 = vld [vmem:[%s11158_s9 + $0x30] sm:$0xff]  ;;  %v2830_v49 = vld [vmem:[%s11158_s9 + $0x28] sm:$0xff]  ;;  %v2829_v2 = vld [vmem:[%s11158_s9 + $0x20] sm:$0xff] }
 0xf6f   :  { %v2828_v6 = vld [vmem:[%s11158_s9 + $0x18] sm:$0xff]  ;;  %v2827_v40 = vld [vmem:[%s11158_s9 + $0x10] sm:$0xff]  ;;  %v2826_v51 = vld [vmem:[%s11158_s9 + $0x8] sm:$0xff] }
 0xf70   :  { %2843 = vmatpush.msra.mxu0 %v2838_v11  ;;  %v2825_v15 = vld [vmem:[%s11158_s9] sm:$0xff] }
 0xf72   :  { %2844 = vmatpush.msra.mxu0 %v2837_v47 }
 0xf74   :  { %2845 = vmatpush.msra.mxu0 %v2836_v48 }
 0xf76   :  { %2846 = vmatpush.msra.mxu0 %v2835_v0 }
 0xf78   :  { %2847 = vmatpush.msra.mxu0 %v2834_v8 }
 0xf7a   :  { %2848 = vmatpush.msra.mxu0 %v2833_v14 }
 0xf7c   :  { %2849 = vmatpush.msra.mxu0 %v2832_v42 }
 0xf7e   :  { %2850 = vmatpush.msra.mxu0 %v2831_v56 }
 0xf80   :  { %2851 = vmatpush.msra.mxu0 %v2830_v49 }
 0xf82   :  { %2852 = vmatpush.msra.mxu0 %v2829_v2 }
 0xf84   :  { %2853 = vmatpush.msra.mxu0 %v2828_v6 }
 0xf86   :  { %2854 = vmatpush.msra.mxu0 %v2827_v40 }
 0xf88   :  { %2855 = vmatpush.msra.mxu0 %v2826_v51 }
 0xf8a   :  { %2856 = vmatpush.msra.mxu0 %v2825_v15 }
 0xfde   :  { %v2805_v28 = vpop.xlane.xlu0 %2804 }
 0xfdf   :  { %vm2806_vm3 = vcmp.ge.f32.partialorder %v2787_v37, %v2805_v28 }
 0xfe0   :  { %v2807_v29 = vsel %vm2806_vm3, %v7935_v58, 128 }
 0xfe1   :  { %v2809_v31 = vshra.s32 %v2807_v29, 16  ;;  %v2808_v25 = vand.u32 65535, %v2807_v29 }
 0xfe3   :  { %v2811_v33 = vcvt.s32.f32 %v2809_v31  ;;  %v2810_v43 = vcvt.s32.f32 %v2808_v25 }
 0xfe5   :  { %2812 = vmin.xlane.f32.xlu0 %v2811_v33 }
0x1058   :  { %v2813_v21 = vpop.xlane.xlu0 %2812 }
0x1059   :  { %vm2814_vm4 = vcmp.eq.f32.partialorder %v2811_v33, %v2813_v21  ;;  %v2819_v12 = vcvt.f32.s32 %v2813_v21 }
0x105a   :  { %v2815_v27 = vsel %vm2814_vm4, %v2810_v43, inf }
0x105b   :  { %2816 = vmin.xlane.f32.xlu1 %v2815_v27  ;;  %v2820_v41 = vshll.u32 %v2819_v12, 16 }
0x10ce   :  { %v2817_v5 = vpop.xlane.xlu1 %2816 }
0x10cf   :  { %v2818_v16 = vcvt.f32.s32 %v2817_v5 }
0x10d1   :  { %v2821_v34 = vadd.s32 %v2820_v41, %v2818_v16 }
0x10d3   :  { %vm2822_vm5 = vcmp.eq.s32.totalorder %v7935_v58, %v2821_v34 }
0x10d4   :  { %6346 = vmatmul.msk.f32.vlgmr.msra.gmra.mxu0 %vm2822_vm5, %v6738_v24 }
0x1151   :  { %v2858_v54 = vpop.f32.mrf.mxu0 }
0x1152   :  { %2861 = vst [vmem:[#allocation6] sm:$0xff] %v2858_v54 }
0x1153 PF:  { %v2878_v35 = vld [vmem:[#allocation4 + $0x50] sm:$0xff]  ;;  %v2877_v60 = vld [vmem:[#allocation4 + $0x60] sm:$0xff]  ;;  %v2876_v9 = vld [vmem:[#allocation4 + $0x8] sm:$0xff]  ;;  %s6349_s5 = sld [smem:[#allocation7 + $0x2]] }
0x1154   :  { %2879 = vmatpush.msra.mxu0 %v2878_v35  ;;  %v2875_v52 = vld [vmem:[#allocation4] sm:$0xff]  ;;  %v2874_v7 = vld [vmem:[#allocation4 + $0x58] sm:$0xff]  ;;  %v2869_v63 = vld [vmem:[#allocation4 + $0x70] sm:$0xff] }
0x1155   :  { %v2873_v22 = vld [vmem:[#allocation4 + $0x18] sm:$0xff]  ;;  %v2871_v55 = vld [vmem:[#allocation4 + $0x20] sm:$0xff]  ;;  %v2868_v13 = vld [vmem:[#allocation4 + $0x30] sm:$0xff] }
0x1156   :  { %2880 = vmatpush.msra.mxu0 %v2877_v60  ;;  %v2872_v39 = vld [vmem:[#allocation4 + $0x78] sm:$0xff]  ;;  %v2867_v1 = vld [vmem:[#allocation4 + $0x48] sm:$0xff]  ;;  %v2866_v3 = vld [vmem:[#allocation4 + $0x40] sm:$0xff] }
0x1157   :  { %v2870_v59 = vld [vmem:[#allocation4 + $0x38] sm:$0xff]  ;;  %v2865_v10 = vld [vmem:[#allocation4 + $0x10] sm:$0xff]  ;;  %v2864_v20 = vld [vmem:[#allocation4 + $0x68] sm:$0xff] }
0x1158   :  { %2881 = vmatpush.msra.mxu0 %v2876_v9  ;;  %v2863_v32 = vld [vmem:[#allocation4 + $0x28] sm:$0xff]  ;;  %v2924_v57 = vld [vmem:[#allocation3 + $0x78] sm:$0xff]  ;;  %v2923_v36 = vld [vmem:[#allocation3 + $0x70] sm:$0xff] }
0x1159   :  { %v2925_v45 = vld [vmem:[#allocation3 + $0x28] sm:$0xff]  ;;  %v2922_v37 = vld [vmem:[#allocation3 + $0x60] sm:$0xff]  ;;  %v2921_v19 = vld [vmem:[#allocation3 + $0x38] sm:$0xff]  ;;  %p6350_p4 = scmp.le.s32.totalorder %s6349_s5, 0 }
0x115a   :  { %2882 = vmatpush.msra.mxu0 %v2875_v52  ;;  %2926 = vmatpush.msra.mxu1 %v2925_v45  ;;  %v2920_v28 = vld [vmem:[#allocation3 + $0x10] sm:$0xff]  ;;  %v2919_v29 = vld [vmem:[#allocation3 + $0x20] sm:$0xff]  ;;  %v2917_v33 = vld [vmem:[#allocation3 + $0x48] sm:$0xff] }
0x115b   :  { %v2918_v31 = vld [vmem:[#allocation3 + $0x40] sm:$0xff]  ;;  %v2916_v18 = vld [vmem:[#allocation3 + $0x8] sm:$0xff]  ;;  %v2914_v8 = vld [vmem:[#allocation3 + $0x50] sm:$0xff] }
0x115c   :  { %2883 = vmatpush.msra.mxu0 %v2874_v7  ;;  %2927 = vmatpush.msra.mxu1 %v2924_v57  ;;  %v2915_v46 = vld [vmem:[#allocation3 + $0x68] sm:$0xff]  ;;  %v2913_v14 = vld [vmem:[#allocation3 + $0x18] sm:$0xff]  ;;  %v2911_v56 = vld [vmem:[#allocation3] sm:$0xff] }
0x115d   :  { %v2912_v42 = vld [vmem:[#allocation3 + $0x58] sm:$0xff]  ;;  %v2910_v49 = vld [vmem:[#allocation3 + $0x30] sm:$0xff]  ;;  %v2995_v2 = vld [vmem:[%s11159_s10 + $0x168] sm:$0xff] }
0x115e   :  { %2884 = vmatpush.msra.mxu0 %v2873_v22  ;;  %2928 = vmatpush.msra.mxu1 %v2923_v36  ;;  %v2992_v6 = vld [vmem:[%s11159_s10 + $0x150] sm:$0xff]  ;;  %v2989_v25 = vld [vmem:[%s11159_s10 + $0x138] sm:$0xff]  ;;  %v3043_v43 = vld [vmem:[%s11159_s10 + $0x2e8] sm:$0xff] }
0x115f   :  { %3046 = vmatpush.msra.mxu2 %v2995_v2  ;;  %v2996_v21 = vld [vmem:[%s11159_s10 + $0x170] sm:$0xff]  ;;  %v2993_v27 = vld [vmem:[%s11159_s10 + $0x158] sm:$0xff]  ;;  %3066 = vmatpush.msra.mxu3 %v3043_v43  ;;  %v2990_v15 = vld [vmem:[%s11159_s10 + $0x140] sm:$0xff] }
0x1160   :  { %2885 = vmatpush.msra.mxu0 %v2872_v39  ;;  %2929 = vmatpush.msra.mxu1 %v2922_v37  ;;  %v3044_v40 = vld [vmem:[%s11159_s10 + $0x2f0] sm:$0xff]  ;;  %v2986_v12 = vld [vmem:[%s11159_s10 + $0x120] sm:$0xff]  ;;  %v3041_v5 = vld [vmem:[%s11159_s10 + $0x2d8] sm:$0xff] }
0x1161   :  { %3047 = vmatpush.msra.mxu2 %v2992_v6  ;;  %v3040_v51 = vld [vmem:[%s11159_s10 + $0x2d0] sm:$0xff]  ;;  %v3037_v41 = vld [vmem:[%s11159_s10 + $0x2b8] sm:$0xff]  ;;  %v2987_v16 = vld [vmem:[%s11159_s10 + $0x128] sm:$0xff] }
0x1162   :  { %2886 = vmatpush.msra.mxu0 %v2871_v55  ;;  %2930 = vmatpush.msra.mxu1 %v2921_v19  ;;  %v3038_v34 = vld [vmem:[%s11159_s10 + $0x2c0] sm:$0xff]  ;;  %v2983_v24 = vld [vmem:[%s11159_s10 + $0x108] sm:$0xff]  ;;  %v2984_v35 = vld [vmem:[%s11159_s10 + $0x110] sm:$0xff] }
0x1163   :  { %3048 = vmatpush.msra.mxu2 %v2989_v25  ;;  %3067 = vmatpush.msra.mxu3 %v3040_v51  ;;  %v3034_v54 = vld [vmem:[%s11159_s10 + $0x2a0] sm:$0xff]  ;;  %v3035_v60 = vld [vmem:[%s11159_s10 + $0x2a8] sm:$0xff]  ;;  %v2980_v9 = vld [vmem:[%s11159_s10 + $0xf0] sm:$0xff] }
0x1164   :  { %2887 = vmatpush.msra.mxu0 %v2870_v59  ;;  %2931 = vmatpush.msra.mxu1 %v2920_v28  ;;  %v3031_v52 = vld [vmem:[%s11159_s10 + $0x288] sm:$0xff]  ;;  %v2981_v7 = vld [vmem:[%s11159_s10 + $0xf8] sm:$0xff]  ;;  %v3032_v22 = vld [vmem:[%s11159_s10 + $0x290] sm:$0xff] }
0x1165   :  { %3049 = vmatpush.msra.mxu2 %v2986_v12  ;;  %3068 = vmatpush.msra.mxu3 %v3037_v41  ;;  %v2977_v39 = vld [vmem:[%s11159_s10 + $0xd8] sm:$0xff]  ;;  %v3028_v55 = vld [vmem:[%s11159_s10 + $0x270] sm:$0xff]  ;;  %v2978_v59 = vld [vmem:[%s11159_s10 + $0xe0] sm:$0xff] }
0x1166   :  { %2888 = vmatpush.msra.mxu0 %v2869_v63  ;;  %2932 = vmatpush.msra.mxu1 %v2919_v29  ;;  %v3029_v63 = vld [vmem:[%s11159_s10 + $0x278] sm:$0xff]  ;;  %v2968_v45 = vld [vmem:[%s11159_s10 + $0x90] sm:$0xff]  ;;  %v3019_v57 = vld [vmem:[%s11159_s10 + $0x228] sm:$0xff] }
0x1167   :  { %3050 = vmatpush.msra.mxu2 %v2983_v24  ;;  %3069 = vmatpush.msra.mxu3 %v3034_v54  ;;  %v2969_v36 = vld [vmem:[%s11159_s10 + $0x98] sm:$0xff]  ;;  %v3020_v37 = vld [vmem:[%s11159_s10 + $0x230] sm:$0xff]  ;;  %v2966_v29 = vld [vmem:[%s11159_s10 + $0x80] sm:$0xff] }
0x1168   :  { %2889 = vmatpush.msra.mxu0 %v2868_v13  ;;  %2933 = vmatpush.msra.mxu1 %v2918_v31  ;;  %v2974_v13 = vld [vmem:[%s11159_s10 + $0xc0] sm:$0xff]  ;;  %v2965_v19 = vld [vmem:[%s11159_s10 + $0x78] sm:$0xff]  ;;  %v3016_v28 = vld [vmem:[%s11159_s10 + $0x210] sm:$0xff] }
0x1169   :  { %3051 = vmatpush.msra.mxu2 %v2980_v9  ;;  %3070 = vmatpush.msra.mxu3 %v3031_v52  ;;  %v3017_v31 = vld [vmem:[%s11159_s10 + $0x218] sm:$0xff]  ;;  %v3008_v6 = vld [vmem:[%s11159_s10 + $0x1d0] sm:$0xff]  ;;  %v2954_v43 = vld [vmem:[%s11159_s10 + $0x20] sm:$0xff] }
0x116a   :  { %2890 = vmatpush.msra.mxu0 %v2867_v1  ;;  %2934 = vmatpush.msra.mxu1 %v2917_v33  ;;  %v3025_v1 = vld [vmem:[%s11159_s10 + $0x258] sm:$0xff]  ;;  %v2962_v33 = vld [vmem:[%s11159_s10 + $0x60] sm:$0xff]  ;;  %v2951_v41 = vld [vmem:[%s11159_s10 + $0x8] sm:$0xff] }
0x116b   :  { %3052 = vmatpush.msra.mxu2 %v2977_v39  ;;  %3071 = vmatpush.msra.mxu3 %v3028_v55  ;;  %v2957_v2 = vld [vmem:[%s11159_s10 + $0x38] sm:$0xff]  ;;  %v3211_v24 = vld [vmem:[#allocation12 + $0x168] sm:$0xff]  ;;  %v2999_v54 = vld [vmem:[%s11159_s10 + $0x188] sm:$0xff] }
0x116c   :  { %2891 = vmatpush.msra.mxu0 %v2866_v3  ;;  %2935 = vmatpush.msra.mxu1 %v2916_v18  ;;  %v2975_v3 = vld [vmem:[%s11159_s10 + $0xc8] sm:$0xff]  ;;  %v3013_v18 = vld [vmem:[%s11159_s10 + $0x1f8] sm:$0xff]  ;;  %v3205_v39 = vld [vmem:[#allocation12 + $0x138] sm:$0xff] }
0x116d   :  { %3053 = vmatpush.msra.mxu2 %v2974_v13  ;;  %3072 = vmatpush.msra.mxu3 %v3025_v1  ;;  %v2953_v25 = vld [vmem:[%s11159_s10 + $0x18] sm:$0xff]  ;;  %v3209_v55 = vld [vmem:[#allocation12 + $0x158] sm:$0xff]  ;;  %v3202_v13 = vld [vmem:[#allocation12 + $0x120] sm:$0xff] }
0x116e   :  { %2892 = vmatpush.msra.mxu0 %v2865_v10  ;;  %2936 = vmatpush.msra.mxu1 %v2915_v46  ;;  %v3026_v10 = vld [vmem:[%s11159_s10 + $0x260] sm:$0xff]  ;;  %v2963_v46 = vld [vmem:[%s11159_s10 + $0x68] sm:$0xff]  ;;  %v3001_v51 = vld [vmem:[%s11159_s10 + $0x198] sm:$0xff] }
0x116f   :  { %v2997_v12 = vld [vmem:[%s11159_s10 + $0x178] sm:$0xff]  ;;  %v3206_v1 = vld [vmem:[#allocation12 + $0x140] sm:$0xff] }
0x1170   :  { %2893 = vmatpush.msra.mxu0 %v2864_v20  ;;  %2937 = vmatpush.msra.mxu1 %v2914_v8  ;;  %v2971_v20 = vld [vmem:[%s11159_s10 + $0xa8] sm:$0xff]  ;;  %v3010_v8 = vld [vmem:[%s11159_s10 + $0x1e0] sm:$0xff]  ;;  %v3208_v9 = vld [vmem:[#allocation12 + $0x150] sm:$0xff] }
0x1171   :  { %3054 = vmatpush.msra.mxu2 %v2971_v20  ;;  %v3212_v52 = vld [vmem:[#allocation12 + $0x170] sm:$0xff]  ;;  %v3199_v20 = vld [vmem:[#allocation12 + $0x108] sm:$0xff] }
0x1172   :  { %2894 = vmatpush.msra.mxu0 %v2863_v32  ;;  %2938 = vmatpush.msra.mxu1 %v2913_v14  ;;  %v3022_v32 = vld [vmem:[%s11159_s10 + $0x240] sm:$0xff]  ;;  %v2960_v14 = vld [vmem:[%s11159_s10 + $0x50] sm:$0xff] }
0x1173   :  { %2895 = vmatmul.f32.vlgmr.msra.gmra.mxu0 %v8635_v53  ;;  %3073 = vmatpush.msra.mxu3 %v3022_v32  ;;  %v3203_v32 = vld [vmem:[#allocation12 + $0x128] sm:$0xff] }
0x1174   :  { %2939 = vmatpush.msra.mxu1 %v2912_v42  ;;  %3086 = vmatpush.msrb.mxu0 %v2996_v21  ;;  %v3011_v42 = vld [vmem:[%s11159_s10 + $0x1e8] sm:$0xff]  ;;  %v3004_v21 = vld [vmem:[%s11159_s10 + $0x1b0] sm:$0xff] }
0x1175   :  { %3055 = vmatpush.msra.mxu2 %v2968_v45  ;;  %3074 = vmatpush.msra.mxu3 %v3019_v57  ;;  %v3196_v45 = vld [vmem:[#allocation12 + $0xf0] sm:$0xff] }
0x1176   :  { %2940 = vmatpush.msra.mxu1 %v2911_v56  ;;  %3087 = vmatpush.msrb.mxu0 %v2993_v27  ;;  %v2956_v56 = vld [vmem:[%s11159_s10 + $0x30] sm:$0xff]  ;;  %v3005_v27 = vld [vmem:[%s11159_s10 + $0x1b8] sm:$0xff] }
0x1177   :  { %3056 = vmatpush.msra.mxu2 %v2965_v19  ;;  %3075 = vmatpush.msra.mxu3 %v3016_v28  ;;  %v3200_v57 = vld [vmem:[#allocation12 + $0x110] sm:$0xff]  ;;  %v3193_v19 = vld [vmem:[#allocation12 + $0xd8] sm:$0xff] }
0x1178   :  { %2941 = vmatpush.msra.mxu1 %v2910_v49  ;;  %3088 = vmatpush.msrb.mxu0 %v2990_v15  ;;  %v3007_v49 = vld [vmem:[%s11159_s10 + $0x1c8] sm:$0xff]  ;;  %v3197_v28 = vld [vmem:[#allocation12 + $0xf8] sm:$0xff] }
0x1179   :  { %3057 = vmatpush.msra.mxu2 %v2962_v33  ;;  %3076 = vmatpush.msra.mxu3 %v3013_v18  ;;  %v3190_v33 = vld [vmem:[#allocation12 + $0xc0] sm:$0xff] }
0x117a   :  { %3106 = vmatpush.msrb.mxu1 %v3044_v40  ;;  %3089 = vmatpush.msrb.mxu0 %v2987_v16  ;;  %v2950_v40 = vld [vmem:[%s11159_s10] sm:$0xff]  ;;  %v3194_v18 = vld [vmem:[#allocation12 + $0xe0] sm:$0xff] }
0x117b   :  { %3077 = vmatpush.msra.mxu3 %v3010_v8  ;;  %v3002_v16 = vld [vmem:[%s11159_s10 + $0x1a0] sm:$0xff]  ;;  %v3187_v8 = vld [vmem:[#allocation12 + $0xa8] sm:$0xff] }
0x117c   :  { %3107 = vmatpush.msrb.mxu1 %v3041_v5  ;;  %3090 = vmatpush.msrb.mxu0 %v2984_v35  ;;  %v2991_v35 = vld [vmem:[%s11159_s10 + $0x148] sm:$0xff] }
0x117d   :  { %3078 = vmatpush.msra.mxu3 %v3007_v49  ;;  %v3184_v49 = vld [vmem:[#allocation12 + $0x90] sm:$0xff] }
0x117e   :  { %3108 = vmatpush.msrb.mxu1 %v3038_v34  ;;  %3091 = vmatpush.msrb.mxu0 %v2981_v7  ;;  %v2994_v34 = vld [vmem:[%s11159_s10 + $0x160] sm:$0xff]  ;;  %v2988_v7 = vld [vmem:[%s11159_s10 + $0x130] sm:$0xff] }
0x117f   :  { %3079 = vmatpush.msra.mxu3 %v3004_v21  ;;  %v3181_v21 = vld [vmem:[#allocation12 + $0x78] sm:$0xff] }
0x1180   :  { %3109 = vmatpush.msrb.mxu1 %v3035_v60  ;;  %3092 = vmatpush.msrb.mxu0 %v2978_v59  ;;  %v3045_v60 = vld [vmem:[%s11159_s10 + $0x2f8] sm:$0xff] }
0x1181   :  { %3080 = vmatpush.msra.mxu3 %v3001_v51  ;;  %v2985_v59 = vld [vmem:[%s11159_s10 + $0x118] sm:$0xff]  ;;  %v3178_v51 = vld [vmem:[#allocation12 + $0x60] sm:$0xff] }
0x1182   :  { %3110 = vmatpush.msrb.mxu1 %v3032_v22  ;;  %3093 = vmatpush.msrb.mxu0 %v2975_v3  ;;  %v3042_v22 = vld [vmem:[%s11159_s10 + $0x2e0] sm:$0xff] }
0x1183   :  { %v2982_v3 = vld [vmem:[%s11159_s10 + $0x100] sm:$0xff] }
0x1184   :  { %3111 = vmatpush.msrb.mxu1 %v3029_v63  ;;  %v3039_v63 = vld [vmem:[%s11159_s10 + $0x2c8] sm:$0xff] }
0x1186   :  { %3112 = vmatpush.msrb.mxu1 %v3026_v10  ;;  %v3036_v10 = vld [vmem:[%s11159_s10 + $0x2b0] sm:$0xff] }
0x11f0   :  { %v2896_v61 = vpop.f32.mrf.mxu0 }
0x11f1   :  { %v2897_v38 = vadd.f32 %v2896_v61, %v7991_v50  ;;  %v2972_v61 = vld [vmem:[%s11159_s10 + $0xb0] sm:$0xff] }
0x11f2   :  { %3094 = vmatpush.msrb.mxu0 %v2972_v61  ;;  %v2979_v61 = vld [vmem:[%s11159_s10 + $0xe8] sm:$0xff] }
0x11f3   :  { %2899 = vmax.xlane.f32.xlu0 %v2897_v38 }
0x11f4   :  { %3095 = vmatpush.msrb.mxu0 %v2969_v36  ;;  %v2976_v36 = vld [vmem:[%s11159_s10 + $0xd0] sm:$0xff] }
0x11f6   :  { %3096 = vmatpush.msrb.mxu0 %v2966_v29  ;;  %v2973_v29 = vld [vmem:[%s11159_s10 + $0xb8] sm:$0xff] }
0x11f8   :  { %3097 = vmatpush.msrb.mxu0 %v2963_v46  ;;  %v2970_v46 = vld [vmem:[%s11159_s10 + $0xa0] sm:$0xff] }
0x11fa   :  { %3098 = vmatpush.msrb.mxu0 %v2960_v14  ;;  %v3191_v14 = vld [vmem:[#allocation12 + $0xc8] sm:$0xff] }
0x11fc   :  { %3099 = vmatpush.msrb.mxu0 %v2957_v2  ;;  %v3188_v2 = vld [vmem:[#allocation12 + $0xb0] sm:$0xff] }
0x11fe   :  { %3100 = vmatpush.msrb.mxu0 %v2954_v43  ;;  %v3185_v43 = vld [vmem:[#allocation12 + $0x98] sm:$0xff] }
0x1200   :  { %3101 = vmatpush.msrb.mxu0 %v2951_v41  ;;  %v3012_v41 = vld [vmem:[%s11159_s10 + $0x1f0] sm:$0xff] }
0x1202   :  { %3214 = vmatpush.msra.mxu0 %v3211_v24  ;;  %v3213_v24 = vld [vmem:[#allocation12 + $0x178] sm:$0xff] }
0x1204   :  { %3215 = vmatpush.msra.mxu0 %v3208_v9  ;;  %v3006_v9 = vld [vmem:[%s11159_s10 + $0x1c0] sm:$0xff] }
0x1206   :  { %3216 = vmatpush.msra.mxu0 %v3205_v39  ;;  %v3003_v39 = vld [vmem:[%s11159_s10 + $0x1a8] sm:$0xff] }
0x1208   :  { %3217 = vmatpush.msra.mxu0 %v3202_v13  ;;  %v3000_v13 = vld [vmem:[%s11159_s10 + $0x190] sm:$0xff] }
0x120a   :  { %3218 = vmatpush.msra.mxu0 %v3199_v20  ;;  %v3195_v20 = vld [vmem:[#allocation12 + $0xe8] sm:$0xff] }
0x120c   :  { %3219 = vmatpush.msra.mxu0 %v3196_v45  ;;  %v3183_v45 = vld [vmem:[#allocation12 + $0x88] sm:$0xff] }
0x120e   :  { %3220 = vmatpush.msra.mxu0 %v3193_v19  ;;  %v3171_v19 = vld [vmem:[#allocation12 + $0x28] sm:$0xff] }
0x1210   :  { %3221 = vmatpush.msra.mxu0 %v3190_v33 }
0x1212   :  { %3222 = vmatpush.msra.mxu0 %v3187_v8 }
0x1214   :  { %3223 = vmatpush.msra.mxu0 %v3184_v49 }
0x1216   :  { %3224 = vmatpush.msra.mxu0 %v3181_v21 }
0x1218   :  { %3225 = vmatpush.msra.mxu0 %v3178_v51 }
0x1266   :  { %v2900_v11 = vpop.xlane.xlu0 %2899 }
0x1267   :  { %v2901_v47 = vsub.f32 %v2897_v38, %v2900_v11  ;;  %v3023_v38 = vld [vmem:[%s11159_s10 + $0x248] sm:$0xff]  ;;  %v3014_v11 = vld [vmem:[%s11159_s10 + $0x200] sm:$0xff] }
0x1268   :  { %3113 = vmatpush.msrb.mxu1 %v3023_v38  ;;  %v3033_v38 = vld [vmem:[%s11159_s10 + $0x298] sm:$0xff] }
0x1269   :  { %v2902_v48 = vmul.f32 1.442695, %v2901_v47 }
0x126a   :  { %3114 = vmatpush.msrb.mxu1 %v3020_v37  ;;  %v3030_v37 = vld [vmem:[%s11159_s10 + $0x280] sm:$0xff] }
0x126b   :  { %6529 = vpow2.f32 %v2902_v48  ;;  %v2959_v48 = vld [vmem:[%s11159_s10 + $0x48] sm:$0xff] }
0x126c   :  { %3115 = vmatpush.msrb.mxu1 %v3017_v31  ;;  %3058 = vmatpush.msra.mxu2 %v2959_v48  ;;  %v3027_v31 = vld [vmem:[%s11159_s10 + $0x268] sm:$0xff]  ;;  %v3024_v48 = vld [vmem:[%s11159_s10 + $0x250] sm:$0xff] }
0x126e   :  { %3116 = vmatpush.msrb.mxu1 %v3014_v11  ;;  %3059 = vmatpush.msra.mxu2 %v2956_v56  ;;  %v2967_v11 = vld [vmem:[%s11159_s10 + $0x88] sm:$0xff]  ;;  %v3021_v56 = vld [vmem:[%s11159_s10 + $0x238] sm:$0xff] }
0x1270   :  { %3117 = vmatpush.msrb.mxu1 %v3011_v42  ;;  %3060 = vmatpush.msra.mxu2 %v2953_v25  ;;  %v2961_v42 = vld [vmem:[%s11159_s10 + $0x58] sm:$0xff]  ;;  %v3018_v25 = vld [vmem:[%s11159_s10 + $0x220] sm:$0xff] }
0x1271   :  { %v8694_v0 = vpop.eup %6529 }
0x1272   :  { %2904 = vadd.xlane.f32.xlu0 %v8694_v0  ;;  %3118 = vmatpush.msrb.mxu1 %v3008_v6  ;;  %v2958_v6 = vld [vmem:[%s11159_s10 + $0x40] sm:$0xff] }
0x1273   :  { %3061 = vmatpush.msra.mxu2 %v2950_v40  ;;  %v3015_v40 = vld [vmem:[%s11159_s10 + $0x208] sm:$0xff] }
0x1274   :  { %3119 = vmatpush.msrb.mxu1 %v3005_v27  ;;  %v2955_v27 = vld [vmem:[%s11159_s10 + $0x28] sm:$0xff] }
0x1275   :  { %3126 = vmatpush.msrb.mxu2 %v2997_v12  ;;  %v2862_v12 = vld [vmem:[#allocation6] sm:$0xff] }
0x1276   :  { %3120 = vmatpush.msrb.mxu1 %v3002_v16  ;;  %3062 = vmatmul.f32.vlgmr.msra.gmra.mxu2 %v2862_v12  ;;  %v3175_v16 = vld [vmem:[#allocation12 + $0x48] sm:$0xff] }
0x1277   :  { %3127 = vmatpush.msrb.mxu2 %v2994_v34  ;;  %v3179_v34 = vld [vmem:[#allocation12 + $0x68] sm:$0xff]  ;;  %3102 = vmatmul.f32.vlgmr.msrb.gmra.mxu0 %v2862_v12 }
0x1278   :  { %3121 = vmatpush.msrb.mxu1 %v2999_v54  ;;  %3226 = vmatpush.msra.mxu0 %v3175_v16  ;;  %v3172_v54 = vld [vmem:[#allocation12 + $0x30] sm:$0xff] }
0x1279   :  { %3128 = vmatpush.msrb.mxu2 %v2991_v35  ;;  %v3176_v35 = vld [vmem:[#allocation12 + $0x50] sm:$0xff] }
0x127a   :  { %3227 = vmatpush.msra.mxu0 %v3172_v54  ;;  %v3324_v54 = vld [vmem:[%s11163_s14 + $0x18] sm:$0xff] }
0x127b   :  { %3129 = vmatpush.msrb.mxu2 %v2988_v7  ;;  %v3173_v7 = vld [vmem:[#allocation12 + $0x38] sm:$0xff] }
0x127d   :  { %3130 = vmatpush.msrb.mxu2 %v2985_v59  ;;  %v3170_v59 = vld [vmem:[#allocation12 + $0x20] sm:$0xff] }
0x127f   :  { %3131 = vmatpush.msrb.mxu2 %v2982_v3  ;;  %v3201_v3 = vld [vmem:[#allocation12 + $0x118] sm:$0xff] }
0x1281   :  { %3132 = vmatpush.msrb.mxu2 %v2979_v61  ;;  %v3189_v61 = vld [vmem:[#allocation12 + $0xb8] sm:$0xff] }
0x1283   :  { %3133 = vmatpush.msrb.mxu2 %v2976_v36  ;;  %v3177_v36 = vld [vmem:[#allocation12 + $0x58] sm:$0xff] }
0x1285   :  { %3134 = vmatpush.msrb.mxu2 %v2973_v29 }
0x1287   :  { %3135 = vmatpush.msrb.mxu2 %v2970_v46  ;;  %v3334_v46 = vld [vmem:[%s11163_s14 + $0x68] sm:$0xff] }
0x1289   :  { %3136 = vmatpush.msrb.mxu2 %v2967_v11  ;;  %v3333_v11 = vld [vmem:[%s11163_s14 + $0x60] sm:$0xff] }
0x12e5   :  { %v2905_v47 = vpop.xlane.xlu0 %2904 }
0x12e6   :  { %6531 = vrcp.f32 %v2905_v47  ;;  %v2964_v47 = vld [vmem:[%s11159_s10 + $0x70] sm:$0xff] }
0x12e7   :  { %3137 = vmatpush.msrb.mxu2 %v2964_v47  ;;  %v3332_v47 = vld [vmem:[%s11163_s14 + $0x58] sm:$0xff] }
0x12e9   :  { %3138 = vmatpush.msrb.mxu2 %v2961_v42  ;;  %v3330_v42 = vld [vmem:[%s11163_s14 + $0x48] sm:$0xff] }
0x12eb   :  { %3139 = vmatpush.msrb.mxu2 %v2958_v6 }
0x12ec   :  { %v6532_v15 = vpop.eup %6531 }
0x12ed   :  { %v2907_v5 = vmul.f32 %v6532_v15, %v8694_v0  ;;  %v2998_v0 = vld [vmem:[%s11159_s10 + $0x180] sm:$0xff]  ;;  %3140 = vmatpush.msrb.mxu2 %v2955_v27  ;;  %v3182_v15 = vld [vmem:[#allocation12 + $0x80] sm:$0xff]  ;;  %v3328_v27 = vld [vmem:[%s11163_s14 + $0x38] sm:$0xff] }
0x12ee   :  { %3081 = vmatpush.msra.mxu3 %v2998_v0  ;;  %v3009_v0 = vld [vmem:[%s11159_s10 + $0x1d8] sm:$0xff] }
0x12ef   :  { %2909 = vst [vmem:[#allocation15 + $0x10] sm:$0xff] %v2907_v5  ;;  %2942 = vmatmul.f32.vlgmr.msra.gmra.mxu1 %v2907_v5  ;;  %v2952_v5 = vld [vmem:[%s11159_s10 + $0x10] sm:$0xff] }
0x12f0   :  { %3146 = vmatpush.msrb.mxu3 %v3045_v60  ;;  %3234 = vmatpush.msra.mxu1 %v3212_v52  ;;  %v3210_v60 = vld [vmem:[#allocation12 + $0x160] sm:$0xff]  ;;  %v3169_v52 = vld [vmem:[#allocation12 + $0x18] sm:$0xff] }
0x12f1   :  { %3141 = vmatpush.msrb.mxu2 %v2952_v5  ;;  %3228 = vmatpush.msra.mxu0 %v3169_v52  ;;  %v3327_v5 = vld [vmem:[%s11163_s14 + $0x30] sm:$0xff]  ;;  %v3321_v52 = vld [vmem:[%s11163_s14] sm:$0xff] }
0x12f2   :  { %3147 = vmatpush.msrb.mxu3 %v3042_v22  ;;  %3235 = vmatpush.msra.mxu1 %v3209_v55  ;;  %v3207_v22 = vld [vmem:[#allocation12 + $0x148] sm:$0xff]  ;;  %v3166_v55 = vld [vmem:[#allocation12] sm:$0xff] }
0x12f3   :  { %3254 = vmatpush.msra.mxu2 %v3213_v24  ;;  %3229 = vmatpush.msra.mxu0 %v3166_v55  ;;  %v3325_v24 = vld [vmem:[%s11163_s14 + $0x20] sm:$0xff] }
0x12f4   :  { %3148 = vmatpush.msrb.mxu3 %v3039_v63  ;;  %3236 = vmatpush.msra.mxu1 %v3206_v1  ;;  %v3204_v63 = vld [vmem:[#allocation12 + $0x130] sm:$0xff]  ;;  %v3167_v1 = vld [vmem:[#allocation12 + $0x8] sm:$0xff]  ;;  %v3103_v33 = vpop.f32.mrf.mxu0 }
0x12f5   :  { %3255 = vmatpush.msra.mxu2 %v3210_v60  ;;  %3230 = vmatmul.f32.vlgmr.msra.gmra.mxu0 %v8635_v53  ;;  %v3322_v60 = vld [vmem:[%s11163_s14 + $0x8] sm:$0xff] }
0x12f6   :  { %3149 = vmatpush.msrb.mxu3 %v3036_v10  ;;  %3237 = vmatpush.msra.mxu1 %v3203_v32  ;;  %v3198_v10 = vld [vmem:[#allocation12 + $0x100] sm:$0xff]  ;;  %v3192_v32 = vld [vmem:[#allocation12 + $0xd0] sm:$0xff] }
0x12f7   :  { %3256 = vmatpush.msra.mxu2 %v3207_v22 }
0x12f8   :  { %3150 = vmatpush.msrb.mxu3 %v3033_v38  ;;  %3238 = vmatpush.msra.mxu1 %v3200_v57  ;;  %v3186_v38 = vld [vmem:[#allocation12 + $0xa0] sm:$0xff]  ;;  %v3180_v57 = vld [vmem:[#allocation12 + $0x70] sm:$0xff] }
0x12f9   :  { %3257 = vmatpush.msra.mxu2 %v3204_v63  ;;  %v3063_v8 = vpop.f32.mrf.mxu2 }
0x12fa   :  { %3151 = vmatpush.msrb.mxu3 %v3030_v37  ;;  %3239 = vmatpush.msra.mxu1 %v3197_v28  ;;  %v3174_v37 = vld [vmem:[#allocation12 + $0x40] sm:$0xff]  ;;  %v3168_v28 = vld [vmem:[#allocation12 + $0x10] sm:$0xff]  ;;  %v3064_v49 = vadd.f32 %v3063_v8, %v8155_v23 }
0x12fb   :  { %3142 = vmatmul.f32.vlgmr.msrb.gmra.mxu2 %v2862_v12 }
0x12fc   :  { %3152 = vmatpush.msrb.mxu3 %v3027_v31  ;;  %3240 = vmatpush.msra.mxu1 %v3194_v18  ;;  %v3336_v31 = vld [vmem:[%s11163_s14 + $0x78] sm:$0xff]  ;;  %v3335_v18 = vld [vmem:[%s11163_s14 + $0x70] sm:$0xff] }
0x12fd   :  { %3258 = vmatpush.msra.mxu2 %v3201_v3 }
0x12fe   :  { %3153 = vmatpush.msrb.mxu3 %v3024_v48  ;;  %3241 = vmatpush.msra.mxu1 %v3191_v14  ;;  %v3331_v14 = vld [vmem:[%s11163_s14 + $0x50] sm:$0xff] }
0x12ff   :  { %3259 = vmatpush.msra.mxu2 %v3198_v10 }
0x1300   :  { %3154 = vmatpush.msrb.mxu3 %v3021_v56  ;;  %3242 = vmatpush.msra.mxu1 %v3188_v2  ;;  %v3104_v2 = vadd.f32 %v3103_v33, %v8192_v30 }
0x1301   :  { %3260 = vmatpush.msra.mxu2 %v3195_v20 }
0x1302   :  { %3155 = vmatpush.msrb.mxu3 %v3018_v25  ;;  %3243 = vmatpush.msra.mxu1 %v3185_v43  ;;  %v3329_v25 = vld [vmem:[%s11163_s14 + $0x40] sm:$0xff] }
0x1303   :  { %3261 = vmatpush.msra.mxu2 %v3192_v32 }
0x1304   :  { %3156 = vmatpush.msrb.mxu3 %v3015_v40  ;;  %3244 = vmatpush.msra.mxu1 %v3182_v15 }
0x1305   :  { %3262 = vmatpush.msra.mxu2 %v3189_v61 }
0x1306   :  { %3157 = vmatpush.msrb.mxu3 %v3012_v41  ;;  %3245 = vmatpush.msra.mxu1 %v3179_v34  ;;  %v3326_v34 = vld [vmem:[%s11163_s14 + $0x28] sm:$0xff] }
0x1307   :  { %3263 = vmatpush.msra.mxu2 %v3186_v38 }
0x1308   :  { %3158 = vmatpush.msrb.mxu3 %v3009_v0  ;;  %3246 = vmatpush.msra.mxu1 %v3176_v35  ;;  %v3323_v35 = vld [vmem:[%s11163_s14 + $0x10] sm:$0xff] }
0x1309   :  { %3264 = vmatpush.msra.mxu2 %v3183_v45 }
0x130a   :  { %3159 = vmatpush.msrb.mxu3 %v3006_v9  ;;  %3247 = vmatpush.msra.mxu1 %v3173_v7 }
0x130b   :  { %3265 = vmatpush.msra.mxu2 %v3180_v57 }
0x130c   :  { %3160 = vmatpush.msrb.mxu3 %v3003_v39  ;;  %3248 = vmatpush.msra.mxu1 %v3170_v59 }
0x130d   :  { %3266 = vmatpush.msra.mxu2 %v3177_v36 }
0x130e   :  { %3161 = vmatpush.msrb.mxu3 %v3000_v13  ;;  %3249 = vmatpush.msra.mxu1 %v3167_v1 }
0x130f   :  { %3267 = vmatpush.msra.mxu2 %v3174_v37 }
0x1311   :  { %3268 = vmatpush.msra.mxu2 %v3171_v19 }
0x1313   :  { %3269 = vmatpush.msra.mxu2 %v3168_v28 }
0x1314   :  { %3270 = vmatmul.f32.vlgmr.msra.gmra.mxu2 %v8635_v53 }
0x136c   :  { %v2943_v29 = vpop.f32.mrf.mxu1 }
0x136d   :  { %3082 = vmatmul.f32.vlgmr.msra.gmra.mxu3 %v2943_v29  ;;  %3122 = vmatmul.f32.vlgmr.msrb.gmra.mxu1 %v2943_v29 }
0x136e   :  { %3337 = vmatpush.msra.mxu3 %v3336_v31 }
0x1370   :  { %3338 = vmatpush.msra.mxu3 %v3335_v18 }
0x1372   :  { %3339 = vmatpush.msra.mxu3 %v3334_v46  ;;  %v3231_v56 = vpop.f32.mrf.mxu0 }
0x1373   :  { %v3232_v6 = vadd.f32 %v3231_v56, %v8167_v26 }
0x1374   :  { %3340 = vmatpush.msra.mxu3 %v3333_v11 }
0x1375   :  { %3162 = vmatmul.f32.vlgmr.msrb.gmra.mxu3 %v2943_v29  ;;  %3250 = vmatmul.f32.vlgmr.msra.gmra.mxu1 %v8635_v53 }
0x1376   :  { %3341 = vmatpush.msra.mxu3 %v3332_v47 }
0x1378   :  { %3342 = vmatpush.msra.mxu3 %v3331_v14 }
0x137a   :  { %3343 = vmatpush.msra.mxu3 %v3330_v42 }
0x137c   :  { %3344 = vmatpush.msra.mxu3 %v3329_v25 }
0x137e   :  { %3345 = vmatpush.msra.mxu3 %v3328_v27  ;;  %v3143_v55 = vpop.f32.mrf.mxu2 }
0x137f   :  { %v3144_v45 = vadd.f32 %v3143_v55, %v8214_v62 }
0x1380   :  { %3346 = vmatpush.msra.mxu3 %v3327_v5 }
0x1382   :  { %3347 = vmatpush.msra.mxu3 %v3326_v34 }
0x1384   :  { %3348 = vmatpush.msra.mxu3 %v3325_v24 }
0x1386   :  { %3349 = vmatpush.msra.mxu3 %v3324_v54 }
0x1388   :  { %3350 = vmatpush.msra.mxu3 %v3323_v35 }
0x138a   :  { %3351 = vmatpush.msra.mxu3 %v3322_v60 }
0x138c   :  { %3352 = vmatpush.msra.mxu3 %v3321_v52 }
0x1397   :  { %v3271_v10 = vpop.f32.mrf.mxu2 }
0x1398   :  { %v3272_v57 = vadd.f32 %v3271_v10, %v8216_v4 }
0x13ea   :  { %v3123_v48 = vpop.f32.mrf.mxu1 }
0x13eb   :  { %v3124_v51 = vadd.f32 %v3123_v48, %v3104_v2 }
0x13f0   :  { %v3083_v21 = vpop.f32.mrf.mxu3 }
0x13f1   :  { %v3084_v43 = vadd.f32 %v3083_v21, %v3064_v49 }
0x13f2   :  { %v3251_v40 = vpop.f32.mrf.mxu1 }
0x13f3   :  { %v3274_v15 = vadd.f32 %v3232_v6, %v3084_v43  ;;  %v3252_v12 = vadd.f32 %v3251_v40, %v8197_v44 }
0x13f5   :  { %v6347_v41 = vmul.f32 -1.442695, %v3274_v15  ;;  %v3294_v16 = vadd.f32 %v3252_v12, %v3124_v51 }
0x13f7   :  { %6533 = vpow2.f32 %v6347_v41  ;;  %v6348_v0 = vmul.f32 -1.442695, %v3294_v16 }
0x13f8   :  { %v3163_v19 = vpop.f32.mrf.mxu3 }
0x13f9   :  { %6535 = vpow2.f32 %v6348_v0  ;;  %v3164_v18 = vadd.f32 %v3163_v19, %v3144_v45 }
0x13fd   :  { %v6534_v9 = vpop.eup %6533 }
0x13fe   :  { %v3278_v7 = vadd.f32 1.0, %v6534_v9 }
0x13ff   :  { %v6536_v22 = vpop.eup %6535 }
0x1400   :  { %6537 = vrcp.f32 %v3278_v7  ;;  %v3298_v39 = vadd.f32 1.0, %v6536_v22  ;;  %v3290_v20 = vand.u32 2147483648, %v3278_v7  ;;  %v3288_v38 = vand.u32 2147483647, %v3278_v7 }
0x1401   :  { %vm3284_vm7 = vweird.f32 %v3278_v7 }
0x1402   :  { %6539 = vrcp.f32 %v3298_v39  ;;  %v3291_v28 = vor.u32 1.1754944e-38, %v3290_v20  ;;  %vm3289_vm9 = vcmp.eq.f32.partialorder %v3288_v38, 8.507059e+37  ;;  %v3310_v11 = vand.u32 2147483648, %v3298_v39 }
0x1403   :  { %vm3304_vm11 = vweird.f32 %v3298_v39  ;;  %v3308_v47 = vand.u32 2147483647, %v3298_v39 }
0x1404   :  { %v3311_v14 = vor.u32 1.1754944e-38, %v3310_v11 }
0x1405   :  { %vm3309_vm13 = vcmp.eq.f32.partialorder %v3308_v47, 8.507059e+37 }
0x1406   :  { %v6538_v59 = vpop.eup %6537 }
0x1407   :  { %v3280_v63 = vmul.f32 %v6538_v59, %v3278_v7  ;;  %vm3285_vm6 = vweird.f32 %v6538_v59 }
0x1408   :  { %v6540_v13 = vpop.eup %6539  ;;  %vm3286_vm8 = vmor %vm3284_vm7, %vm3285_vm6 }
0x1409   :  { %v3300_v1 = vmul.f32 %v6540_v13, %v3298_v39  ;;  %v3281_v3 = vsub.f32 1.0, %v3280_v63  ;;  %vm3305_vm10 = vweird.f32 %v6540_v13 }
0x140a   :  { %vm3306_vm12 = vmor %vm3304_vm11, %vm3305_vm10 }
0x140b   :  { %v3301_v32 = vsub.f32 1.0, %v3300_v1  ;;  %v3282_v61 = vmul.f32 %v6538_v59, %v3281_v3 }
0x140d   :  { %v3283_v36 = vadd.f32 %v6538_v59, %v3282_v61  ;;  %v3302_v37 = vmul.f32 %v6540_v13, %v3301_v32 }
0x140f   :  { %v3287_v29 = vsel %vm3286_vm8, %v6538_v59, %v3283_v36  ;;  %v3303_v33 = vadd.f32 %v6540_v13, %v3302_v37 }
0x1410   :  { %v3292_v31 = vsel %vm3289_vm9, %v3291_v28, %v3287_v29 }
0x1411   :  { %v3314_v46 = vmul.f32 %v3292_v31, %v3272_v57  ;;  %v3307_v8 = vsel %vm3306_vm12, %v6540_v13, %v3303_v33 }
0x1412   :  { %v3312_v42 = vsel %vm3309_vm13, %v3311_v14, %v3307_v8 }
0x1413   :  { %v3315_v48 = vadd.f32 %v3314_v46, %v3164_v18  ;;  %v3317_v56 = vsub.f32 1.0, %v3312_v42  ;;  %v3319_v6 = vmul.f32 %v3312_v42, %v8635_v53 }
0x1415   :  { %6541 = vtanh.f32 %v3315_v48 }
0x141b   :  { %v6542_v49 = vpop.eup %6541 }
0x141c   :  { %v3318_v2 = vmul.f32 %v6542_v49, %v3317_v56 }
0x141e   :  { %v9044_v25 = vadd.f32 %v3319_v6, %v3318_v2 }
0x1420   :  { %3353 = vmatmul.f32.vlgmr.msra.gmra.mxu3 %v9044_v25 }
0x14a2   :  { %3363 = sbr.rel (%p6350_p4) target bundleno = 5289 (0x14a9), region = 97 }
0x14a3   :  { %v3354_v21 = vpop.f32.mrf.mxu3 }
0x14a4   :  { %v3355_v43 = vadd.f32 %v8227_v17, %v3354_v21 }
0x14a6   :  { %3358 = vst [vmem:[#allocation14 + $0x10] sm:$0xff] %v3355_v43 }
0x14a7   :  { %v6351_v27 = vld [vmem:[%s11151_s2 + $0x10] sm:$0xff] }
0x14a8   :  { %3366 = vst [vmem:[#allocation6] sm:$0xff] %v6351_v27 }
0x14a9 PF:  { %s6352_s21 = sld [smem:[#allocation7 + $0x2]] }
0x14af   :  { %p6353_p5 = scmp.ne.s32.totalorder %s6352_s21, 0 }
0x14b1   :  { %3371 = sbr.rel (%p6353_p5) target bundleno = 5790 (0x169e), region = 101 }
0x14b6   :  { %3372 = vmax.xlane.f32.xlu0 %v3355_v43  ;;  %v3408_v12 = vld [vmem:[%s11158_s9 + $0x78] sm:$0xff]  ;;  %v3407_v5 = vld [vmem:[%s11158_s9 + $0x70] sm:$0xff]  ;;  %v3406_v41 = vld [vmem:[%s11158_s9 + $0x68] sm:$0xff]  ;;  %v6739_v38 = vmov 1.0  }
0x14b7   :  { %3409 = vmatpush.msra.mxu0 %v3408_v12  ;;  %v3405_v16 = vld [vmem:[%s11158_s9 + $0x60] sm:$0xff]  ;;  %v3404_v34 = vld [vmem:[%s11158_s9 + $0x58] sm:$0xff]  ;;  %v3403_v24 = vld [vmem:[%s11158_s9 + $0x50] sm:$0xff] }
0x14b8   :  { %v3402_v0 = vld [vmem:[%s11158_s9 + $0x48] sm:$0xff]  ;;  %v3401_v54 = vld [vmem:[%s11158_s9 + $0x40] sm:$0xff]  ;;  %v3400_v35 = vld [vmem:[%s11158_s9 + $0x38] sm:$0xff] }
0x14b9   :  { %3410 = vmatpush.msra.mxu0 %v3407_v5  ;;  %v3399_v60 = vld [vmem:[%s11158_s9 + $0x30] sm:$0xff]  ;;  %v3398_v9 = vld [vmem:[%s11158_s9 + $0x28] sm:$0xff]  ;;  %v3397_v52 = vld [vmem:[%s11158_s9 + $0x20] sm:$0xff] }
0x14ba   :  { %v3396_v7 = vld [vmem:[%s11158_s9 + $0x18] sm:$0xff]  ;;  %v3395_v63 = vld [vmem:[%s11158_s9 + $0x10] sm:$0xff]  ;;  %v3394_v13 = vld [vmem:[%s11158_s9 + $0x8] sm:$0xff] }
0x14bb   :  { %3411 = vmatpush.msra.mxu0 %v3406_v41  ;;  %v3393_v1 = vld [vmem:[%s11158_s9] sm:$0xff] }
0x14bd   :  { %3412 = vmatpush.msra.mxu0 %v3405_v16 }
0x14bf   :  { %3413 = vmatpush.msra.mxu0 %v3404_v34 }
0x14c1   :  { %3414 = vmatpush.msra.mxu0 %v3403_v24 }
0x14c3   :  { %3415 = vmatpush.msra.mxu0 %v3402_v0 }
0x14c5   :  { %3416 = vmatpush.msra.mxu0 %v3401_v54 }
0x14c7   :  { %3417 = vmatpush.msra.mxu0 %v3400_v35 }
0x14c9   :  { %3418 = vmatpush.msra.mxu0 %v3399_v60 }
0x14cb   :  { %3419 = vmatpush.msra.mxu0 %v3398_v9 }
0x14cd   :  { %3420 = vmatpush.msra.mxu0 %v3397_v52 }
0x14cf   :  { %3421 = vmatpush.msra.mxu0 %v3396_v7 }
0x14d1   :  { %3422 = vmatpush.msra.mxu0 %v3395_v63 }
0x14d3   :  { %3423 = vmatpush.msra.mxu0 %v3394_v13 }
0x14d5   :  { %3424 = vmatpush.msra.mxu0 %v3393_v1 }
0x1529   :  { %v3373_v53 = vpop.xlane.xlu0 %3372 }
0x152a   :  { %vm3374_vm14 = vcmp.ge.f32.partialorder %v3355_v43, %v3373_v53 }
0x152b   :  { %v3375_v40 = vsel %vm3374_vm14, %v7935_v58, 128 }
0x152c   :  { %v3377_v51 = vshra.s32 %v3375_v40, 16  ;;  %v3376_v22 = vand.u32 65535, %v3375_v40 }
0x152e   :  { %v3379_v15 = vcvt.s32.f32 %v3377_v51  ;;  %v3378_v55 = vcvt.s32.f32 %v3376_v22 }
0x1530   :  { %3380 = vmin.xlane.f32.xlu0 %v3379_v15 }
0x15a3   :  { %v3381_v39 = vpop.xlane.xlu0 %3380 }
0x15a4   :  { %vm3382_vm15 = vcmp.eq.f32.partialorder %v3379_v15, %v3381_v39  ;;  %v3387_v3 = vcvt.f32.s32 %v3381_v39 }
0x15a5   :  { %v3383_v59 = vsel %vm3382_vm15, %v3378_v55, inf }
0x15a6   :  { %3384 = vmin.xlane.f32.xlu1 %v3383_v59  ;;  %v3388_v20 = vshll.u32 %v3387_v3, 16 }
0x1619   :  { %v3385_v10 = vpop.xlane.xlu1 %3384 }
0x161a   :  { %v3386_v32 = vcvt.f32.s32 %v3385_v10 }
0x161c   :  { %v3389_v61 = vadd.s32 %v3388_v20, %v3386_v32 }
0x161e   :  { %vm3390_vm0 = vcmp.eq.s32.totalorder %v7935_v58, %v3389_v61 }
0x161f   :  { %6355 = vmatmul.msk.f32.vlgmr.msra.gmra.mxu0 %vm3390_vm0, %v6739_v38 }
0x169c   :  { %v3426_v45 = vpop.f32.mrf.mxu0 }
0x169d   :  { %3429 = vst [vmem:[#allocation6] sm:$0xff] %v3426_v45 }
0x169e PF:  { %v3446_v57 = vld [vmem:[#allocation4 + $0x50] sm:$0xff]  ;;  %v3445_v36 = vld [vmem:[#allocation4 + $0x60] sm:$0xff]  ;;  %v3444_v37 = vld [vmem:[#allocation4 + $0x8] sm:$0xff]  ;;  %s6358_s7 = sld [smem:[#allocation7 + $0x3]] }
0x169f   :  { %3447 = vmatpush.msra.mxu0 %v3446_v57  ;;  %v3443_v19 = vld [vmem:[#allocation4] sm:$0xff]  ;;  %v3442_v28 = vld [vmem:[#allocation4 + $0x58] sm:$0xff]  ;;  %v3437_v46 = vld [vmem:[#allocation4 + $0x70] sm:$0xff] }
0x16a0   :  { %v3441_v29 = vld [vmem:[#allocation4 + $0x18] sm:$0xff]  ;;  %v3439_v33 = vld [vmem:[#allocation4 + $0x20] sm:$0xff]  ;;  %v3436_v11 = vld [vmem:[#allocation4 + $0x30] sm:$0xff] }
0x16a1   :  { %3448 = vmatpush.msra.mxu0 %v3445_v36  ;;  %v3440_v31 = vld [vmem:[#allocation4 + $0x78] sm:$0xff]  ;;  %v3435_v47 = vld [vmem:[#allocation4 + $0x48] sm:$0xff]  ;;  %v3434_v48 = vld [vmem:[#allocation4 + $0x40] sm:$0xff] }
0x16a2   :  { %v3438_v18 = vld [vmem:[#allocation4 + $0x38] sm:$0xff]  ;;  %v3433_v8 = vld [vmem:[#allocation4 + $0x10] sm:$0xff]  ;;  %v3432_v14 = vld [vmem:[#allocation4 + $0x68] sm:$0xff] }
0x16a3   :  { %3449 = vmatpush.msra.mxu0 %v3444_v37  ;;  %v3431_v42 = vld [vmem:[#allocation4 + $0x28] sm:$0xff]  ;;  %v3492_v6 = vld [vmem:[#allocation3 + $0x78] sm:$0xff]  ;;  %v3491_v21 = vld [vmem:[#allocation3 + $0x70] sm:$0xff] }
0x16a4   :  { %v3493_v2 = vld [vmem:[#allocation3 + $0x28] sm:$0xff]  ;;  %v3490_v43 = vld [vmem:[#allocation3 + $0x60] sm:$0xff]  ;;  %v3489_v27 = vld [vmem:[#allocation3 + $0x38] sm:$0xff]  ;;  %p6359_p6 = scmp.le.s32.totalorder %s6358_s7, 0 }
0x16a5   :  { %3450 = vmatpush.msra.mxu0 %v3443_v19  ;;  %3494 = vmatpush.msra.mxu1 %v3493_v2  ;;  %v3488_v53 = vld [vmem:[#allocation3 + $0x10] sm:$0xff]  ;;  %v3487_v40 = vld [vmem:[#allocation3 + $0x20] sm:$0xff]  ;;  %v3485_v15 = vld [vmem:[#allocation3 + $0x48] sm:$0xff] }
0x16a6   :  { %v3486_v51 = vld [vmem:[#allocation3 + $0x40] sm:$0xff]  ;;  %v3484_v12 = vld [vmem:[#allocation3 + $0x8] sm:$0xff]  ;;  %v3482_v0 = vld [vmem:[#allocation3 + $0x50] sm:$0xff] }
0x16a7   :  { %3451 = vmatpush.msra.mxu0 %v3442_v28  ;;  %3495 = vmatpush.msra.mxu1 %v3492_v6  ;;  %v3483_v5 = vld [vmem:[#allocation3 + $0x68] sm:$0xff]  ;;  %v3481_v54 = vld [vmem:[#allocation3 + $0x18] sm:$0xff]  ;;  %v3479_v60 = vld [vmem:[#allocation3] sm:$0xff] }
0x16a8   :  { %v3480_v35 = vld [vmem:[#allocation3 + $0x58] sm:$0xff]  ;;  %v3478_v9 = vld [vmem:[#allocation3 + $0x30] sm:$0xff]  ;;  %v3563_v52 = vld [vmem:[%s11159_s10 + $0x168] sm:$0xff] }
0x16a9   :  { %3452 = vmatpush.msra.mxu0 %v3441_v29  ;;  %3496 = vmatpush.msra.mxu1 %v3491_v21  ;;  %v3560_v7 = vld [vmem:[%s11159_s10 + $0x150] sm:$0xff]  ;;  %v3557_v22 = vld [vmem:[%s11159_s10 + $0x138] sm:$0xff]  ;;  %v3611_v55 = vld [vmem:[%s11159_s10 + $0x2e8] sm:$0xff] }
0x16aa   :  { %3614 = vmatpush.msra.mxu2 %v3563_v52  ;;  %v3564_v39 = vld [vmem:[%s11159_s10 + $0x170] sm:$0xff]  ;;  %v3561_v59 = vld [vmem:[%s11159_s10 + $0x158] sm:$0xff]  ;;  %3634 = vmatpush.msra.mxu3 %v3611_v55  ;;  %v3558_v1 = vld [vmem:[%s11159_s10 + $0x140] sm:$0xff] }
0x16ab   :  { %3453 = vmatpush.msra.mxu0 %v3440_v31  ;;  %3497 = vmatpush.msra.mxu1 %v3490_v43  ;;  %v3612_v63 = vld [vmem:[%s11159_s10 + $0x2f0] sm:$0xff]  ;;  %v3554_v3 = vld [vmem:[%s11159_s10 + $0x120] sm:$0xff]  ;;  %v3609_v10 = vld [vmem:[%s11159_s10 + $0x2d8] sm:$0xff] }
0x16ac   :  { %3615 = vmatpush.msra.mxu2 %v3560_v7  ;;  %v3608_v13 = vld [vmem:[%s11159_s10 + $0x2d0] sm:$0xff]  ;;  %v3605_v20 = vld [vmem:[%s11159_s10 + $0x2b8] sm:$0xff]  ;;  %v3555_v32 = vld [vmem:[%s11159_s10 + $0x128] sm:$0xff] }
0x16ad   :  { %3454 = vmatpush.msra.mxu0 %v3439_v33  ;;  %3498 = vmatpush.msra.mxu1 %v3489_v27  ;;  %v3606_v61 = vld [vmem:[%s11159_s10 + $0x2c0] sm:$0xff]  ;;  %v3551_v38 = vld [vmem:[%s11159_s10 + $0x108] sm:$0xff]  ;;  %v3552_v57 = vld [vmem:[%s11159_s10 + $0x110] sm:$0xff] }
0x16ae   :  { %3616 = vmatpush.msra.mxu2 %v3557_v22  ;;  %3635 = vmatpush.msra.mxu3 %v3608_v13  ;;  %v3602_v45 = vld [vmem:[%s11159_s10 + $0x2a0] sm:$0xff]  ;;  %v3603_v36 = vld [vmem:[%s11159_s10 + $0x2a8] sm:$0xff]  ;;  %v3548_v37 = vld [vmem:[%s11159_s10 + $0xf0] sm:$0xff] }
0x16af   :  { %3455 = vmatpush.msra.mxu0 %v3438_v18  ;;  %3499 = vmatpush.msra.mxu1 %v3488_v53  ;;  %v3599_v19 = vld [vmem:[%s11159_s10 + $0x288] sm:$0xff]  ;;  %v3549_v28 = vld [vmem:[%s11159_s10 + $0xf8] sm:$0xff]  ;;  %v3600_v29 = vld [vmem:[%s11159_s10 + $0x290] sm:$0xff] }
0x16b0   :  { %3617 = vmatpush.msra.mxu2 %v3554_v3  ;;  %3636 = vmatpush.msra.mxu3 %v3605_v20  ;;  %v3545_v31 = vld [vmem:[%s11159_s10 + $0xd8] sm:$0xff]  ;;  %v3596_v33 = vld [vmem:[%s11159_s10 + $0x270] sm:$0xff]  ;;  %v3546_v18 = vld [vmem:[%s11159_s10 + $0xe0] sm:$0xff] }
0x16b1   :  { %3456 = vmatpush.msra.mxu0 %v3437_v46  ;;  %3500 = vmatpush.msra.mxu1 %v3487_v40  ;;  %v3597_v46 = vld [vmem:[%s11159_s10 + $0x278] sm:$0xff]  ;;  %v3536_v2 = vld [vmem:[%s11159_s10 + $0x90] sm:$0xff]  ;;  %v3587_v6 = vld [vmem:[%s11159_s10 + $0x228] sm:$0xff] }
0x16b2   :  { %3618 = vmatpush.msra.mxu2 %v3551_v38  ;;  %3637 = vmatpush.msra.mxu3 %v3602_v45  ;;  %v3537_v21 = vld [vmem:[%s11159_s10 + $0x98] sm:$0xff]  ;;  %v3588_v43 = vld [vmem:[%s11159_s10 + $0x230] sm:$0xff]  ;;  %v3534_v40 = vld [vmem:[%s11159_s10 + $0x80] sm:$0xff] }
0x16b3   :  { %3457 = vmatpush.msra.mxu0 %v3436_v11  ;;  %3501 = vmatpush.msra.mxu1 %v3486_v51  ;;  %v3542_v11 = vld [vmem:[%s11159_s10 + $0xc0] sm:$0xff]  ;;  %v3533_v27 = vld [vmem:[%s11159_s10 + $0x78] sm:$0xff]  ;;  %v3584_v53 = vld [vmem:[%s11159_s10 + $0x210] sm:$0xff] }
0x16b4   :  { %3619 = vmatpush.msra.mxu2 %v3548_v37  ;;  %3638 = vmatpush.msra.mxu3 %v3599_v19  ;;  %v3585_v51 = vld [vmem:[%s11159_s10 + $0x218] sm:$0xff]  ;;  %v3576_v7 = vld [vmem:[%s11159_s10 + $0x1d0] sm:$0xff]  ;;  %v3522_v55 = vld [vmem:[%s11159_s10 + $0x20] sm:$0xff] }
0x16b5   :  { %3458 = vmatpush.msra.mxu0 %v3435_v47  ;;  %3502 = vmatpush.msra.mxu1 %v3485_v15  ;;  %v3593_v47 = vld [vmem:[%s11159_s10 + $0x258] sm:$0xff]  ;;  %v3530_v15 = vld [vmem:[%s11159_s10 + $0x60] sm:$0xff]  ;;  %v3519_v20 = vld [vmem:[%s11159_s10 + $0x8] sm:$0xff] }
0x16b6   :  { %3620 = vmatpush.msra.mxu2 %v3545_v31  ;;  %3639 = vmatpush.msra.mxu3 %v3596_v33  ;;  %v3525_v52 = vld [vmem:[%s11159_s10 + $0x38] sm:$0xff]  ;;  %v3779_v38 = vld [vmem:[#allocation12 + $0x168] sm:$0xff]  ;;  %v3567_v45 = vld [vmem:[%s11159_s10 + $0x188] sm:$0xff] }
0x16b7   :  { %3459 = vmatpush.msra.mxu0 %v3434_v48  ;;  %3503 = vmatpush.msra.mxu1 %v3484_v12  ;;  %v3543_v48 = vld [vmem:[%s11159_s10 + $0xc8] sm:$0xff]  ;;  %v3581_v12 = vld [vmem:[%s11159_s10 + $0x1f8] sm:$0xff]  ;;  %v3773_v31 = vld [vmem:[#allocation12 + $0x138] sm:$0xff] }
0x16b8   :  { %3621 = vmatpush.msra.mxu2 %v3542_v11  ;;  %3640 = vmatpush.msra.mxu3 %v3593_v47  ;;  %v3521_v22 = vld [vmem:[%s11159_s10 + $0x18] sm:$0xff]  ;;  %v3777_v33 = vld [vmem:[#allocation12 + $0x158] sm:$0xff]  ;;  %v3770_v11 = vld [vmem:[#allocation12 + $0x120] sm:$0xff] }
0x16b9   :  { %3460 = vmatpush.msra.mxu0 %v3433_v8  ;;  %3504 = vmatpush.msra.mxu1 %v3483_v5  ;;  %v3594_v8 = vld [vmem:[%s11159_s10 + $0x260] sm:$0xff]  ;;  %v3531_v5 = vld [vmem:[%s11159_s10 + $0x68] sm:$0xff]  ;;  %v3569_v13 = vld [vmem:[%s11159_s10 + $0x198] sm:$0xff] }
0x16ba   :  { %v3565_v3 = vld [vmem:[%s11159_s10 + $0x178] sm:$0xff]  ;;  %v3774_v47 = vld [vmem:[#allocation12 + $0x140] sm:$0xff] }
0x16bb   :  { %3461 = vmatpush.msra.mxu0 %v3432_v14  ;;  %3505 = vmatpush.msra.mxu1 %v3482_v0  ;;  %v3539_v14 = vld [vmem:[%s11159_s10 + $0xa8] sm:$0xff]  ;;  %v3578_v0 = vld [vmem:[%s11159_s10 + $0x1e0] sm:$0xff]  ;;  %v3776_v37 = vld [vmem:[#allocation12 + $0x150] sm:$0xff] }
0x16bc   :  { %3622 = vmatpush.msra.mxu2 %v3539_v14  ;;  %v3780_v19 = vld [vmem:[#allocation12 + $0x170] sm:$0xff]  ;;  %v3767_v14 = vld [vmem:[#allocation12 + $0x108] sm:$0xff] }
0x16bd   :  { %3462 = vmatpush.msra.mxu0 %v3431_v42  ;;  %3506 = vmatpush.msra.mxu1 %v3481_v54  ;;  %v3590_v42 = vld [vmem:[%s11159_s10 + $0x240] sm:$0xff]  ;;  %v3528_v54 = vld [vmem:[%s11159_s10 + $0x50] sm:$0xff] }
0x16be   :  { %3463 = vmatmul.f32.vlgmr.msra.gmra.mxu0 %v9044_v25  ;;  %3641 = vmatpush.msra.mxu3 %v3590_v42  ;;  %v3771_v42 = vld [vmem:[#allocation12 + $0x128] sm:$0xff] }
0x16bf   :  { %3507 = vmatpush.msra.mxu1 %v3480_v35  ;;  %3654 = vmatpush.msrb.mxu0 %v3564_v39  ;;  %v3579_v35 = vld [vmem:[%s11159_s10 + $0x1e8] sm:$0xff]  ;;  %v3572_v39 = vld [vmem:[%s11159_s10 + $0x1b0] sm:$0xff] }
0x16c0   :  { %3623 = vmatpush.msra.mxu2 %v3536_v2  ;;  %3642 = vmatpush.msra.mxu3 %v3587_v6  ;;  %v3764_v2 = vld [vmem:[#allocation12 + $0xf0] sm:$0xff] }
0x16c1   :  { %3508 = vmatpush.msra.mxu1 %v3479_v60  ;;  %3655 = vmatpush.msrb.mxu0 %v3561_v59  ;;  %v3524_v60 = vld [vmem:[%s11159_s10 + $0x30] sm:$0xff]  ;;  %v3573_v59 = vld [vmem:[%s11159_s10 + $0x1b8] sm:$0xff] }
0x16c2   :  { %3624 = vmatpush.msra.mxu2 %v3533_v27  ;;  %3643 = vmatpush.msra.mxu3 %v3584_v53  ;;  %v3768_v6 = vld [vmem:[#allocation12 + $0x110] sm:$0xff]  ;;  %v3761_v27 = vld [vmem:[#allocation12 + $0xd8] sm:$0xff] }
0x16c3   :  { %3509 = vmatpush.msra.mxu1 %v3478_v9  ;;  %3656 = vmatpush.msrb.mxu0 %v3558_v1  ;;  %v3575_v9 = vld [vmem:[%s11159_s10 + $0x1c8] sm:$0xff]  ;;  %v3765_v53 = vld [vmem:[#allocation12 + $0xf8] sm:$0xff] }
0x16c4   :  { %3625 = vmatpush.msra.mxu2 %v3530_v15  ;;  %3644 = vmatpush.msra.mxu3 %v3581_v12  ;;  %v3758_v15 = vld [vmem:[#allocation12 + $0xc0] sm:$0xff] }
0x16c5   :  { %3674 = vmatpush.msrb.mxu1 %v3612_v63  ;;  %3657 = vmatpush.msrb.mxu0 %v3555_v32  ;;  %v3518_v63 = vld [vmem:[%s11159_s10] sm:$0xff]  ;;  %v3762_v12 = vld [vmem:[#allocation12 + $0xe0] sm:$0xff] }
0x16c6   :  { %3645 = vmatpush.msra.mxu3 %v3578_v0  ;;  %v3570_v32 = vld [vmem:[%s11159_s10 + $0x1a0] sm:$0xff]  ;;  %v3755_v0 = vld [vmem:[#allocation12 + $0xa8] sm:$0xff] }
0x16c7   :  { %3675 = vmatpush.msrb.mxu1 %v3609_v10  ;;  %3658 = vmatpush.msrb.mxu0 %v3552_v57  ;;  %v3559_v57 = vld [vmem:[%s11159_s10 + $0x148] sm:$0xff] }
0x16c8   :  { %3646 = vmatpush.msra.mxu3 %v3575_v9  ;;  %v3752_v9 = vld [vmem:[#allocation12 + $0x90] sm:$0xff] }
0x16c9   :  { %3676 = vmatpush.msrb.mxu1 %v3606_v61  ;;  %3659 = vmatpush.msrb.mxu0 %v3549_v28  ;;  %v3562_v61 = vld [vmem:[%s11159_s10 + $0x160] sm:$0xff]  ;;  %v3556_v28 = vld [vmem:[%s11159_s10 + $0x130] sm:$0xff] }
0x16ca   :  { %3647 = vmatpush.msra.mxu3 %v3572_v39  ;;  %v3749_v39 = vld [vmem:[#allocation12 + $0x78] sm:$0xff] }
0x16cb   :  { %3677 = vmatpush.msrb.mxu1 %v3603_v36  ;;  %3660 = vmatpush.msrb.mxu0 %v3546_v18  ;;  %v3613_v36 = vld [vmem:[%s11159_s10 + $0x2f8] sm:$0xff] }
0x16cc   :  { %3648 = vmatpush.msra.mxu3 %v3569_v13  ;;  %v3553_v18 = vld [vmem:[%s11159_s10 + $0x118] sm:$0xff]  ;;  %v3746_v13 = vld [vmem:[#allocation12 + $0x60] sm:$0xff] }
0x16cd   :  { %3678 = vmatpush.msrb.mxu1 %v3600_v29  ;;  %3661 = vmatpush.msrb.mxu0 %v3543_v48  ;;  %v3610_v29 = vld [vmem:[%s11159_s10 + $0x2e0] sm:$0xff] }
0x16ce   :  { %v3550_v48 = vld [vmem:[%s11159_s10 + $0x100] sm:$0xff] }
0x16cf   :  { %3679 = vmatpush.msrb.mxu1 %v3597_v46  ;;  %v3607_v46 = vld [vmem:[%s11159_s10 + $0x2c8] sm:$0xff] }
0x16d1   :  { %3680 = vmatpush.msrb.mxu1 %v3594_v8  ;;  %v3604_v8 = vld [vmem:[%s11159_s10 + $0x2b0] sm:$0xff] }
0x173b   :  { %v3464_v56 = vpop.f32.mrf.mxu0 }
0x173c   :  { %v3465_v49 = vadd.f32 %v3464_v56, %v7991_v50  ;;  %v3540_v56 = vld [vmem:[%s11159_s10 + $0xb0] sm:$0xff] }
0x173d   :  { %3662 = vmatpush.msrb.mxu0 %v3540_v56  ;;  %v3547_v56 = vld [vmem:[%s11159_s10 + $0xe8] sm:$0xff] }
0x173e   :  { %3467 = vmax.xlane.f32.xlu0 %v3465_v49 }
0x173f   :  { %3663 = vmatpush.msrb.mxu0 %v3537_v21  ;;  %v3544_v21 = vld [vmem:[%s11159_s10 + $0xd0] sm:$0xff] }
0x1741   :  { %3664 = vmatpush.msrb.mxu0 %v3534_v40  ;;  %v3541_v40 = vld [vmem:[%s11159_s10 + $0xb8] sm:$0xff] }
0x1743   :  { %3665 = vmatpush.msrb.mxu0 %v3531_v5  ;;  %v3538_v5 = vld [vmem:[%s11159_s10 + $0xa0] sm:$0xff] }
0x1745   :  { %3666 = vmatpush.msrb.mxu0 %v3528_v54  ;;  %v3759_v54 = vld [vmem:[#allocation12 + $0xc8] sm:$0xff] }
0x1747   :  { %3667 = vmatpush.msrb.mxu0 %v3525_v52  ;;  %v3756_v52 = vld [vmem:[#allocation12 + $0xb0] sm:$0xff] }
0x1749   :  { %3668 = vmatpush.msrb.mxu0 %v3522_v55  ;;  %v3753_v55 = vld [vmem:[#allocation12 + $0x98] sm:$0xff] }
0x174b   :  { %3669 = vmatpush.msrb.mxu0 %v3519_v20  ;;  %v3580_v20 = vld [vmem:[%s11159_s10 + $0x1f0] sm:$0xff] }
0x174d   :  { %3782 = vmatpush.msra.mxu0 %v3779_v38  ;;  %v3781_v38 = vld [vmem:[#allocation12 + $0x178] sm:$0xff] }
0x174f   :  { %3783 = vmatpush.msra.mxu0 %v3776_v37  ;;  %v3574_v37 = vld [vmem:[%s11159_s10 + $0x1c0] sm:$0xff] }
0x1751   :  { %3784 = vmatpush.msra.mxu0 %v3773_v31  ;;  %v3571_v31 = vld [vmem:[%s11159_s10 + $0x1a8] sm:$0xff] }
0x1753   :  { %3785 = vmatpush.msra.mxu0 %v3770_v11  ;;  %v3568_v11 = vld [vmem:[%s11159_s10 + $0x190] sm:$0xff] }
0x1755   :  { %3786 = vmatpush.msra.mxu0 %v3767_v14  ;;  %v3763_v14 = vld [vmem:[#allocation12 + $0xe8] sm:$0xff] }
0x1757   :  { %3787 = vmatpush.msra.mxu0 %v3764_v2  ;;  %v3751_v2 = vld [vmem:[#allocation12 + $0x88] sm:$0xff] }
0x1759   :  { %3788 = vmatpush.msra.mxu0 %v3761_v27  ;;  %v3739_v27 = vld [vmem:[#allocation12 + $0x28] sm:$0xff] }
0x175b   :  { %3789 = vmatpush.msra.mxu0 %v3758_v15 }
0x175d   :  { %3790 = vmatpush.msra.mxu0 %v3755_v0 }
0x175f   :  { %3791 = vmatpush.msra.mxu0 %v3752_v9 }
0x1761   :  { %3792 = vmatpush.msra.mxu0 %v3749_v39 }
0x1763   :  { %3793 = vmatpush.msra.mxu0 %v3746_v13 }
0x17b1   :  { %v3468_v41 = vpop.xlane.xlu0 %3467 }
0x17b2   :  { %v3469_v16 = vsub.f32 %v3465_v49, %v3468_v41  ;;  %v3591_v49 = vld [vmem:[%s11159_s10 + $0x248] sm:$0xff]  ;;  %v3582_v41 = vld [vmem:[%s11159_s10 + $0x200] sm:$0xff] }
0x17b3   :  { %3681 = vmatpush.msrb.mxu1 %v3591_v49  ;;  %v3601_v49 = vld [vmem:[%s11159_s10 + $0x298] sm:$0xff] }
0x17b4   :  { %v3470_v34 = vmul.f32 1.442695, %v3469_v16 }
0x17b5   :  { %3682 = vmatpush.msrb.mxu1 %v3588_v43  ;;  %v3598_v43 = vld [vmem:[%s11159_s10 + $0x280] sm:$0xff] }
0x17b6   :  { %6543 = vpow2.f32 %v3470_v34  ;;  %v3527_v34 = vld [vmem:[%s11159_s10 + $0x48] sm:$0xff] }
0x17b7   :  { %3683 = vmatpush.msrb.mxu1 %v3585_v51  ;;  %3626 = vmatpush.msra.mxu2 %v3527_v34  ;;  %v3595_v51 = vld [vmem:[%s11159_s10 + $0x268] sm:$0xff]  ;;  %v3592_v34 = vld [vmem:[%s11159_s10 + $0x250] sm:$0xff] }
0x17b9   :  { %3684 = vmatpush.msrb.mxu1 %v3582_v41  ;;  %3627 = vmatpush.msra.mxu2 %v3524_v60  ;;  %v3535_v41 = vld [vmem:[%s11159_s10 + $0x88] sm:$0xff]  ;;  %v3589_v60 = vld [vmem:[%s11159_s10 + $0x238] sm:$0xff] }
0x17bb   :  { %3685 = vmatpush.msrb.mxu1 %v3579_v35  ;;  %3628 = vmatpush.msra.mxu2 %v3521_v22  ;;  %v3529_v35 = vld [vmem:[%s11159_s10 + $0x58] sm:$0xff]  ;;  %v3586_v22 = vld [vmem:[%s11159_s10 + $0x220] sm:$0xff] }
0x17bc   :  { %v9103_v24 = vpop.eup %6543 }
0x17bd   :  { %3472 = vadd.xlane.f32.xlu0 %v9103_v24  ;;  %3686 = vmatpush.msrb.mxu1 %v3576_v7  ;;  %v3526_v7 = vld [vmem:[%s11159_s10 + $0x40] sm:$0xff] }
0x17be   :  { %3629 = vmatpush.msra.mxu2 %v3518_v63  ;;  %v3583_v63 = vld [vmem:[%s11159_s10 + $0x208] sm:$0xff] }
0x17bf   :  { %3687 = vmatpush.msrb.mxu1 %v3573_v59  ;;  %v3523_v59 = vld [vmem:[%s11159_s10 + $0x28] sm:$0xff] }
0x17c0   :  { %3694 = vmatpush.msrb.mxu2 %v3565_v3  ;;  %v3430_v3 = vld [vmem:[#allocation6] sm:$0xff] }
0x17c1   :  { %3688 = vmatpush.msrb.mxu1 %v3570_v32  ;;  %3630 = vmatmul.f32.vlgmr.msra.gmra.mxu2 %v3430_v3  ;;  %v3743_v32 = vld [vmem:[#allocation12 + $0x48] sm:$0xff] }
0x17c2   :  { %3695 = vmatpush.msrb.mxu2 %v3562_v61  ;;  %v3747_v61 = vld [vmem:[#allocation12 + $0x68] sm:$0xff]  ;;  %3670 = vmatmul.f32.vlgmr.msrb.gmra.mxu0 %v3430_v3 }
0x17c3   :  { %3689 = vmatpush.msrb.mxu1 %v3567_v45  ;;  %3794 = vmatpush.msra.mxu0 %v3743_v32  ;;  %v3740_v45 = vld [vmem:[#allocation12 + $0x30] sm:$0xff] }
0x17c4   :  { %3696 = vmatpush.msrb.mxu2 %v3559_v57  ;;  %v3744_v57 = vld [vmem:[#allocation12 + $0x50] sm:$0xff] }
0x17c5   :  { %3795 = vmatpush.msra.mxu0 %v3740_v45  ;;  %v3892_v45 = vld [vmem:[%s11163_s14 + $0x18] sm:$0xff] }
0x17c6   :  { %3697 = vmatpush.msrb.mxu2 %v3556_v28  ;;  %v3741_v28 = vld [vmem:[#allocation12 + $0x38] sm:$0xff] }
0x17c8   :  { %3698 = vmatpush.msrb.mxu2 %v3553_v18  ;;  %v3738_v18 = vld [vmem:[#allocation12 + $0x20] sm:$0xff] }
0x17ca   :  { %3699 = vmatpush.msrb.mxu2 %v3550_v48  ;;  %v3769_v48 = vld [vmem:[#allocation12 + $0x118] sm:$0xff] }
0x17cc   :  { %3700 = vmatpush.msrb.mxu2 %v3547_v56  ;;  %v3757_v56 = vld [vmem:[#allocation12 + $0xb8] sm:$0xff] }
0x17ce   :  { %3701 = vmatpush.msrb.mxu2 %v3544_v21  ;;  %v3745_v21 = vld [vmem:[#allocation12 + $0x58] sm:$0xff] }
0x17d0   :  { %3702 = vmatpush.msrb.mxu2 %v3541_v40 }
0x17d2   :  { %3703 = vmatpush.msrb.mxu2 %v3538_v5  ;;  %v3902_v5 = vld [vmem:[%s11163_s14 + $0x68] sm:$0xff] }
0x17d4   :  { %3704 = vmatpush.msrb.mxu2 %v3535_v41  ;;  %v3901_v41 = vld [vmem:[%s11163_s14 + $0x60] sm:$0xff] }
0x1830   :  { %v3473_v16 = vpop.xlane.xlu0 %3472 }
0x1831   :  { %6545 = vrcp.f32 %v3473_v16  ;;  %v3532_v16 = vld [vmem:[%s11159_s10 + $0x70] sm:$0xff] }
0x1832   :  { %3705 = vmatpush.msrb.mxu2 %v3532_v16  ;;  %v3900_v16 = vld [vmem:[%s11163_s14 + $0x58] sm:$0xff] }
0x1834   :  { %3706 = vmatpush.msrb.mxu2 %v3529_v35  ;;  %v3898_v35 = vld [vmem:[%s11163_s14 + $0x48] sm:$0xff] }
0x1836   :  { %3707 = vmatpush.msrb.mxu2 %v3526_v7 }
0x1837   :  { %v6546_v1 = vpop.eup %6545 }
0x1838   :  { %v3475_v10 = vmul.f32 %v6546_v1, %v9103_v24  ;;  %v3566_v24 = vld [vmem:[%s11159_s10 + $0x180] sm:$0xff]  ;;  %3708 = vmatpush.msrb.mxu2 %v3523_v59  ;;  %v3750_v1 = vld [vmem:[#allocation12 + $0x80] sm:$0xff]  ;;  %v3896_v59 = vld [vmem:[%s11163_s14 + $0x38] sm:$0xff] }
0x1839   :  { %3649 = vmatpush.msra.mxu3 %v3566_v24  ;;  %v3577_v24 = vld [vmem:[%s11159_s10 + $0x1d8] sm:$0xff] }
0x183a   :  { %3477 = vst [vmem:[#allocation15 + $0x18] sm:$0xff] %v3475_v10  ;;  %3510 = vmatmul.f32.vlgmr.msra.gmra.mxu1 %v3475_v10  ;;  %v3520_v10 = vld [vmem:[%s11159_s10 + $0x10] sm:$0xff] }
0x183b   :  { %3714 = vmatpush.msrb.mxu3 %v3613_v36  ;;  %3802 = vmatpush.msra.mxu1 %v3780_v19  ;;  %v3778_v36 = vld [vmem:[#allocation12 + $0x160] sm:$0xff]  ;;  %v3737_v19 = vld [vmem:[#allocation12 + $0x18] sm:$0xff] }
0x183c   :  { %3709 = vmatpush.msrb.mxu2 %v3520_v10  ;;  %3796 = vmatpush.msra.mxu0 %v3737_v19  ;;  %v3895_v10 = vld [vmem:[%s11163_s14 + $0x30] sm:$0xff]  ;;  %v3889_v19 = vld [vmem:[%s11163_s14] sm:$0xff] }
0x183d   :  { %3715 = vmatpush.msrb.mxu3 %v3610_v29  ;;  %3803 = vmatpush.msra.mxu1 %v3777_v33  ;;  %v3775_v29 = vld [vmem:[#allocation12 + $0x148] sm:$0xff]  ;;  %v3734_v33 = vld [vmem:[#allocation12] sm:$0xff] }
0x183e   :  { %3822 = vmatpush.msra.mxu2 %v3781_v38  ;;  %3797 = vmatpush.msra.mxu0 %v3734_v33  ;;  %v3893_v38 = vld [vmem:[%s11163_s14 + $0x20] sm:$0xff] }
0x183f   :  { %3716 = vmatpush.msrb.mxu3 %v3607_v46  ;;  %3804 = vmatpush.msra.mxu1 %v3774_v47  ;;  %v3772_v46 = vld [vmem:[#allocation12 + $0x130] sm:$0xff]  ;;  %v3735_v47 = vld [vmem:[#allocation12 + $0x8] sm:$0xff]  ;;  %v3671_v15 = vpop.f32.mrf.mxu0 }
0x1840   :  { %3823 = vmatpush.msra.mxu2 %v3778_v36  ;;  %3798 = vmatmul.f32.vlgmr.msra.gmra.mxu0 %v9044_v25  ;;  %v3890_v36 = vld [vmem:[%s11163_s14 + $0x8] sm:$0xff] }
0x1841   :  { %3717 = vmatpush.msrb.mxu3 %v3604_v8  ;;  %3805 = vmatpush.msra.mxu1 %v3771_v42  ;;  %v3766_v8 = vld [vmem:[#allocation12 + $0x100] sm:$0xff]  ;;  %v3760_v42 = vld [vmem:[#allocation12 + $0xd0] sm:$0xff] }
0x1842   :  { %3824 = vmatpush.msra.mxu2 %v3775_v29 }
0x1843   :  { %3718 = vmatpush.msrb.mxu3 %v3601_v49  ;;  %3806 = vmatpush.msra.mxu1 %v3768_v6  ;;  %v3754_v49 = vld [vmem:[#allocation12 + $0xa0] sm:$0xff]  ;;  %v3748_v6 = vld [vmem:[#allocation12 + $0x70] sm:$0xff] }
0x1844   :  { %3825 = vmatpush.msra.mxu2 %v3772_v46  ;;  %v3631_v0 = vpop.f32.mrf.mxu2 }
0x1845   :  { %3719 = vmatpush.msrb.mxu3 %v3598_v43  ;;  %3807 = vmatpush.msra.mxu1 %v3765_v53  ;;  %v3742_v43 = vld [vmem:[#allocation12 + $0x40] sm:$0xff]  ;;  %v3736_v53 = vld [vmem:[#allocation12 + $0x10] sm:$0xff]  ;;  %v3632_v9 = vadd.f32 %v3631_v0, %v8155_v23 }
0x1846   :  { %3710 = vmatmul.f32.vlgmr.msrb.gmra.mxu2 %v3430_v3 }
0x1847   :  { %3720 = vmatpush.msrb.mxu3 %v3595_v51  ;;  %3808 = vmatpush.msra.mxu1 %v3762_v12  ;;  %v3904_v51 = vld [vmem:[%s11163_s14 + $0x78] sm:$0xff]  ;;  %v3903_v12 = vld [vmem:[%s11163_s14 + $0x70] sm:$0xff] }
0x1848   :  { %3826 = vmatpush.msra.mxu2 %v3769_v48 }
0x1849   :  { %3721 = vmatpush.msrb.mxu3 %v3592_v34  ;;  %3809 = vmatpush.msra.mxu1 %v3759_v54  ;;  %v3899_v54 = vld [vmem:[%s11163_s14 + $0x50] sm:$0xff] }
0x184a   :  { %3827 = vmatpush.msra.mxu2 %v3766_v8 }
0x184b   :  { %3722 = vmatpush.msrb.mxu3 %v3589_v60  ;;  %3810 = vmatpush.msra.mxu1 %v3756_v52  ;;  %v3672_v52 = vadd.f32 %v3671_v15, %v8192_v30 }
0x184c   :  { %3828 = vmatpush.msra.mxu2 %v3763_v14 }
0x184d   :  { %3723 = vmatpush.msrb.mxu3 %v3586_v22  ;;  %3811 = vmatpush.msra.mxu1 %v3753_v55  ;;  %v3897_v22 = vld [vmem:[%s11163_s14 + $0x40] sm:$0xff] }
0x184e   :  { %3829 = vmatpush.msra.mxu2 %v3760_v42 }
0x184f   :  { %3724 = vmatpush.msrb.mxu3 %v3583_v63  ;;  %3812 = vmatpush.msra.mxu1 %v3750_v1 }
0x1850   :  { %3830 = vmatpush.msra.mxu2 %v3757_v56 }
0x1851   :  { %3725 = vmatpush.msrb.mxu3 %v3580_v20  ;;  %3813 = vmatpush.msra.mxu1 %v3747_v61  ;;  %v3894_v61 = vld [vmem:[%s11163_s14 + $0x28] sm:$0xff] }
0x1852   :  { %3831 = vmatpush.msra.mxu2 %v3754_v49 }
0x1853   :  { %3726 = vmatpush.msrb.mxu3 %v3577_v24  ;;  %3814 = vmatpush.msra.mxu1 %v3744_v57  ;;  %v3891_v57 = vld [vmem:[%s11163_s14 + $0x10] sm:$0xff] }
0x1854   :  { %3832 = vmatpush.msra.mxu2 %v3751_v2 }
0x1855   :  { %3727 = vmatpush.msrb.mxu3 %v3574_v37  ;;  %3815 = vmatpush.msra.mxu1 %v3741_v28 }
0x1856   :  { %3833 = vmatpush.msra.mxu2 %v3748_v6 }
0x1857   :  { %3728 = vmatpush.msrb.mxu3 %v3571_v31  ;;  %3816 = vmatpush.msra.mxu1 %v3738_v18 }
0x1858   :  { %3834 = vmatpush.msra.mxu2 %v3745_v21 }
0x1859   :  { %3729 = vmatpush.msrb.mxu3 %v3568_v11  ;;  %3817 = vmatpush.msra.mxu1 %v3735_v47 }
0x185a   :  { %3835 = vmatpush.msra.mxu2 %v3742_v43 }
0x185c   :  { %3836 = vmatpush.msra.mxu2 %v3739_v27 }
0x185e   :  { %3837 = vmatpush.msra.mxu2 %v3736_v53 }
0x185f   :  { %3838 = vmatmul.f32.vlgmr.msra.gmra.mxu2 %v9044_v25 }
0x18b7   :  { %v3511_v40 = vpop.f32.mrf.mxu1 }
0x18b8   :  { %3650 = vmatmul.f32.vlgmr.msra.gmra.mxu3 %v3511_v40  ;;  %3690 = vmatmul.f32.vlgmr.msrb.gmra.mxu1 %v3511_v40 }
0x18b9   :  { %3905 = vmatpush.msra.mxu3 %v3904_v51 }
0x18bb   :  { %3906 = vmatpush.msra.mxu3 %v3903_v12 }
0x18bd   :  { %3907 = vmatpush.msra.mxu3 %v3902_v5  ;;  %v3799_v60 = vpop.f32.mrf.mxu0 }
0x18be   :  { %v3800_v7 = vadd.f32 %v3799_v60, %v8167_v26 }
0x18bf   :  { %3908 = vmatpush.msra.mxu3 %v3901_v41 }
0x18c0   :  { %3730 = vmatmul.f32.vlgmr.msrb.gmra.mxu3 %v3511_v40  ;;  %3818 = vmatmul.f32.vlgmr.msra.gmra.mxu1 %v9044_v25 }
0x18c1   :  { %3909 = vmatpush.msra.mxu3 %v3900_v16 }
0x18c3   :  { %3910 = vmatpush.msra.mxu3 %v3899_v54 }
0x18c5   :  { %3911 = vmatpush.msra.mxu3 %v3898_v35 }
0x18c7   :  { %3912 = vmatpush.msra.mxu3 %v3897_v22 }
0x18c9   :  { %3913 = vmatpush.msra.mxu3 %v3896_v59  ;;  %v3711_v33 = vpop.f32.mrf.mxu2 }
0x18ca   :  { %v3712_v2 = vadd.f32 %v3711_v33, %v8214_v62 }
0x18cb   :  { %3914 = vmatpush.msra.mxu3 %v3895_v10 }
0x18cd   :  { %3915 = vmatpush.msra.mxu3 %v3894_v61 }
0x18cf   :  { %3916 = vmatpush.msra.mxu3 %v3893_v38 }
0x18d1   :  { %3917 = vmatpush.msra.mxu3 %v3892_v45 }
0x18d3   :  { %3918 = vmatpush.msra.mxu3 %v3891_v57 }
0x18d5   :  { %3919 = vmatpush.msra.mxu3 %v3890_v36 }
0x18d7   :  { %3920 = vmatpush.msra.mxu3 %v3889_v19 }
0x18e2   :  { %v3839_v8 = vpop.f32.mrf.mxu2 }
0x18e3   :  { %v3840_v6 = vadd.f32 %v3839_v8, %v8216_v4 }
0x1935   :  { %v3691_v34 = vpop.f32.mrf.mxu1 }
0x1936   :  { %v3692_v13 = vadd.f32 %v3691_v34, %v3672_v52 }
0x193b   :  { %v3651_v39 = vpop.f32.mrf.mxu3 }
0x193c   :  { %v3652_v55 = vadd.f32 %v3651_v39, %v3632_v9 }
0x193d   :  { %v3819_v63 = vpop.f32.mrf.mxu1 }
0x193e   :  { %v3842_v1 = vadd.f32 %v3800_v7, %v3652_v55  ;;  %v3820_v3 = vadd.f32 %v3819_v63, %v8197_v44 }
0x1940   :  { %v6356_v20 = vmul.f32 -1.442695, %v3842_v1  ;;  %v3862_v32 = vadd.f32 %v3820_v3, %v3692_v13 }
0x1942   :  { %6547 = vpow2.f32 %v6356_v20  ;;  %v6357_v24 = vmul.f32 -1.442695, %v3862_v32 }
0x1943   :  { %v3731_v27 = vpop.f32.mrf.mxu3 }
0x1944   :  { %6549 = vpow2.f32 %v6357_v24  ;;  %v3732_v12 = vadd.f32 %v3731_v27, %v3712_v2 }
0x1948   :  { %v6548_v37 = vpop.eup %6547 }
0x1949   :  { %v3846_v28 = vadd.f32 1.0, %v6548_v37 }
0x194a   :  { %v6550_v29 = vpop.eup %6549 }
0x194b   :  { %6551 = vrcp.f32 %v3846_v28  ;;  %v3866_v31 = vadd.f32 1.0, %v6550_v29  ;;  %v3858_v14 = vand.u32 2147483648, %v3846_v28  ;;  %v3856_v49 = vand.u32 2147483647, %v3846_v28 }
0x194c   :  { %vm3852_vm2 = vweird.f32 %v3846_v28 }
0x194d   :  { %6553 = vrcp.f32 %v3866_v31  ;;  %v3859_v53 = vor.u32 1.1754944e-38, %v3858_v14  ;;  %vm3857_vm4 = vcmp.eq.f32.partialorder %v3856_v49, 8.507059e+37  ;;  %v3878_v41 = vand.u32 2147483648, %v3866_v31 }
0x194e   :  { %vm3872_vm6 = vweird.f32 %v3866_v31  ;;  %v3876_v16 = vand.u32 2147483647, %v3866_v31 }
0x194f   :  { %v3879_v54 = vor.u32 1.1754944e-38, %v3878_v41 }
0x1950   :  { %vm3877_vm8 = vcmp.eq.f32.partialorder %v3876_v16, 8.507059e+37 }
0x1951   :  { %v6552_v18 = vpop.eup %6551 }
0x1952   :  { %v3848_v46 = vmul.f32 %v6552_v18, %v3846_v28  ;;  %vm3853_vm1 = vweird.f32 %v6552_v18 }
0x1953   :  { %v6554_v11 = vpop.eup %6553  ;;  %vm3854_vm3 = vmor %vm3852_vm2, %vm3853_vm1 }
0x1954   :  { %v3868_v47 = vmul.f32 %v6554_v11, %v3866_v31  ;;  %v3849_v48 = vsub.f32 1.0, %v3848_v46  ;;  %vm3873_vm5 = vweird.f32 %v6554_v11 }
0x1955   :  { %vm3874_vm7 = vmor %vm3872_vm6, %vm3873_vm5 }
0x1956   :  { %v3869_v42 = vsub.f32 1.0, %v3868_v47  ;;  %v3850_v56 = vmul.f32 %v6552_v18, %v3849_v48 }
0x1958   :  { %v3851_v21 = vadd.f32 %v6552_v18, %v3850_v56  ;;  %v3870_v43 = vmul.f32 %v6554_v11, %v3869_v42 }
0x195a   :  { %v3855_v40 = vsel %vm3854_vm3, %v6552_v18, %v3851_v21  ;;  %v3871_v15 = vadd.f32 %v6554_v11, %v3870_v43 }
0x195b   :  { %v3860_v51 = vsel %vm3857_vm4, %v3859_v53, %v3855_v40 }
0x195c   :  { %v3882_v5 = vmul.f32 %v3860_v51, %v3840_v6  ;;  %v3875_v0 = vsel %vm3874_vm7, %v6554_v11, %v3871_v15 }
0x195d   :  { %v3880_v35 = vsel %vm3877_vm8, %v3879_v54, %v3875_v0 }
0x195e   :  { %v3883_v34 = vadd.f32 %v3882_v5, %v3732_v12  ;;  %v3885_v60 = vsub.f32 1.0, %v3880_v35  ;;  %v3887_v7 = vmul.f32 %v3880_v35, %v9044_v25 }
0x1960   :  { %6555 = vtanh.f32 %v3883_v34 }
0x1966   :  { %v6556_v9 = vpop.eup %6555 }
0x1967   :  { %v3886_v52 = vmul.f32 %v6556_v9, %v3885_v60 }
0x1969   :  { %v9453_v22 = vadd.f32 %v3887_v7, %v3886_v52 }
0x196b   :  { %3921 = vmatmul.f32.vlgmr.msra.gmra.mxu3 %v9453_v22 }
0x19ed   :  { %3931 = sbr.rel (%p6359_p6) target bundleno = 6644 (0x19f4), region = 105 }
0x19ee   :  { %v3922_v39 = vpop.f32.mrf.mxu3 }
0x19ef   :  { %v3923_v55 = vadd.f32 %v8227_v17, %v3922_v39 }
0x19f1   :  { %3926 = vst [vmem:[#allocation14 + $0x18] sm:$0xff] %v3923_v55 }
0x19f2   :  { %v6360_v59 = vld [vmem:[%s11151_s2 + $0x18] sm:$0xff] }
0x19f3   :  { %3934 = vst [vmem:[#allocation6] sm:$0xff] %v6360_v59 }
0x19f4 PF:  { %s6361_s25 = sld [smem:[#allocation7 + $0x3]] }
0x19fa   :  { %p6362_p7 = scmp.ne.s32.totalorder %s6361_s25, 0 }
0x19fc   :  { %3939 = sbr.rel (%p6362_p7) target bundleno = 7145 (0x1be9), region = 109 }
0x1a01   :  { %3940 = vmax.xlane.f32.xlu0 %v3923_v55  ;;  %v3976_v3 = vld [vmem:[%s11158_s9 + $0x78] sm:$0xff]  ;;  %v3975_v10 = vld [vmem:[%s11158_s9 + $0x70] sm:$0xff]  ;;  %v3974_v20 = vld [vmem:[%s11158_s9 + $0x68] sm:$0xff]  ;;  %v6740_v49 = vmov 1.0  }
0x1a02   :  { %3977 = vmatpush.msra.mxu0 %v3976_v3  ;;  %v3973_v32 = vld [vmem:[%s11158_s9 + $0x60] sm:$0xff]  ;;  %v3972_v61 = vld [vmem:[%s11158_s9 + $0x58] sm:$0xff]  ;;  %v3971_v38 = vld [vmem:[%s11158_s9 + $0x50] sm:$0xff] }
0x1a03   :  { %v3970_v24 = vld [vmem:[%s11158_s9 + $0x48] sm:$0xff]  ;;  %v3969_v45 = vld [vmem:[%s11158_s9 + $0x40] sm:$0xff]  ;;  %v3968_v57 = vld [vmem:[%s11158_s9 + $0x38] sm:$0xff] }
0x1a04   :  { %3978 = vmatpush.msra.mxu0 %v3975_v10  ;;  %v3967_v36 = vld [vmem:[%s11158_s9 + $0x30] sm:$0xff]  ;;  %v3966_v37 = vld [vmem:[%s11158_s9 + $0x28] sm:$0xff]  ;;  %v3965_v19 = vld [vmem:[%s11158_s9 + $0x20] sm:$0xff] }
0x1a05   :  { %v3964_v28 = vld [vmem:[%s11158_s9 + $0x18] sm:$0xff]  ;;  %v3963_v46 = vld [vmem:[%s11158_s9 + $0x10] sm:$0xff]  ;;  %v3962_v11 = vld [vmem:[%s11158_s9 + $0x8] sm:$0xff] }
0x1a06   :  { %3979 = vmatpush.msra.mxu0 %v3974_v20  ;;  %v3961_v47 = vld [vmem:[%s11158_s9] sm:$0xff] }
0x1a08   :  { %3980 = vmatpush.msra.mxu0 %v3973_v32 }
0x1a0a   :  { %3981 = vmatpush.msra.mxu0 %v3972_v61 }
0x1a0c   :  { %3982 = vmatpush.msra.mxu0 %v3971_v38 }
0x1a0e   :  { %3983 = vmatpush.msra.mxu0 %v3970_v24 }
0x1a10   :  { %3984 = vmatpush.msra.mxu0 %v3969_v45 }
0x1a12   :  { %3985 = vmatpush.msra.mxu0 %v3968_v57 }
0x1a14   :  { %3986 = vmatpush.msra.mxu0 %v3967_v36 }
0x1a16   :  { %3987 = vmatpush.msra.mxu0 %v3966_v37 }
0x1a18   :  { %3988 = vmatpush.msra.mxu0 %v3965_v19 }
0x1a1a   :  { %3989 = vmatpush.msra.mxu0 %v3964_v28 }
0x1a1c   :  { %3990 = vmatpush.msra.mxu0 %v3963_v46 }
0x1a1e   :  { %3991 = vmatpush.msra.mxu0 %v3962_v11 }
0x1a20   :  { %3992 = vmatpush.msra.mxu0 %v3961_v47 }
0x1a74   :  { %v3941_v25 = vpop.xlane.xlu0 %3940 }
0x1a75   :  { %vm3942_vm9 = vcmp.ge.f32.partialorder %v3923_v55, %v3941_v25 }
0x1a76   :  { %v3943_v63 = vsel %vm3942_vm9, %v7935_v58, 128 }
0x1a77   :  { %v3945_v13 = vshra.s32 %v3943_v63, 16  ;;  %v3944_v29 = vand.u32 65535, %v3943_v63 }
0x1a79   :  { %v3947_v1 = vcvt.s32.f32 %v3945_v13  ;;  %v3946_v33 = vcvt.s32.f32 %v3944_v29 }
0x1a7b   :  { %3948 = vmin.xlane.f32.xlu0 %v3947_v1 }
0x1aee   :  { %v3949_v31 = vpop.xlane.xlu0 %3948 }
0x1aef   :  { %vm3950_vm10 = vcmp.eq.f32.partialorder %v3947_v1, %v3949_v31  ;;  %v3955_v48 = vcvt.f32.s32 %v3949_v31 }
0x1af0   :  { %v3951_v18 = vsel %vm3950_vm10, %v3946_v33, inf }
0x1af1   :  { %3952 = vmin.xlane.f32.xlu1 %v3951_v18  ;;  %v3956_v14 = vshll.u32 %v3955_v48, 16 }
0x1b64   :  { %v3953_v8 = vpop.xlane.xlu1 %3952 }
0x1b65   :  { %v3954_v42 = vcvt.f32.s32 %v3953_v8 }
0x1b67   :  { %v3957_v56 = vadd.s32 %v3956_v14, %v3954_v42 }
0x1b69   :  { %vm3958_vm11 = vcmp.eq.s32.totalorder %v7935_v58, %v3957_v56 }
0x1b6a   :  { %6364 = vmatmul.msk.f32.vlgmr.msra.gmra.mxu0 %vm3958_vm11, %v6740_v49 }
0x1be7   :  { %v3994_v2 = vpop.f32.mrf.mxu0 }
0x1be8   :  { %3997 = vst [vmem:[#allocation6] sm:$0xff] %v3994_v2 }
0x1be9 PF:  { %v4014_v6 = vld [vmem:[#allocation4 + $0x50] sm:$0xff]  ;;  %v4013_v21 = vld [vmem:[#allocation4 + $0x60] sm:$0xff]  ;;  %v4012_v43 = vld [vmem:[#allocation4 + $0x8] sm:$0xff]  ;;  %s6367_s0 = sld [smem:[#allocation7 + $0x4]] }
0x1bea   :  { %4015 = vmatpush.msra.mxu0 %v4014_v6  ;;  %v4011_v27 = vld [vmem:[#allocation4] sm:$0xff]  ;;  %v4010_v53 = vld [vmem:[#allocation4 + $0x58] sm:$0xff]  ;;  %v4005_v5 = vld [vmem:[#allocation4 + $0x70] sm:$0xff] }
0x1beb   :  { %v4009_v40 = vld [vmem:[#allocation4 + $0x18] sm:$0xff]  ;;  %v4007_v15 = vld [vmem:[#allocation4 + $0x20] sm:$0xff]  ;;  %v4004_v41 = vld [vmem:[#allocation4 + $0x30] sm:$0xff] }
0x1bec   :  { %4016 = vmatpush.msra.mxu0 %v4013_v21  ;;  %v4008_v51 = vld [vmem:[#allocation4 + $0x78] sm:$0xff]  ;;  %v4003_v16 = vld [vmem:[#allocation4 + $0x48] sm:$0xff]  ;;  %v4002_v34 = vld [vmem:[#allocation4 + $0x40] sm:$0xff] }
0x1bed   :  { %v4006_v12 = vld [vmem:[#allocation4 + $0x38] sm:$0xff]  ;;  %v4001_v0 = vld [vmem:[#allocation4 + $0x10] sm:$0xff]  ;;  %v4000_v54 = vld [vmem:[#allocation4 + $0x68] sm:$0xff] }
0x1bee   :  { %4017 = vmatpush.msra.mxu0 %v4012_v43  ;;  %v3999_v35 = vld [vmem:[#allocation4 + $0x28] sm:$0xff]  ;;  %v4060_v7 = vld [vmem:[#allocation3 + $0x78] sm:$0xff]  ;;  %v4059_v39 = vld [vmem:[#allocation3 + $0x70] sm:$0xff] }
0x1bef   :  { %v4061_v52 = vld [vmem:[#allocation3 + $0x28] sm:$0xff]  ;;  %v4058_v55 = vld [vmem:[#allocation3 + $0x60] sm:$0xff]  ;;  %v4057_v59 = vld [vmem:[#allocation3 + $0x38] sm:$0xff]  ;;  %p6368_p8 = scmp.le.s32.totalorder %s6367_s0, 0 }
0x1bf0   :  { %4018 = vmatpush.msra.mxu0 %v4011_v27  ;;  %4062 = vmatpush.msra.mxu1 %v4061_v52  ;;  %v4056_v25 = vld [vmem:[#allocation3 + $0x10] sm:$0xff]  ;;  %v4055_v63 = vld [vmem:[#allocation3 + $0x20] sm:$0xff]  ;;  %v4053_v1 = vld [vmem:[#allocation3 + $0x48] sm:$0xff] }
0x1bf1   :  { %v4054_v13 = vld [vmem:[#allocation3 + $0x40] sm:$0xff]  ;;  %v4052_v3 = vld [vmem:[#allocation3 + $0x8] sm:$0xff]  ;;  %v4050_v24 = vld [vmem:[#allocation3 + $0x50] sm:$0xff] }
0x1bf2   :  { %4019 = vmatpush.msra.mxu0 %v4010_v53  ;;  %4063 = vmatpush.msra.mxu1 %v4060_v7  ;;  %v4051_v10 = vld [vmem:[#allocation3 + $0x68] sm:$0xff]  ;;  %v4049_v45 = vld [vmem:[#allocation3 + $0x18] sm:$0xff]  ;;  %v4047_v36 = vld [vmem:[#allocation3] sm:$0xff] }
0x1bf3   :  { %v4048_v57 = vld [vmem:[#allocation3 + $0x58] sm:$0xff]  ;;  %v4046_v37 = vld [vmem:[#allocation3 + $0x30] sm:$0xff]  ;;  %v4131_v19 = vld [vmem:[%s11159_s10 + $0x168] sm:$0xff] }
0x1bf4   :  { %4020 = vmatpush.msra.mxu0 %v4009_v40  ;;  %4064 = vmatpush.msra.mxu1 %v4059_v39  ;;  %v4128_v28 = vld [vmem:[%s11159_s10 + $0x150] sm:$0xff]  ;;  %v4125_v29 = vld [vmem:[%s11159_s10 + $0x138] sm:$0xff]  ;;  %v4179_v33 = vld [vmem:[%s11159_s10 + $0x2e8] sm:$0xff] }
0x1bf5   :  { %4182 = vmatpush.msra.mxu2 %v4131_v19  ;;  %v4132_v31 = vld [vmem:[%s11159_s10 + $0x170] sm:$0xff]  ;;  %v4129_v18 = vld [vmem:[%s11159_s10 + $0x158] sm:$0xff]  ;;  %4202 = vmatpush.msra.mxu3 %v4179_v33  ;;  %v4126_v47 = vld [vmem:[%s11159_s10 + $0x140] sm:$0xff] }
0x1bf6   :  { %4021 = vmatpush.msra.mxu0 %v4008_v51  ;;  %4065 = vmatpush.msra.mxu1 %v4058_v55  ;;  %v4180_v46 = vld [vmem:[%s11159_s10 + $0x2f0] sm:$0xff]  ;;  %v4122_v48 = vld [vmem:[%s11159_s10 + $0x120] sm:$0xff]  ;;  %v4177_v8 = vld [vmem:[%s11159_s10 + $0x2d8] sm:$0xff] }
0x1bf7   :  { %4183 = vmatpush.msra.mxu2 %v4128_v28  ;;  %v4176_v11 = vld [vmem:[%s11159_s10 + $0x2d0] sm:$0xff]  ;;  %v4173_v14 = vld [vmem:[%s11159_s10 + $0x2b8] sm:$0xff]  ;;  %v4123_v42 = vld [vmem:[%s11159_s10 + $0x128] sm:$0xff] }
0x1bf8   :  { %4022 = vmatpush.msra.mxu0 %v4007_v15  ;;  %4066 = vmatpush.msra.mxu1 %v4057_v59  ;;  %v4174_v56 = vld [vmem:[%s11159_s10 + $0x2c0] sm:$0xff]  ;;  %v4119_v49 = vld [vmem:[%s11159_s10 + $0x108] sm:$0xff]  ;;  %v4120_v6 = vld [vmem:[%s11159_s10 + $0x110] sm:$0xff] }
0x1bf9   :  { %4184 = vmatpush.msra.mxu2 %v4125_v29  ;;  %4203 = vmatpush.msra.mxu3 %v4176_v11  ;;  %v4170_v2 = vld [vmem:[%s11159_s10 + $0x2a0] sm:$0xff]  ;;  %v4171_v21 = vld [vmem:[%s11159_s10 + $0x2a8] sm:$0xff]  ;;  %v4116_v43 = vld [vmem:[%s11159_s10 + $0xf0] sm:$0xff] }
0x1bfa   :  { %4023 = vmatpush.msra.mxu0 %v4006_v12  ;;  %4067 = vmatpush.msra.mxu1 %v4056_v25  ;;  %v4167_v27 = vld [vmem:[%s11159_s10 + $0x288] sm:$0xff]  ;;  %v4117_v53 = vld [vmem:[%s11159_s10 + $0xf8] sm:$0xff]  ;;  %v4168_v40 = vld [vmem:[%s11159_s10 + $0x290] sm:$0xff] }
0x1bfb   :  { %4185 = vmatpush.msra.mxu2 %v4122_v48  ;;  %4204 = vmatpush.msra.mxu3 %v4173_v14  ;;  %v4113_v51 = vld [vmem:[%s11159_s10 + $0xd8] sm:$0xff]  ;;  %v4164_v15 = vld [vmem:[%s11159_s10 + $0x270] sm:$0xff]  ;;  %v4114_v12 = vld [vmem:[%s11159_s10 + $0xe0] sm:$0xff] }
0x1bfc   :  { %4024 = vmatpush.msra.mxu0 %v4005_v5  ;;  %4068 = vmatpush.msra.mxu1 %v4055_v63  ;;  %v4165_v5 = vld [vmem:[%s11159_s10 + $0x278] sm:$0xff]  ;;  %v4104_v52 = vld [vmem:[%s11159_s10 + $0x90] sm:$0xff]  ;;  %v4155_v7 = vld [vmem:[%s11159_s10 + $0x228] sm:$0xff] }
0x1bfd   :  { %4186 = vmatpush.msra.mxu2 %v4119_v49  ;;  %4205 = vmatpush.msra.mxu3 %v4170_v2  ;;  %v4105_v39 = vld [vmem:[%s11159_s10 + $0x98] sm:$0xff]  ;;  %v4156_v55 = vld [vmem:[%s11159_s10 + $0x230] sm:$0xff]  ;;  %v4102_v63 = vld [vmem:[%s11159_s10 + $0x80] sm:$0xff] }
0x1bfe   :  { %4025 = vmatpush.msra.mxu0 %v4004_v41  ;;  %4069 = vmatpush.msra.mxu1 %v4054_v13  ;;  %v4110_v41 = vld [vmem:[%s11159_s10 + $0xc0] sm:$0xff]  ;;  %v4101_v59 = vld [vmem:[%s11159_s10 + $0x78] sm:$0xff]  ;;  %v4152_v25 = vld [vmem:[%s11159_s10 + $0x210] sm:$0xff] }
0x1bff   :  { %4187 = vmatpush.msra.mxu2 %v4116_v43  ;;  %4206 = vmatpush.msra.mxu3 %v4167_v27  ;;  %v4153_v13 = vld [vmem:[%s11159_s10 + $0x218] sm:$0xff]  ;;  %v4144_v28 = vld [vmem:[%s11159_s10 + $0x1d0] sm:$0xff]  ;;  %v4090_v33 = vld [vmem:[%s11159_s10 + $0x20] sm:$0xff] }
0x1c00   :  { %4026 = vmatpush.msra.mxu0 %v4003_v16  ;;  %4070 = vmatpush.msra.mxu1 %v4053_v1  ;;  %v4161_v16 = vld [vmem:[%s11159_s10 + $0x258] sm:$0xff]  ;;  %v4098_v1 = vld [vmem:[%s11159_s10 + $0x60] sm:$0xff]  ;;  %v4087_v14 = vld [vmem:[%s11159_s10 + $0x8] sm:$0xff] }
0x1c01   :  { %4188 = vmatpush.msra.mxu2 %v4113_v51  ;;  %4207 = vmatpush.msra.mxu3 %v4164_v15  ;;  %v4093_v19 = vld [vmem:[%s11159_s10 + $0x38] sm:$0xff]  ;;  %v4347_v49 = vld [vmem:[#allocation12 + $0x168] sm:$0xff]  ;;  %v4135_v2 = vld [vmem:[%s11159_s10 + $0x188] sm:$0xff] }
0x1c02   :  { %4027 = vmatpush.msra.mxu0 %v4002_v34  ;;  %4071 = vmatpush.msra.mxu1 %v4052_v3  ;;  %v4111_v34 = vld [vmem:[%s11159_s10 + $0xc8] sm:$0xff]  ;;  %v4149_v3 = vld [vmem:[%s11159_s10 + $0x1f8] sm:$0xff]  ;;  %v4341_v51 = vld [vmem:[#allocation12 + $0x138] sm:$0xff] }
0x1c03   :  { %4189 = vmatpush.msra.mxu2 %v4110_v41  ;;  %4208 = vmatpush.msra.mxu3 %v4161_v16  ;;  %v4089_v29 = vld [vmem:[%s11159_s10 + $0x18] sm:$0xff]  ;;  %v4345_v15 = vld [vmem:[#allocation12 + $0x158] sm:$0xff]  ;;  %v4338_v41 = vld [vmem:[#allocation12 + $0x120] sm:$0xff] }
0x1c04   :  { %4028 = vmatpush.msra.mxu0 %v4001_v0  ;;  %4072 = vmatpush.msra.mxu1 %v4051_v10  ;;  %v4162_v0 = vld [vmem:[%s11159_s10 + $0x260] sm:$0xff]  ;;  %v4099_v10 = vld [vmem:[%s11159_s10 + $0x68] sm:$0xff]  ;;  %v4137_v11 = vld [vmem:[%s11159_s10 + $0x198] sm:$0xff] }
0x1c05   :  { %v4133_v48 = vld [vmem:[%s11159_s10 + $0x178] sm:$0xff]  ;;  %v4342_v16 = vld [vmem:[#allocation12 + $0x140] sm:$0xff] }
0x1c06   :  { %4029 = vmatpush.msra.mxu0 %v4000_v54  ;;  %4073 = vmatpush.msra.mxu1 %v4050_v24  ;;  %v4107_v54 = vld [vmem:[%s11159_s10 + $0xa8] sm:$0xff]  ;;  %v4146_v24 = vld [vmem:[%s11159_s10 + $0x1e0] sm:$0xff]  ;;  %v4344_v43 = vld [vmem:[#allocation12 + $0x150] sm:$0xff] }
0x1c07   :  { %4190 = vmatpush.msra.mxu2 %v4107_v54  ;;  %v4348_v27 = vld [vmem:[#allocation12 + $0x170] sm:$0xff]  ;;  %v4335_v54 = vld [vmem:[#allocation12 + $0x108] sm:$0xff] }
0x1c08   :  { %4030 = vmatpush.msra.mxu0 %v3999_v35  ;;  %4074 = vmatpush.msra.mxu1 %v4049_v45  ;;  %v4158_v35 = vld [vmem:[%s11159_s10 + $0x240] sm:$0xff]  ;;  %v4096_v45 = vld [vmem:[%s11159_s10 + $0x50] sm:$0xff] }
0x1c09   :  { %4031 = vmatmul.f32.vlgmr.msra.gmra.mxu0 %v9453_v22  ;;  %4209 = vmatpush.msra.mxu3 %v4158_v35  ;;  %v4339_v35 = vld [vmem:[#allocation12 + $0x128] sm:$0xff] }
0x1c0a   :  { %4075 = vmatpush.msra.mxu1 %v4048_v57  ;;  %4222 = vmatpush.msrb.mxu0 %v4132_v31  ;;  %v4147_v57 = vld [vmem:[%s11159_s10 + $0x1e8] sm:$0xff]  ;;  %v4140_v31 = vld [vmem:[%s11159_s10 + $0x1b0] sm:$0xff] }
0x1c0b   :  { %4191 = vmatpush.msra.mxu2 %v4104_v52  ;;  %4210 = vmatpush.msra.mxu3 %v4155_v7  ;;  %v4332_v52 = vld [vmem:[#allocation12 + $0xf0] sm:$0xff] }
0x1c0c   :  { %4076 = vmatpush.msra.mxu1 %v4047_v36  ;;  %4223 = vmatpush.msrb.mxu0 %v4129_v18  ;;  %v4092_v36 = vld [vmem:[%s11159_s10 + $0x30] sm:$0xff]  ;;  %v4141_v18 = vld [vmem:[%s11159_s10 + $0x1b8] sm:$0xff] }
0x1c0d   :  { %4192 = vmatpush.msra.mxu2 %v4101_v59  ;;  %4211 = vmatpush.msra.mxu3 %v4152_v25  ;;  %v4336_v7 = vld [vmem:[#allocation12 + $0x110] sm:$0xff]  ;;  %v4329_v59 = vld [vmem:[#allocation12 + $0xd8] sm:$0xff] }
0x1c0e   :  { %4077 = vmatpush.msra.mxu1 %v4046_v37  ;;  %4224 = vmatpush.msrb.mxu0 %v4126_v47  ;;  %v4143_v37 = vld [vmem:[%s11159_s10 + $0x1c8] sm:$0xff]  ;;  %v4333_v25 = vld [vmem:[#allocation12 + $0xf8] sm:$0xff] }
0x1c0f   :  { %4193 = vmatpush.msra.mxu2 %v4098_v1  ;;  %4212 = vmatpush.msra.mxu3 %v4149_v3  ;;  %v4326_v1 = vld [vmem:[#allocation12 + $0xc0] sm:$0xff] }
0x1c10   :  { %4242 = vmatpush.msrb.mxu1 %v4180_v46  ;;  %4225 = vmatpush.msrb.mxu0 %v4123_v42  ;;  %v4086_v46 = vld [vmem:[%s11159_s10] sm:$0xff]  ;;  %v4330_v3 = vld [vmem:[#allocation12 + $0xe0] sm:$0xff] }
0x1c11   :  { %4213 = vmatpush.msra.mxu3 %v4146_v24  ;;  %v4138_v42 = vld [vmem:[%s11159_s10 + $0x1a0] sm:$0xff]  ;;  %v4323_v24 = vld [vmem:[#allocation12 + $0xa8] sm:$0xff] }
0x1c12   :  { %4243 = vmatpush.msrb.mxu1 %v4177_v8  ;;  %4226 = vmatpush.msrb.mxu0 %v4120_v6  ;;  %v4127_v6 = vld [vmem:[%s11159_s10 + $0x148] sm:$0xff] }
0x1c13   :  { %4214 = vmatpush.msra.mxu3 %v4143_v37  ;;  %v4320_v37 = vld [vmem:[#allocation12 + $0x90] sm:$0xff] }
0x1c14   :  { %4244 = vmatpush.msrb.mxu1 %v4174_v56  ;;  %4227 = vmatpush.msrb.mxu0 %v4117_v53  ;;  %v4130_v56 = vld [vmem:[%s11159_s10 + $0x160] sm:$0xff]  ;;  %v4124_v53 = vld [vmem:[%s11159_s10 + $0x130] sm:$0xff] }
0x1c15   :  { %4215 = vmatpush.msra.mxu3 %v4140_v31  ;;  %v4317_v31 = vld [vmem:[#allocation12 + $0x78] sm:$0xff] }
0x1c16   :  { %4245 = vmatpush.msrb.mxu1 %v4171_v21  ;;  %4228 = vmatpush.msrb.mxu0 %v4114_v12  ;;  %v4181_v21 = vld [vmem:[%s11159_s10 + $0x2f8] sm:$0xff] }
0x1c17   :  { %4216 = vmatpush.msra.mxu3 %v4137_v11  ;;  %v4121_v12 = vld [vmem:[%s11159_s10 + $0x118] sm:$0xff]  ;;  %v4314_v11 = vld [vmem:[#allocation12 + $0x60] sm:$0xff] }
0x1c18   :  { %4246 = vmatpush.msrb.mxu1 %v4168_v40  ;;  %4229 = vmatpush.msrb.mxu0 %v4111_v34  ;;  %v4178_v40 = vld [vmem:[%s11159_s10 + $0x2e0] sm:$0xff] }
0x1c19   :  { %v4118_v34 = vld [vmem:[%s11159_s10 + $0x100] sm:$0xff] }
0x1c1a   :  { %4247 = vmatpush.msrb.mxu1 %v4165_v5  ;;  %v4175_v5 = vld [vmem:[%s11159_s10 + $0x2c8] sm:$0xff] }
0x1c1c   :  { %4248 = vmatpush.msrb.mxu1 %v4162_v0  ;;  %v4172_v0 = vld [vmem:[%s11159_s10 + $0x2b0] sm:$0xff] }
0x1c86   :  { %v4032_v60 = vpop.f32.mrf.mxu0 }
0x1c87   :  { %v4033_v9 = vadd.f32 %v4032_v60, %v7991_v50  ;;  %v4108_v60 = vld [vmem:[%s11159_s10 + $0xb0] sm:$0xff] }
0x1c88   :  { %4230 = vmatpush.msrb.mxu0 %v4108_v60  ;;  %v4115_v60 = vld [vmem:[%s11159_s10 + $0xe8] sm:$0xff] }
0x1c89   :  { %4035 = vmax.xlane.f32.xlu0 %v4033_v9 }
0x1c8a   :  { %4231 = vmatpush.msrb.mxu0 %v4105_v39  ;;  %v4112_v39 = vld [vmem:[%s11159_s10 + $0xd0] sm:$0xff] }
0x1c8c   :  { %4232 = vmatpush.msrb.mxu0 %v4102_v63  ;;  %v4109_v63 = vld [vmem:[%s11159_s10 + $0xb8] sm:$0xff] }
0x1c8e   :  { %4233 = vmatpush.msrb.mxu0 %v4099_v10  ;;  %v4106_v10 = vld [vmem:[%s11159_s10 + $0xa0] sm:$0xff] }
0x1c90   :  { %4234 = vmatpush.msrb.mxu0 %v4096_v45  ;;  %v4327_v45 = vld [vmem:[#allocation12 + $0xc8] sm:$0xff] }
0x1c92   :  { %4235 = vmatpush.msrb.mxu0 %v4093_v19  ;;  %v4324_v19 = vld [vmem:[#allocation12 + $0xb0] sm:$0xff] }
0x1c94   :  { %4236 = vmatpush.msrb.mxu0 %v4090_v33  ;;  %v4321_v33 = vld [vmem:[#allocation12 + $0x98] sm:$0xff] }
0x1c96   :  { %4237 = vmatpush.msrb.mxu0 %v4087_v14  ;;  %v4148_v14 = vld [vmem:[%s11159_s10 + $0x1f0] sm:$0xff] }
0x1c98   :  { %4350 = vmatpush.msra.mxu0 %v4347_v49  ;;  %v4349_v49 = vld [vmem:[#allocation12 + $0x178] sm:$0xff] }
0x1c9a   :  { %4351 = vmatpush.msra.mxu0 %v4344_v43  ;;  %v4142_v43 = vld [vmem:[%s11159_s10 + $0x1c0] sm:$0xff] }
0x1c9c   :  { %4352 = vmatpush.msra.mxu0 %v4341_v51  ;;  %v4139_v51 = vld [vmem:[%s11159_s10 + $0x1a8] sm:$0xff] }
0x1c9e   :  { %4353 = vmatpush.msra.mxu0 %v4338_v41  ;;  %v4136_v41 = vld [vmem:[%s11159_s10 + $0x190] sm:$0xff] }
0x1ca0   :  { %4354 = vmatpush.msra.mxu0 %v4335_v54  ;;  %v4331_v54 = vld [vmem:[#allocation12 + $0xe8] sm:$0xff] }
0x1ca2   :  { %4355 = vmatpush.msra.mxu0 %v4332_v52  ;;  %v4319_v52 = vld [vmem:[#allocation12 + $0x88] sm:$0xff] }
0x1ca4   :  { %4356 = vmatpush.msra.mxu0 %v4329_v59  ;;  %v4307_v59 = vld [vmem:[#allocation12 + $0x28] sm:$0xff] }
0x1ca6   :  { %4357 = vmatpush.msra.mxu0 %v4326_v1 }
0x1ca8   :  { %4358 = vmatpush.msra.mxu0 %v4323_v24 }
0x1caa   :  { %4359 = vmatpush.msra.mxu0 %v4320_v37 }
0x1cac   :  { %4360 = vmatpush.msra.mxu0 %v4317_v31 }
0x1cae   :  { %4361 = vmatpush.msra.mxu0 %v4314_v11 }
0x1cfc   :  { %v4036_v20 = vpop.xlane.xlu0 %4035 }
0x1cfd   :  { %v4037_v32 = vsub.f32 %v4033_v9, %v4036_v20  ;;  %v4159_v9 = vld [vmem:[%s11159_s10 + $0x248] sm:$0xff]  ;;  %v4150_v20 = vld [vmem:[%s11159_s10 + $0x200] sm:$0xff] }
0x1cfe   :  { %4249 = vmatpush.msrb.mxu1 %v4159_v9  ;;  %v4169_v9 = vld [vmem:[%s11159_s10 + $0x298] sm:$0xff] }
0x1cff   :  { %v4038_v61 = vmul.f32 1.442695, %v4037_v32 }
0x1d00   :  { %4250 = vmatpush.msrb.mxu1 %v4156_v55  ;;  %v4166_v55 = vld [vmem:[%s11159_s10 + $0x280] sm:$0xff] }
0x1d01   :  { %6557 = vpow2.f32 %v4038_v61  ;;  %v4095_v61 = vld [vmem:[%s11159_s10 + $0x48] sm:$0xff] }
0x1d02   :  { %4251 = vmatpush.msrb.mxu1 %v4153_v13  ;;  %4194 = vmatpush.msra.mxu2 %v4095_v61  ;;  %v4163_v13 = vld [vmem:[%s11159_s10 + $0x268] sm:$0xff]  ;;  %v4160_v61 = vld [vmem:[%s11159_s10 + $0x250] sm:$0xff] }
0x1d04   :  { %4252 = vmatpush.msrb.mxu1 %v4150_v20  ;;  %4195 = vmatpush.msra.mxu2 %v4092_v36  ;;  %v4103_v20 = vld [vmem:[%s11159_s10 + $0x88] sm:$0xff]  ;;  %v4157_v36 = vld [vmem:[%s11159_s10 + $0x238] sm:$0xff] }
0x1d06   :  { %4253 = vmatpush.msrb.mxu1 %v4147_v57  ;;  %4196 = vmatpush.msra.mxu2 %v4089_v29  ;;  %v4097_v57 = vld [vmem:[%s11159_s10 + $0x58] sm:$0xff]  ;;  %v4154_v29 = vld [vmem:[%s11159_s10 + $0x220] sm:$0xff] }
0x1d07   :  { %v9512_v38 = vpop.eup %6557 }
0x1d08   :  { %4040 = vadd.xlane.f32.xlu0 %v9512_v38  ;;  %4254 = vmatpush.msrb.mxu1 %v4144_v28  ;;  %v4094_v28 = vld [vmem:[%s11159_s10 + $0x40] sm:$0xff] }
0x1d09   :  { %4197 = vmatpush.msra.mxu2 %v4086_v46  ;;  %v4151_v46 = vld [vmem:[%s11159_s10 + $0x208] sm:$0xff] }
0x1d0a   :  { %4255 = vmatpush.msrb.mxu1 %v4141_v18  ;;  %v4091_v18 = vld [vmem:[%s11159_s10 + $0x28] sm:$0xff] }
0x1d0b   :  { %4262 = vmatpush.msrb.mxu2 %v4133_v48  ;;  %v3998_v48 = vld [vmem:[#allocation6] sm:$0xff] }
0x1d0c   :  { %4256 = vmatpush.msrb.mxu1 %v4138_v42  ;;  %4198 = vmatmul.f32.vlgmr.msra.gmra.mxu2 %v3998_v48  ;;  %v4311_v42 = vld [vmem:[#allocation12 + $0x48] sm:$0xff] }
0x1d0d   :  { %4263 = vmatpush.msrb.mxu2 %v4130_v56  ;;  %v4315_v56 = vld [vmem:[#allocation12 + $0x68] sm:$0xff]  ;;  %4238 = vmatmul.f32.vlgmr.msrb.gmra.mxu0 %v3998_v48 }
0x1d0e   :  { %4257 = vmatpush.msrb.mxu1 %v4135_v2  ;;  %4362 = vmatpush.msra.mxu0 %v4311_v42  ;;  %v4308_v2 = vld [vmem:[#allocation12 + $0x30] sm:$0xff] }
0x1d0f   :  { %4264 = vmatpush.msrb.mxu2 %v4127_v6  ;;  %v4312_v6 = vld [vmem:[#allocation12 + $0x50] sm:$0xff] }
0x1d10   :  { %4363 = vmatpush.msra.mxu0 %v4308_v2  ;;  %v4460_v2 = vld [vmem:[%s11163_s14 + $0x18] sm:$0xff] }
0x1d11   :  { %4265 = vmatpush.msrb.mxu2 %v4124_v53  ;;  %v4309_v53 = vld [vmem:[#allocation12 + $0x38] sm:$0xff] }
0x1d13   :  { %4266 = vmatpush.msrb.mxu2 %v4121_v12  ;;  %v4306_v12 = vld [vmem:[#allocation12 + $0x20] sm:$0xff] }
0x1d15   :  { %4267 = vmatpush.msrb.mxu2 %v4118_v34  ;;  %v4337_v34 = vld [vmem:[#allocation12 + $0x118] sm:$0xff] }
0x1d17   :  { %4268 = vmatpush.msrb.mxu2 %v4115_v60  ;;  %v4325_v60 = vld [vmem:[#allocation12 + $0xb8] sm:$0xff] }
0x1d19   :  { %4269 = vmatpush.msrb.mxu2 %v4112_v39  ;;  %v4313_v39 = vld [vmem:[#allocation12 + $0x58] sm:$0xff] }
0x1d1b   :  { %4270 = vmatpush.msrb.mxu2 %v4109_v63 }
0x1d1d   :  { %4271 = vmatpush.msrb.mxu2 %v4106_v10  ;;  %v4470_v10 = vld [vmem:[%s11163_s14 + $0x68] sm:$0xff] }
0x1d1f   :  { %4272 = vmatpush.msrb.mxu2 %v4103_v20  ;;  %v4469_v20 = vld [vmem:[%s11163_s14 + $0x60] sm:$0xff] }
0x1d7b   :  { %v4041_v32 = vpop.xlane.xlu0 %4040 }
0x1d7c   :  { %6559 = vrcp.f32 %v4041_v32  ;;  %v4100_v32 = vld [vmem:[%s11159_s10 + $0x70] sm:$0xff] }
0x1d7d   :  { %4273 = vmatpush.msrb.mxu2 %v4100_v32  ;;  %v4468_v32 = vld [vmem:[%s11163_s14 + $0x58] sm:$0xff] }
0x1d7f   :  { %4274 = vmatpush.msrb.mxu2 %v4097_v57  ;;  %v4466_v57 = vld [vmem:[%s11163_s14 + $0x48] sm:$0xff] }
0x1d81   :  { %4275 = vmatpush.msrb.mxu2 %v4094_v28 }
0x1d82   :  { %v6560_v47 = vpop.eup %6559 }
0x1d83   :  { %v4043_v8 = vmul.f32 %v6560_v47, %v9512_v38  ;;  %v4134_v38 = vld [vmem:[%s11159_s10 + $0x180] sm:$0xff]  ;;  %4276 = vmatpush.msrb.mxu2 %v4091_v18  ;;  %v4318_v47 = vld [vmem:[#allocation12 + $0x80] sm:$0xff]  ;;  %v4464_v18 = vld [vmem:[%s11163_s14 + $0x38] sm:$0xff] }
0x1d84   :  { %4217 = vmatpush.msra.mxu3 %v4134_v38  ;;  %v4145_v38 = vld [vmem:[%s11159_s10 + $0x1d8] sm:$0xff] }
0x1d85   :  { %4045 = vst [vmem:[#allocation15 + $0x20] sm:$0xff] %v4043_v8  ;;  %4078 = vmatmul.f32.vlgmr.msra.gmra.mxu1 %v4043_v8  ;;  %v4088_v8 = vld [vmem:[%s11159_s10 + $0x10] sm:$0xff] }
0x1d86   :  { %4282 = vmatpush.msrb.mxu3 %v4181_v21  ;;  %4370 = vmatpush.msra.mxu1 %v4348_v27  ;;  %v4346_v21 = vld [vmem:[#allocation12 + $0x160] sm:$0xff]  ;;  %v4305_v27 = vld [vmem:[#allocation12 + $0x18] sm:$0xff] }
0x1d87   :  { %4277 = vmatpush.msrb.mxu2 %v4088_v8  ;;  %4364 = vmatpush.msra.mxu0 %v4305_v27  ;;  %v4463_v8 = vld [vmem:[%s11163_s14 + $0x30] sm:$0xff]  ;;  %v4457_v27 = vld [vmem:[%s11163_s14] sm:$0xff] }
0x1d88   :  { %4283 = vmatpush.msrb.mxu3 %v4178_v40  ;;  %4371 = vmatpush.msra.mxu1 %v4345_v15  ;;  %v4343_v40 = vld [vmem:[#allocation12 + $0x148] sm:$0xff]  ;;  %v4302_v15 = vld [vmem:[#allocation12] sm:$0xff] }
0x1d89   :  { %4390 = vmatpush.msra.mxu2 %v4349_v49  ;;  %4365 = vmatpush.msra.mxu0 %v4302_v15  ;;  %v4461_v49 = vld [vmem:[%s11163_s14 + $0x20] sm:$0xff] }
0x1d8a   :  { %4284 = vmatpush.msrb.mxu3 %v4175_v5  ;;  %4372 = vmatpush.msra.mxu1 %v4342_v16  ;;  %v4340_v5 = vld [vmem:[#allocation12 + $0x130] sm:$0xff]  ;;  %v4303_v16 = vld [vmem:[#allocation12 + $0x8] sm:$0xff]  ;;  %v4239_v1 = vpop.f32.mrf.mxu0 }
0x1d8b   :  { %4391 = vmatpush.msra.mxu2 %v4346_v21  ;;  %4366 = vmatmul.f32.vlgmr.msra.gmra.mxu0 %v9453_v22  ;;  %v4458_v21 = vld [vmem:[%s11163_s14 + $0x8] sm:$0xff] }
0x1d8c   :  { %4285 = vmatpush.msrb.mxu3 %v4172_v0  ;;  %4373 = vmatpush.msra.mxu1 %v4339_v35  ;;  %v4334_v0 = vld [vmem:[#allocation12 + $0x100] sm:$0xff]  ;;  %v4328_v35 = vld [vmem:[#allocation12 + $0xd0] sm:$0xff] }
0x1d8d   :  { %4392 = vmatpush.msra.mxu2 %v4343_v40 }
0x1d8e   :  { %4286 = vmatpush.msrb.mxu3 %v4169_v9  ;;  %4374 = vmatpush.msra.mxu1 %v4336_v7  ;;  %v4322_v9 = vld [vmem:[#allocation12 + $0xa0] sm:$0xff]  ;;  %v4316_v7 = vld [vmem:[#allocation12 + $0x70] sm:$0xff] }
0x1d8f   :  { %4393 = vmatpush.msra.mxu2 %v4340_v5  ;;  %v4199_v24 = vpop.f32.mrf.mxu2 }
0x1d90   :  { %4287 = vmatpush.msrb.mxu3 %v4166_v55  ;;  %4375 = vmatpush.msra.mxu1 %v4333_v25  ;;  %v4310_v55 = vld [vmem:[#allocation12 + $0x40] sm:$0xff]  ;;  %v4304_v25 = vld [vmem:[#allocation12 + $0x10] sm:$0xff]  ;;  %v4200_v37 = vadd.f32 %v4199_v24, %v8155_v23 }
0x1d91   :  { %4278 = vmatmul.f32.vlgmr.msrb.gmra.mxu2 %v3998_v48 }
0x1d92   :  { %4288 = vmatpush.msrb.mxu3 %v4163_v13  ;;  %4376 = vmatpush.msra.mxu1 %v4330_v3  ;;  %v4472_v13 = vld [vmem:[%s11163_s14 + $0x78] sm:$0xff]  ;;  %v4471_v3 = vld [vmem:[%s11163_s14 + $0x70] sm:$0xff] }
0x1d93   :  { %4394 = vmatpush.msra.mxu2 %v4337_v34 }
0x1d94   :  { %4289 = vmatpush.msrb.mxu3 %v4160_v61  ;;  %4377 = vmatpush.msra.mxu1 %v4327_v45  ;;  %v4467_v45 = vld [vmem:[%s11163_s14 + $0x50] sm:$0xff] }
0x1d95   :  { %4395 = vmatpush.msra.mxu2 %v4334_v0 }
0x1d96   :  { %4290 = vmatpush.msrb.mxu3 %v4157_v36  ;;  %4378 = vmatpush.msra.mxu1 %v4324_v19  ;;  %v4240_v19 = vadd.f32 %v4239_v1, %v8192_v30 }
0x1d97   :  { %4396 = vmatpush.msra.mxu2 %v4331_v54 }
0x1d98   :  { %4291 = vmatpush.msrb.mxu3 %v4154_v29  ;;  %4379 = vmatpush.msra.mxu1 %v4321_v33  ;;  %v4465_v29 = vld [vmem:[%s11163_s14 + $0x40] sm:$0xff] }
0x1d99   :  { %4397 = vmatpush.msra.mxu2 %v4328_v35 }
0x1d9a   :  { %4292 = vmatpush.msrb.mxu3 %v4151_v46  ;;  %4380 = vmatpush.msra.mxu1 %v4318_v47 }
0x1d9b   :  { %4398 = vmatpush.msra.mxu2 %v4325_v60 }
0x1d9c   :  { %4293 = vmatpush.msrb.mxu3 %v4148_v14  ;;  %4381 = vmatpush.msra.mxu1 %v4315_v56  ;;  %v4462_v56 = vld [vmem:[%s11163_s14 + $0x28] sm:$0xff] }
0x1d9d   :  { %4399 = vmatpush.msra.mxu2 %v4322_v9 }
0x1d9e   :  { %4294 = vmatpush.msrb.mxu3 %v4145_v38  ;;  %4382 = vmatpush.msra.mxu1 %v4312_v6  ;;  %v4459_v6 = vld [vmem:[%s11163_s14 + $0x10] sm:$0xff] }
0x1d9f   :  { %4400 = vmatpush.msra.mxu2 %v4319_v52 }
0x1da0   :  { %4295 = vmatpush.msrb.mxu3 %v4142_v43  ;;  %4383 = vmatpush.msra.mxu1 %v4309_v53 }
0x1da1   :  { %4401 = vmatpush.msra.mxu2 %v4316_v7 }
0x1da2   :  { %4296 = vmatpush.msrb.mxu3 %v4139_v51  ;;  %4384 = vmatpush.msra.mxu1 %v4306_v12 }
0x1da3   :  { %4402 = vmatpush.msra.mxu2 %v4313_v39 }
0x1da4   :  { %4297 = vmatpush.msrb.mxu3 %v4136_v41  ;;  %4385 = vmatpush.msra.mxu1 %v4303_v16 }
0x1da5   :  { %4403 = vmatpush.msra.mxu2 %v4310_v55 }
0x1da7   :  { %4404 = vmatpush.msra.mxu2 %v4307_v59 }
0x1da9   :  { %4405 = vmatpush.msra.mxu2 %v4304_v25 }
0x1daa   :  { %4406 = vmatmul.f32.vlgmr.msra.gmra.mxu2 %v9453_v22 }
0x1e02   :  { %v4079_v63 = vpop.f32.mrf.mxu1 }
0x1e03   :  { %4218 = vmatmul.f32.vlgmr.msra.gmra.mxu3 %v4079_v63  ;;  %4258 = vmatmul.f32.vlgmr.msrb.gmra.mxu1 %v4079_v63 }
0x1e04   :  { %4473 = vmatpush.msra.mxu3 %v4472_v13 }
0x1e06   :  { %4474 = vmatpush.msra.mxu3 %v4471_v3 }
0x1e08   :  { %4475 = vmatpush.msra.mxu3 %v4470_v10  ;;  %v4367_v36 = vpop.f32.mrf.mxu0 }
0x1e09   :  { %v4368_v28 = vadd.f32 %v4367_v36, %v8167_v26 }
0x1e0a   :  { %4476 = vmatpush.msra.mxu3 %v4469_v20 }
0x1e0b   :  { %4298 = vmatmul.f32.vlgmr.msrb.gmra.mxu3 %v4079_v63  ;;  %4386 = vmatmul.f32.vlgmr.msra.gmra.mxu1 %v9453_v22 }
0x1e0c   :  { %4477 = vmatpush.msra.mxu3 %v4468_v32 }
0x1e0e   :  { %4478 = vmatpush.msra.mxu3 %v4467_v45 }
0x1e10   :  { %4479 = vmatpush.msra.mxu3 %v4466_v57 }
0x1e12   :  { %4480 = vmatpush.msra.mxu3 %v4465_v29 }
0x1e14   :  { %4481 = vmatpush.msra.mxu3 %v4464_v18  ;;  %v4279_v15 = vpop.f32.mrf.mxu2 }
0x1e15   :  { %v4280_v52 = vadd.f32 %v4279_v15, %v8214_v62 }
0x1e16   :  { %4482 = vmatpush.msra.mxu3 %v4463_v8 }
0x1e18   :  { %4483 = vmatpush.msra.mxu3 %v4462_v56 }
0x1e1a   :  { %4484 = vmatpush.msra.mxu3 %v4461_v49 }
0x1e1c   :  { %4485 = vmatpush.msra.mxu3 %v4460_v2 }
0x1e1e   :  { %4486 = vmatpush.msra.mxu3 %v4459_v6 }
0x1e20   :  { %4487 = vmatpush.msra.mxu3 %v4458_v21 }
0x1e22   :  { %4488 = vmatpush.msra.mxu3 %v4457_v27 }
0x1e2d   :  { %v4407_v0 = vpop.f32.mrf.mxu2 }
0x1e2e   :  { %v4408_v7 = vadd.f32 %v4407_v0, %v8216_v4 }
0x1e80   :  { %v4259_v61 = vpop.f32.mrf.mxu1 }
0x1e81   :  { %v4260_v11 = vadd.f32 %v4259_v61, %v4240_v19 }
0x1e86   :  { %v4219_v31 = vpop.f32.mrf.mxu3 }
0x1e87   :  { %v4220_v33 = vadd.f32 %v4219_v31, %v4200_v37 }
0x1e88   :  { %v4387_v46 = vpop.f32.mrf.mxu1 }
0x1e89   :  { %v4410_v47 = vadd.f32 %v4368_v28, %v4220_v33  ;;  %v4388_v48 = vadd.f32 %v4387_v46, %v8197_v44 }
0x1e8b   :  { %v6365_v14 = vmul.f32 -1.442695, %v4410_v47  ;;  %v4430_v42 = vadd.f32 %v4388_v48, %v4260_v11 }
0x1e8d   :  { %6561 = vpow2.f32 %v6365_v14  ;;  %v6366_v38 = vmul.f32 -1.442695, %v4430_v42 }
0x1e8e   :  { %v4299_v59 = vpop.f32.mrf.mxu3 }
0x1e8f   :  { %6563 = vpow2.f32 %v6366_v38  ;;  %v4300_v3 = vadd.f32 %v4299_v59, %v4280_v52 }
0x1e93   :  { %v6562_v43 = vpop.eup %6561 }
0x1e94   :  { %v4414_v53 = vadd.f32 1.0, %v6562_v43 }
0x1e95   :  { %v6564_v40 = vpop.eup %6563 }
0x1e96   :  { %6565 = vrcp.f32 %v4414_v53  ;;  %v4434_v51 = vadd.f32 1.0, %v6564_v40  ;;  %v4426_v54 = vand.u32 2147483648, %v4414_v53  ;;  %v4424_v9 = vand.u32 2147483647, %v4414_v53 }
0x1e97   :  { %vm4420_vm13 = vweird.f32 %v4414_v53 }
0x1e98   :  { %6567 = vrcp.f32 %v4434_v51  ;;  %v4427_v25 = vor.u32 1.1754944e-38, %v4426_v54  ;;  %vm4425_vm15 = vcmp.eq.f32.partialorder %v4424_v9, 8.507059e+37  ;;  %v4446_v20 = vand.u32 2147483648, %v4434_v51 }
0x1e99   :  { %vm4440_vm1 = vweird.f32 %v4434_v51  ;;  %v4444_v32 = vand.u32 2147483647, %v4434_v51 }
0x1e9a   :  { %v4447_v45 = vor.u32 1.1754944e-38, %v4446_v20 }
0x1e9b   :  { %vm4445_vm3 = vcmp.eq.f32.partialorder %v4444_v32, 8.507059e+37 }
0x1e9c   :  { %v6566_v12 = vpop.eup %6565 }
0x1e9d   :  { %v4416_v5 = vmul.f32 %v6566_v12, %v4414_v53  ;;  %vm4421_vm12 = vweird.f32 %v6566_v12 }
0x1e9e   :  { %v6568_v41 = vpop.eup %6567  ;;  %vm4422_vm14 = vmor %vm4420_vm13, %vm4421_vm12 }
0x1e9f   :  { %v4436_v16 = vmul.f32 %v6568_v41, %v4434_v51  ;;  %v4417_v34 = vsub.f32 1.0, %v4416_v5  ;;  %vm4441_vm0 = vweird.f32 %v6568_v41 }
0x1ea0   :  { %vm4442_vm2 = vmor %vm4440_vm1, %vm4441_vm0 }
0x1ea1   :  { %v4437_v35 = vsub.f32 1.0, %v4436_v16  ;;  %v4418_v60 = vmul.f32 %v6566_v12, %v4417_v34 }
0x1ea3   :  { %v4419_v39 = vadd.f32 %v6566_v12, %v4418_v60  ;;  %v4438_v55 = vmul.f32 %v6568_v41, %v4437_v35 }
0x1ea5   :  { %v4423_v63 = vsel %vm4422_vm14, %v6566_v12, %v4419_v39  ;;  %v4439_v1 = vadd.f32 %v6568_v41, %v4438_v55 }
0x1ea6   :  { %v4428_v13 = vsel %vm4425_vm15, %v4427_v25, %v4423_v63 }
0x1ea7   :  { %v4450_v10 = vmul.f32 %v4428_v13, %v4408_v7  ;;  %v4443_v24 = vsel %vm4442_vm2, %v6568_v41, %v4439_v1 }
0x1ea8   :  { %v4448_v57 = vsel %vm4445_vm3, %v4447_v45, %v4443_v24 }
0x1ea9   :  { %v4451_v61 = vadd.f32 %v4450_v10, %v4300_v3  ;;  %v4453_v36 = vsub.f32 1.0, %v4448_v57  ;;  %v4455_v28 = vmul.f32 %v4448_v57, %v9453_v22 }
0x1eab   :  { %6569 = vtanh.f32 %v4451_v61 }
0x1eb1   :  { %v6570_v37 = vpop.eup %6569 }
0x1eb2   :  { %v4454_v19 = vmul.f32 %v6570_v37, %v4453_v36 }
0x1eb4   :  { %v9862_v29 = vadd.f32 %v4455_v28, %v4454_v19 }
0x1eb6   :  { %4489 = vmatmul.f32.vlgmr.msra.gmra.mxu3 %v9862_v29 }
0x1f38   :  { %4499 = sbr.rel (%p6368_p8) target bundleno = 7999 (0x1f3f), region = 113 }
0x1f39   :  { %v4490_v31 = vpop.f32.mrf.mxu3 }
0x1f3a   :  { %v4491_v33 = vadd.f32 %v8227_v17, %v4490_v31 }
0x1f3c   :  { %4494 = vst [vmem:[#allocation14 + $0x20] sm:$0xff] %v4491_v33 }
0x1f3d   :  { %v6369_v18 = vld [vmem:[%s11151_s2 + $0x20] sm:$0xff] }
0x1f3e   :  { %4502 = vst [vmem:[#allocation6] sm:$0xff] %v6369_v18 }
0x1f3f PF:  { %s6370_s19 = sld [smem:[#allocation7 + $0x4]] }
0x1f45   :  { %p6371_p9 = scmp.ne.s32.totalorder %s6370_s19, 0 }
0x1f47   :  { %4507 = sbr.rel (%p6371_p9) target bundleno = 8500 (0x2134), region = 117 }
0x1f4c   :  { %4508 = vmax.xlane.f32.xlu0 %v4491_v33  ;;  %v4544_v48 = vld [vmem:[%s11158_s9 + $0x78] sm:$0xff]  ;;  %v4543_v8 = vld [vmem:[%s11158_s9 + $0x70] sm:$0xff]  ;;  %v4542_v14 = vld [vmem:[%s11158_s9 + $0x68] sm:$0xff]  ;;  %v6741_v9 = vmov 1.0  }
0x1f4d   :  { %4545 = vmatpush.msra.mxu0 %v4544_v48  ;;  %v4541_v42 = vld [vmem:[%s11158_s9 + $0x60] sm:$0xff]  ;;  %v4540_v56 = vld [vmem:[%s11158_s9 + $0x58] sm:$0xff]  ;;  %v4539_v49 = vld [vmem:[%s11158_s9 + $0x50] sm:$0xff] }
0x1f4e   :  { %v4538_v38 = vld [vmem:[%s11158_s9 + $0x48] sm:$0xff]  ;;  %v4537_v2 = vld [vmem:[%s11158_s9 + $0x40] sm:$0xff]  ;;  %v4536_v6 = vld [vmem:[%s11158_s9 + $0x38] sm:$0xff] }
0x1f4f   :  { %4546 = vmatpush.msra.mxu0 %v4543_v8  ;;  %v4535_v21 = vld [vmem:[%s11158_s9 + $0x30] sm:$0xff]  ;;  %v4534_v43 = vld [vmem:[%s11158_s9 + $0x28] sm:$0xff]  ;;  %v4533_v27 = vld [vmem:[%s11158_s9 + $0x20] sm:$0xff] }
0x1f50   :  { %v4532_v53 = vld [vmem:[%s11158_s9 + $0x18] sm:$0xff]  ;;  %v4531_v5 = vld [vmem:[%s11158_s9 + $0x10] sm:$0xff]  ;;  %v4530_v41 = vld [vmem:[%s11158_s9 + $0x8] sm:$0xff] }
0x1f51   :  { %4547 = vmatpush.msra.mxu0 %v4542_v14  ;;  %v4529_v16 = vld [vmem:[%s11158_s9] sm:$0xff] }
0x1f53   :  { %4548 = vmatpush.msra.mxu0 %v4541_v42 }
0x1f55   :  { %4549 = vmatpush.msra.mxu0 %v4540_v56 }
0x1f57   :  { %4550 = vmatpush.msra.mxu0 %v4539_v49 }
0x1f59   :  { %4551 = vmatpush.msra.mxu0 %v4538_v38 }
0x1f5b   :  { %4552 = vmatpush.msra.mxu0 %v4537_v2 }
0x1f5d   :  { %4553 = vmatpush.msra.mxu0 %v4536_v6 }
0x1f5f   :  { %4554 = vmatpush.msra.mxu0 %v4535_v21 }
0x1f61   :  { %4555 = vmatpush.msra.mxu0 %v4534_v43 }
0x1f63   :  { %4556 = vmatpush.msra.mxu0 %v4533_v27 }
0x1f65   :  { %4557 = vmatpush.msra.mxu0 %v4532_v53 }
0x1f67   :  { %4558 = vmatpush.msra.mxu0 %v4531_v5 }
0x1f69   :  { %4559 = vmatpush.msra.mxu0 %v4530_v41 }
0x1f6b   :  { %4560 = vmatpush.msra.mxu0 %v4529_v16 }
0x1fbf   :  { %v4509_v22 = vpop.xlane.xlu0 %4508 }
0x1fc0   :  { %vm4510_vm4 = vcmp.ge.f32.partialorder %v4491_v33, %v4509_v22 }
0x1fc1   :  { %v4511_v46 = vsel %vm4510_vm4, %v7935_v58, 128 }
0x1fc2   :  { %v4513_v11 = vshra.s32 %v4511_v46, 16  ;;  %v4512_v40 = vand.u32 65535, %v4511_v46 }
0x1fc4   :  { %v4515_v47 = vcvt.s32.f32 %v4513_v11  ;;  %v4514_v15 = vcvt.s32.f32 %v4512_v40 }
0x1fc6   :  { %4516 = vmin.xlane.f32.xlu0 %v4515_v47 }
0x2039   :  { %v4517_v51 = vpop.xlane.xlu0 %4516 }
0x203a   :  { %vm4518_vm5 = vcmp.eq.f32.partialorder %v4515_v47, %v4517_v51  ;;  %v4523_v34 = vcvt.f32.s32 %v4517_v51 }
0x203b   :  { %v4519_v12 = vsel %vm4518_vm5, %v4514_v15, inf }
0x203c   :  { %4520 = vmin.xlane.f32.xlu1 %v4519_v12  ;;  %v4524_v54 = vshll.u32 %v4523_v34, 16 }
0x20af   :  { %v4521_v0 = vpop.xlane.xlu1 %4520 }
0x20b0   :  { %v4522_v35 = vcvt.f32.s32 %v4521_v0 }
0x20b2   :  { %v4525_v60 = vadd.s32 %v4524_v54, %v4522_v35 }
0x20b4   :  { %vm4526_vm6 = vcmp.eq.s32.totalorder %v7935_v58, %v4525_v60 }
0x20b5   :  { %6373 = vmatmul.msk.f32.vlgmr.msra.gmra.mxu0 %vm4526_vm6, %v6741_v9 }
0x2132   :  { %v4562_v52 = vpop.f32.mrf.mxu0 }
0x2133   :  { %4565 = vst [vmem:[#allocation6] sm:$0xff] %v4562_v52 }
0x2134 PF:  { %v4582_v7 = vld [vmem:[#allocation4 + $0x50] sm:$0xff]  ;;  %v4581_v39 = vld [vmem:[#allocation4 + $0x60] sm:$0xff]  ;;  %v4580_v55 = vld [vmem:[#allocation4 + $0x8] sm:$0xff]  ;;  %s6376_s22 = sld [smem:[#allocation7 + $0x5]] }
0x2135   :  { %4583 = vmatpush.msra.mxu0 %v4582_v7  ;;  %v4579_v59 = vld [vmem:[#allocation4] sm:$0xff]  ;;  %v4578_v25 = vld [vmem:[#allocation4 + $0x58] sm:$0xff]  ;;  %v4573_v10 = vld [vmem:[#allocation4 + $0x70] sm:$0xff] }
0x2136   :  { %v4577_v63 = vld [vmem:[#allocation4 + $0x18] sm:$0xff]  ;;  %v4575_v1 = vld [vmem:[#allocation4 + $0x20] sm:$0xff]  ;;  %v4572_v20 = vld [vmem:[#allocation4 + $0x30] sm:$0xff] }
0x2137   :  { %4584 = vmatpush.msra.mxu0 %v4581_v39  ;;  %v4576_v13 = vld [vmem:[#allocation4 + $0x78] sm:$0xff]  ;;  %v4571_v32 = vld [vmem:[#allocation4 + $0x48] sm:$0xff]  ;;  %v4570_v61 = vld [vmem:[#allocation4 + $0x40] sm:$0xff] }
0x2138   :  { %v4574_v3 = vld [vmem:[#allocation4 + $0x38] sm:$0xff]  ;;  %v4569_v24 = vld [vmem:[#allocation4 + $0x10] sm:$0xff]  ;;  %v4568_v45 = vld [vmem:[#allocation4 + $0x68] sm:$0xff] }
0x2139   :  { %4585 = vmatpush.msra.mxu0 %v4580_v55  ;;  %v4567_v57 = vld [vmem:[#allocation4 + $0x28] sm:$0xff]  ;;  %v4628_v28 = vld [vmem:[#allocation3 + $0x78] sm:$0xff]  ;;  %v4627_v31 = vld [vmem:[#allocation3 + $0x70] sm:$0xff] }
0x213a   :  { %v4629_v19 = vld [vmem:[#allocation3 + $0x28] sm:$0xff]  ;;  %v4626_v33 = vld [vmem:[#allocation3 + $0x60] sm:$0xff]  ;;  %v4625_v18 = vld [vmem:[#allocation3 + $0x38] sm:$0xff]  ;;  %p6377_p10 = scmp.le.s32.totalorder %s6376_s22, 0 }
0x213b   :  { %4586 = vmatpush.msra.mxu0 %v4579_v59  ;;  %4630 = vmatpush.msra.mxu1 %v4629_v19  ;;  %v4624_v22 = vld [vmem:[#allocation3 + $0x10] sm:$0xff]  ;;  %v4623_v46 = vld [vmem:[#allocation3 + $0x20] sm:$0xff]  ;;  %v4621_v47 = vld [vmem:[#allocation3 + $0x48] sm:$0xff] }
0x213c   :  { %v4622_v11 = vld [vmem:[#allocation3 + $0x40] sm:$0xff]  ;;  %v4620_v48 = vld [vmem:[#allocation3 + $0x8] sm:$0xff]  ;;  %v4618_v38 = vld [vmem:[#allocation3 + $0x50] sm:$0xff] }
0x213d   :  { %4587 = vmatpush.msra.mxu0 %v4578_v25  ;;  %4631 = vmatpush.msra.mxu1 %v4628_v28  ;;  %v4619_v8 = vld [vmem:[#allocation3 + $0x68] sm:$0xff]  ;;  %v4617_v2 = vld [vmem:[#allocation3 + $0x18] sm:$0xff]  ;;  %v4615_v21 = vld [vmem:[#allocation3] sm:$0xff] }
0x213e   :  { %v4616_v6 = vld [vmem:[#allocation3 + $0x58] sm:$0xff]  ;;  %v4614_v43 = vld [vmem:[#allocation3 + $0x30] sm:$0xff]  ;;  %v4699_v27 = vld [vmem:[%s11159_s10 + $0x168] sm:$0xff] }
0x213f   :  { %4588 = vmatpush.msra.mxu0 %v4577_v63  ;;  %4632 = vmatpush.msra.mxu1 %v4627_v31  ;;  %v4696_v53 = vld [vmem:[%s11159_s10 + $0x150] sm:$0xff]  ;;  %v4693_v40 = vld [vmem:[%s11159_s10 + $0x138] sm:$0xff]  ;;  %v4747_v15 = vld [vmem:[%s11159_s10 + $0x2e8] sm:$0xff] }
0x2140   :  { %4750 = vmatpush.msra.mxu2 %v4699_v27  ;;  %v4700_v51 = vld [vmem:[%s11159_s10 + $0x170] sm:$0xff]  ;;  %v4697_v12 = vld [vmem:[%s11159_s10 + $0x158] sm:$0xff]  ;;  %4770 = vmatpush.msra.mxu3 %v4747_v15  ;;  %v4694_v16 = vld [vmem:[%s11159_s10 + $0x140] sm:$0xff] }
0x2141   :  { %4589 = vmatpush.msra.mxu0 %v4576_v13  ;;  %4633 = vmatpush.msra.mxu1 %v4626_v33  ;;  %v4748_v5 = vld [vmem:[%s11159_s10 + $0x2f0] sm:$0xff]  ;;  %v4690_v34 = vld [vmem:[%s11159_s10 + $0x120] sm:$0xff]  ;;  %v4745_v0 = vld [vmem:[%s11159_s10 + $0x2d8] sm:$0xff] }
0x2142   :  { %4751 = vmatpush.msra.mxu2 %v4696_v53  ;;  %v4744_v41 = vld [vmem:[%s11159_s10 + $0x2d0] sm:$0xff]  ;;  %v4741_v54 = vld [vmem:[%s11159_s10 + $0x2b8] sm:$0xff]  ;;  %v4691_v35 = vld [vmem:[%s11159_s10 + $0x128] sm:$0xff] }
0x2143   :  { %4590 = vmatpush.msra.mxu0 %v4575_v1  ;;  %4634 = vmatpush.msra.mxu1 %v4625_v18  ;;  %v4742_v60 = vld [vmem:[%s11159_s10 + $0x2c0] sm:$0xff]  ;;  %v4687_v9 = vld [vmem:[%s11159_s10 + $0x108] sm:$0xff]  ;;  %v4688_v7 = vld [vmem:[%s11159_s10 + $0x110] sm:$0xff] }
0x2144   :  { %4752 = vmatpush.msra.mxu2 %v4693_v40  ;;  %4771 = vmatpush.msra.mxu3 %v4744_v41  ;;  %v4738_v52 = vld [vmem:[%s11159_s10 + $0x2a0] sm:$0xff]  ;;  %v4739_v39 = vld [vmem:[%s11159_s10 + $0x2a8] sm:$0xff]  ;;  %v4684_v55 = vld [vmem:[%s11159_s10 + $0xf0] sm:$0xff] }
0x2145   :  { %4591 = vmatpush.msra.mxu0 %v4574_v3  ;;  %4635 = vmatpush.msra.mxu1 %v4624_v22  ;;  %v4735_v59 = vld [vmem:[%s11159_s10 + $0x288] sm:$0xff]  ;;  %v4685_v25 = vld [vmem:[%s11159_s10 + $0xf8] sm:$0xff]  ;;  %v4736_v63 = vld [vmem:[%s11159_s10 + $0x290] sm:$0xff] }
0x2146   :  { %4753 = vmatpush.msra.mxu2 %v4690_v34  ;;  %4772 = vmatpush.msra.mxu3 %v4741_v54  ;;  %v4681_v13 = vld [vmem:[%s11159_s10 + $0xd8] sm:$0xff]  ;;  %v4732_v1 = vld [vmem:[%s11159_s10 + $0x270] sm:$0xff]  ;;  %v4682_v3 = vld [vmem:[%s11159_s10 + $0xe0] sm:$0xff] }
0x2147   :  { %4592 = vmatpush.msra.mxu0 %v4573_v10  ;;  %4636 = vmatpush.msra.mxu1 %v4623_v46  ;;  %v4733_v10 = vld [vmem:[%s11159_s10 + $0x278] sm:$0xff]  ;;  %v4672_v19 = vld [vmem:[%s11159_s10 + $0x90] sm:$0xff]  ;;  %v4723_v28 = vld [vmem:[%s11159_s10 + $0x228] sm:$0xff] }
0x2148   :  { %4754 = vmatpush.msra.mxu2 %v4687_v9  ;;  %4773 = vmatpush.msra.mxu3 %v4738_v52  ;;  %v4673_v31 = vld [vmem:[%s11159_s10 + $0x98] sm:$0xff]  ;;  %v4724_v33 = vld [vmem:[%s11159_s10 + $0x230] sm:$0xff]  ;;  %v4670_v46 = vld [vmem:[%s11159_s10 + $0x80] sm:$0xff] }
0x2149   :  { %4593 = vmatpush.msra.mxu0 %v4572_v20  ;;  %4637 = vmatpush.msra.mxu1 %v4622_v11  ;;  %v4678_v20 = vld [vmem:[%s11159_s10 + $0xc0] sm:$0xff]  ;;  %v4669_v18 = vld [vmem:[%s11159_s10 + $0x78] sm:$0xff]  ;;  %v4720_v22 = vld [vmem:[%s11159_s10 + $0x210] sm:$0xff] }
0x214a   :  { %4755 = vmatpush.msra.mxu2 %v4684_v55  ;;  %4774 = vmatpush.msra.mxu3 %v4735_v59  ;;  %v4721_v11 = vld [vmem:[%s11159_s10 + $0x218] sm:$0xff]  ;;  %v4712_v53 = vld [vmem:[%s11159_s10 + $0x1d0] sm:$0xff]  ;;  %v4658_v15 = vld [vmem:[%s11159_s10 + $0x20] sm:$0xff] }
0x214b   :  { %4594 = vmatpush.msra.mxu0 %v4571_v32  ;;  %4638 = vmatpush.msra.mxu1 %v4621_v47  ;;  %v4729_v32 = vld [vmem:[%s11159_s10 + $0x258] sm:$0xff]  ;;  %v4666_v47 = vld [vmem:[%s11159_s10 + $0x60] sm:$0xff]  ;;  %v4655_v54 = vld [vmem:[%s11159_s10 + $0x8] sm:$0xff] }
0x214c   :  { %4756 = vmatpush.msra.mxu2 %v4681_v13  ;;  %4775 = vmatpush.msra.mxu3 %v4732_v1  ;;  %v4661_v27 = vld [vmem:[%s11159_s10 + $0x38] sm:$0xff]  ;;  %v4915_v9 = vld [vmem:[#allocation12 + $0x168] sm:$0xff]  ;;  %v4703_v52 = vld [vmem:[%s11159_s10 + $0x188] sm:$0xff] }
0x214d   :  { %4595 = vmatpush.msra.mxu0 %v4570_v61  ;;  %4639 = vmatpush.msra.mxu1 %v4620_v48  ;;  %v4679_v61 = vld [vmem:[%s11159_s10 + $0xc8] sm:$0xff]  ;;  %v4717_v48 = vld [vmem:[%s11159_s10 + $0x1f8] sm:$0xff]  ;;  %v4909_v13 = vld [vmem:[#allocation12 + $0x138] sm:$0xff] }
0x214e   :  { %4757 = vmatpush.msra.mxu2 %v4678_v20  ;;  %4776 = vmatpush.msra.mxu3 %v4729_v32  ;;  %v4657_v40 = vld [vmem:[%s11159_s10 + $0x18] sm:$0xff]  ;;  %v4913_v1 = vld [vmem:[#allocation12 + $0x158] sm:$0xff]  ;;  %v4906_v20 = vld [vmem:[#allocation12 + $0x120] sm:$0xff] }
0x214f   :  { %4596 = vmatpush.msra.mxu0 %v4569_v24  ;;  %4640 = vmatpush.msra.mxu1 %v4619_v8  ;;  %v4730_v24 = vld [vmem:[%s11159_s10 + $0x260] sm:$0xff]  ;;  %v4667_v8 = vld [vmem:[%s11159_s10 + $0x68] sm:$0xff]  ;;  %v4705_v41 = vld [vmem:[%s11159_s10 + $0x198] sm:$0xff] }
0x2150   :  { %v4701_v34 = vld [vmem:[%s11159_s10 + $0x178] sm:$0xff]  ;;  %v4910_v32 = vld [vmem:[#allocation12 + $0x140] sm:$0xff] }
0x2151   :  { %4597 = vmatpush.msra.mxu0 %v4568_v45  ;;  %4641 = vmatpush.msra.mxu1 %v4618_v38  ;;  %v4675_v45 = vld [vmem:[%s11159_s10 + $0xa8] sm:$0xff]  ;;  %v4714_v38 = vld [vmem:[%s11159_s10 + $0x1e0] sm:$0xff]  ;;  %v4912_v55 = vld [vmem:[#allocation12 + $0x150] sm:$0xff] }
0x2152   :  { %4758 = vmatpush.msra.mxu2 %v4675_v45  ;;  %v4916_v59 = vld [vmem:[#allocation12 + $0x170] sm:$0xff]  ;;  %v4903_v45 = vld [vmem:[#allocation12 + $0x108] sm:$0xff] }
0x2153   :  { %4598 = vmatpush.msra.mxu0 %v4567_v57  ;;  %4642 = vmatpush.msra.mxu1 %v4617_v2  ;;  %v4726_v57 = vld [vmem:[%s11159_s10 + $0x240] sm:$0xff]  ;;  %v4664_v2 = vld [vmem:[%s11159_s10 + $0x50] sm:$0xff] }
0x2154   :  { %4599 = vmatmul.f32.vlgmr.msra.gmra.mxu0 %v9862_v29  ;;  %4777 = vmatpush.msra.mxu3 %v4726_v57  ;;  %v4907_v57 = vld [vmem:[#allocation12 + $0x128] sm:$0xff] }
0x2155   :  { %4643 = vmatpush.msra.mxu1 %v4616_v6  ;;  %4790 = vmatpush.msrb.mxu0 %v4700_v51  ;;  %v4715_v6 = vld [vmem:[%s11159_s10 + $0x1e8] sm:$0xff]  ;;  %v4708_v51 = vld [vmem:[%s11159_s10 + $0x1b0] sm:$0xff] }
0x2156   :  { %4759 = vmatpush.msra.mxu2 %v4672_v19  ;;  %4778 = vmatpush.msra.mxu3 %v4723_v28  ;;  %v4900_v19 = vld [vmem:[#allocation12 + $0xf0] sm:$0xff] }
0x2157   :  { %4644 = vmatpush.msra.mxu1 %v4615_v21  ;;  %4791 = vmatpush.msrb.mxu0 %v4697_v12  ;;  %v4660_v21 = vld [vmem:[%s11159_s10 + $0x30] sm:$0xff]  ;;  %v4709_v12 = vld [vmem:[%s11159_s10 + $0x1b8] sm:$0xff] }
0x2158   :  { %4760 = vmatpush.msra.mxu2 %v4669_v18  ;;  %4779 = vmatpush.msra.mxu3 %v4720_v22  ;;  %v4904_v28 = vld [vmem:[#allocation12 + $0x110] sm:$0xff]  ;;  %v4897_v18 = vld [vmem:[#allocation12 + $0xd8] sm:$0xff] }
0x2159   :  { %4645 = vmatpush.msra.mxu1 %v4614_v43  ;;  %4792 = vmatpush.msrb.mxu0 %v4694_v16  ;;  %v4711_v43 = vld [vmem:[%s11159_s10 + $0x1c8] sm:$0xff]  ;;  %v4901_v22 = vld [vmem:[#allocation12 + $0xf8] sm:$0xff] }
0x215a   :  { %4761 = vmatpush.msra.mxu2 %v4666_v47  ;;  %4780 = vmatpush.msra.mxu3 %v4717_v48  ;;  %v4894_v47 = vld [vmem:[#allocation12 + $0xc0] sm:$0xff] }
0x215b   :  { %4810 = vmatpush.msrb.mxu1 %v4748_v5  ;;  %4793 = vmatpush.msrb.mxu0 %v4691_v35  ;;  %v4654_v5 = vld [vmem:[%s11159_s10] sm:$0xff]  ;;  %v4898_v48 = vld [vmem:[#allocation12 + $0xe0] sm:$0xff] }
0x215c   :  { %4781 = vmatpush.msra.mxu3 %v4714_v38  ;;  %v4706_v35 = vld [vmem:[%s11159_s10 + $0x1a0] sm:$0xff]  ;;  %v4891_v38 = vld [vmem:[#allocation12 + $0xa8] sm:$0xff] }
0x215d   :  { %4811 = vmatpush.msrb.mxu1 %v4745_v0  ;;  %4794 = vmatpush.msrb.mxu0 %v4688_v7  ;;  %v4695_v7 = vld [vmem:[%s11159_s10 + $0x148] sm:$0xff] }
0x215e   :  { %4782 = vmatpush.msra.mxu3 %v4711_v43  ;;  %v4888_v43 = vld [vmem:[#allocation12 + $0x90] sm:$0xff] }
0x215f   :  { %4812 = vmatpush.msrb.mxu1 %v4742_v60  ;;  %4795 = vmatpush.msrb.mxu0 %v4685_v25  ;;  %v4698_v60 = vld [vmem:[%s11159_s10 + $0x160] sm:$0xff]  ;;  %v4692_v25 = vld [vmem:[%s11159_s10 + $0x130] sm:$0xff] }
0x2160   :  { %4783 = vmatpush.msra.mxu3 %v4708_v51  ;;  %v4885_v51 = vld [vmem:[#allocation12 + $0x78] sm:$0xff] }
0x2161   :  { %4813 = vmatpush.msrb.mxu1 %v4739_v39  ;;  %4796 = vmatpush.msrb.mxu0 %v4682_v3  ;;  %v4749_v39 = vld [vmem:[%s11159_s10 + $0x2f8] sm:$0xff] }
0x2162   :  { %4784 = vmatpush.msra.mxu3 %v4705_v41  ;;  %v4689_v3 = vld [vmem:[%s11159_s10 + $0x118] sm:$0xff]  ;;  %v4882_v41 = vld [vmem:[#allocation12 + $0x60] sm:$0xff] }
0x2163   :  { %4814 = vmatpush.msrb.mxu1 %v4736_v63  ;;  %4797 = vmatpush.msrb.mxu0 %v4679_v61  ;;  %v4746_v63 = vld [vmem:[%s11159_s10 + $0x2e0] sm:$0xff] }
0x2164   :  { %v4686_v61 = vld [vmem:[%s11159_s10 + $0x100] sm:$0xff] }
0x2165   :  { %4815 = vmatpush.msrb.mxu1 %v4733_v10  ;;  %v4743_v10 = vld [vmem:[%s11159_s10 + $0x2c8] sm:$0xff] }
0x2167   :  { %4816 = vmatpush.msrb.mxu1 %v4730_v24  ;;  %v4740_v24 = vld [vmem:[%s11159_s10 + $0x2b0] sm:$0xff] }
0x21d1   :  { %v4600_v36 = vpop.f32.mrf.mxu0 }
0x21d2   :  { %v4601_v37 = vadd.f32 %v4600_v36, %v7991_v50  ;;  %v4676_v36 = vld [vmem:[%s11159_s10 + $0xb0] sm:$0xff] }
0x21d3   :  { %4798 = vmatpush.msrb.mxu0 %v4676_v36  ;;  %v4683_v36 = vld [vmem:[%s11159_s10 + $0xe8] sm:$0xff] }
0x21d4   :  { %4603 = vmax.xlane.f32.xlu0 %v4601_v37 }
0x21d5   :  { %4799 = vmatpush.msrb.mxu0 %v4673_v31  ;;  %v4680_v31 = vld [vmem:[%s11159_s10 + $0xd0] sm:$0xff] }
0x21d7   :  { %4800 = vmatpush.msrb.mxu0 %v4670_v46  ;;  %v4677_v46 = vld [vmem:[%s11159_s10 + $0xb8] sm:$0xff] }
0x21d9   :  { %4801 = vmatpush.msrb.mxu0 %v4667_v8  ;;  %v4674_v8 = vld [vmem:[%s11159_s10 + $0xa0] sm:$0xff] }
0x21db   :  { %4802 = vmatpush.msrb.mxu0 %v4664_v2  ;;  %v4895_v2 = vld [vmem:[#allocation12 + $0xc8] sm:$0xff] }
0x21dd   :  { %4803 = vmatpush.msrb.mxu0 %v4661_v27  ;;  %v4892_v27 = vld [vmem:[#allocation12 + $0xb0] sm:$0xff] }
0x21df   :  { %4804 = vmatpush.msrb.mxu0 %v4658_v15  ;;  %v4889_v15 = vld [vmem:[#allocation12 + $0x98] sm:$0xff] }
0x21e1   :  { %4805 = vmatpush.msrb.mxu0 %v4655_v54  ;;  %v4716_v54 = vld [vmem:[%s11159_s10 + $0x1f0] sm:$0xff] }
0x21e3   :  { %4918 = vmatpush.msra.mxu0 %v4915_v9  ;;  %v4917_v9 = vld [vmem:[#allocation12 + $0x178] sm:$0xff] }
0x21e5   :  { %4919 = vmatpush.msra.mxu0 %v4912_v55  ;;  %v4710_v55 = vld [vmem:[%s11159_s10 + $0x1c0] sm:$0xff] }
0x21e7   :  { %4920 = vmatpush.msra.mxu0 %v4909_v13  ;;  %v4707_v13 = vld [vmem:[%s11159_s10 + $0x1a8] sm:$0xff] }
0x21e9   :  { %4921 = vmatpush.msra.mxu0 %v4906_v20  ;;  %v4704_v20 = vld [vmem:[%s11159_s10 + $0x190] sm:$0xff] }
0x21eb   :  { %4922 = vmatpush.msra.mxu0 %v4903_v45  ;;  %v4899_v45 = vld [vmem:[#allocation12 + $0xe8] sm:$0xff] }
0x21ed   :  { %4923 = vmatpush.msra.mxu0 %v4900_v19  ;;  %v4887_v19 = vld [vmem:[#allocation12 + $0x88] sm:$0xff] }
0x21ef   :  { %4924 = vmatpush.msra.mxu0 %v4897_v18  ;;  %v4875_v18 = vld [vmem:[#allocation12 + $0x28] sm:$0xff] }
0x21f1   :  { %4925 = vmatpush.msra.mxu0 %v4894_v47 }
0x21f3   :  { %4926 = vmatpush.msra.mxu0 %v4891_v38 }
0x21f5   :  { %4927 = vmatpush.msra.mxu0 %v4888_v43 }
0x21f7   :  { %4928 = vmatpush.msra.mxu0 %v4885_v51 }
0x21f9   :  { %4929 = vmatpush.msra.mxu0 %v4882_v41 }
0x2247   :  { %v4604_v14 = vpop.xlane.xlu0 %4603 }
0x2248   :  { %v4605_v42 = vsub.f32 %v4601_v37, %v4604_v14  ;;  %v4727_v37 = vld [vmem:[%s11159_s10 + $0x248] sm:$0xff]  ;;  %v4718_v14 = vld [vmem:[%s11159_s10 + $0x200] sm:$0xff] }
0x2249   :  { %4817 = vmatpush.msrb.mxu1 %v4727_v37  ;;  %v4737_v37 = vld [vmem:[%s11159_s10 + $0x298] sm:$0xff] }
0x224a   :  { %v4606_v56 = vmul.f32 1.442695, %v4605_v42 }
0x224b   :  { %4818 = vmatpush.msrb.mxu1 %v4724_v33  ;;  %v4734_v33 = vld [vmem:[%s11159_s10 + $0x280] sm:$0xff] }
0x224c   :  { %6571 = vpow2.f32 %v4606_v56  ;;  %v4663_v56 = vld [vmem:[%s11159_s10 + $0x48] sm:$0xff] }
0x224d   :  { %4819 = vmatpush.msrb.mxu1 %v4721_v11  ;;  %4762 = vmatpush.msra.mxu2 %v4663_v56  ;;  %v4731_v11 = vld [vmem:[%s11159_s10 + $0x268] sm:$0xff]  ;;  %v4728_v56 = vld [vmem:[%s11159_s10 + $0x250] sm:$0xff] }
0x224f   :  { %4820 = vmatpush.msrb.mxu1 %v4718_v14  ;;  %4763 = vmatpush.msra.mxu2 %v4660_v21  ;;  %v4671_v14 = vld [vmem:[%s11159_s10 + $0x88] sm:$0xff]  ;;  %v4725_v21 = vld [vmem:[%s11159_s10 + $0x238] sm:$0xff] }
0x2251   :  { %4821 = vmatpush.msrb.mxu1 %v4715_v6  ;;  %4764 = vmatpush.msra.mxu2 %v4657_v40  ;;  %v4665_v6 = vld [vmem:[%s11159_s10 + $0x58] sm:$0xff]  ;;  %v4722_v40 = vld [vmem:[%s11159_s10 + $0x220] sm:$0xff] }
0x2252   :  { %v9921_v49 = vpop.eup %6571 }
0x2253   :  { %4608 = vadd.xlane.f32.xlu0 %v9921_v49  ;;  %4822 = vmatpush.msrb.mxu1 %v4712_v53  ;;  %v4662_v53 = vld [vmem:[%s11159_s10 + $0x40] sm:$0xff] }
0x2254   :  { %4765 = vmatpush.msra.mxu2 %v4654_v5  ;;  %v4719_v5 = vld [vmem:[%s11159_s10 + $0x208] sm:$0xff] }
0x2255   :  { %4823 = vmatpush.msrb.mxu1 %v4709_v12  ;;  %v4659_v12 = vld [vmem:[%s11159_s10 + $0x28] sm:$0xff] }
0x2256   :  { %4830 = vmatpush.msrb.mxu2 %v4701_v34  ;;  %v4566_v34 = vld [vmem:[#allocation6] sm:$0xff] }
0x2257   :  { %4824 = vmatpush.msrb.mxu1 %v4706_v35  ;;  %4766 = vmatmul.f32.vlgmr.msra.gmra.mxu2 %v4566_v34  ;;  %v4879_v35 = vld [vmem:[#allocation12 + $0x48] sm:$0xff] }
0x2258   :  { %4831 = vmatpush.msrb.mxu2 %v4698_v60  ;;  %v4883_v60 = vld [vmem:[#allocation12 + $0x68] sm:$0xff]  ;;  %4806 = vmatmul.f32.vlgmr.msrb.gmra.mxu0 %v4566_v34 }
0x2259   :  { %4825 = vmatpush.msrb.mxu1 %v4703_v52  ;;  %4930 = vmatpush.msra.mxu0 %v4879_v35  ;;  %v4876_v52 = vld [vmem:[#allocation12 + $0x30] sm:$0xff] }
0x225a   :  { %4832 = vmatpush.msrb.mxu2 %v4695_v7  ;;  %v4880_v7 = vld [vmem:[#allocation12 + $0x50] sm:$0xff] }
0x225b   :  { %4931 = vmatpush.msra.mxu0 %v4876_v52  ;;  %v5028_v52 = vld [vmem:[%s11163_s14 + $0x18] sm:$0xff] }
0x225c   :  { %4833 = vmatpush.msrb.mxu2 %v4692_v25  ;;  %v4877_v25 = vld [vmem:[#allocation12 + $0x38] sm:$0xff] }
0x225e   :  { %4834 = vmatpush.msrb.mxu2 %v4689_v3  ;;  %v4874_v3 = vld [vmem:[#allocation12 + $0x20] sm:$0xff] }
0x2260   :  { %4835 = vmatpush.msrb.mxu2 %v4686_v61  ;;  %v4905_v61 = vld [vmem:[#allocation12 + $0x118] sm:$0xff] }
0x2262   :  { %4836 = vmatpush.msrb.mxu2 %v4683_v36  ;;  %v4893_v36 = vld [vmem:[#allocation12 + $0xb8] sm:$0xff] }
0x2264   :  { %4837 = vmatpush.msrb.mxu2 %v4680_v31  ;;  %v4881_v31 = vld [vmem:[#allocation12 + $0x58] sm:$0xff] }
0x2266   :  { %4838 = vmatpush.msrb.mxu2 %v4677_v46 }
0x2268   :  { %4839 = vmatpush.msrb.mxu2 %v4674_v8  ;;  %v5038_v8 = vld [vmem:[%s11163_s14 + $0x68] sm:$0xff] }
0x226a   :  { %4840 = vmatpush.msrb.mxu2 %v4671_v14  ;;  %v5037_v14 = vld [vmem:[%s11163_s14 + $0x60] sm:$0xff] }
0x22c6   :  { %v4609_v42 = vpop.xlane.xlu0 %4608 }
0x22c7   :  { %6573 = vrcp.f32 %v4609_v42  ;;  %v4668_v42 = vld [vmem:[%s11159_s10 + $0x70] sm:$0xff] }
0x22c8   :  { %4841 = vmatpush.msrb.mxu2 %v4668_v42  ;;  %v5036_v42 = vld [vmem:[%s11163_s14 + $0x58] sm:$0xff] }
0x22ca   :  { %4842 = vmatpush.msrb.mxu2 %v4665_v6  ;;  %v5034_v6 = vld [vmem:[%s11163_s14 + $0x48] sm:$0xff] }
0x22cc   :  { %4843 = vmatpush.msrb.mxu2 %v4662_v53 }
0x22cd   :  { %v6574_v16 = vpop.eup %6573 }
0x22ce   :  { %v4611_v0 = vmul.f32 %v6574_v16, %v9921_v49  ;;  %v4702_v49 = vld [vmem:[%s11159_s10 + $0x180] sm:$0xff]  ;;  %4844 = vmatpush.msrb.mxu2 %v4659_v12  ;;  %v4886_v16 = vld [vmem:[#allocation12 + $0x80] sm:$0xff]  ;;  %v5032_v12 = vld [vmem:[%s11163_s14 + $0x38] sm:$0xff] }
0x22cf   :  { %4785 = vmatpush.msra.mxu3 %v4702_v49  ;;  %v4713_v49 = vld [vmem:[%s11159_s10 + $0x1d8] sm:$0xff] }
0x22d0   :  { %4613 = vst [vmem:[#allocation15 + $0x28] sm:$0xff] %v4611_v0  ;;  %4646 = vmatmul.f32.vlgmr.msra.gmra.mxu1 %v4611_v0  ;;  %v4656_v0 = vld [vmem:[%s11159_s10 + $0x10] sm:$0xff] }
0x22d1   :  { %4850 = vmatpush.msrb.mxu3 %v4749_v39  ;;  %4938 = vmatpush.msra.mxu1 %v4916_v59  ;;  %v4914_v39 = vld [vmem:[#allocation12 + $0x160] sm:$0xff]  ;;  %v4873_v59 = vld [vmem:[#allocation12 + $0x18] sm:$0xff] }
0x22d2   :  { %4845 = vmatpush.msrb.mxu2 %v4656_v0  ;;  %4932 = vmatpush.msra.mxu0 %v4873_v59  ;;  %v5031_v0 = vld [vmem:[%s11163_s14 + $0x30] sm:$0xff]  ;;  %v5025_v59 = vld [vmem:[%s11163_s14] sm:$0xff] }
0x22d3   :  { %4851 = vmatpush.msrb.mxu3 %v4746_v63  ;;  %4939 = vmatpush.msra.mxu1 %v4913_v1  ;;  %v4911_v63 = vld [vmem:[#allocation12 + $0x148] sm:$0xff]  ;;  %v4870_v1 = vld [vmem:[#allocation12] sm:$0xff] }
0x22d4   :  { %4958 = vmatpush.msra.mxu2 %v4917_v9  ;;  %4933 = vmatpush.msra.mxu0 %v4870_v1  ;;  %v5029_v9 = vld [vmem:[%s11163_s14 + $0x20] sm:$0xff] }
0x22d5   :  { %4852 = vmatpush.msrb.mxu3 %v4743_v10  ;;  %4940 = vmatpush.msra.mxu1 %v4910_v32  ;;  %v4908_v10 = vld [vmem:[#allocation12 + $0x130] sm:$0xff]  ;;  %v4871_v32 = vld [vmem:[#allocation12 + $0x8] sm:$0xff]  ;;  %v4807_v47 = vpop.f32.mrf.mxu0 }
0x22d6   :  { %4959 = vmatpush.msra.mxu2 %v4914_v39  ;;  %4934 = vmatmul.f32.vlgmr.msra.gmra.mxu0 %v9862_v29  ;;  %v5026_v39 = vld [vmem:[%s11163_s14 + $0x8] sm:$0xff] }
0x22d7   :  { %4853 = vmatpush.msrb.mxu3 %v4740_v24  ;;  %4941 = vmatpush.msra.mxu1 %v4907_v57  ;;  %v4902_v24 = vld [vmem:[#allocation12 + $0x100] sm:$0xff]  ;;  %v4896_v57 = vld [vmem:[#allocation12 + $0xd0] sm:$0xff] }
0x22d8   :  { %4960 = vmatpush.msra.mxu2 %v4911_v63 }
0x22d9   :  { %4854 = vmatpush.msrb.mxu3 %v4737_v37  ;;  %4942 = vmatpush.msra.mxu1 %v4904_v28  ;;  %v4890_v37 = vld [vmem:[#allocation12 + $0xa0] sm:$0xff]  ;;  %v4884_v28 = vld [vmem:[#allocation12 + $0x70] sm:$0xff] }
0x22da   :  { %4961 = vmatpush.msra.mxu2 %v4908_v10  ;;  %v4767_v38 = vpop.f32.mrf.mxu2 }
0x22db   :  { %4855 = vmatpush.msrb.mxu3 %v4734_v33  ;;  %4943 = vmatpush.msra.mxu1 %v4901_v22  ;;  %v4878_v33 = vld [vmem:[#allocation12 + $0x40] sm:$0xff]  ;;  %v4872_v22 = vld [vmem:[#allocation12 + $0x10] sm:$0xff]  ;;  %v4768_v43 = vadd.f32 %v4767_v38, %v8155_v23 }
0x22dc   :  { %4846 = vmatmul.f32.vlgmr.msrb.gmra.mxu2 %v4566_v34 }
0x22dd   :  { %4856 = vmatpush.msrb.mxu3 %v4731_v11  ;;  %4944 = vmatpush.msra.mxu1 %v4898_v48  ;;  %v5040_v11 = vld [vmem:[%s11163_s14 + $0x78] sm:$0xff]  ;;  %v5039_v48 = vld [vmem:[%s11163_s14 + $0x70] sm:$0xff] }
0x22de   :  { %4962 = vmatpush.msra.mxu2 %v4905_v61 }
0x22df   :  { %4857 = vmatpush.msrb.mxu3 %v4728_v56  ;;  %4945 = vmatpush.msra.mxu1 %v4895_v2  ;;  %v5035_v2 = vld [vmem:[%s11163_s14 + $0x50] sm:$0xff] }
0x22e0   :  { %4963 = vmatpush.msra.mxu2 %v4902_v24 }
0x22e1   :  { %4858 = vmatpush.msrb.mxu3 %v4725_v21  ;;  %4946 = vmatpush.msra.mxu1 %v4892_v27  ;;  %v4808_v27 = vadd.f32 %v4807_v47, %v8192_v30 }
0x22e2   :  { %4964 = vmatpush.msra.mxu2 %v4899_v45 }
0x22e3   :  { %4859 = vmatpush.msrb.mxu3 %v4722_v40  ;;  %4947 = vmatpush.msra.mxu1 %v4889_v15  ;;  %v5033_v40 = vld [vmem:[%s11163_s14 + $0x40] sm:$0xff] }
0x22e4   :  { %4965 = vmatpush.msra.mxu2 %v4896_v57 }
0x22e5   :  { %4860 = vmatpush.msrb.mxu3 %v4719_v5  ;;  %4948 = vmatpush.msra.mxu1 %v4886_v16 }
0x22e6   :  { %4966 = vmatpush.msra.mxu2 %v4893_v36 }
0x22e7   :  { %4861 = vmatpush.msrb.mxu3 %v4716_v54  ;;  %4949 = vmatpush.msra.mxu1 %v4883_v60  ;;  %v5030_v60 = vld [vmem:[%s11163_s14 + $0x28] sm:$0xff] }
0x22e8   :  { %4967 = vmatpush.msra.mxu2 %v4890_v37 }
0x22e9   :  { %4862 = vmatpush.msrb.mxu3 %v4713_v49  ;;  %4950 = vmatpush.msra.mxu1 %v4880_v7  ;;  %v5027_v7 = vld [vmem:[%s11163_s14 + $0x10] sm:$0xff] }
0x22ea   :  { %4968 = vmatpush.msra.mxu2 %v4887_v19 }
0x22eb   :  { %4863 = vmatpush.msrb.mxu3 %v4710_v55  ;;  %4951 = vmatpush.msra.mxu1 %v4877_v25 }
0x22ec   :  { %4969 = vmatpush.msra.mxu2 %v4884_v28 }
0x22ed   :  { %4864 = vmatpush.msrb.mxu3 %v4707_v13  ;;  %4952 = vmatpush.msra.mxu1 %v4874_v3 }
0x22ee   :  { %4970 = vmatpush.msra.mxu2 %v4881_v31 }
0x22ef   :  { %4865 = vmatpush.msrb.mxu3 %v4704_v20  ;;  %4953 = vmatpush.msra.mxu1 %v4871_v32 }
0x22f0   :  { %4971 = vmatpush.msra.mxu2 %v4878_v33 }
0x22f2   :  { %4972 = vmatpush.msra.mxu2 %v4875_v18 }
0x22f4   :  { %4973 = vmatpush.msra.mxu2 %v4872_v22 }
0x22f5   :  { %4974 = vmatmul.f32.vlgmr.msra.gmra.mxu2 %v9862_v29 }
0x234d   :  { %v4647_v46 = vpop.f32.mrf.mxu1 }
0x234e   :  { %4786 = vmatmul.f32.vlgmr.msra.gmra.mxu3 %v4647_v46  ;;  %4826 = vmatmul.f32.vlgmr.msrb.gmra.mxu1 %v4647_v46 }
0x234f   :  { %5041 = vmatpush.msra.mxu3 %v5040_v11 }
0x2351   :  { %5042 = vmatpush.msra.mxu3 %v5039_v48 }
0x2353   :  { %5043 = vmatpush.msra.mxu3 %v5038_v8  ;;  %v4935_v21 = vpop.f32.mrf.mxu0 }
0x2354   :  { %v4936_v53 = vadd.f32 %v4935_v21, %v8167_v26 }
0x2355   :  { %5044 = vmatpush.msra.mxu3 %v5037_v14 }
0x2356   :  { %4866 = vmatmul.f32.vlgmr.msrb.gmra.mxu3 %v4647_v46  ;;  %4954 = vmatmul.f32.vlgmr.msra.gmra.mxu1 %v9862_v29 }
0x2357   :  { %5045 = vmatpush.msra.mxu3 %v5036_v42 }
0x2359   :  { %5046 = vmatpush.msra.mxu3 %v5035_v2 }
0x235b   :  { %5047 = vmatpush.msra.mxu3 %v5034_v6 }
0x235d   :  { %5048 = vmatpush.msra.mxu3 %v5033_v40 }
0x235f   :  { %5049 = vmatpush.msra.mxu3 %v5032_v12  ;;  %v4847_v1 = vpop.f32.mrf.mxu2 }
0x2360   :  { %v4848_v19 = vadd.f32 %v4847_v1, %v8214_v62 }
0x2361   :  { %5050 = vmatpush.msra.mxu3 %v5031_v0 }
0x2363   :  { %5051 = vmatpush.msra.mxu3 %v5030_v60 }
0x2365   :  { %5052 = vmatpush.msra.mxu3 %v5029_v9 }
0x2367   :  { %5053 = vmatpush.msra.mxu3 %v5028_v52 }
0x2369   :  { %5054 = vmatpush.msra.mxu3 %v5027_v7 }
0x236b   :  { %5055 = vmatpush.msra.mxu3 %v5026_v39 }
0x236d   :  { %5056 = vmatpush.msra.mxu3 %v5025_v59 }
0x2378   :  { %v4975_v24 = vpop.f32.mrf.mxu2 }
0x2379   :  { %v4976_v28 = vadd.f32 %v4975_v24, %v8216_v4 }
0x23cb   :  { %v4827_v56 = vpop.f32.mrf.mxu1 }
0x23cc   :  { %v4828_v41 = vadd.f32 %v4827_v56, %v4808_v27 }
0x23d1   :  { %v4787_v51 = vpop.f32.mrf.mxu3 }
0x23d2   :  { %v4788_v15 = vadd.f32 %v4787_v51, %v4768_v43 }
0x23d3   :  { %v4955_v5 = vpop.f32.mrf.mxu1 }
0x23d4   :  { %v4978_v16 = vadd.f32 %v4936_v53, %v4788_v15  ;;  %v4956_v34 = vadd.f32 %v4955_v5, %v8197_v44 }
0x23d6   :  { %v6374_v54 = vmul.f32 -1.442695, %v4978_v16  ;;  %v4998_v35 = vadd.f32 %v4956_v34, %v4828_v41 }
0x23d8   :  { %6575 = vpow2.f32 %v6374_v54  ;;  %v6375_v49 = vmul.f32 -1.442695, %v4998_v35 }
0x23d9   :  { %v4867_v18 = vpop.f32.mrf.mxu3 }
0x23da   :  { %6577 = vpow2.f32 %v6375_v49  ;;  %v4868_v48 = vadd.f32 %v4867_v18, %v4848_v19 }
0x23de   :  { %v6576_v55 = vpop.eup %6575 }
0x23df   :  { %v4982_v25 = vadd.f32 1.0, %v6576_v55 }
0x23e0   :  { %v6578_v63 = vpop.eup %6577 }
0x23e1   :  { %6579 = vrcp.f32 %v4982_v25  ;;  %v5002_v13 = vadd.f32 1.0, %v6578_v63  ;;  %v4994_v45 = vand.u32 2147483648, %v4982_v25  ;;  %v4992_v37 = vand.u32 2147483647, %v4982_v25 }
0x23e2   :  { %vm4988_vm8 = vweird.f32 %v4982_v25 }
0x23e3   :  { %6581 = vrcp.f32 %v5002_v13  ;;  %v4995_v22 = vor.u32 1.1754944e-38, %v4994_v45  ;;  %vm4993_vm10 = vcmp.eq.f32.partialorder %v4992_v37, 8.507059e+37  ;;  %v5014_v14 = vand.u32 2147483648, %v5002_v13 }
0x23e4   :  { %vm5008_vm12 = vweird.f32 %v5002_v13  ;;  %v5012_v42 = vand.u32 2147483647, %v5002_v13 }
0x23e5   :  { %v5015_v2 = vor.u32 1.1754944e-38, %v5014_v14 }
0x23e6   :  { %vm5013_vm14 = vcmp.eq.f32.partialorder %v5012_v42, 8.507059e+37 }
0x23e7   :  { %v6580_v3 = vpop.eup %6579 }
0x23e8   :  { %v4984_v10 = vmul.f32 %v6580_v3, %v4982_v25  ;;  %vm4989_vm7 = vweird.f32 %v6580_v3 }
0x23e9   :  { %v6582_v20 = vpop.eup %6581  ;;  %vm4990_vm9 = vmor %vm4988_vm8, %vm4989_vm7 }
0x23ea   :  { %v5004_v32 = vmul.f32 %v6582_v20, %v5002_v13  ;;  %v4985_v61 = vsub.f32 1.0, %v4984_v10  ;;  %vm5009_vm11 = vweird.f32 %v6582_v20 }
0x23eb   :  { %vm5010_vm13 = vmor %vm5008_vm12, %vm5009_vm11 }
0x23ec   :  { %v5005_v57 = vsub.f32 1.0, %v5004_v32  ;;  %v4986_v36 = vmul.f32 %v6580_v3, %v4985_v61 }
0x23ee   :  { %v4987_v31 = vadd.f32 %v6580_v3, %v4986_v36  ;;  %v5006_v33 = vmul.f32 %v6582_v20, %v5005_v57 }
0x23f0   :  { %v4991_v46 = vsel %vm4990_vm9, %v6580_v3, %v4987_v31  ;;  %v5007_v47 = vadd.f32 %v6582_v20, %v5006_v33 }
0x23f1   :  { %v4996_v11 = vsel %vm4993_vm10, %v4995_v22, %v4991_v46 }
0x23f2   :  { %v5018_v8 = vmul.f32 %v4996_v11, %v4976_v28  ;;  %v5011_v38 = vsel %vm5010_vm13, %v6582_v20, %v5007_v47 }
0x23f3   :  { %v5016_v6 = vsel %vm5013_vm14, %v5015_v2, %v5011_v38 }
0x23f4   :  { %v5019_v56 = vadd.f32 %v5018_v8, %v4868_v48  ;;  %v5021_v21 = vsub.f32 1.0, %v5016_v6  ;;  %v5023_v53 = vmul.f32 %v5016_v6, %v9862_v29 }
0x23f6   :  { %6583 = vtanh.f32 %v5019_v56 }
0x23fc   :  { %v6584_v43 = vpop.eup %6583 }
0x23fd   :  { %v5022_v27 = vmul.f32 %v6584_v43, %v5021_v21 }
0x23ff   :  { %v10271_v40 = vadd.f32 %v5023_v53, %v5022_v27 }
0x2401   :  { %5057 = vmatmul.f32.vlgmr.msra.gmra.mxu3 %v10271_v40 }
0x2483   :  { %5067 = sbr.rel (%p6377_p10) target bundleno = 9354 (0x248a), region = 121 }
0x2484   :  { %v5058_v51 = vpop.f32.mrf.mxu3 }
0x2485   :  { %v5059_v15 = vadd.f32 %v8227_v17, %v5058_v51 }
0x2487   :  { %5062 = vst [vmem:[#allocation14 + $0x28] sm:$0xff] %v5059_v15 }
0x2488   :  { %v6378_v12 = vld [vmem:[%s11151_s2 + $0x28] sm:$0xff] }
0x2489   :  { %5070 = vst [vmem:[#allocation6] sm:$0xff] %v6378_v12 }
0x248a PF:  { %s6379_s24 = sld [smem:[#allocation7 + $0x5]] }
0x2490   :  { %p6380_p11 = scmp.ne.s32.totalorder %s6379_s24, 0 }
0x2492   :  { %5075 = sbr.rel (%p6380_p11) target bundleno = 9855 (0x267f), region = 125 }
0x2497   :  { %5076 = vmax.xlane.f32.xlu0 %v5059_v15  ;;  %v5112_v34 = vld [vmem:[%s11158_s9 + $0x78] sm:$0xff]  ;;  %v5111_v0 = vld [vmem:[%s11158_s9 + $0x70] sm:$0xff]  ;;  %v5110_v54 = vld [vmem:[%s11158_s9 + $0x68] sm:$0xff]  ;;  %v6742_v37 = vmov 1.0  }
0x2498   :  { %5113 = vmatpush.msra.mxu0 %v5112_v34  ;;  %v5109_v35 = vld [vmem:[%s11158_s9 + $0x60] sm:$0xff]  ;;  %v5108_v60 = vld [vmem:[%s11158_s9 + $0x58] sm:$0xff]  ;;  %v5107_v9 = vld [vmem:[%s11158_s9 + $0x50] sm:$0xff] }
0x2499   :  { %v5106_v49 = vld [vmem:[%s11158_s9 + $0x48] sm:$0xff]  ;;  %v5105_v52 = vld [vmem:[%s11158_s9 + $0x40] sm:$0xff]  ;;  %v5104_v7 = vld [vmem:[%s11158_s9 + $0x38] sm:$0xff] }
0x249a   :  { %5114 = vmatpush.msra.mxu0 %v5111_v0  ;;  %v5103_v39 = vld [vmem:[%s11158_s9 + $0x30] sm:$0xff]  ;;  %v5102_v55 = vld [vmem:[%s11158_s9 + $0x28] sm:$0xff]  ;;  %v5101_v59 = vld [vmem:[%s11158_s9 + $0x20] sm:$0xff] }
0x249b   :  { %v5100_v25 = vld [vmem:[%s11158_s9 + $0x18] sm:$0xff]  ;;  %v5099_v10 = vld [vmem:[%s11158_s9 + $0x10] sm:$0xff]  ;;  %v5098_v20 = vld [vmem:[%s11158_s9 + $0x8] sm:$0xff] }
0x249c   :  { %5115 = vmatpush.msra.mxu0 %v5110_v54  ;;  %v5097_v32 = vld [vmem:[%s11158_s9] sm:$0xff] }
0x249e   :  { %5116 = vmatpush.msra.mxu0 %v5109_v35 }
0x24a0   :  { %5117 = vmatpush.msra.mxu0 %v5108_v60 }
0x24a2   :  { %5118 = vmatpush.msra.mxu0 %v5107_v9 }
0x24a4   :  { %5119 = vmatpush.msra.mxu0 %v5106_v49 }
0x24a6   :  { %5120 = vmatpush.msra.mxu0 %v5105_v52 }
0x24a8   :  { %5121 = vmatpush.msra.mxu0 %v5104_v7 }
0x24aa   :  { %5122 = vmatpush.msra.mxu0 %v5103_v39 }
0x24ac   :  { %5123 = vmatpush.msra.mxu0 %v5102_v55 }
0x24ae   :  { %5124 = vmatpush.msra.mxu0 %v5101_v59 }
0x24b0   :  { %5125 = vmatpush.msra.mxu0 %v5100_v25 }
0x24b2   :  { %5126 = vmatpush.msra.mxu0 %v5099_v10 }
0x24b4   :  { %5127 = vmatpush.msra.mxu0 %v5098_v20 }
0x24b6   :  { %5128 = vmatpush.msra.mxu0 %v5097_v32 }
0x250a   :  { %v5077_v29 = vpop.xlane.xlu0 %5076 }
0x250b   :  { %vm5078_vm15 = vcmp.ge.f32.partialorder %v5059_v15, %v5077_v29 }
0x250c   :  { %v5079_v5 = vsel %vm5078_vm15, %v7935_v58, 128 }
0x250d   :  { %v5081_v41 = vshra.s32 %v5079_v5, 16  ;;  %v5080_v63 = vand.u32 65535, %v5079_v5 }
0x250f   :  { %v5083_v16 = vcvt.s32.f32 %v5081_v41  ;;  %v5082_v1 = vcvt.s32.f32 %v5080_v63 }
0x2511   :  { %5084 = vmin.xlane.f32.xlu0 %v5083_v16 }
0x2584   :  { %v5085_v13 = vpop.xlane.xlu0 %5084 }
0x2585   :  { %vm5086_vm0 = vcmp.eq.f32.partialorder %v5083_v16, %v5085_v13  ;;  %v5091_v61 = vcvt.f32.s32 %v5085_v13 }
0x2586   :  { %v5087_v3 = vsel %vm5086_vm0, %v5082_v1, inf }
0x2587   :  { %5088 = vmin.xlane.f32.xlu1 %v5087_v3  ;;  %v5092_v45 = vshll.u32 %v5091_v61, 16 }
0x25fa   :  { %v5089_v24 = vpop.xlane.xlu1 %5088 }
0x25fb   :  { %v5090_v57 = vcvt.f32.s32 %v5089_v24 }
0x25fd   :  { %v5093_v36 = vadd.s32 %v5092_v45, %v5090_v57 }
0x25ff   :  { %vm5094_vm1 = vcmp.eq.s32.totalorder %v7935_v58, %v5093_v36 }
0x2600   :  { %6382 = vmatmul.msk.f32.vlgmr.msra.gmra.mxu0 %vm5094_vm1, %v6742_v37 }
0x267d   :  { %v5130_v19 = vpop.f32.mrf.mxu0 }
0x267e   :  { %5133 = vst [vmem:[#allocation6] sm:$0xff] %v5130_v19 }
0x267f PF:  { %v5150_v28 = vld [vmem:[#allocation4 + $0x50] sm:$0xff]  ;;  %v5149_v31 = vld [vmem:[#allocation4 + $0x60] sm:$0xff]  ;;  %v5148_v33 = vld [vmem:[#allocation4 + $0x8] sm:$0xff]  ;;  %s6385_s27 = sld [smem:[#allocation7 + $0x6]] }
0x2680   :  { %5151 = vmatpush.msra.mxu0 %v5150_v28  ;;  %v5147_v18 = vld [vmem:[#allocation4] sm:$0xff]  ;;  %v5146_v22 = vld [vmem:[#allocation4 + $0x58] sm:$0xff]  ;;  %v5141_v8 = vld [vmem:[#allocation4 + $0x70] sm:$0xff] }
0x2681   :  { %v5145_v46 = vld [vmem:[#allocation4 + $0x18] sm:$0xff]  ;;  %v5143_v47 = vld [vmem:[#allocation4 + $0x20] sm:$0xff]  ;;  %v5140_v14 = vld [vmem:[#allocation4 + $0x30] sm:$0xff] }
0x2682   :  { %5152 = vmatpush.msra.mxu0 %v5149_v31  ;;  %v5144_v11 = vld [vmem:[#allocation4 + $0x78] sm:$0xff]  ;;  %v5139_v42 = vld [vmem:[#allocation4 + $0x48] sm:$0xff]  ;;  %v5138_v56 = vld [vmem:[#allocation4 + $0x40] sm:$0xff] }
0x2683   :  { %v5142_v48 = vld [vmem:[#allocation4 + $0x38] sm:$0xff]  ;;  %v5137_v38 = vld [vmem:[#allocation4 + $0x10] sm:$0xff]  ;;  %v5136_v2 = vld [vmem:[#allocation4 + $0x68] sm:$0xff] }
0x2684   :  { %5153 = vmatpush.msra.mxu0 %v5148_v33  ;;  %v5135_v6 = vld [vmem:[#allocation4 + $0x28] sm:$0xff]  ;;  %v5196_v53 = vld [vmem:[#allocation3 + $0x78] sm:$0xff]  ;;  %v5195_v51 = vld [vmem:[#allocation3 + $0x70] sm:$0xff] }
0x2685   :  { %v5197_v27 = vld [vmem:[#allocation3 + $0x28] sm:$0xff]  ;;  %v5194_v15 = vld [vmem:[#allocation3 + $0x60] sm:$0xff]  ;;  %v5193_v12 = vld [vmem:[#allocation3 + $0x38] sm:$0xff]  ;;  %p6386_p12 = scmp.le.s32.totalorder %s6385_s27, 0 }
0x2686   :  { %5154 = vmatpush.msra.mxu0 %v5147_v18  ;;  %5198 = vmatpush.msra.mxu1 %v5197_v27  ;;  %v5192_v29 = vld [vmem:[#allocation3 + $0x10] sm:$0xff]  ;;  %v5191_v5 = vld [vmem:[#allocation3 + $0x20] sm:$0xff]  ;;  %v5189_v16 = vld [vmem:[#allocation3 + $0x48] sm:$0xff] }
0x2687   :  { %v5190_v41 = vld [vmem:[#allocation3 + $0x40] sm:$0xff]  ;;  %v5188_v34 = vld [vmem:[#allocation3 + $0x8] sm:$0xff]  ;;  %v5186_v49 = vld [vmem:[#allocation3 + $0x50] sm:$0xff] }
0x2688   :  { %5155 = vmatpush.msra.mxu0 %v5146_v22  ;;  %5199 = vmatpush.msra.mxu1 %v5196_v53  ;;  %v5187_v0 = vld [vmem:[#allocation3 + $0x68] sm:$0xff]  ;;  %v5185_v52 = vld [vmem:[#allocation3 + $0x18] sm:$0xff]  ;;  %v5183_v39 = vld [vmem:[#allocation3] sm:$0xff] }
0x2689   :  { %v5184_v7 = vld [vmem:[#allocation3 + $0x58] sm:$0xff]  ;;  %v5182_v55 = vld [vmem:[#allocation3 + $0x30] sm:$0xff]  ;;  %v5267_v59 = vld [vmem:[%s11159_s10 + $0x168] sm:$0xff] }
0x268a   :  { %5156 = vmatpush.msra.mxu0 %v5145_v46  ;;  %5200 = vmatpush.msra.mxu1 %v5195_v51  ;;  %v5264_v25 = vld [vmem:[%s11159_s10 + $0x150] sm:$0xff]  ;;  %v5261_v63 = vld [vmem:[%s11159_s10 + $0x138] sm:$0xff]  ;;  %v5315_v1 = vld [vmem:[%s11159_s10 + $0x2e8] sm:$0xff] }
0x268b   :  { %5318 = vmatpush.msra.mxu2 %v5267_v59  ;;  %v5268_v13 = vld [vmem:[%s11159_s10 + $0x170] sm:$0xff]  ;;  %v5265_v3 = vld [vmem:[%s11159_s10 + $0x158] sm:$0xff]  ;;  %5338 = vmatpush.msra.mxu3 %v5315_v1  ;;  %v5262_v32 = vld [vmem:[%s11159_s10 + $0x140] sm:$0xff] }
0x268c   :  { %5157 = vmatpush.msra.mxu0 %v5144_v11  ;;  %5201 = vmatpush.msra.mxu1 %v5194_v15  ;;  %v5316_v10 = vld [vmem:[%s11159_s10 + $0x2f0] sm:$0xff]  ;;  %v5258_v61 = vld [vmem:[%s11159_s10 + $0x120] sm:$0xff]  ;;  %v5313_v24 = vld [vmem:[%s11159_s10 + $0x2d8] sm:$0xff] }
0x268d   :  { %5319 = vmatpush.msra.mxu2 %v5264_v25  ;;  %v5312_v20 = vld [vmem:[%s11159_s10 + $0x2d0] sm:$0xff]  ;;  %v5309_v45 = vld [vmem:[%s11159_s10 + $0x2b8] sm:$0xff]  ;;  %v5259_v57 = vld [vmem:[%s11159_s10 + $0x128] sm:$0xff] }
0x268e   :  { %5158 = vmatpush.msra.mxu0 %v5143_v47  ;;  %5202 = vmatpush.msra.mxu1 %v5193_v12  ;;  %v5310_v36 = vld [vmem:[%s11159_s10 + $0x2c0] sm:$0xff]  ;;  %v5255_v37 = vld [vmem:[%s11159_s10 + $0x108] sm:$0xff]  ;;  %v5256_v28 = vld [vmem:[%s11159_s10 + $0x110] sm:$0xff] }
0x268f   :  { %5320 = vmatpush.msra.mxu2 %v5261_v63  ;;  %5339 = vmatpush.msra.mxu3 %v5312_v20  ;;  %v5306_v19 = vld [vmem:[%s11159_s10 + $0x2a0] sm:$0xff]  ;;  %v5307_v31 = vld [vmem:[%s11159_s10 + $0x2a8] sm:$0xff]  ;;  %v5252_v33 = vld [vmem:[%s11159_s10 + $0xf0] sm:$0xff] }
0x2690   :  { %5159 = vmatpush.msra.mxu0 %v5142_v48  ;;  %5203 = vmatpush.msra.mxu1 %v5192_v29  ;;  %v5303_v18 = vld [vmem:[%s11159_s10 + $0x288] sm:$0xff]  ;;  %v5253_v22 = vld [vmem:[%s11159_s10 + $0xf8] sm:$0xff]  ;;  %v5304_v46 = vld [vmem:[%s11159_s10 + $0x290] sm:$0xff] }
0x2691   :  { %5321 = vmatpush.msra.mxu2 %v5258_v61  ;;  %5340 = vmatpush.msra.mxu3 %v5309_v45  ;;  %v5249_v11 = vld [vmem:[%s11159_s10 + $0xd8] sm:$0xff]  ;;  %v5300_v47 = vld [vmem:[%s11159_s10 + $0x270] sm:$0xff]  ;;  %v5250_v48 = vld [vmem:[%s11159_s10 + $0xe0] sm:$0xff] }
0x2692   :  { %5160 = vmatpush.msra.mxu0 %v5141_v8  ;;  %5204 = vmatpush.msra.mxu1 %v5191_v5  ;;  %v5301_v8 = vld [vmem:[%s11159_s10 + $0x278] sm:$0xff]  ;;  %v5240_v27 = vld [vmem:[%s11159_s10 + $0x90] sm:$0xff]  ;;  %v5291_v53 = vld [vmem:[%s11159_s10 + $0x228] sm:$0xff] }
0x2693   :  { %5322 = vmatpush.msra.mxu2 %v5255_v37  ;;  %5341 = vmatpush.msra.mxu3 %v5306_v19  ;;  %v5241_v51 = vld [vmem:[%s11159_s10 + $0x98] sm:$0xff]  ;;  %v5292_v15 = vld [vmem:[%s11159_s10 + $0x230] sm:$0xff]  ;;  %v5238_v5 = vld [vmem:[%s11159_s10 + $0x80] sm:$0xff] }
0x2694   :  { %5161 = vmatpush.msra.mxu0 %v5140_v14  ;;  %5205 = vmatpush.msra.mxu1 %v5190_v41  ;;  %v5246_v14 = vld [vmem:[%s11159_s10 + $0xc0] sm:$0xff]  ;;  %v5237_v12 = vld [vmem:[%s11159_s10 + $0x78] sm:$0xff]  ;;  %v5288_v29 = vld [vmem:[%s11159_s10 + $0x210] sm:$0xff] }
0x2695   :  { %5323 = vmatpush.msra.mxu2 %v5252_v33  ;;  %5342 = vmatpush.msra.mxu3 %v5303_v18  ;;  %v5289_v41 = vld [vmem:[%s11159_s10 + $0x218] sm:$0xff]  ;;  %v5280_v25 = vld [vmem:[%s11159_s10 + $0x1d0] sm:$0xff]  ;;  %v5226_v1 = vld [vmem:[%s11159_s10 + $0x20] sm:$0xff] }
0x2696   :  { %5162 = vmatpush.msra.mxu0 %v5139_v42  ;;  %5206 = vmatpush.msra.mxu1 %v5189_v16  ;;  %v5297_v42 = vld [vmem:[%s11159_s10 + $0x258] sm:$0xff]  ;;  %v5234_v16 = vld [vmem:[%s11159_s10 + $0x60] sm:$0xff]  ;;  %v5223_v45 = vld [vmem:[%s11159_s10 + $0x8] sm:$0xff] }
0x2697   :  { %5324 = vmatpush.msra.mxu2 %v5249_v11  ;;  %5343 = vmatpush.msra.mxu3 %v5300_v47  ;;  %v5229_v59 = vld [vmem:[%s11159_s10 + $0x38] sm:$0xff]  ;;  %v5483_v37 = vld [vmem:[#allocation12 + $0x168] sm:$0xff]  ;;  %v5271_v19 = vld [vmem:[%s11159_s10 + $0x188] sm:$0xff] }
0x2698   :  { %5163 = vmatpush.msra.mxu0 %v5138_v56  ;;  %5207 = vmatpush.msra.mxu1 %v5188_v34  ;;  %v5247_v56 = vld [vmem:[%s11159_s10 + $0xc8] sm:$0xff]  ;;  %v5285_v34 = vld [vmem:[%s11159_s10 + $0x1f8] sm:$0xff]  ;;  %v5477_v11 = vld [vmem:[#allocation12 + $0x138] sm:$0xff] }
0x2699   :  { %5325 = vmatpush.msra.mxu2 %v5246_v14  ;;  %5344 = vmatpush.msra.mxu3 %v5297_v42  ;;  %v5225_v63 = vld [vmem:[%s11159_s10 + $0x18] sm:$0xff]  ;;  %v5481_v47 = vld [vmem:[#allocation12 + $0x158] sm:$0xff]  ;;  %v5474_v14 = vld [vmem:[#allocation12 + $0x120] sm:$0xff] }
0x269a   :  { %5164 = vmatpush.msra.mxu0 %v5137_v38  ;;  %5208 = vmatpush.msra.mxu1 %v5187_v0  ;;  %v5298_v38 = vld [vmem:[%s11159_s10 + $0x260] sm:$0xff]  ;;  %v5235_v0 = vld [vmem:[%s11159_s10 + $0x68] sm:$0xff]  ;;  %v5273_v20 = vld [vmem:[%s11159_s10 + $0x198] sm:$0xff] }
0x269b   :  { %v5269_v61 = vld [vmem:[%s11159_s10 + $0x178] sm:$0xff]  ;;  %v5478_v42 = vld [vmem:[#allocation12 + $0x140] sm:$0xff] }
0x269c   :  { %5165 = vmatpush.msra.mxu0 %v5136_v2  ;;  %5209 = vmatpush.msra.mxu1 %v5186_v49  ;;  %v5243_v2 = vld [vmem:[%s11159_s10 + $0xa8] sm:$0xff]  ;;  %v5282_v49 = vld [vmem:[%s11159_s10 + $0x1e0] sm:$0xff]  ;;  %v5480_v33 = vld [vmem:[#allocation12 + $0x150] sm:$0xff] }
0x269d   :  { %5326 = vmatpush.msra.mxu2 %v5243_v2  ;;  %v5484_v18 = vld [vmem:[#allocation12 + $0x170] sm:$0xff]  ;;  %v5471_v2 = vld [vmem:[#allocation12 + $0x108] sm:$0xff] }
0x269e   :  { %5166 = vmatpush.msra.mxu0 %v5135_v6  ;;  %5210 = vmatpush.msra.mxu1 %v5185_v52  ;;  %v5294_v6 = vld [vmem:[%s11159_s10 + $0x240] sm:$0xff]  ;;  %v5232_v52 = vld [vmem:[%s11159_s10 + $0x50] sm:$0xff] }
0x269f   :  { %5167 = vmatmul.f32.vlgmr.msra.gmra.mxu0 %v10271_v40  ;;  %5345 = vmatpush.msra.mxu3 %v5294_v6  ;;  %v5475_v6 = vld [vmem:[#allocation12 + $0x128] sm:$0xff] }
0x26a0   :  { %5211 = vmatpush.msra.mxu1 %v5184_v7  ;;  %5358 = vmatpush.msrb.mxu0 %v5268_v13  ;;  %v5283_v7 = vld [vmem:[%s11159_s10 + $0x1e8] sm:$0xff]  ;;  %v5276_v13 = vld [vmem:[%s11159_s10 + $0x1b0] sm:$0xff] }
0x26a1   :  { %5327 = vmatpush.msra.mxu2 %v5240_v27  ;;  %5346 = vmatpush.msra.mxu3 %v5291_v53  ;;  %v5468_v27 = vld [vmem:[#allocation12 + $0xf0] sm:$0xff] }
0x26a2   :  { %5212 = vmatpush.msra.mxu1 %v5183_v39  ;;  %5359 = vmatpush.msrb.mxu0 %v5265_v3  ;;  %v5228_v39 = vld [vmem:[%s11159_s10 + $0x30] sm:$0xff]  ;;  %v5277_v3 = vld [vmem:[%s11159_s10 + $0x1b8] sm:$0xff] }
0x26a3   :  { %5328 = vmatpush.msra.mxu2 %v5237_v12  ;;  %5347 = vmatpush.msra.mxu3 %v5288_v29  ;;  %v5472_v53 = vld [vmem:[#allocation12 + $0x110] sm:$0xff]  ;;  %v5465_v12 = vld [vmem:[#allocation12 + $0xd8] sm:$0xff] }
0x26a4   :  { %5213 = vmatpush.msra.mxu1 %v5182_v55  ;;  %5360 = vmatpush.msrb.mxu0 %v5262_v32  ;;  %v5279_v55 = vld [vmem:[%s11159_s10 + $0x1c8] sm:$0xff]  ;;  %v5469_v29 = vld [vmem:[#allocation12 + $0xf8] sm:$0xff] }
0x26a5   :  { %5329 = vmatpush.msra.mxu2 %v5234_v16  ;;  %5348 = vmatpush.msra.mxu3 %v5285_v34  ;;  %v5462_v16 = vld [vmem:[#allocation12 + $0xc0] sm:$0xff] }
0x26a6   :  { %5378 = vmatpush.msrb.mxu1 %v5316_v10  ;;  %5361 = vmatpush.msrb.mxu0 %v5259_v57  ;;  %v5222_v10 = vld [vmem:[%s11159_s10] sm:$0xff]  ;;  %v5466_v34 = vld [vmem:[#allocation12 + $0xe0] sm:$0xff] }
0x26a7   :  { %5349 = vmatpush.msra.mxu3 %v5282_v49  ;;  %v5274_v57 = vld [vmem:[%s11159_s10 + $0x1a0] sm:$0xff]  ;;  %v5459_v49 = vld [vmem:[#allocation12 + $0xa8] sm:$0xff] }
0x26a8   :  { %5379 = vmatpush.msrb.mxu1 %v5313_v24  ;;  %5362 = vmatpush.msrb.mxu0 %v5256_v28  ;;  %v5263_v28 = vld [vmem:[%s11159_s10 + $0x148] sm:$0xff] }
0x26a9   :  { %5350 = vmatpush.msra.mxu3 %v5279_v55  ;;  %v5456_v55 = vld [vmem:[#allocation12 + $0x90] sm:$0xff] }
0x26aa   :  { %5380 = vmatpush.msrb.mxu1 %v5310_v36  ;;  %5363 = vmatpush.msrb.mxu0 %v5253_v22  ;;  %v5266_v36 = vld [vmem:[%s11159_s10 + $0x160] sm:$0xff]  ;;  %v5260_v22 = vld [vmem:[%s11159_s10 + $0x130] sm:$0xff] }
0x26ab   :  { %5351 = vmatpush.msra.mxu3 %v5276_v13  ;;  %v5453_v13 = vld [vmem:[#allocation12 + $0x78] sm:$0xff] }
0x26ac   :  { %5381 = vmatpush.msrb.mxu1 %v5307_v31  ;;  %5364 = vmatpush.msrb.mxu0 %v5250_v48  ;;  %v5317_v31 = vld [vmem:[%s11159_s10 + $0x2f8] sm:$0xff] }
0x26ad   :  { %5352 = vmatpush.msra.mxu3 %v5273_v20  ;;  %v5257_v48 = vld [vmem:[%s11159_s10 + $0x118] sm:$0xff]  ;;  %v5450_v20 = vld [vmem:[#allocation12 + $0x60] sm:$0xff] }
0x26ae   :  { %5382 = vmatpush.msrb.mxu1 %v5304_v46  ;;  %5365 = vmatpush.msrb.mxu0 %v5247_v56  ;;  %v5314_v46 = vld [vmem:[%s11159_s10 + $0x2e0] sm:$0xff] }
0x26af   :  { %v5254_v56 = vld [vmem:[%s11159_s10 + $0x100] sm:$0xff] }
0x26b0   :  { %5383 = vmatpush.msrb.mxu1 %v5301_v8  ;;  %v5311_v8 = vld [vmem:[%s11159_s10 + $0x2c8] sm:$0xff] }
0x26b2   :  { %5384 = vmatpush.msrb.mxu1 %v5298_v38  ;;  %v5308_v38 = vld [vmem:[%s11159_s10 + $0x2b0] sm:$0xff] }
0x271c   :  { %v5168_v21 = vpop.f32.mrf.mxu0 }
0x271d   :  { %v5169_v43 = vadd.f32 %v5168_v21, %v7991_v50  ;;  %v5244_v21 = vld [vmem:[%s11159_s10 + $0xb0] sm:$0xff] }
0x271e   :  { %5366 = vmatpush.msrb.mxu0 %v5244_v21  ;;  %v5251_v21 = vld [vmem:[%s11159_s10 + $0xe8] sm:$0xff] }
0x271f   :  { %5171 = vmax.xlane.f32.xlu0 %v5169_v43 }
0x2720   :  { %5367 = vmatpush.msrb.mxu0 %v5241_v51  ;;  %v5248_v51 = vld [vmem:[%s11159_s10 + $0xd0] sm:$0xff] }
0x2722   :  { %5368 = vmatpush.msrb.mxu0 %v5238_v5  ;;  %v5245_v5 = vld [vmem:[%s11159_s10 + $0xb8] sm:$0xff] }
0x2724   :  { %5369 = vmatpush.msrb.mxu0 %v5235_v0  ;;  %v5242_v0 = vld [vmem:[%s11159_s10 + $0xa0] sm:$0xff] }
0x2726   :  { %5370 = vmatpush.msrb.mxu0 %v5232_v52  ;;  %v5463_v52 = vld [vmem:[#allocation12 + $0xc8] sm:$0xff] }
0x2728   :  { %5371 = vmatpush.msrb.mxu0 %v5229_v59  ;;  %v5460_v59 = vld [vmem:[#allocation12 + $0xb0] sm:$0xff] }
0x272a   :  { %5372 = vmatpush.msrb.mxu0 %v5226_v1  ;;  %v5457_v1 = vld [vmem:[#allocation12 + $0x98] sm:$0xff] }
0x272c   :  { %5373 = vmatpush.msrb.mxu0 %v5223_v45  ;;  %v5284_v45 = vld [vmem:[%s11159_s10 + $0x1f0] sm:$0xff] }
0x272e   :  { %5486 = vmatpush.msra.mxu0 %v5483_v37  ;;  %v5485_v37 = vld [vmem:[#allocation12 + $0x178] sm:$0xff] }
0x2730   :  { %5487 = vmatpush.msra.mxu0 %v5480_v33  ;;  %v5278_v33 = vld [vmem:[%s11159_s10 + $0x1c0] sm:$0xff] }
0x2732   :  { %5488 = vmatpush.msra.mxu0 %v5477_v11  ;;  %v5275_v11 = vld [vmem:[%s11159_s10 + $0x1a8] sm:$0xff] }
0x2734   :  { %5489 = vmatpush.msra.mxu0 %v5474_v14  ;;  %v5272_v14 = vld [vmem:[%s11159_s10 + $0x190] sm:$0xff] }
0x2736   :  { %5490 = vmatpush.msra.mxu0 %v5471_v2  ;;  %v5467_v2 = vld [vmem:[#allocation12 + $0xe8] sm:$0xff] }
0x2738   :  { %5491 = vmatpush.msra.mxu0 %v5468_v27  ;;  %v5455_v27 = vld [vmem:[#allocation12 + $0x88] sm:$0xff] }
0x273a   :  { %5492 = vmatpush.msra.mxu0 %v5465_v12  ;;  %v5443_v12 = vld [vmem:[#allocation12 + $0x28] sm:$0xff] }
0x273c   :  { %5493 = vmatpush.msra.mxu0 %v5462_v16 }
0x273e   :  { %5494 = vmatpush.msra.mxu0 %v5459_v49 }
0x2740   :  { %5495 = vmatpush.msra.mxu0 %v5456_v55 }
0x2742   :  { %5496 = vmatpush.msra.mxu0 %v5453_v13 }
0x2744   :  { %5497 = vmatpush.msra.mxu0 %v5450_v20 }
0x2792   :  { %v5172_v54 = vpop.xlane.xlu0 %5171 }
0x2793   :  { %v5173_v35 = vsub.f32 %v5169_v43, %v5172_v54  ;;  %v5295_v43 = vld [vmem:[%s11159_s10 + $0x248] sm:$0xff]  ;;  %v5286_v54 = vld [vmem:[%s11159_s10 + $0x200] sm:$0xff] }
0x2794   :  { %5385 = vmatpush.msrb.mxu1 %v5295_v43  ;;  %v5305_v43 = vld [vmem:[%s11159_s10 + $0x298] sm:$0xff] }
0x2795   :  { %v5174_v60 = vmul.f32 1.442695, %v5173_v35 }
0x2796   :  { %5386 = vmatpush.msrb.mxu1 %v5292_v15  ;;  %v5302_v15 = vld [vmem:[%s11159_s10 + $0x280] sm:$0xff] }
0x2797   :  { %6585 = vpow2.f32 %v5174_v60  ;;  %v5231_v60 = vld [vmem:[%s11159_s10 + $0x48] sm:$0xff] }
0x2798   :  { %5387 = vmatpush.msrb.mxu1 %v5289_v41  ;;  %5330 = vmatpush.msra.mxu2 %v5231_v60  ;;  %v5299_v41 = vld [vmem:[%s11159_s10 + $0x268] sm:$0xff]  ;;  %v5296_v60 = vld [vmem:[%s11159_s10 + $0x250] sm:$0xff] }
0x279a   :  { %5388 = vmatpush.msrb.mxu1 %v5286_v54  ;;  %5331 = vmatpush.msra.mxu2 %v5228_v39  ;;  %v5239_v54 = vld [vmem:[%s11159_s10 + $0x88] sm:$0xff]  ;;  %v5293_v39 = vld [vmem:[%s11159_s10 + $0x238] sm:$0xff] }
0x279c   :  { %5389 = vmatpush.msrb.mxu1 %v5283_v7  ;;  %5332 = vmatpush.msra.mxu2 %v5225_v63  ;;  %v5233_v7 = vld [vmem:[%s11159_s10 + $0x58] sm:$0xff]  ;;  %v5290_v63 = vld [vmem:[%s11159_s10 + $0x220] sm:$0xff] }
0x279d   :  { %v10330_v9 = vpop.eup %6585 }
0x279e   :  { %5176 = vadd.xlane.f32.xlu0 %v10330_v9  ;;  %5390 = vmatpush.msrb.mxu1 %v5280_v25  ;;  %v5230_v25 = vld [vmem:[%s11159_s10 + $0x40] sm:$0xff] }
0x279f   :  { %5333 = vmatpush.msra.mxu2 %v5222_v10  ;;  %v5287_v10 = vld [vmem:[%s11159_s10 + $0x208] sm:$0xff] }
0x27a0   :  { %5391 = vmatpush.msrb.mxu1 %v5277_v3  ;;  %v5227_v3 = vld [vmem:[%s11159_s10 + $0x28] sm:$0xff] }
0x27a1   :  { %5398 = vmatpush.msrb.mxu2 %v5269_v61  ;;  %v5134_v61 = vld [vmem:[#allocation6] sm:$0xff] }
0x27a2   :  { %5392 = vmatpush.msrb.mxu1 %v5274_v57  ;;  %5334 = vmatmul.f32.vlgmr.msra.gmra.mxu2 %v5134_v61  ;;  %v5447_v57 = vld [vmem:[#allocation12 + $0x48] sm:$0xff] }
0x27a3   :  { %5399 = vmatpush.msrb.mxu2 %v5266_v36  ;;  %v5451_v36 = vld [vmem:[#allocation12 + $0x68] sm:$0xff]  ;;  %5374 = vmatmul.f32.vlgmr.msrb.gmra.mxu0 %v5134_v61 }
0x27a4   :  { %5393 = vmatpush.msrb.mxu1 %v5271_v19  ;;  %5498 = vmatpush.msra.mxu0 %v5447_v57  ;;  %v5444_v19 = vld [vmem:[#allocation12 + $0x30] sm:$0xff] }
0x27a5   :  { %5400 = vmatpush.msrb.mxu2 %v5263_v28  ;;  %v5448_v28 = vld [vmem:[#allocation12 + $0x50] sm:$0xff] }
0x27a6   :  { %5499 = vmatpush.msra.mxu0 %v5444_v19  ;;  %v5596_v19 = vld [vmem:[%s11163_s14 + $0x18] sm:$0xff] }
0x27a7   :  { %5401 = vmatpush.msrb.mxu2 %v5260_v22  ;;  %v5445_v22 = vld [vmem:[#allocation12 + $0x38] sm:$0xff] }
0x27a9   :  { %5402 = vmatpush.msrb.mxu2 %v5257_v48  ;;  %v5442_v48 = vld [vmem:[#allocation12 + $0x20] sm:$0xff] }
0x27ab   :  { %5403 = vmatpush.msrb.mxu2 %v5254_v56  ;;  %v5473_v56 = vld [vmem:[#allocation12 + $0x118] sm:$0xff] }
0x27ad   :  { %5404 = vmatpush.msrb.mxu2 %v5251_v21  ;;  %v5461_v21 = vld [vmem:[#allocation12 + $0xb8] sm:$0xff] }
0x27af   :  { %5405 = vmatpush.msrb.mxu2 %v5248_v51  ;;  %v5449_v51 = vld [vmem:[#allocation12 + $0x58] sm:$0xff] }
0x27b1   :  { %5406 = vmatpush.msrb.mxu2 %v5245_v5 }
0x27b3   :  { %5407 = vmatpush.msrb.mxu2 %v5242_v0  ;;  %v5606_v0 = vld [vmem:[%s11163_s14 + $0x68] sm:$0xff] }
0x27b5   :  { %5408 = vmatpush.msrb.mxu2 %v5239_v54  ;;  %v5605_v54 = vld [vmem:[%s11163_s14 + $0x60] sm:$0xff] }
0x2811   :  { %v5177_v35 = vpop.xlane.xlu0 %5176 }
0x2812   :  { %6587 = vrcp.f32 %v5177_v35  ;;  %v5236_v35 = vld [vmem:[%s11159_s10 + $0x70] sm:$0xff] }
0x2813   :  { %5409 = vmatpush.msrb.mxu2 %v5236_v35  ;;  %v5604_v35 = vld [vmem:[%s11163_s14 + $0x58] sm:$0xff] }
0x2815   :  { %5410 = vmatpush.msrb.mxu2 %v5233_v7  ;;  %v5602_v7 = vld [vmem:[%s11163_s14 + $0x48] sm:$0xff] }
0x2817   :  { %5411 = vmatpush.msrb.mxu2 %v5230_v25 }
0x2818   :  { %v6588_v32 = vpop.eup %6587 }
0x2819   :  { %v5179_v24 = vmul.f32 %v6588_v32, %v10330_v9  ;;  %v5270_v9 = vld [vmem:[%s11159_s10 + $0x180] sm:$0xff]  ;;  %5412 = vmatpush.msrb.mxu2 %v5227_v3  ;;  %v5454_v32 = vld [vmem:[#allocation12 + $0x80] sm:$0xff]  ;;  %v5600_v3 = vld [vmem:[%s11163_s14 + $0x38] sm:$0xff] }
0x281a   :  { %5353 = vmatpush.msra.mxu3 %v5270_v9  ;;  %v5281_v9 = vld [vmem:[%s11159_s10 + $0x1d8] sm:$0xff] }
0x281b   :  { %5181 = vst [vmem:[#allocation15 + $0x30] sm:$0xff] %v5179_v24  ;;  %5214 = vmatmul.f32.vlgmr.msra.gmra.mxu1 %v5179_v24  ;;  %v5224_v24 = vld [vmem:[%s11159_s10 + $0x10] sm:$0xff] }
0x281c   :  { %5418 = vmatpush.msrb.mxu3 %v5317_v31  ;;  %5506 = vmatpush.msra.mxu1 %v5484_v18  ;;  %v5482_v31 = vld [vmem:[#allocation12 + $0x160] sm:$0xff]  ;;  %v5441_v18 = vld [vmem:[#allocation12 + $0x18] sm:$0xff] }
0x281d   :  { %5413 = vmatpush.msrb.mxu2 %v5224_v24  ;;  %5500 = vmatpush.msra.mxu0 %v5441_v18  ;;  %v5599_v24 = vld [vmem:[%s11163_s14 + $0x30] sm:$0xff]  ;;  %v5593_v18 = vld [vmem:[%s11163_s14] sm:$0xff] }
0x281e   :  { %5419 = vmatpush.msrb.mxu3 %v5314_v46  ;;  %5507 = vmatpush.msra.mxu1 %v5481_v47  ;;  %v5479_v46 = vld [vmem:[#allocation12 + $0x148] sm:$0xff]  ;;  %v5438_v47 = vld [vmem:[#allocation12] sm:$0xff] }
0x281f   :  { %5526 = vmatpush.msra.mxu2 %v5485_v37  ;;  %5501 = vmatpush.msra.mxu0 %v5438_v47  ;;  %v5597_v37 = vld [vmem:[%s11163_s14 + $0x20] sm:$0xff] }
0x2820   :  { %5420 = vmatpush.msrb.mxu3 %v5311_v8  ;;  %5508 = vmatpush.msra.mxu1 %v5478_v42  ;;  %v5476_v8 = vld [vmem:[#allocation12 + $0x130] sm:$0xff]  ;;  %v5439_v42 = vld [vmem:[#allocation12 + $0x8] sm:$0xff]  ;;  %v5375_v16 = vpop.f32.mrf.mxu0 }
0x2821   :  { %5527 = vmatpush.msra.mxu2 %v5482_v31  ;;  %5502 = vmatmul.f32.vlgmr.msra.gmra.mxu0 %v10271_v40  ;;  %v5594_v31 = vld [vmem:[%s11163_s14 + $0x8] sm:$0xff] }
0x2822   :  { %5421 = vmatpush.msrb.mxu3 %v5308_v38  ;;  %5509 = vmatpush.msra.mxu1 %v5475_v6  ;;  %v5470_v38 = vld [vmem:[#allocation12 + $0x100] sm:$0xff]  ;;  %v5464_v6 = vld [vmem:[#allocation12 + $0xd0] sm:$0xff] }
0x2823   :  { %5528 = vmatpush.msra.mxu2 %v5479_v46 }
0x2824   :  { %5422 = vmatpush.msrb.mxu3 %v5305_v43  ;;  %5510 = vmatpush.msra.mxu1 %v5472_v53  ;;  %v5458_v43 = vld [vmem:[#allocation12 + $0xa0] sm:$0xff]  ;;  %v5452_v53 = vld [vmem:[#allocation12 + $0x70] sm:$0xff] }
0x2825   :  { %5529 = vmatpush.msra.mxu2 %v5476_v8  ;;  %v5335_v49 = vpop.f32.mrf.mxu2 }
0x2826   :  { %5423 = vmatpush.msrb.mxu3 %v5302_v15  ;;  %5511 = vmatpush.msra.mxu1 %v5469_v29  ;;  %v5446_v15 = vld [vmem:[#allocation12 + $0x40] sm:$0xff]  ;;  %v5440_v29 = vld [vmem:[#allocation12 + $0x10] sm:$0xff]  ;;  %v5336_v55 = vadd.f32 %v5335_v49, %v8155_v23 }
0x2827   :  { %5414 = vmatmul.f32.vlgmr.msrb.gmra.mxu2 %v5134_v61 }
0x2828   :  { %5424 = vmatpush.msrb.mxu3 %v5299_v41  ;;  %5512 = vmatpush.msra.mxu1 %v5466_v34  ;;  %v5608_v41 = vld [vmem:[%s11163_s14 + $0x78] sm:$0xff]  ;;  %v5607_v34 = vld [vmem:[%s11163_s14 + $0x70] sm:$0xff] }
0x2829   :  { %5530 = vmatpush.msra.mxu2 %v5473_v56 }
0x282a   :  { %5425 = vmatpush.msrb.mxu3 %v5296_v60  ;;  %5513 = vmatpush.msra.mxu1 %v5463_v52  ;;  %v5603_v52 = vld [vmem:[%s11163_s14 + $0x50] sm:$0xff] }
0x282b   :  { %5531 = vmatpush.msra.mxu2 %v5470_v38 }
0x282c   :  { %5426 = vmatpush.msrb.mxu3 %v5293_v39  ;;  %5514 = vmatpush.msra.mxu1 %v5460_v59  ;;  %v5376_v59 = vadd.f32 %v5375_v16, %v8192_v30 }
0x282d   :  { %5532 = vmatpush.msra.mxu2 %v5467_v2 }
0x282e   :  { %5427 = vmatpush.msrb.mxu3 %v5290_v63  ;;  %5515 = vmatpush.msra.mxu1 %v5457_v1  ;;  %v5601_v63 = vld [vmem:[%s11163_s14 + $0x40] sm:$0xff] }
0x282f   :  { %5533 = vmatpush.msra.mxu2 %v5464_v6 }
0x2830   :  { %5428 = vmatpush.msrb.mxu3 %v5287_v10  ;;  %5516 = vmatpush.msra.mxu1 %v5454_v32 }
0x2831   :  { %5534 = vmatpush.msra.mxu2 %v5461_v21 }
0x2832   :  { %5429 = vmatpush.msrb.mxu3 %v5284_v45  ;;  %5517 = vmatpush.msra.mxu1 %v5451_v36  ;;  %v5598_v36 = vld [vmem:[%s11163_s14 + $0x28] sm:$0xff] }
0x2833   :  { %5535 = vmatpush.msra.mxu2 %v5458_v43 }
0x2834   :  { %5430 = vmatpush.msrb.mxu3 %v5281_v9  ;;  %5518 = vmatpush.msra.mxu1 %v5448_v28  ;;  %v5595_v28 = vld [vmem:[%s11163_s14 + $0x10] sm:$0xff] }
0x2835   :  { %5536 = vmatpush.msra.mxu2 %v5455_v27 }
0x2836   :  { %5431 = vmatpush.msrb.mxu3 %v5278_v33  ;;  %5519 = vmatpush.msra.mxu1 %v5445_v22 }
0x2837   :  { %5537 = vmatpush.msra.mxu2 %v5452_v53 }
0x2838   :  { %5432 = vmatpush.msrb.mxu3 %v5275_v11  ;;  %5520 = vmatpush.msra.mxu1 %v5442_v48 }
0x2839   :  { %5538 = vmatpush.msra.mxu2 %v5449_v51 }
0x283a   :  { %5433 = vmatpush.msrb.mxu3 %v5272_v14  ;;  %5521 = vmatpush.msra.mxu1 %v5439_v42 }
0x283b   :  { %5539 = vmatpush.msra.mxu2 %v5446_v15 }
0x283d   :  { %5540 = vmatpush.msra.mxu2 %v5443_v12 }
0x283f   :  { %5541 = vmatpush.msra.mxu2 %v5440_v29 }
0x2840   :  { %5542 = vmatmul.f32.vlgmr.msra.gmra.mxu2 %v10271_v40 }
0x2898   :  { %v5215_v5 = vpop.f32.mrf.mxu1 }
0x2899   :  { %5354 = vmatmul.f32.vlgmr.msra.gmra.mxu3 %v5215_v5  ;;  %5394 = vmatmul.f32.vlgmr.msrb.gmra.mxu1 %v5215_v5 }
0x289a   :  { %5609 = vmatpush.msra.mxu3 %v5608_v41 }
0x289c   :  { %5610 = vmatpush.msra.mxu3 %v5607_v34 }
0x289e   :  { %5611 = vmatpush.msra.mxu3 %v5606_v0  ;;  %v5503_v39 = vpop.f32.mrf.mxu0 }
0x289f   :  { %v5504_v25 = vadd.f32 %v5503_v39, %v8167_v26 }
0x28a0   :  { %5612 = vmatpush.msra.mxu3 %v5605_v54 }
0x28a1   :  { %5434 = vmatmul.f32.vlgmr.msrb.gmra.mxu3 %v5215_v5  ;;  %5522 = vmatmul.f32.vlgmr.msra.gmra.mxu1 %v10271_v40 }
0x28a2   :  { %5613 = vmatpush.msra.mxu3 %v5604_v35 }
0x28a4   :  { %5614 = vmatpush.msra.mxu3 %v5603_v52 }
0x28a6   :  { %5615 = vmatpush.msra.mxu3 %v5602_v7 }
0x28a8   :  { %5616 = vmatpush.msra.mxu3 %v5601_v63 }
0x28aa   :  { %5617 = vmatpush.msra.mxu3 %v5600_v3  ;;  %v5415_v47 = vpop.f32.mrf.mxu2 }
0x28ab   :  { %v5416_v27 = vadd.f32 %v5415_v47, %v8214_v62 }
0x28ac   :  { %5618 = vmatpush.msra.mxu3 %v5599_v24 }
0x28ae   :  { %5619 = vmatpush.msra.mxu3 %v5598_v36 }
0x28b0   :  { %5620 = vmatpush.msra.mxu3 %v5597_v37 }
0x28b2   :  { %5621 = vmatpush.msra.mxu3 %v5596_v19 }
0x28b4   :  { %5622 = vmatpush.msra.mxu3 %v5595_v28 }
0x28b6   :  { %5623 = vmatpush.msra.mxu3 %v5594_v31 }
0x28b8   :  { %5624 = vmatpush.msra.mxu3 %v5593_v18 }
0x28c3   :  { %v5543_v38 = vpop.f32.mrf.mxu2 }
0x28c4   :  { %v5544_v53 = vadd.f32 %v5543_v38, %v8216_v4 }
0x2916   :  { %v5395_v60 = vpop.f32.mrf.mxu1 }
0x2917   :  { %v5396_v20 = vadd.f32 %v5395_v60, %v5376_v59 }
0x291c   :  { %v5355_v13 = vpop.f32.mrf.mxu3 }
0x291d   :  { %v5356_v1 = vadd.f32 %v5355_v13, %v5336_v55 }
0x291e   :  { %v5523_v10 = vpop.f32.mrf.mxu1 }
0x291f   :  { %v5546_v32 = vadd.f32 %v5504_v25, %v5356_v1  ;;  %v5524_v61 = vadd.f32 %v5523_v10, %v8197_v44 }
0x2921   :  { %v6383_v45 = vmul.f32 -1.442695, %v5546_v32  ;;  %v5566_v57 = vadd.f32 %v5524_v61, %v5396_v20 }
0x2923   :  { %6589 = vpow2.f32 %v6383_v45  ;;  %v6384_v9 = vmul.f32 -1.442695, %v5566_v57 }
0x2924   :  { %v5435_v12 = vpop.f32.mrf.mxu3 }
0x2925   :  { %6591 = vpow2.f32 %v6384_v9  ;;  %v5436_v34 = vadd.f32 %v5435_v12, %v5416_v27 }
0x2929   :  { %v6590_v33 = vpop.eup %6589 }
0x292a   :  { %v5550_v22 = vadd.f32 1.0, %v6590_v33 }
0x292b   :  { %v6592_v46 = vpop.eup %6591 }
0x292c   :  { %6593 = vrcp.f32 %v5550_v22  ;;  %v5570_v11 = vadd.f32 1.0, %v6592_v46  ;;  %v5562_v2 = vand.u32 2147483648, %v5550_v22  ;;  %v5560_v43 = vand.u32 2147483647, %v5550_v22 }
0x292d   :  { %vm5556_vm3 = vweird.f32 %v5550_v22 }
0x292e   :  { %6595 = vrcp.f32 %v5570_v11  ;;  %v5563_v29 = vor.u32 1.1754944e-38, %v5562_v2  ;;  %vm5561_vm5 = vcmp.eq.f32.partialorder %v5560_v43, 8.507059e+37  ;;  %v5582_v54 = vand.u32 2147483648, %v5570_v11 }
0x292f   :  { %vm5576_vm7 = vweird.f32 %v5570_v11  ;;  %v5580_v35 = vand.u32 2147483647, %v5570_v11 }
0x2930   :  { %v5583_v52 = vor.u32 1.1754944e-38, %v5582_v54 }
0x2931   :  { %vm5581_vm9 = vcmp.eq.f32.partialorder %v5580_v35, 8.507059e+37 }
0x2932   :  { %v6594_v48 = vpop.eup %6593 }
0x2933   :  { %v5552_v8 = vmul.f32 %v6594_v48, %v5550_v22  ;;  %vm5557_vm2 = vweird.f32 %v6594_v48 }
0x2934   :  { %v6596_v14 = vpop.eup %6595  ;;  %vm5558_vm4 = vmor %vm5556_vm3, %vm5557_vm2 }
0x2935   :  { %v5572_v42 = vmul.f32 %v6596_v14, %v5570_v11  ;;  %v5553_v56 = vsub.f32 1.0, %v5552_v8  ;;  %vm5577_vm6 = vweird.f32 %v6596_v14 }
0x2936   :  { %vm5578_vm8 = vmor %vm5576_vm7, %vm5577_vm6 }
0x2937   :  { %v5573_v6 = vsub.f32 1.0, %v5572_v42  ;;  %v5554_v21 = vmul.f32 %v6594_v48, %v5553_v56 }
0x2939   :  { %v5555_v51 = vadd.f32 %v6594_v48, %v5554_v21  ;;  %v5574_v15 = vmul.f32 %v6596_v14, %v5573_v6 }
0x293b   :  { %v5559_v5 = vsel %vm5558_vm4, %v6594_v48, %v5555_v51  ;;  %v5575_v16 = vadd.f32 %v6596_v14, %v5574_v15 }
0x293c   :  { %v5564_v41 = vsel %vm5561_vm5, %v5563_v29, %v5559_v5 }
0x293d   :  { %v5586_v0 = vmul.f32 %v5564_v41, %v5544_v53  ;;  %v5579_v49 = vsel %vm5578_vm8, %v6596_v14, %v5575_v16 }
0x293e   :  { %v5584_v7 = vsel %vm5581_vm9, %v5583_v52, %v5579_v49 }
0x293f   :  { %v5587_v60 = vadd.f32 %v5586_v0, %v5436_v34  ;;  %v5589_v39 = vsub.f32 1.0, %v5584_v7  ;;  %v5591_v25 = vmul.f32 %v5584_v7, %v10271_v40 }
0x2941   :  { %6597 = vtanh.f32 %v5587_v60 }
0x2947   :  { %v6598_v55 = vpop.eup %6597 }
0x2948   :  { %v5590_v59 = vmul.f32 %v6598_v55, %v5589_v39 }
0x294a   :  { %v10680_v63 = vadd.f32 %v5591_v25, %v5590_v59 }
0x294c   :  { %5625 = vmatmul.f32.vlgmr.msra.gmra.mxu3 %v10680_v63 }
0x29ce   :  { %5635 = sbr.rel (%p6386_p12) target bundleno = 10709 (0x29d5), region = 129 }
0x29cf   :  { %v5626_v13 = vpop.f32.mrf.mxu3 }
0x29d0   :  { %v5627_v1 = vadd.f32 %v8227_v17, %v5626_v13 }
0x29d2   :  { %5630 = vst [vmem:[#allocation14 + $0x30] sm:$0xff] %v5627_v1 }
0x29d3   :  { %v6387_v3 = vld [vmem:[%s11151_s2 + $0x30] sm:$0xff] }
0x29d4   :  { %5638 = vst [vmem:[#allocation6] sm:$0xff] %v6387_v3 }
0x29d5 PF:  { %s6388_s28 = sld [smem:[#allocation7 + $0x6]] }
0x29db   :  { %p6389_p13 = scmp.ne.s32.totalorder %s6388_s28, 0 }
0x29dd   :  { %5643 = sbr.rel (%p6389_p13) target bundleno = 11210 (0x2bca), region = 133 }
0x29e2   :  { %5644 = vmax.xlane.f32.xlu0 %v5627_v1  ;;  %v5680_v61 = vld [vmem:[%s11158_s9 + $0x78] sm:$0xff]  ;;  %v5679_v24 = vld [vmem:[%s11158_s9 + $0x70] sm:$0xff]  ;;  %v5678_v45 = vld [vmem:[%s11158_s9 + $0x68] sm:$0xff]  ;;  %v6743_v43 = vmov 1.0  }
0x29e3   :  { %5681 = vmatpush.msra.mxu0 %v5680_v61  ;;  %v5677_v57 = vld [vmem:[%s11158_s9 + $0x60] sm:$0xff]  ;;  %v5676_v36 = vld [vmem:[%s11158_s9 + $0x58] sm:$0xff]  ;;  %v5675_v37 = vld [vmem:[%s11158_s9 + $0x50] sm:$0xff] }
0x29e4   :  { %v5674_v9 = vld [vmem:[%s11158_s9 + $0x48] sm:$0xff]  ;;  %v5673_v19 = vld [vmem:[%s11158_s9 + $0x40] sm:$0xff]  ;;  %v5672_v28 = vld [vmem:[%s11158_s9 + $0x38] sm:$0xff] }
0x29e5   :  { %5682 = vmatpush.msra.mxu0 %v5679_v24  ;;  %v5671_v31 = vld [vmem:[%s11158_s9 + $0x30] sm:$0xff]  ;;  %v5670_v33 = vld [vmem:[%s11158_s9 + $0x28] sm:$0xff]  ;;  %v5669_v18 = vld [vmem:[%s11158_s9 + $0x20] sm:$0xff] }
0x29e6   :  { %v5668_v22 = vld [vmem:[%s11158_s9 + $0x18] sm:$0xff]  ;;  %v5667_v8 = vld [vmem:[%s11158_s9 + $0x10] sm:$0xff]  ;;  %v5666_v14 = vld [vmem:[%s11158_s9 + $0x8] sm:$0xff] }
0x29e7   :  { %5683 = vmatpush.msra.mxu0 %v5678_v45  ;;  %v5665_v42 = vld [vmem:[%s11158_s9] sm:$0xff] }
0x29e9   :  { %5684 = vmatpush.msra.mxu0 %v5677_v57 }
0x29eb   :  { %5685 = vmatpush.msra.mxu0 %v5676_v36 }
0x29ed   :  { %5686 = vmatpush.msra.mxu0 %v5675_v37 }
0x29ef   :  { %5687 = vmatpush.msra.mxu0 %v5674_v9 }
0x29f1   :  { %5688 = vmatpush.msra.mxu0 %v5673_v19 }
0x29f3   :  { %5689 = vmatpush.msra.mxu0 %v5672_v28 }
0x29f5   :  { %5690 = vmatpush.msra.mxu0 %v5671_v31 }
0x29f7   :  { %5691 = vmatpush.msra.mxu0 %v5670_v33 }
0x29f9   :  { %5692 = vmatpush.msra.mxu0 %v5669_v18 }
0x29fb   :  { %5693 = vmatpush.msra.mxu0 %v5668_v22 }
0x29fd   :  { %5694 = vmatpush.msra.mxu0 %v5667_v8 }
0x29ff   :  { %5695 = vmatpush.msra.mxu0 %v5666_v14 }
0x2a01   :  { %5696 = vmatpush.msra.mxu0 %v5665_v42 }
0x2a55   :  { %v5645_v40 = vpop.xlane.xlu0 %5644 }
0x2a56   :  { %vm5646_vm10 = vcmp.ge.f32.partialorder %v5627_v1, %v5645_v40 }
0x2a57   :  { %v5647_v10 = vsel %vm5646_vm10, %v7935_v58, 128 }
0x2a58   :  { %v5649_v20 = vshra.s32 %v5647_v10, 16  ;;  %v5648_v46 = vand.u32 65535, %v5647_v10 }
0x2a5a   :  { %v5651_v32 = vcvt.s32.f32 %v5649_v20  ;;  %v5650_v47 = vcvt.s32.f32 %v5648_v46 }
0x2a5c   :  { %5652 = vmin.xlane.f32.xlu0 %v5651_v32 }
0x2acf   :  { %v5653_v11 = vpop.xlane.xlu0 %5652 }
0x2ad0   :  { %vm5654_vm11 = vcmp.eq.f32.partialorder %v5651_v32, %v5653_v11  ;;  %v5659_v56 = vcvt.f32.s32 %v5653_v11 }
0x2ad1   :  { %v5655_v48 = vsel %vm5654_vm11, %v5650_v47, inf }
0x2ad2   :  { %5656 = vmin.xlane.f32.xlu1 %v5655_v48  ;;  %v5660_v2 = vshll.u32 %v5659_v56, 16 }
0x2b45   :  { %v5657_v38 = vpop.xlane.xlu1 %5656 }
0x2b46   :  { %v5658_v6 = vcvt.f32.s32 %v5657_v38 }
0x2b48   :  { %v5661_v21 = vadd.s32 %v5660_v2, %v5658_v6 }
0x2b4a   :  { %vm5662_vm12 = vcmp.eq.s32.totalorder %v7935_v58, %v5661_v21 }
0x2b4b   :  { %6391 = vmatmul.msk.f32.vlgmr.msra.gmra.mxu0 %vm5662_vm12, %v6743_v43 }
0x2bc8   :  { %v5698_v27 = vpop.f32.mrf.mxu0 }
0x2bc9   :  { %5701 = vst [vmem:[#allocation6] sm:$0xff] %v5698_v27 }
0x2bca PF:  { %v5718_v53 = vld [vmem:[#allocation4 + $0x50] sm:$0xff]  ;;  %v5717_v51 = vld [vmem:[#allocation4 + $0x60] sm:$0xff]  ;;  %v5716_v15 = vld [vmem:[#allocation4 + $0x8] sm:$0xff] }
0x2bcb   :  { %5719 = vmatpush.msra.mxu0 %v5718_v53  ;;  %v5715_v12 = vld [vmem:[#allocation4] sm:$0xff]  ;;  %v5714_v29 = vld [vmem:[#allocation4 + $0x58] sm:$0xff]  ;;  %v5709_v0 = vld [vmem:[#allocation4 + $0x70] sm:$0xff] }
0x2bcc   :  { %v5713_v5 = vld [vmem:[#allocation4 + $0x18] sm:$0xff]  ;;  %v5711_v16 = vld [vmem:[#allocation4 + $0x20] sm:$0xff]  ;;  %v5708_v54 = vld [vmem:[#allocation4 + $0x30] sm:$0xff] }
0x2bcd   :  { %5720 = vmatpush.msra.mxu0 %v5717_v51  ;;  %v5712_v41 = vld [vmem:[#allocation4 + $0x78] sm:$0xff]  ;;  %v5707_v35 = vld [vmem:[#allocation4 + $0x48] sm:$0xff]  ;;  %v5706_v60 = vld [vmem:[#allocation4 + $0x40] sm:$0xff] }
0x2bce   :  { %v5710_v34 = vld [vmem:[#allocation4 + $0x38] sm:$0xff]  ;;  %v5705_v49 = vld [vmem:[#allocation4 + $0x10] sm:$0xff]  ;;  %v5704_v52 = vld [vmem:[#allocation4 + $0x68] sm:$0xff] }
0x2bcf   :  { %5721 = vmatpush.msra.mxu0 %v5716_v15  ;;  %v5703_v7 = vld [vmem:[#allocation4 + $0x28] sm:$0xff]  ;;  %v5764_v25 = vld [vmem:[#allocation3 + $0x78] sm:$0xff]  ;;  %v5763_v13 = vld [vmem:[#allocation3 + $0x70] sm:$0xff] }
0x2bd0   :  { %v5765_v59 = vld [vmem:[#allocation3 + $0x28] sm:$0xff]  ;;  %v5762_v1 = vld [vmem:[#allocation3 + $0x60] sm:$0xff]  ;;  %v5761_v3 = vld [vmem:[#allocation3 + $0x38] sm:$0xff] }
0x2bd1   :  { %5722 = vmatpush.msra.mxu0 %v5715_v12  ;;  %5766 = vmatpush.msra.mxu1 %v5765_v59  ;;  %v5760_v40 = vld [vmem:[#allocation3 + $0x10] sm:$0xff]  ;;  %v5759_v10 = vld [vmem:[#allocation3 + $0x20] sm:$0xff]  ;;  %v5757_v32 = vld [vmem:[#allocation3 + $0x48] sm:$0xff] }
0x2bd2   :  { %v5758_v20 = vld [vmem:[#allocation3 + $0x40] sm:$0xff]  ;;  %v5756_v61 = vld [vmem:[#allocation3 + $0x8] sm:$0xff]  ;;  %v5754_v37 = vld [vmem:[#allocation3 + $0x50] sm:$0xff] }
0x2bd3   :  { %5723 = vmatpush.msra.mxu0 %v5714_v29  ;;  %5767 = vmatpush.msra.mxu1 %v5764_v25  ;;  %v5753_v9 = vld [vmem:[#allocation3 + $0x18] sm:$0xff]  ;;  %v5751_v28 = vld [vmem:[#allocation3] sm:$0xff]  ;;  %v5750_v31 = vld [vmem:[#allocation3 + $0x30] sm:$0xff] }
0x2bd4   :  { %v5752_v19 = vld [vmem:[#allocation3 + $0x58] sm:$0xff]  ;;  %v5835_v33 = vld [vmem:[%s11159_s10 + $0x168] sm:$0xff]  ;;  %v5832_v18 = vld [vmem:[%s11159_s10 + $0x150] sm:$0xff] }
0x2bd5   :  { %5724 = vmatpush.msra.mxu0 %v5713_v5  ;;  %5768 = vmatpush.msra.mxu1 %v5763_v13  ;;  %v5829_v22 = vld [vmem:[%s11159_s10 + $0x138] sm:$0xff]  ;;  %v5836_v46 = vld [vmem:[%s11159_s10 + $0x170] sm:$0xff]  ;;  %v5883_v11 = vld [vmem:[%s11159_s10 + $0x2e8] sm:$0xff] }
0x2bd6   :  { %5886 = vmatpush.msra.mxu2 %v5835_v33  ;;  %v5833_v47 = vld [vmem:[%s11159_s10 + $0x158] sm:$0xff]  ;;  %v5884_v48 = vld [vmem:[%s11159_s10 + $0x2f0] sm:$0xff]  ;;  %5906 = vmatpush.msra.mxu3 %v5883_v11  ;;  %v5830_v14 = vld [vmem:[%s11159_s10 + $0x140] sm:$0xff] }
0x2bd7   :  { %5725 = vmatpush.msra.mxu0 %v5712_v41  ;;  %5769 = vmatpush.msra.mxu1 %v5762_v1  ;;  %v5880_v8 = vld [vmem:[%s11159_s10 + $0x2d0] sm:$0xff]  ;;  %v5826_v42 = vld [vmem:[%s11159_s10 + $0x120] sm:$0xff]  ;;  %v5881_v56 = vld [vmem:[%s11159_s10 + $0x2d8] sm:$0xff] }
0x2bd8   :  { %5887 = vmatpush.msra.mxu2 %v5832_v18  ;;  %v5877_v38 = vld [vmem:[%s11159_s10 + $0x2b8] sm:$0xff]  ;;  %5907 = vmatpush.msra.mxu3 %v5880_v8  ;;  %v5827_v2 = vld [vmem:[%s11159_s10 + $0x128] sm:$0xff]  ;;  %v5878_v6 = vld [vmem:[%s11159_s10 + $0x2c0] sm:$0xff] }
0x2bd9   :  { %5726 = vmatpush.msra.mxu0 %v5711_v16  ;;  %5770 = vmatpush.msra.mxu1 %v5761_v3  ;;  %v5823_v21 = vld [vmem:[%s11159_s10 + $0x108] sm:$0xff]  ;;  %v5874_v43 = vld [vmem:[%s11159_s10 + $0x2a0] sm:$0xff]  ;;  %v5824_v27 = vld [vmem:[%s11159_s10 + $0x110] sm:$0xff] }
0x2bda   :  { %5888 = vmatpush.msra.mxu2 %v5829_v22  ;;  %5908 = vmatpush.msra.mxu3 %v5877_v38  ;;  %v5875_v53 = vld [vmem:[%s11159_s10 + $0x2a8] sm:$0xff]  ;;  %v5820_v51 = vld [vmem:[%s11159_s10 + $0xf0] sm:$0xff]  ;;  %v5821_v12 = vld [vmem:[%s11159_s10 + $0xf8] sm:$0xff] }
0x2bdb   :  { %5727 = vmatpush.msra.mxu0 %v5710_v34  ;;  %5771 = vmatpush.msra.mxu1 %v5760_v40  ;;  %v5871_v15 = vld [vmem:[%s11159_s10 + $0x288] sm:$0xff]  ;;  %v5872_v29 = vld [vmem:[%s11159_s10 + $0x290] sm:$0xff]  ;;  %v5817_v5 = vld [vmem:[%s11159_s10 + $0xd8] sm:$0xff] }
0x2bdc   :  { %5889 = vmatpush.msra.mxu2 %v5826_v42  ;;  %5909 = vmatpush.msra.mxu3 %v5874_v43  ;;  %v5868_v41 = vld [vmem:[%s11159_s10 + $0x270] sm:$0xff]  ;;  %v5818_v16 = vld [vmem:[%s11159_s10 + $0xe0] sm:$0xff]  ;;  %v5869_v34 = vld [vmem:[%s11159_s10 + $0x278] sm:$0xff] }
0x2bdd   :  { %5728 = vmatpush.msra.mxu0 %v5709_v0  ;;  %5772 = vmatpush.msra.mxu1 %v5759_v10  ;;  %v5814_v0 = vld [vmem:[%s11159_s10 + $0xc0] sm:$0xff]  ;;  %v5859_v59 = vld [vmem:[%s11159_s10 + $0x228] sm:$0xff]  ;;  %v5809_v25 = vld [vmem:[%s11159_s10 + $0x98] sm:$0xff] }
0x2bde   :  { %5890 = vmatpush.msra.mxu2 %v5823_v21  ;;  %5910 = vmatpush.msra.mxu3 %v5871_v15  ;;  %v5860_v13 = vld [vmem:[%s11159_s10 + $0x230] sm:$0xff]  ;;  %v5805_v1 = vld [vmem:[%s11159_s10 + $0x78] sm:$0xff]  ;;  %v5806_v40 = vld [vmem:[%s11159_s10 + $0x80] sm:$0xff] }
0x2bdf   :  { %5729 = vmatpush.msra.mxu0 %v5708_v54  ;;  %5773 = vmatpush.msra.mxu1 %v5758_v20  ;;  %v5865_v54 = vld [vmem:[%s11159_s10 + $0x258] sm:$0xff]  ;;  %v5856_v3 = vld [vmem:[%s11159_s10 + $0x210] sm:$0xff]  ;;  %v5802_v20 = vld [vmem:[%s11159_s10 + $0x60] sm:$0xff] }
0x2be0   :  { %5891 = vmatpush.msra.mxu2 %v5820_v51  ;;  %5911 = vmatpush.msra.mxu3 %v5868_v41  ;;  %v5857_v10 = vld [vmem:[%s11159_s10 + $0x218] sm:$0xff]  ;;  %v5848_v33 = vld [vmem:[%s11159_s10 + $0x1d0] sm:$0xff]  ;;  %v5842_v38 = vld [vmem:[%s11159_s10 + $0x1a0] sm:$0xff] }
0x2be1   :  { %5730 = vmatpush.msra.mxu0 %v5707_v35  ;;  %5774 = vmatpush.msra.mxu1 %v5757_v32  ;;  %v5815_v35 = vld [vmem:[%s11159_s10 + $0xc8] sm:$0xff]  ;;  %v5853_v32 = vld [vmem:[%s11159_s10 + $0x1f8] sm:$0xff]  ;;  %v5844_v22 = vld [vmem:[%s11159_s10 + $0x1b0] sm:$0xff] }
0x2be2   :  { %5892 = vmatpush.msra.mxu2 %v5817_v5  ;;  %5912 = vmatpush.msra.mxu3 %v5865_v54  ;;  %v5793_v18 = vld [vmem:[%s11159_s10 + $0x18] sm:$0xff]  ;;  %v5839_v21 = vld [vmem:[%s11159_s10 + $0x188] sm:$0xff]  ;;  %v5828_v15 = vld [vmem:[%s11159_s10 + $0x130] sm:$0xff] }
0x2be3   :  { %5731 = vmatpush.msra.mxu0 %v5706_v60  ;;  %5775 = vmatpush.msra.mxu1 %v5756_v61  ;;  %v5866_v60 = vld [vmem:[%s11159_s10 + $0x260] sm:$0xff]  ;;  %v5803_v61 = vld [vmem:[%s11159_s10 + $0x68] sm:$0xff]  ;;  %v5845_v11 = vld [vmem:[%s11159_s10 + $0x1b8] sm:$0xff] }
0x2be4   :  { %5893 = vmatpush.msra.mxu2 %v5814_v0  ;;  %v5831_v43 = vld [vmem:[%s11159_s10 + $0x148] sm:$0xff]  ;;  %v6052_v51 = vld [vmem:[#allocation12 + $0x170] sm:$0xff]  ;;  %v6049_v5 = vld [vmem:[#allocation12 + $0x158] sm:$0xff] }
0x2be5   :  { %5732 = vmatpush.msra.mxu0 %v5705_v49  ;;  %v5811_v49 = vld [vmem:[%s11159_s10 + $0xa8] sm:$0xff]  ;;  %v5825_v41 = vld [vmem:[%s11159_s10 + $0x118] sm:$0xff]  ;;  %v5822_v54 = vld [vmem:[%s11159_s10 + $0x100] sm:$0xff] }
0x2be6   :  { %5894 = vmatpush.msra.mxu2 %v5811_v49  ;;  %v6046_v0 = vld [vmem:[#allocation12 + $0x140] sm:$0xff]  ;;  %v6043_v49 = vld [vmem:[#allocation12 + $0x128] sm:$0xff] }
0x2be7   :  { %5733 = vmatpush.msra.mxu0 %v5704_v52  ;;  %v5862_v52 = vld [vmem:[%s11159_s10 + $0x240] sm:$0xff] }
0x2be8   :  { %5913 = vmatpush.msra.mxu3 %v5862_v52  ;;  %v5819_v52 = vld [vmem:[%s11159_s10 + $0xe8] sm:$0xff] }
0x2be9   :  { %5734 = vmatpush.msra.mxu0 %v5703_v7  ;;  %v5812_v7 = vld [vmem:[%s11159_s10 + $0xb0] sm:$0xff] }
0x2bea   :  { %5735 = vmatmul.f32.vlgmr.msra.gmra.mxu0 %v10680_v63  ;;  %5914 = vmatpush.msra.mxu3 %v5859_v59  ;;  %v5816_v59 = vld [vmem:[%s11159_s10 + $0xd0] sm:$0xff] }
0x2beb   :  { %5926 = vmatpush.msrb.mxu0 %v5836_v46  ;;  %v5794_v46 = vld [vmem:[%s11159_s10 + $0x20] sm:$0xff] }
0x2bec   :  { %5915 = vmatpush.msra.mxu3 %v5856_v3  ;;  %v5813_v3 = vld [vmem:[%s11159_s10 + $0xb8] sm:$0xff] }
0x2bed   :  { %5927 = vmatpush.msrb.mxu0 %v5833_v47  ;;  %v5790_v47 = vld [vmem:[%s11159_s10] sm:$0xff] }
0x2bee   :  { %5916 = vmatpush.msra.mxu3 %v5853_v32  ;;  %v5810_v32 = vld [vmem:[%s11159_s10 + $0xa0] sm:$0xff] }
0x2bef   :  { %5928 = vmatpush.msrb.mxu0 %v5830_v14  ;;  %v5837_v14 = vld [vmem:[%s11159_s10 + $0x178] sm:$0xff] }
0x2bf1   :  { %5929 = vmatpush.msrb.mxu0 %v5827_v2  ;;  %v5834_v2 = vld [vmem:[%s11159_s10 + $0x160] sm:$0xff] }
0x2bf3   :  { %5930 = vmatpush.msrb.mxu0 %v5824_v27  ;;  %v5885_v27 = vld [vmem:[%s11159_s10 + $0x2f8] sm:$0xff] }
0x2bf5   :  { %5931 = vmatpush.msrb.mxu0 %v5821_v12  ;;  %v5882_v12 = vld [vmem:[%s11159_s10 + $0x2e0] sm:$0xff] }
0x2bf7   :  { %5932 = vmatpush.msrb.mxu0 %v5818_v16  ;;  %v5879_v16 = vld [vmem:[%s11159_s10 + $0x2c8] sm:$0xff] }
0x2bf9   :  { %5933 = vmatpush.msrb.mxu0 %v5815_v35  ;;  %v5876_v35 = vld [vmem:[%s11159_s10 + $0x2b0] sm:$0xff] }
0x2bfb   :  { %5934 = vmatpush.msrb.mxu0 %v5812_v7  ;;  %v5873_v7 = vld [vmem:[%s11159_s10 + $0x298] sm:$0xff] }
0x2bfd   :  { %5935 = vmatpush.msrb.mxu0 %v5809_v25  ;;  %v5870_v25 = vld [vmem:[%s11159_s10 + $0x280] sm:$0xff] }
0x2bff   :  { %5936 = vmatpush.msrb.mxu0 %v5806_v40  ;;  %v5867_v40 = vld [vmem:[%s11159_s10 + $0x268] sm:$0xff] }
0x2c01   :  { %5937 = vmatpush.msrb.mxu0 %v5803_v61  ;;  %v5807_v61 = vld [vmem:[%s11159_s10 + $0x88] sm:$0xff] }
0x2c67   :  { %v5736_v39 = vpop.f32.mrf.mxu0 }
0x2c68   :  { %v5737_v55 = vadd.f32 %v5736_v39, %v7991_v50  ;;  %v5755_v50 = vld [vmem:[#allocation3 + $0x68] sm:$0xff] }
0x2c69   :  { %5776 = vmatpush.msra.mxu1 %v5755_v50  ;;  %v5863_v39 = vld [vmem:[%s11159_s10 + $0x248] sm:$0xff]  ;;  %v5854_v50 = vld [vmem:[%s11159_s10 + $0x200] sm:$0xff] }
0x2c6a   :  { %5739 = vmax.xlane.f32.xlu0 %v5737_v55 }
0x2c6b   :  { %5777 = vmatpush.msra.mxu1 %v5754_v37  ;;  %v5800_v37 = vld [vmem:[%s11159_s10 + $0x50] sm:$0xff] }
0x2c6c   :  { %5938 = vmatpush.msrb.mxu0 %v5800_v37  ;;  %v5801_v37 = vld [vmem:[%s11159_s10 + $0x58] sm:$0xff] }
0x2c6d   :  { %5778 = vmatpush.msra.mxu1 %v5753_v9  ;;  %v5851_v9 = vld [vmem:[%s11159_s10 + $0x1e8] sm:$0xff] }
0x2c6f   :  { %5779 = vmatpush.msra.mxu1 %v5752_v19  ;;  %v5796_v19 = vld [vmem:[%s11159_s10 + $0x30] sm:$0xff] }
0x2c71   :  { %5780 = vmatpush.msra.mxu1 %v5751_v28  ;;  %v5847_v28 = vld [vmem:[%s11159_s10 + $0x1c8] sm:$0xff] }
0x2c73   :  { %5781 = vmatpush.msra.mxu1 %v5750_v31  ;;  %v5797_v31 = vld [vmem:[%s11159_s10 + $0x38] sm:$0xff] }
0x2c74   :  { %5939 = vmatpush.msrb.mxu0 %v5797_v31  ;;  %v5798_v31 = vld [vmem:[%s11159_s10 + $0x40] sm:$0xff] }
0x2c75   :  { %5946 = vmatpush.msrb.mxu1 %v5884_v48  ;;  %v5841_v48 = vld [vmem:[%s11159_s10 + $0x198] sm:$0xff] }
0x2c76   :  { %5940 = vmatpush.msrb.mxu0 %v5794_v46  ;;  %v5795_v46 = vld [vmem:[%s11159_s10 + $0x28] sm:$0xff] }
0x2c77   :  { %5947 = vmatpush.msrb.mxu1 %v5881_v56  ;;  %v5791_v56 = vld [vmem:[%s11159_s10 + $0x8] sm:$0xff] }
0x2c78   :  { %5941 = vmatpush.msrb.mxu0 %v5791_v56  ;;  %v6015_v56 = vld [vmem:[#allocation12 + $0x48] sm:$0xff] }
0x2c79   :  { %5948 = vmatpush.msrb.mxu1 %v5878_v6  ;;  %v6051_v6 = vld [vmem:[#allocation12 + $0x168] sm:$0xff] }
0x2c7a   :  { %6054 = vmatpush.msra.mxu0 %v6051_v6  ;;  %v5849_v6 = vld [vmem:[%s11159_s10 + $0x1d8] sm:$0xff] }
0x2c7b   :  { %5949 = vmatpush.msrb.mxu1 %v5875_v53  ;;  %v6048_v53 = vld [vmem:[#allocation12 + $0x150] sm:$0xff] }
0x2c7c   :  { %6055 = vmatpush.msra.mxu0 %v6048_v53  ;;  %v6009_v53 = vld [vmem:[#allocation12 + $0x18] sm:$0xff] }
0x2c7d   :  { %5950 = vmatpush.msrb.mxu1 %v5872_v29  ;;  %v6045_v29 = vld [vmem:[#allocation12 + $0x138] sm:$0xff] }
0x2c7e   :  { %6056 = vmatpush.msra.mxu0 %v6045_v29  ;;  %v6006_v29 = vld [vmem:[#allocation12] sm:$0xff] }
0x2c7f   :  { %5951 = vmatpush.msrb.mxu1 %v5869_v34  ;;  %v6042_v34 = vld [vmem:[#allocation12 + $0x120] sm:$0xff] }
0x2c80   :  { %6057 = vmatpush.msra.mxu0 %v6042_v34  ;;  %v6007_v34 = vld [vmem:[#allocation12 + $0x8] sm:$0xff] }
0x2c81   :  { %5952 = vmatpush.msrb.mxu1 %v5866_v60  ;;  %v6039_v60 = vld [vmem:[#allocation12 + $0x108] sm:$0xff] }
0x2c82   :  { %6058 = vmatpush.msra.mxu0 %v6039_v60  ;;  %v6032_v60 = vld [vmem:[#allocation12 + $0xd0] sm:$0xff] }
0x2c83   :  { %5953 = vmatpush.msrb.mxu1 %v5863_v39  ;;  %v6036_v39 = vld [vmem:[#allocation12 + $0xf0] sm:$0xff] }
0x2c84   :  { %6059 = vmatpush.msra.mxu0 %v6036_v39  ;;  %v6020_v39 = vld [vmem:[#allocation12 + $0x70] sm:$0xff] }
0x2c85   :  { %5954 = vmatpush.msrb.mxu1 %v5860_v13  ;;  %v6033_v13 = vld [vmem:[#allocation12 + $0xd8] sm:$0xff] }
0x2c86   :  { %6060 = vmatpush.msra.mxu0 %v6033_v13  ;;  %v6008_v13 = vld [vmem:[#allocation12 + $0x10] sm:$0xff] }
0x2c87   :  { %5955 = vmatpush.msrb.mxu1 %v5857_v10  ;;  %v6030_v10 = vld [vmem:[#allocation12 + $0xc0] sm:$0xff] }
0x2c88   :  { %6061 = vmatpush.msra.mxu0 %v6030_v10  ;;  %v6175_v10 = vld [vmem:[%s11163_s14 + $0x70] sm:$0xff] }
0x2c89   :  { %5956 = vmatpush.msrb.mxu1 %v5854_v50  ;;  %v5804_v50 = vld [vmem:[%s11159_s10 + $0x70] sm:$0xff] }
0x2c8b   :  { %5957 = vmatpush.msrb.mxu1 %v5851_v9  ;;  %v5861_v9 = vld [vmem:[%s11159_s10 + $0x238] sm:$0xff] }
0x2c8d   :  { %5958 = vmatpush.msrb.mxu1 %v5848_v33  ;;  %v5858_v33 = vld [vmem:[%s11159_s10 + $0x220] sm:$0xff] }
0x2c8f   :  { %5959 = vmatpush.msrb.mxu1 %v5845_v11  ;;  %v5855_v11 = vld [vmem:[%s11159_s10 + $0x208] sm:$0xff] }
0x2c91   :  { %5960 = vmatpush.msrb.mxu1 %v5842_v38  ;;  %v6019_v38 = vld [vmem:[#allocation12 + $0x68] sm:$0xff] }
0x2c93   :  { %5961 = vmatpush.msrb.mxu1 %v5839_v21  ;;  %v6016_v21 = vld [vmem:[#allocation12 + $0x50] sm:$0xff] }
0x2cdd   :  { %v5740_v24 = vpop.xlane.xlu0 %5739 }
0x2cde   :  { %v5741_v45 = vsub.f32 %v5737_v55, %v5740_v24  ;;  %v5808_v55 = vld [vmem:[%s11159_s10 + $0x90] sm:$0xff] }
0x2cdf   :  { %5895 = vmatpush.msra.mxu2 %v5808_v55  ;;  %v6040_v55 = vld [vmem:[#allocation12 + $0x110] sm:$0xff] }
0x2ce0   :  { %v5742_v57 = vmul.f32 1.442695, %v5741_v45  ;;  %v5799_v45 = vld [vmem:[%s11159_s10 + $0x48] sm:$0xff] }
0x2ce1   :  { %5896 = vmatpush.msra.mxu2 %v5805_v1  ;;  %v6037_v1 = vld [vmem:[#allocation12 + $0xf8] sm:$0xff] }
0x2ce2   :  { %6599 = vpow2.f32 %v5742_v57  ;;  %v5850_v57 = vld [vmem:[%s11159_s10 + $0x1e0] sm:$0xff] }
0x2ce3   :  { %5897 = vmatpush.msra.mxu2 %v5802_v20  ;;  %5917 = vmatpush.msra.mxu3 %v5850_v57  ;;  %v6034_v20 = vld [vmem:[#allocation12 + $0xe0] sm:$0xff]  ;;  %v6031_v57 = vld [vmem:[#allocation12 + $0xc8] sm:$0xff] }
0x2ce5   :  { %5898 = vmatpush.msra.mxu2 %v5799_v45  ;;  %5918 = vmatpush.msra.mxu3 %v5847_v28  ;;  %v6027_v45 = vld [vmem:[#allocation12 + $0xa8] sm:$0xff]  ;;  %v6028_v28 = vld [vmem:[#allocation12 + $0xb0] sm:$0xff] }
0x2ce6   :  { %6062 = vmatpush.msra.mxu0 %v6027_v45  ;;  %v6171_v45 = vld [vmem:[%s11163_s14 + $0x50] sm:$0xff] }
0x2ce7   :  { %5899 = vmatpush.msra.mxu2 %v5796_v19  ;;  %5919 = vmatpush.msra.mxu3 %v5844_v22  ;;  %v6024_v19 = vld [vmem:[#allocation12 + $0x90] sm:$0xff]  ;;  %v6025_v22 = vld [vmem:[#allocation12 + $0x98] sm:$0xff] }
0x2ce8   :  { %v10739_v36 = vpop.eup %6599  ;;  %6063 = vmatpush.msra.mxu0 %v6024_v19 }
0x2ce9   :  { %5744 = vadd.xlane.f32.xlu0 %v10739_v36  ;;  %5900 = vmatpush.msra.mxu2 %v5793_v18  ;;  %v6021_v18 = vld [vmem:[#allocation12 + $0x78] sm:$0xff] }
0x2cea   :  { %5920 = vmatpush.msra.mxu3 %v5841_v48  ;;  %6064 = vmatpush.msra.mxu0 %v6021_v18  ;;  %v6022_v48 = vld [vmem:[#allocation12 + $0x80] sm:$0xff] }
0x2ceb   :  { %5901 = vmatpush.msra.mxu2 %v5790_v47  ;;  %v6018_v47 = vld [vmem:[#allocation12 + $0x60] sm:$0xff] }
0x2cec   :  { %6065 = vmatpush.msra.mxu0 %v6018_v47 }
0x2ced   :  { %5966 = vmatpush.msrb.mxu2 %v5837_v14  ;;  %v5792_v14 = vld [vmem:[%s11159_s10 + $0x10] sm:$0xff] }
0x2cee   :  { %6066 = vmatpush.msra.mxu0 %v6015_v56  ;;  %v6163_v56 = vld [vmem:[%s11163_s14 + $0x10] sm:$0xff] }
0x2cef   :  { %5967 = vmatpush.msrb.mxu2 %v5834_v2  ;;  %v6053_v2 = vld [vmem:[#allocation12 + $0x178] sm:$0xff] }
0x2cf1   :  { %5968 = vmatpush.msrb.mxu2 %v5831_v43  ;;  %v6050_v43 = vld [vmem:[#allocation12 + $0x160] sm:$0xff] }
0x2cf3   :  { %5969 = vmatpush.msrb.mxu2 %v5828_v15  ;;  %v6047_v15 = vld [vmem:[#allocation12 + $0x148] sm:$0xff] }
0x2cf5   :  { %5970 = vmatpush.msrb.mxu2 %v5825_v41  ;;  %v6044_v41 = vld [vmem:[#allocation12 + $0x130] sm:$0xff] }
0x2cf7   :  { %5971 = vmatpush.msrb.mxu2 %v5822_v54  ;;  %v6038_v54 = vld [vmem:[#allocation12 + $0x100] sm:$0xff] }
0x2cf9   :  { %5972 = vmatpush.msrb.mxu2 %v5819_v52  ;;  %v6026_v52 = vld [vmem:[#allocation12 + $0xa0] sm:$0xff] }
0x2cfb   :  { %5973 = vmatpush.msrb.mxu2 %v5816_v59  ;;  %v6014_v59 = vld [vmem:[#allocation12 + $0x40] sm:$0xff] }
0x2cfd   :  { %5974 = vmatpush.msrb.mxu2 %v5813_v3  ;;  %v6176_v3 = vld [vmem:[%s11163_s14 + $0x78] sm:$0xff] }
0x2cff   :  { %5975 = vmatpush.msrb.mxu2 %v5810_v32  ;;  %v6173_v32 = vld [vmem:[%s11163_s14 + $0x60] sm:$0xff] }
0x2d01   :  { %5976 = vmatpush.msrb.mxu2 %v5807_v61  ;;  %v6172_v61 = vld [vmem:[%s11163_s14 + $0x58] sm:$0xff] }
0x2d03   :  { %5977 = vmatpush.msrb.mxu2 %v5804_v50 }
0x2d05   :  { %5978 = vmatpush.msrb.mxu2 %v5801_v37 }
0x2d07   :  { %5979 = vmatpush.msrb.mxu2 %v5798_v31  ;;  %v6169_v31 = vld [vmem:[%s11163_s14 + $0x40] sm:$0xff] }
0x2d09   :  { %5980 = vmatpush.msrb.mxu2 %v5795_v46 }
0x2d0b   :  { %5981 = vmatpush.msrb.mxu2 %v5792_v14  ;;  %v6165_v14 = vld [vmem:[%s11163_s14 + $0x20] sm:$0xff] }
0x2d5c   :  { %v5745_v24 = vpop.xlane.xlu0 %5744 }
0x2d5d   :  { %6601 = vrcp.f32 %v5745_v24  ;;  %v5864_v24 = vld [vmem:[%s11159_s10 + $0x250] sm:$0xff] }
0x2d63   :  { %v6602_v8 = vpop.eup %6601 }
0x2d64   :  { %v5747_v42 = vmul.f32 %v6602_v8, %v10739_v36  ;;  %v5838_v36 = vld [vmem:[%s11159_s10 + $0x180] sm:$0xff] }
0x2d65   :  { %5921 = vmatpush.msra.mxu3 %v5838_v36  ;;  %v5702_v8 = vld [vmem:[#allocation6] sm:$0xff]  ;;  %v6012_v36 = vld [vmem:[#allocation12 + $0x30] sm:$0xff] }
0x2d66   :  { %5749 = vst [vmem:[#allocation15 + $0x38] sm:$0xff] %v5747_v42  ;;  %5782 = vmatmul.f32.vlgmr.msra.gmra.mxu1 %v5747_v42  ;;  %5902 = vmatmul.f32.vlgmr.msra.gmra.mxu2 %v5702_v8  ;;  %v5852_v42 = vld [vmem:[%s11159_s10 + $0x1f0] sm:$0xff] }
0x2d67   :  { %5986 = vmatpush.msrb.mxu3 %v5885_v27  ;;  %6074 = vmatpush.msra.mxu1 %v6052_v51  ;;  %v5846_v27 = vld [vmem:[%s11159_s10 + $0x1c0] sm:$0xff] }
0x2d68   :  { %5942 = vmatmul.f32.vlgmr.msrb.gmra.mxu0 %v5702_v8  ;;  %6094 = vmatpush.msra.mxu2 %v6053_v2  ;;  %v6013_v51 = vld [vmem:[#allocation12 + $0x38] sm:$0xff] }
0x2d69   :  { %5987 = vmatpush.msrb.mxu3 %v5882_v12  ;;  %6075 = vmatpush.msra.mxu1 %v6049_v5  ;;  %v5843_v12 = vld [vmem:[%s11159_s10 + $0x1a8] sm:$0xff] }
0x2d6a   :  { %6067 = vmatpush.msra.mxu0 %v6012_v36  ;;  %6095 = vmatpush.msra.mxu2 %v6050_v43  ;;  %v6010_v5 = vld [vmem:[#allocation12 + $0x20] sm:$0xff] }
0x2d6b   :  { %5988 = vmatpush.msrb.mxu3 %v5879_v16  ;;  %6076 = vmatpush.msra.mxu1 %v6046_v0  ;;  %v5840_v16 = vld [vmem:[%s11159_s10 + $0x190] sm:$0xff]  ;;  %v6041_v0 = vld [vmem:[#allocation12 + $0x118] sm:$0xff] }
0x2d6c   :  { %6068 = vmatpush.msra.mxu0 %v6009_v53  ;;  %6096 = vmatpush.msra.mxu2 %v6047_v15 }
0x2d6d   :  { %5989 = vmatpush.msrb.mxu3 %v5876_v35  ;;  %6077 = vmatpush.msra.mxu1 %v6043_v49  ;;  %v6035_v35 = vld [vmem:[#allocation12 + $0xe8] sm:$0xff]  ;;  %v6029_v49 = vld [vmem:[#allocation12 + $0xb8] sm:$0xff] }
0x2d6e   :  { %6069 = vmatpush.msra.mxu0 %v6006_v29  ;;  %6097 = vmatpush.msra.mxu2 %v6044_v41 }
0x2d6f   :  { %5990 = vmatpush.msrb.mxu3 %v5873_v7  ;;  %6078 = vmatpush.msra.mxu1 %v6040_v55  ;;  %v6023_v7 = vld [vmem:[#allocation12 + $0x88] sm:$0xff]  ;;  %v6017_v55 = vld [vmem:[#allocation12 + $0x58] sm:$0xff] }
0x2d70   :  { %5982 = vmatmul.f32.vlgmr.msrb.gmra.mxu2 %v5702_v8  ;;  %6070 = vmatmul.f32.vlgmr.msra.gmra.mxu0 %v10680_v63  ;;  %v6166_v8 = vld [vmem:[%s11163_s14 + $0x28] sm:$0xff] }
0x2d71   :  { %5991 = vmatpush.msrb.mxu3 %v5870_v25  ;;  %6079 = vmatpush.msra.mxu1 %v6037_v1  ;;  %v6011_v25 = vld [vmem:[#allocation12 + $0x28] sm:$0xff] }
0x2d72   :  { %6098 = vmatpush.msra.mxu2 %v6041_v0 }
0x2d73   :  { %5992 = vmatpush.msrb.mxu3 %v5867_v40  ;;  %6080 = vmatpush.msra.mxu1 %v6034_v20  ;;  %v6174_v20 = vld [vmem:[%s11163_s14 + $0x68] sm:$0xff] }
0x2d74   :  { %6099 = vmatpush.msra.mxu2 %v6038_v54 }
0x2d75   :  { %5993 = vmatpush.msrb.mxu3 %v5864_v24  ;;  %6081 = vmatpush.msra.mxu1 %v6031_v57  ;;  %v6170_v57 = vld [vmem:[%s11163_s14 + $0x48] sm:$0xff] }
0x2d76   :  { %6100 = vmatpush.msra.mxu2 %v6035_v35 }
0x2d77   :  { %5994 = vmatpush.msrb.mxu3 %v5861_v9  ;;  %6082 = vmatpush.msra.mxu1 %v6028_v28 }
0x2d78   :  { %6101 = vmatpush.msra.mxu2 %v6032_v60 }
0x2d79   :  { %5995 = vmatpush.msrb.mxu3 %v5858_v33  ;;  %6083 = vmatpush.msra.mxu1 %v6025_v22  ;;  %v6168_v22 = vld [vmem:[%s11163_s14 + $0x38] sm:$0xff] }
0x2d7a   :  { %6102 = vmatpush.msra.mxu2 %v6029_v49 }
0x2d7b   :  { %5996 = vmatpush.msrb.mxu3 %v5855_v11  ;;  %6084 = vmatpush.msra.mxu1 %v6022_v48 }
0x2d7c   :  { %6103 = vmatpush.msra.mxu2 %v6026_v52 }
0x2d7d   :  { %5997 = vmatpush.msrb.mxu3 %v5852_v42  ;;  %6085 = vmatpush.msra.mxu1 %v6019_v38  ;;  %v6162_v38 = vld [vmem:[%s11163_s14 + $0x8] sm:$0xff] }
0x2d7e   :  { %6104 = vmatpush.msra.mxu2 %v6023_v7 }
0x2d7f   :  { %5998 = vmatpush.msrb.mxu3 %v5849_v6  ;;  %6086 = vmatpush.msra.mxu1 %v6016_v21  ;;  %v6161_v6 = vld [vmem:[%s11163_s14] sm:$0xff] }
0x2d80   :  { %6105 = vmatpush.msra.mxu2 %v6020_v39 }
0x2d81   :  { %5999 = vmatpush.msrb.mxu3 %v5846_v27  ;;  %6087 = vmatpush.msra.mxu1 %v6013_v51 }
0x2d82   :  { %6106 = vmatpush.msra.mxu2 %v6017_v55 }
0x2d83   :  { %6000 = vmatpush.msrb.mxu3 %v5843_v12  ;;  %6088 = vmatpush.msra.mxu1 %v6010_v5 }
0x2d84   :  { %6107 = vmatpush.msra.mxu2 %v6014_v59 }
0x2d85   :  { %6001 = vmatpush.msrb.mxu3 %v5840_v16  ;;  %6089 = vmatpush.msra.mxu1 %v6007_v34 }
0x2d86   :  { %6108 = vmatpush.msra.mxu2 %v6011_v25 }
0x2d88   :  { %6109 = vmatpush.msra.mxu2 %v6008_v13 }
0x2d89   :  { %6110 = vmatmul.f32.vlgmr.msra.gmra.mxu2 %v10680_v63 }
0x2de3   :  { %v5783_v1 = vpop.f32.mrf.mxu1 }
0x2de4   :  { %5922 = vmatmul.f32.vlgmr.msra.gmra.mxu3 %v5783_v1  ;;  %5962 = vmatmul.f32.vlgmr.msrb.gmra.mxu1 %v5783_v1 }
0x2de5   :  { %6177 = vmatpush.msra.mxu3 %v6176_v3  ;;  %v5943_v40 = vpop.f32.mrf.mxu0 }
0x2de6   :  { %v5944_v19 = vadd.f32 %v5943_v40, %v8192_v30 }
0x2de7   :  { %6178 = vmatpush.msra.mxu3 %v6175_v10 }
0x2de9   :  { %6179 = vmatpush.msra.mxu3 %v6174_v20  ;;  %v5903_v24 = vpop.f32.mrf.mxu2 }
0x2dea   :  { %v5904_v9 = vadd.f32 %v5903_v24, %v8155_v23 }
0x2deb   :  { %6180 = vmatpush.msra.mxu3 %v6173_v32 }
0x2dec   :  { %6002 = vmatmul.f32.vlgmr.msrb.gmra.mxu3 %v5783_v1  ;;  %6090 = vmatmul.f32.vlgmr.msra.gmra.mxu1 %v10680_v63 }
0x2ded   :  { %6181 = vmatpush.msra.mxu3 %v6172_v61  ;;  %v6071_v37 = vpop.f32.mrf.mxu0 }
0x2dee   :  { %v6072_v28 = vadd.f32 %v6071_v37, %v8167_v26  ;;  %v6167_v26 = vld [vmem:[%s11163_s14 + $0x30] sm:$0xff] }
0x2def   :  { %6182 = vmatpush.msra.mxu3 %v6171_v45 }
0x2df1   :  { %6183 = vmatpush.msra.mxu3 %v6170_v57 }
0x2df3   :  { %6184 = vmatpush.msra.mxu3 %v6169_v31  ;;  %v5983_v27 = vpop.f32.mrf.mxu2 }
0x2df4   :  { %v5984_v54 = vadd.f32 %v5983_v27, %v8214_v62 }
0x2df5   :  { %6185 = vmatpush.msra.mxu3 %v6168_v22 }
0x2df7   :  { %6186 = vmatpush.msra.mxu3 %v6167_v26 }
0x2df9   :  { %6187 = vmatpush.msra.mxu3 %v6166_v8 }
0x2dfb   :  { %6188 = vmatpush.msra.mxu3 %v6165_v14 }
0x2e0c   :  { %v6111_v5 = vpop.f32.mrf.mxu2 }
0x2e0d   :  { %v6112_v35 = vadd.f32 %v6111_v5, %v8216_v4 }
0x2e61   :  { %v5963_v50 = vpop.f32.mrf.mxu1 }
0x2e62   :  { %v5964_v11 = vadd.f32 %v5963_v50, %v5944_v19 }
0x2e67   :  { %v5923_v33 = vpop.f32.mrf.mxu3 }
0x2e68   :  { %v5924_v18 = vadd.f32 %v5923_v33, %v5904_v9 }
0x2e69   :  { %v6091_v46 = vpop.f32.mrf.mxu1 }
0x2e6a   :  { %v6114_v23 = vadd.f32 %v6072_v28, %v5924_v18  ;;  %v6092_v47 = vadd.f32 %v6091_v46, %v8197_v44  ;;  %v6164_v44 = vld [vmem:[%s11163_s14 + $0x18] sm:$0xff]  ;;  %s6394_s14 = sld [smem:[#allocation7 + $0x7]] }
0x2e6b   :  { %6189 = vmatpush.msra.mxu3 %v6164_v44 }
0x2e6c   :  { %v6392_v30 = vmul.f32 -1.442695, %v6114_v23  ;;  %v6134_v48 = vadd.f32 %v6092_v47, %v5964_v11 }
0x2e6d   :  { %6190 = vmatpush.msra.mxu3 %v6163_v56 }
0x2e6e   :  { %6603 = vpow2.f32 %v6392_v30  ;;  %v6393_v42 = vmul.f32 -1.442695, %v6134_v48 }
0x2e6f   :  { %6191 = vmatpush.msra.mxu3 %v6162_v38  ;;  %v6003_v52 = vpop.f32.mrf.mxu3 }
0x2e70   :  { %6605 = vpow2.f32 %v6393_v42  ;;  %v6004_v25 = vadd.f32 %v6003_v52, %v5984_v54  ;;  %p6395_p0 = scmp.le.s32.totalorder %s6394_s14, 0 }
0x2e71   :  { %6192 = vmatpush.msra.mxu3 %v6161_v6 }
0x2e74   :  { %v6604_v2 = vpop.eup %6603 }
0x2e75   :  { %v6118_v36 = vadd.f32 1.0, %v6604_v2 }
0x2e76   :  { %v6606_v21 = vpop.eup %6605 }
0x2e77   :  { %6607 = vrcp.f32 %v6118_v36  ;;  %v6138_v43 = vadd.f32 1.0, %v6606_v21  ;;  %v6130_v41 = vand.u32 2147483648, %v6118_v36  ;;  %v6128_v0 = vand.u32 2147483647, %v6118_v36 }
0x2e78   :  { %vm6124_vm14 = vweird.f32 %v6118_v36 }
0x2e79   :  { %6609 = vrcp.f32 %v6138_v43  ;;  %v6131_v7 = vor.u32 1.1754944e-38, %v6130_v41  ;;  %vm6129_vm0 = vcmp.eq.f32.partialorder %v6128_v0, 8.507059e+37  ;;  %v6150_v1 = vand.u32 2147483648, %v6138_v43 }
0x2e7a   :  { %vm6144_vm2 = vweird.f32 %v6138_v43  ;;  %v6148_v3 = vand.u32 2147483647, %v6138_v43 }
0x2e7b   :  { %v6151_v4 = vor.u32 1.1754944e-38, %v6150_v1 }
0x2e7c   :  { %vm6149_vm4 = vcmp.eq.f32.partialorder %v6148_v3, 8.507059e+37 }
0x2e7d   :  { %v6608_v53 = vpop.eup %6607 }
0x2e7e   :  { %v6120_v51 = vmul.f32 %v6608_v53, %v6118_v36  ;;  %vm6125_vm13 = vweird.f32 %v6608_v53 }
0x2e7f   :  { %v6610_v15 = vpop.eup %6609  ;;  %vm6126_vm15 = vmor %vm6124_vm14, %vm6125_vm13 }
0x2e80   :  { %v6140_v12 = vmul.f32 %v6610_v15, %v6138_v43  ;;  %v6121_v29 = vsub.f32 1.0, %v6120_v51  ;;  %vm6145_vm1 = vweird.f32 %v6610_v15 }
0x2e81   :  { %vm6146_vm3 = vmor %vm6144_vm2, %vm6145_vm1 }
0x2e82   :  { %v6141_v16 = vsub.f32 1.0, %v6140_v12  ;;  %v6122_v34 = vmul.f32 %v6608_v53, %v6121_v29 }
0x2e84   :  { %v6123_v60 = vadd.f32 %v6608_v53, %v6122_v34  ;;  %v6142_v49 = vmul.f32 %v6610_v15, %v6141_v16 }
0x2e86   :  { %v6127_v39 = vsel %vm6126_vm15, %v6608_v53, %v6123_v60  ;;  %v6143_v59 = vadd.f32 %v6610_v15, %v6142_v49 }
0x2e87   :  { %v6132_v55 = vsel %vm6129_vm0, %v6131_v7, %v6127_v39 }
0x2e88   :  { %v6154_v13 = vmul.f32 %v6132_v55, %v6112_v35  ;;  %v6147_v62 = vsel %vm6146_vm3, %v6610_v15, %v6143_v59 }
0x2e89   :  { %v6152_v10 = vsel %vm6149_vm4, %v6151_v4, %v6147_v62 }
0x2e8a   :  { %v6155_v40 = vadd.f32 %v6154_v13, %v6004_v25  ;;  %v6157_v20 = vsub.f32 1.0, %v6152_v10  ;;  %v6159_v50 = vmul.f32 %v6152_v10, %v10680_v63 }
0x2e8c   :  { %6611 = vtanh.f32 %v6155_v40 }
0x2e92   :  { %v6612_v32 = vpop.eup %6611 }
0x2e93   :  { %v6158_v61 = vmul.f32 %v6612_v32, %v6157_v20 }
0x2e95   :  { %v6160_v24 = vadd.f32 %v6159_v50, %v6158_v61 }
0x2e97   :  { %6193 = vmatmul.f32.vlgmr.msra.gmra.mxu3 %v6160_v24 }
0x2f19   :  { %6203 = sbr.rel (%p6395_p0) target bundleno = 12064 (0x2f20), region = 137 }
0x2f1a   :  { %v6194_v45 = vpop.f32.mrf.mxu3 }
0x2f1b   :  { %v6195_v57 = vadd.f32 %v8227_v17, %v6194_v45 }
0x2f1d   :  { %6198 = vst [vmem:[#allocation14 + $0x38] sm:$0xff] %v6195_v57 }
0x2f1e   :  { %v6396_v37 = vld [vmem:[%s11151_s2 + $0x38] sm:$0xff] }
0x2f1f   :  { %6206 = vst [vmem:[#allocation6] sm:$0xff] %v6396_v37 }
0x2f20 PF:  { %s6397_s5 = sld [smem:[#allocation7 + $0x7]] }
0x2f26   :  { %p6398_p1 = scmp.ne.s32.totalorder %s6397_s5, 0 }
0x2f28   :  { %6211 = sbr.rel (%p6398_p1) target bundleno = 12565 (0x3115), region = 141 }
0x2f2d   :  { %6212 = vmax.xlane.f32.xlu0 %v6195_v57  ;;  %v6248_v17 = vld [vmem:[%s11158_s9 + $0x78] sm:$0xff]  ;;  %v6247_v31 = vld [vmem:[%s11158_s9 + $0x70] sm:$0xff]  ;;  %v6246_v33 = vld [vmem:[%s11158_s9 + $0x68] sm:$0xff]  ;;  %v6744_v51 = vmov 1.0  }
0x2f2e   :  { %6249 = vmatpush.msra.mxu0 %v6248_v17  ;;  %v6245_v18 = vld [vmem:[%s11158_s9 + $0x60] sm:$0xff]  ;;  %v6244_v22 = vld [vmem:[%s11158_s9 + $0x58] sm:$0xff]  ;;  %v6243_v46 = vld [vmem:[%s11158_s9 + $0x50] sm:$0xff] }
0x2f2f   :  { %v6242_v11 = vld [vmem:[%s11158_s9 + $0x48] sm:$0xff]  ;;  %v6241_v23 = vld [vmem:[%s11158_s9 + $0x40] sm:$0xff]  ;;  %v6240_v47 = vld [vmem:[%s11158_s9 + $0x38] sm:$0xff] }
0x2f30   :  { %6250 = vmatpush.msra.mxu0 %v6247_v31  ;;  %v6239_v26 = vld [vmem:[%s11158_s9 + $0x30] sm:$0xff]  ;;  %v6238_v30 = vld [vmem:[%s11158_s9 + $0x28] sm:$0xff]  ;;  %v6237_v48 = vld [vmem:[%s11158_s9 + $0x20] sm:$0xff] }
0x2f31   :  { %v6236_v8 = vld [vmem:[%s11158_s9 + $0x18] sm:$0xff]  ;;  %v6235_v38 = vld [vmem:[%s11158_s9 + $0x10] sm:$0xff]  ;;  %v6234_v2 = vld [vmem:[%s11158_s9 + $0x8] sm:$0xff] }
0x2f32   :  { %6251 = vmatpush.msra.mxu0 %v6246_v33  ;;  %v6233_v6 = vld [vmem:[%s11158_s9] sm:$0xff] }
0x2f34   :  { %6252 = vmatpush.msra.mxu0 %v6245_v18 }
0x2f36   :  { %6253 = vmatpush.msra.mxu0 %v6244_v22 }
0x2f38   :  { %6254 = vmatpush.msra.mxu0 %v6243_v46 }
0x2f3a   :  { %6255 = vmatpush.msra.mxu0 %v6242_v11 }
0x2f3c   :  { %6256 = vmatpush.msra.mxu0 %v6241_v23 }
0x2f3e   :  { %6257 = vmatpush.msra.mxu0 %v6240_v47 }
0x2f40   :  { %6258 = vmatpush.msra.mxu0 %v6239_v26 }
0x2f42   :  { %6259 = vmatpush.msra.mxu0 %v6238_v30 }
0x2f44   :  { %6260 = vmatpush.msra.mxu0 %v6237_v48 }
0x2f46   :  { %6261 = vmatpush.msra.mxu0 %v6236_v8 }
0x2f48   :  { %6262 = vmatpush.msra.mxu0 %v6235_v38 }
0x2f4a   :  { %6263 = vmatpush.msra.mxu0 %v6234_v2 }
0x2f4c   :  { %6264 = vmatpush.msra.mxu0 %v6233_v6 }
0x2fa0   :  { %v6213_v63 = vpop.xlane.xlu0 %6212 }
0x2fa1   :  { %vm6214_vm5 = vcmp.ge.f32.partialorder %v6195_v57, %v6213_v63 }
0x2fa2   :  { %v6215_v9 = vsel %vm6214_vm5, %v7935_v58, 128 }
0x2fa3   :  { %v6217_v19 = vshra.s32 %v6215_v9, 16  ;;  %v6216_v14 = vand.u32 65535, %v6215_v9 }
0x2fa5   :  { %v6219_v28 = vcvt.s32.f32 %v6217_v19  ;;  %v6218_v44 = vcvt.s32.f32 %v6216_v14 }
0x2fa7   :  { %6220 = vmin.xlane.f32.xlu0 %v6219_v28 }
0x301a   :  { %v6221_v42 = vpop.xlane.xlu0 %6220 }
0x301b   :  { %vm6222_vm6 = vcmp.eq.f32.partialorder %v6219_v28, %v6221_v42  ;;  %v6227_v36 = vcvt.f32.s32 %v6221_v42 }
0x301c   :  { %v6223_v56 = vsel %vm6222_vm6, %v6218_v44, inf }
0x301d   :  { %6224 = vmin.xlane.f32.xlu1 %v6223_v56  ;;  %v6228_v43 = vshll.u32 %v6227_v36, 16 }
0x3090   :  { %v6225_v21 = vpop.xlane.xlu1 %6224 }
0x3091   :  { %v6226_v27 = vcvt.f32.s32 %v6225_v21 }
0x3093   :  { %v6229_v53 = vadd.s32 %v6228_v43, %v6226_v27 }
0x3095   :  { %vm6230_vm7 = vcmp.eq.s32.totalorder %v7935_v58, %v6229_v53 }
0x3096   :  { %6400 = vmatmul.msk.f32.vlgmr.msra.gmra.mxu0 %vm6230_vm7, %v6744_v51 }
0x3113   :  { %v6266_v15 = vpop.f32.mrf.mxu0 }
0x3114   :  { %6269 = vst [vmem:[#allocation6] sm:$0xff] %v6266_v15 }
0x3115 PF:  { %s6276_s23 = sshll.u32 %s11165_s16, 4  ;;  %s6745_s13 = smov [#allocation14]   ;;  %s6277_s23 = int_to_ptr.hbm [resolvable:$true] %s6276_s23 }
0x3116   :  { %s6274_s24 = sshll.u32 %s6745_s13, 4  ;;  %s6746_s9 = smov 128   ;;  %s6275_s24 = int_to_ptr.vmem [resolvable:$true] %s6274_s24 }
0x3117   :  { %s6747_s15 = smov 8   ;;  %s6748_s7 = smov [#allocation15]  }
0x3118   :  { %6282 = dma.vmem_to_hbm [thread:$0]  %s6275_s24, 1024, %s6277_s23, [#allocation9], %s6746_s9, %s6746_s9, %s6747_s15  }
0x3119   :  { %s6287_s8 = sshll.u32 %s6748_s7, 4  ;;  %s6289_s6 = sshll.u32 %s11166_s17, 4  ;;  %s6288_s8 = int_to_ptr.vmem [resolvable:$true] %s6287_s8  ;;  %s6290_s6 = int_to_ptr.hbm [resolvable:$true] %s6289_s6 }
0x311a   :  { %6295 = dma.vmem_to_hbm [thread:$0]  %s6288_s8, 1024, %s6290_s6, [#allocation16], %s6746_s9, %s6746_s9, %s6747_s15  }
0x311b   :  { %6727 = dma.done.wait [#allocation9], 1024  }
0x311c   :  { %6728 = vsyncadd [#allocation9], 4294966272 }
0x311d   :  { %6729 = dma.done.wait [#allocation16], 1024  }
0x311e   :  { %6730 = vsyncadd [#allocation16], 4294966272 }
0x311f   :  { %6304 = vsyncpa [#allocation8], 1 }
0x3120   :  { %6305 = vsyncpa [#allocation13], 1 }
0x3121   :  { %6306 = vsyncpa [#allocation9], 1 }
0x3122   :  { %6307 = vsyncpa [#allocation16], 1 }
0x3123   :  { %6308 = vsyncpa [#allocation10], 1 }

</bundles_post_ra>
